<compile_context>
chip_gen: v7x
topology: tpu7x:2x2x1
jax: 0.10.0
libtpu: 0.0.40
codegen_flags: <defaults>
</compile_context>

<pallas_src>
import math

import jax
import jax.numpy as jnp
from jax import lax
from jax.experimental import pallas as pl
from jax.experimental.pallas import tpu as pltpu

_LANE = 128
_TARGET_BLOCK_BYTES = 4 * 1024 * 1024        # ~4 MiB input blocks for the reductions


# --------------------------------------------------------------------------- #
# Generic grouped sum-reduction kernel (bpp terms, per-image SSE for PSNR)
# --------------------------------------------------------------------------- #

def _make_reduce_kernel(op, n_rows, n_cols, blk_rows, n_blocks):
    """Per-(group, row-block) partial sums accumulated into the (1, 8, n_cols)
    output block, which is revisited across the row-block grid axis."""
    exact = (blk_rows * n_blocks == n_rows)     # no ragged tail block
    vreg_path = (blk_rows % 8 == 0)

    def kernel(*refs):
        if op == 'sqdiff':
            a_ref, b_ref, out_ref = refs
        else:
            a_ref, out_ref = refs
        j = pl.program_id(1)

        @pl.when(j == 0)
        def _():
            out_ref[...] = jnp.zeros_like(out_ref)

        a = a_ref[0].astype(jnp.float32)                      # (blk_rows, n_cols)
        if op == 'log':
            vals = jnp.log(a)
        elif op == 'sqdiff':
            d = a - b_ref[0].astype(jnp.float32)
            vals = d * d
        else:                                                 # 'sum'
            vals = a

        def _accumulate(v):
            if vreg_path:
                # (blk/8, 8, cols) reshape is layout-free; sum(axis=0) is pure VALU
                # vreg adds.  Only one (8, cols) read-modify-write of the output block.
                out_ref[0] += v.reshape(blk_rows // 8, 8, n_cols).sum(axis=0)
            else:
                # Tiny single-block case (rows not a multiple of 8).
                out_ref[0, 0:1, :] += jnp.sum(v, axis=0, keepdims=True)

        if exact:
            _accumulate(vals)
        else:
            # Only the final row-block is ragged; interior blocks take the unmasked
            # path (scalar-gated), so the iota/compare/select costs nothing steady-state.
            tail = j == n_blocks - 1

            @pl.when(jnp.logical_not(tail))
            def _():
                _accumulate(vals)

            @pl.when(tail)
            def _():
                row = lax.broadcasted_iota(jnp.int32, vals.shape, 0)
                _accumulate(jnp.where(j * blk_rows + row < n_rows, vals, 0.0))

    return kernel


def _as_slab3(x, groups):
    """Free (collapse/split only) reshape to (groups, rows, cols), lane-dense when possible."""
    x = jnp.asarray(x)
    total = int(x.size)
    per = total // max(groups, 1)
    if per % _LANE == 0:
        return x.reshape(groups, per // _LANE, _LANE)
    last = int(x.shape[-1]) if x.ndim else 1
    if last <= 0 or per % last != 0:
        last = 1
    return x.reshape(groups, per // last, last)


def _pick_block_rows(rows, cols):
    blk = _TARGET_BLOCK_BYTES // (max(cols, 1) * 4)
    blk = max(8, (blk // 8) * 8)
    return rows if rows <= blk else blk


def _reduce_sums(op, a, b=None, groups=1, block_rows=None):
    """Per-group sums of log(a) / a / (a-b)^2 over a tensor, one Pallas launch.

    No concatenate / pad staging copies: the operand is only re-viewed via free
    reshapes.  Returns a (groups,) float32 vector of sums.
    """
    slab_a = _as_slab3(a, groups)
    g_dim, rows, cols = slab_a.shape
    if block_rows is None:
        blk = _pick_block_rows(rows, cols)
    else:
        blk = min(int(block_rows), rows)
        if blk < rows:
            blk = max(8, (blk // 8) * 8)
    n_blocks = -(-rows // blk)

    operands = [slab_a]
    in_specs = [pl.BlockSpec((1, blk, cols), lambda g, j: (g, j, 0))]
    if op == 'sqdiff':
        operands.append(_as_slab3(b, groups))
        in_specs.append(pl.BlockSpec((1, blk, cols), lambda g, j: (g, j, 0)))

    itemsize = jnp.dtype(slab_a.dtype).itemsize
    vmem_bytes = len(operands) * 2 * blk * cols * itemsize + (4 << 20)
    vmem_bytes = int(min(max(vmem_bytes, 16 << 20), 48 << 20))

    out = pl.pallas_call(
        _make_reduce_kernel(op, rows, cols, blk, n_blocks),
        out_shape=jax.ShapeDtypeStruct((g_dim, 8, cols), jnp.float32),
        grid_spec=pltpu.PrefetchScalarGridSpec(
            num_scalar_prefetch=0,
            grid=(g_dim, n_blocks),
            in_specs=in_specs,
            out_specs=pl.BlockSpec((1, 8, cols), lambda g, j: (g, 0, 0)),
        ),
        compiler_params=pltpu.CompilerParams(
            dimension_semantics=("parallel", "arbitrary"),
            vmem_limit_bytes=vmem_bytes),
    )(*operands)
    # Tiny (groups * 8 * cols) final reduce in plain XLA.
    return jnp.sum(out, axis=(1, 2))


def tensor_sum_log(t):
    return _reduce_sums('log', t)[0]


def tensor_sum(t):
    return _reduce_sums('sum', t)[0]


def _collect_tensors(likelihoods, out_list):
    if isinstance(likelihoods, jax.Array):
        out_list.append(likelihoods)
    elif isinstance(likelihoods, (list, tuple)):
        for item in likelihoods:
            _collect_tensors(item, out_list)
    elif isinstance(likelihoods, dict):
        for item in likelihoods.values():
            _collect_tensors(item, out_list)
    # anything else contributes 0 (matches torch.tensor(0.0) in the reference)


def recursive_likelihoods_sum(likelihoods, num_pixels):
    """sum(log(likelihoods)) / (-log(2) * num_pixels) over a pytree."""
    tensors = []
    _collect_tensors(likelihoods, tensors)
    if not tensors:
        return jnp.float32(0.0)
    total = jnp.float32(0.0)
    for t in tensors:          # one launch per tensor; avoids HBM staging concat
        total = total + tensor_sum_log(t)
    return total / (-math.log(2.0) * num_pixels)


def psnr(x, y, data_range=1.0):
    """Per-image PSNR averaged over the batch (piq.psnr defaults)."""
    x = x.astype(jnp.float32)
    y = y.astype(jnp.float32)
    if float(data_range) != 1.0:
        x = x / float(data_range)
        y = y / float(data_range)
    n = x.shape[0]
    per_image = int(x.size) // n
    sse = _reduce_sums('sqdiff', x, b=y, groups=n)
    mse = sse / float(per_image)
    return jnp.mean(-10.0 * jnp.log10(mse + 1e-8))


# --------------------------------------------------------------------------- #
# Multi-scale SSIM (piq.multi_scale_ssim defaults)
# --------------------------------------------------------------------------- #

_MS_SSIM_WEIGHTS = (0.0448, 0.2856, 0.3001, 0.2363, 0.1333)
_SSIM_KERNEL_SIZE = 11
_SSIM_SIGMA = 1.5
_SSIM_K1 = 0.01
_SSIM_K2 = 0.03
_MIN_PALLAS_HW = 64     # below this, lane utilization is terrible -> plain XLA path


def _gaussian_1d(size, sigma):
    coords = jnp.arange(size, dtype=jnp.float32) - (size - 1) / 2.0
    g = jnp.exp(-(coords ** 2) / (2.0 * sigma ** 2))
    return g / jnp.sum(g)


def _band_matrix(n_out, n_in, g):
    """M[i, j] = g[j - i] for 0 <= j - i < len(g), else 0 (valid correlation)."""
    k = g.shape[0]
    i = jnp.arange(n_out, dtype=jnp.int32)[:, None]
    j = jnp.arange(n_in, dtype=jnp.int32)[None, :]
    d = j - i
    return jnp.where((d >= 0) & (d < k),
                     g[jnp.clip(d, 0, k - 1)], 0.0).astype(jnp.float32)


def _ssim_channel_kernel(x_ref, y_ref, a_ref, b_ref, ss_ref, cs_ref):
    x = x_ref[0]            # (H, W)
    y = y_ref[0]
    a = a_ref[...]          # (Ho, H)  valid Gaussian blur along rows
    b = b_ref[...]          # (W, Wo)  valid Gaussian blur along columns
    h = x.shape[0]

    # Pass 1 (contract W): one row-stacked matmul for all five blur inputs.
    stacked = jnp.concatenate([x, y, x * x, y * y, x * y], axis=0)     # (5H, W)
    u = jnp.dot(stacked, b, preferred_element_type=jnp.float32)       # (5H, Wo)

    # Pass 2 (contract H): five sublane-aligned slices of u, shared A.
    def col_blur(k):
        return jnp.dot(a, u[k * h:(k + 1) * h, :],
                       preferred_element_type=jnp.float32)            # (Ho, Wo)

    mu_x = col_blur(0)
    mu_y = col_blur(1)
    e_xx = col_blur(2)
    e_yy = col_blur(3)
    e_xy = col_blur(4)

    mu_xx = mu_x * mu_x
    mu_yy = mu_y * mu_y
    mu_xy = mu_x * mu_y
    s_xx = e_xx - mu_xx
    s_yy = e_yy - mu_yy
    s_xy = e_xy - mu_xy

    c1 = _SSIM_K1 ** 2
    c2 = _SSIM_K2 ** 2
    cs_map = (2.0 * s_xy + c2) / (s_xx + s_yy + c2)
    ss_map = ((2.0 * mu_xy + c1) / (mu_xx + mu_yy + c1)) * cs_map

    # Row-reduced partial sums; the (Wo,) -> scalar finish happens in plain XLA.
    ss_ref[...] = jnp.sum(ss_map, axis=0).reshape(1, 1, -1)
    cs_ref[...] = jnp.sum(cs_map, axis=0).reshape(1, 1, -1)


def _ssim_per_channel_pallas(x, y, g1d):
    """Per-channel (ssim, cs) spatial means via one fused Pallas step per channel."""
    n, c, h, w = x.shape
    k = _SSIM_KERNEL_SIZE
    ho, wo = h - k + 1, w - k + 1
    a = _band_matrix(ho, h, g1d)          # (ho, h)
    b = _band_matrix(wo, w, g1d).T        # (w, wo)
    xf = x.reshape(n * c, h, w)
    yf = y.reshape(n * c, h, w)

    ss, cs = pl.pallas_call(
        _ssim_channel_kernel,
        out_shape=(jax.ShapeDtypeStruct((n * c, 1, wo), jnp.float32),
                   jax.ShapeDtypeStruct((n * c, 1, wo), jnp.float32)),
        grid_spec=pltpu.PrefetchScalarGridSpec(
            num_scalar_prefetch=0,
            grid=(n * c,),
            in_specs=[pl.BlockSpec((1, h, w), lambda i: (i, 0, 0)),
                      pl.BlockSpec((1, h, w), lambda i: (i, 0, 0)),
                      pl.BlockSpec((ho, h), lambda i: (0, 0)),
                      pl.BlockSpec((w, wo), lambda i: (0, 0))],
            out_specs=(pl.BlockSpec((1, 1, wo), lambda i: (i, 0, 0)),
                       pl.BlockSpec((1, 1, wo), lambda i: (i, 0, 0))),
        ),
        compiler_params=pltpu.CompilerParams(
            dimension_semantics=("parallel",),        # megacore-shardable on v7x
            vmem_limit_bytes=32 * 1024 * 1024),
    )(xf, yf, a, b)

    inv_hw = 1.0 / float(ho * wo)
    ss_mean = jnp.sum(ss[:, 0, :], axis=-1) * inv_hw
    cs_mean = jnp.sum(cs[:, 0, :], axis=-1) * inv_hw
    return ss_mean.reshape(n, c), cs_mean.reshape(n, c)


def _ssim_per_channel_ref(x, y, g1d):
    """Plain-XLA reference path (also used for the coarse pyramid levels)."""
    n, c, h, w = x.shape
    k = _SSIM_KERNEL_SIZE
    ho, wo = h - k + 1, w - k + 1
    a = _band_matrix(ho, h, g1d)          # (ho, h)
    bt = _band_matrix(wo, w, g1d)         # (wo, w)

    def blur(img):
        t = jnp.einsum('oh,nchw->ncow', a, img)
        return jnp.einsum('vw,ncow->ncov', bt, t)

    mu_x, mu_y = blur(x), blur(y)
    mu_xx, mu_yy, mu_xy = mu_x * mu_x, mu_y * mu_y, mu_x * mu_y
    s_xx = blur(x * x) - mu_xx
    s_yy = blur(y * y) - mu_yy
    s_xy = blur(x * y) - mu_xy
    c1 = _SSIM_K1 ** 2
    c2 = _SSIM_K2 ** 2
    cs_map = (2.0 * s_xy + c2) / (s_xx + s_yy + c2)
    ss_map = ((2.0 * mu_xy + c1) / (mu_xx + mu_yy + c1)) * cs_map
    return ss_map.mean(axis=(-2, -1)), cs_map.mean(axis=(-2, -1))


def _avg_pool_2x2(x):
    n, c, h, w = x.shape
    return x.reshape(n, c, h // 2, 2, w // 2, 2).mean(axis=(3, 5))


def multi_scale_ssim(x, y, data_range=1.0, use_pallas=True):
    """piq.multi_scale_ssim with default params and reduction='mean'."""
    x = x.astype(jnp.float32)
    y = y.astype(jnp.float32)
    if float(data_range) != 1.0:
        x = x / float(data_range)
        y = y / float(data_range)
    levels = len(_MS_SSIM_WEIGHTS)
    g1d = _gaussian_1d(_SSIM_KERNEL_SIZE, _SSIM_SIGMA)

    mcs = []
    ss = None
    for level in range(levels):
        if level > 0:
            pad = max(x.shape[2] % 2, x.shape[3] % 2)
            if pad:
                widths = ((0, 0), (0, 0), (pad, 0), (pad, 0))
                x = jnp.pad(x, widths, mode='edge')
                y = jnp.pad(y, widths, mode='edge')
            x = _avg_pool_2x2(x)
            y = _avg_pool_2x2(y)
        if use_pallas and min(x.shape[2], x.shape[3]) >= _MIN_PALLAS_HW:
            ss, cs = _ssim_per_channel_pallas(x, y, g1d)
        else:
            ss, cs = _ssim_per_channel_ref(x, y, g1d)
        mcs.append(cs)

    vals = jnp.maximum(jnp.stack(mcs[:-1] + [ss], axis=0), 0.0)       # (L, N, C)
    weights = jnp.asarray(_MS_SSIM_WEIGHTS, jnp.float32).reshape(levels, 1, 1)
    per_image = jnp.prod(vals ** weights, axis=0).mean(axis=1)        # (N,)
    return jnp.mean(per_image)


# --------------------------------------------------------------------------- #
# MS_SSIM_Loss_wo_depth forward (module port)
# --------------------------------------------------------------------------- #

class Args:
    def __init__(self, lmbda, model_name='MSFDPM'):
        self.lmbda = lmbda
        self.model_name = model_name


def ms_ssim_loss_wo_depth_forward(output, x_main, args, is_test=False,
                                  is_only_decode_test=False):
    x_main_hat = output['x_hat']
    x_main_c = jnp.clip(x_main, 0.0, 1.0)
    x_main_hat_c = jnp.clip(x_main_hat, 0.0, 1.0)
    n, _, h, w = x_main.shape
    out = {}
    num_pixels = n * h * w
    ms_val = None

    if not is_only_decode_test:
        if args.model_name != 'SASIC':
            out['bpp_img_y'] = recursive_likelihoods_sum(
                output['likelihoods']['y'], num_pixels)
            out['bpp_img_z'] = recursive_likelihoods_sum(
                output['likelihoods']['z'], num_pixels)
        else:
            # TODO(synk): SASIC branch is untested (no SASIC rate object in demo).
            rate = output['rate']
            out['bpp_img_y'] = tensor_sum(rate.y) / num_pixels
            out['bpp_img_z'] = tensor_sum(rate.z) / num_pixels
        out['bpp_loss'] = out['bpp_img_y'] + out['bpp_img_z']
        ms_val = multi_scale_ssim(x_main_hat_c, x_main_c, data_range=1.0)
        out['ms_ssim_loss_img'] = 1.0 - ms_val
        out['loss'] = args.lmbda * out['ms_ssim_loss_img'] + out['bpp_loss']

    if is_test or is_only_decode_test:
        out['psnr'] = psnr(x_main_hat_c, x_main_c, data_range=1.0)
        # Reuse the already-computed MS-SSIM in test mode (one pyramid instead of two).
        out['ms-ssim'] = ms_val if ms_val is not None else multi_scale_ssim(
            x_main_hat_c, x_main_c, data_range=1.0)
    return out


class MS_SSIM_Loss_wo_depth:
    def forward(self, output, x_main, args, is_test=False,
                is_only_decode_test=False):
        return ms_ssim_loss_wo_depth_forward(
            output, x_main, args, is_test=is_test,
            is_only_decode_test=is_only_decode_test)

    __call__ = forward


# --------------------------------------------------------------------------- #
# main
# --------------------------------------------------------------------------- #

if __name__ == "__main__":
    key = jax.random.PRNGKey(0)
    ks = jax.random.split(key, 4)

    # MS-SSIM with 5 scales and an 11-tap Gaussian requires H, W >= 161.
    N, C, H, W = 2, 3, 192, 192
    x_main = jax.random.uniform(ks[0], (N, C, H, W), jnp.float32)
    x_hat = x_main + 0.03 * jax.random.normal(ks[1], (N, C, H, W), jnp.float32)

    def lk(k, shape):   # likelihoods in (0, 1] so log is well defined
        return jax.random.uniform(k, shape, jnp.float32, minval=0.01, maxval=1.0)

    lk_y = lk(ks[2], (N, 16, H // 16, W // 16))
    lk_z = lk(ks[3], (N, 8, H // 64, W // 64))
    output = {'x_hat': x_hat, 'likelihoods': {'y': lk_y, 'z': lk_z}}
    args = Args(lmbda=8.73, model_name='MSFDPM')
    loss_fn = MS_SSIM_Loss_wo_depth()

    @jax.jit
    def run(output_, x_main_):
        return loss_fn(output_, x_main_, args, is_test=True)

    out = run(output, x_main)
    out = jax.block_until_ready(out)

    # ---------------- validation against plain-jnp references ---------------- #
    num_pixels = N * H * W
    bpp_ref = (jnp.sum(jnp.log(lk_y)) + jnp.sum(jnp.log(lk_z))) / (
        -math.log(2.0) * num_pixels)
    assert jnp.allclose(out['bpp_loss'], bpp_ref, rtol=1e-4, atol=1e-5), (
        out['bpp_loss'], bpp_ref)

    xc = jnp.clip(x_main, 0.0, 1.0)
    xh = jnp.clip(x_hat, 0.0, 1.0)
    mse_ref = jnp.mean((xh - xc) ** 2, axis=(1, 2, 3))
    psnr_ref = jnp.mean(-10.0 * jnp.log10(mse_ref + 1e-8))
    assert jnp.allclose(out['psnr'], psnr_ref, rtol=1e-4, atol=1e-4), (
        out['psnr'], psnr_ref)

    ms_ref = multi_scale_ssim(xh, xc, data_range=1.0, use_pallas=False)
    assert jnp.allclose(out['ms-ssim'], ms_ref, rtol=5e-3, atol=5e-3), (
        out['ms-ssim'], ms_ref)

    # Exercise the multi-block / ragged-tail / grouped reduction path explicitly.
    sse_small_blocks = _reduce_sums('sqdiff', xh, b=xc, groups=N, block_rows=256)
    sse_ref = jnp.sum((xh - xc) ** 2, axis=(1, 2, 3))
    assert jnp.allclose(sse_small_blocks, sse_ref, rtol=1e-4, atol=1e-4), (
        sse_small_blocks, sse_ref)

    assert jnp.isfinite(out['loss'])
    assert jnp.isfinite(out['ms-ssim'])
    assert jnp.isfinite(out['psnr'])
    print("KERNEL_OK")
</pallas_src>

<mosaic_0001>
module attributes {stable_mosaic.version = 11 : i64} {
  func.func @kernel(%arg0: i32, %arg1: i32, %arg2: memref<1x48x3xf32, #tpu.memory_space<vmem>>, %arg3: memref<1x8x3xf32, #tpu.memory_space<vmem>>) attributes {dimension_semantics = [#tpu.dimension_semantics<parallel>, #tpu.dimension_semantics<arbitrary>], iteration_bounds = array<i64: 1, 1>, scalar_prefetch = 0 : i64, scratch_operands = 0 : i64, tpu.core_type = #tpu.core_type<tc>, window_params = [{transform_indices = @transform_0, window_bounds = array<i64: 1, 48, 3>}, {transform_indices = @transform_1, window_bounds = array<i64: 1, 8, 3>}]} {
    %c0_i32 = arith.constant 0 : i32
    %0 = arith.cmpi eq, %arg1, %c0_i32 : i32
    %1 = arith.extui %0 : i1 to i32
    %c0_i32_0 = arith.constant 0 : i32
    %2 = arith.cmpi ne, %1, %c0_i32_0 : i32
    scf.if %2 {
      %cst_9 = arith.constant 0.000000e+00 : f32
      %14 = vector.broadcast %cst_9 : f32 to vector<1x8x3xf32>
      %c0_10 = arith.constant 0 : index
      %c0_11 = arith.constant 0 : index
      %c0_12 = arith.constant 0 : index
      %15 = vector.load %arg3[%c0_10, %c0_11, %c0_12] : memref<1x8x3xf32, #tpu.memory_space<vmem>>, vector<1x8x3xf32>
      tpu.vector_store %arg3[%c0_10, %c0_11, %c0_12], %14 {strides = array<i32>} : memref<1x8x3xf32, #tpu.memory_space<vmem>>, vector<1x8x3xf32>,
    } else {
    }
    %c0 = arith.constant 0 : index
    %c0_1 = arith.constant 0 : index
    %c0_2 = arith.constant 0 : index
    %3 = vector.load %arg2[%c0, %c0_1, %c0_2] : memref<1x48x3xf32, #tpu.memory_space<vmem>>, vector<1x48x3xf32>
    %4 = vector.shape_cast %3 : vector<1x48x3xf32> to vector<48x3xf32>
    %5 = math.log %4 : vector<48x3xf32>
    %c0_3 = arith.constant 0 : index
    %c0_4 = arith.constant 0 : index
    %c0_5 = arith.constant 0 : index
    %6 = vector.load %arg3[%c0_3, %c0_4, %c0_5] : memref<1x8x3xf32, #tpu.memory_space<vmem>>, vector<1x8x3xf32>
    %7 = vector.shape_cast %6 : vector<1x8x3xf32> to vector<8x3xf32>
    %8 = vector.shape_cast %5 : vector<48x3xf32> to vector<6x8x3xf32>
    %cst = arith.constant dense<0.000000e+00> : vector<8x3xf32>
    %9 = vector.multi_reduction <add>, %8, %cst [0] : vector<6x8x3xf32> to vector<8x3xf32>
    %10 = arith.addf %7, %9 : vector<8x3xf32>
    %c0_6 = arith.constant 0 : index
    %c0_7 = arith.constant 0 : index
    %c0_8 = arith.constant 0 : index
    %11 = vector.load %arg3[%c0_6, %c0_7, %c0_8] : memref<1x8x3xf32, #tpu.memory_space<vmem>>, vector<1x8x3xf32>
    %12 = vector.shape_cast %11 : vector<1x8x3xf32> to vector<8x3xf32>
    %13 = vector.shape_cast %10 : vector<8x3xf32> to vector<1x8x3xf32>
    tpu.vector_store %arg3[%c0_6, %c0_7, %c0_8], %13 {strides = array<i32>} : memref<1x8x3xf32, #tpu.memory_space<vmem>>, vector<1x8x3xf32>,
    return
  }
  func.func @transform_0(%arg0: i32, %arg1: i32) -> (i32, i32, i32) {
    %c0_i32 = arith.constant 0 : i32
    %c0_i32_0 = arith.constant 0 : i32
    return %arg0, %arg1, %c0_i32 : i32, i32, i32
  }
  func.func @transform_1(%arg0: i32, %arg1: i32) -> (i32, i32, i32) {
    %c0_i32 = arith.constant 0 : i32
    %c0_i32_0 = arith.constant 0 : i32
    %c0_i32_1 = arith.constant 0 : i32
    return %arg0, %c0_i32, %c0_i32_0 : i32, i32, i32
  }
}

module attributes {stable_mosaic.version = 11 : i64} {
  func.func @kernel(%arg0: i32, %arg1: i32, %arg2: memref<1x36x128xf32, #tpu.memory_space<vmem>>, %arg3: memref<1x8x128xf32, #tpu.memory_space<vmem>>) attributes {dimension_semantics = [#tpu.dimension_semantics<parallel>, #tpu.dimension_semantics<arbitrary>], iteration_bounds = array<i64: 1, 1>, scalar_prefetch = 0 : i64, scratch_operands = 0 : i64, tpu.core_type = #tpu.core_type<tc>, window_params = [{transform_indices = @transform_0, window_bounds = array<i64: 1, 36, 128>}, {transform_indices = @transform_1, window_bounds = array<i64: 1, 8, 128>}]} {
    %c0_i32 = arith.constant 0 : i32
    %0 = arith.cmpi eq, %arg1, %c0_i32 : i32
    %1 = arith.extui %0 : i1 to i32
    %c0_i32_0 = arith.constant 0 : i32
    %2 = arith.cmpi ne, %1, %c0_i32_0 : i32
    scf.if %2 {
      %cst_9 = arith.constant 0.000000e+00 : f32
      %14 = vector.broadcast %cst_9 : f32 to vector<1x8x128xf32>
      %c0_10 = arith.constant 0 : index
      %c0_11 = arith.constant 0 : index
      %c0_12 = arith.constant 0 : index
      %15 = vector.load %arg3[%c0_10, %c0_11, %c0_12] : memref<1x8x128xf32, #tpu.memory_space<vmem>>, vector<1x8x128xf32>
      tpu.vector_store %arg3[%c0_10, %c0_11, %c0_12], %14 {strides = array<i32>} : memref<1x8x128xf32, #tpu.memory_space<vmem>>, vector<1x8x128xf32>,
    } else {
    }
    %c0 = arith.constant 0 : index
    %c0_1 = arith.constant 0 : index
    %c0_2 = arith.constant 0 : index
    %3 = vector.load %arg2[%c0, %c0_1, %c0_2] : memref<1x36x128xf32, #tpu.memory_space<vmem>>, vector<1x36x128xf32>
    %4 = vector.shape_cast %3 : vector<1x36x128xf32> to vector<36x128xf32>
    %5 = math.log %4 : vector<36x128xf32>
    %c0_3 = arith.constant 0 : index
    %c0_4 = arith.constant 0 : index
    %c0_5 = arith.constant 0 : index
    %6 = vector.load %arg3[%c0_3, %c0_4, %c0_5] : memref<1x8x128xf32, #tpu.memory_space<vmem>>, vector<1x1x128xf32>
    %7 = vector.shape_cast %6 : vector<1x1x128xf32> to vector<1x128xf32>
    %cst = arith.constant dense<0.000000e+00> : vector<128xf32>
    %8 = vector.multi_reduction <add>, %5, %cst [0] : vector<36x128xf32> to vector<128xf32>
    %9 = vector.shape_cast %8 : vector<128xf32> to vector<1x128xf32>
    %10 = arith.addf %7, %9 : vector<1x128xf32>
    %c0_6 = arith.constant 0 : index
    %c0_7 = arith.constant 0 : index
    %c0_8 = arith.constant 0 : index
    %11 = vector.load %arg3[%c0_6, %c0_7, %c0_8] : memref<1x8x128xf32, #tpu.memory_space<vmem>>, vector<1x1x128xf32>
    %12 = vector.shape_cast %11 : vector<1x1x128xf32> to vector<1x128xf32>
    %13 = vector.shape_cast %10 : vector<1x128xf32> to vector<1x1x128xf32>
    tpu.vector_store %arg3[%c0_6, %c0_7, %c0_8], %13 {strides = array<i32>} : memref<1x8x128xf32, #tpu.memory_space<vmem>>, vector<1x1x128xf32>,
    return
  }
  func.func @transform_0(%arg0: i32, %arg1: i32) -> (i32, i32, i32) {
    %c0_i32 = arith.constant 0 : i32
    %c0_i32_0 = arith.constant 0 : i32
    return %arg0, %arg1, %c0_i32 : i32, i32, i32
  }
  func.func @transform_1(%arg0: i32, %arg1: i32) -> (i32, i32, i32) {
    %c0_i32 = arith.constant 0 : i32
    %c0_i32_0 = arith.constant 0 : i32
    %c0_i32_1 = arith.constant 0 : i32
    return %arg0, %c0_i32, %c0_i32_0 : i32, i32, i32
  }
}

module attributes {stable_mosaic.version = 11 : i64} {
  func.func @_ssim_channel_kernel(%arg0: i32, %arg1: memref<1x192x192xf32, #tpu.memory_space<vmem>>, %arg2: memref<1x192x192xf32, #tpu.memory_space<vmem>>, %arg3: memref<182x192xf32, #tpu.memory_space<vmem>>, %arg4: memref<192x182xf32, #tpu.memory_space<vmem>>, %arg5: memref<1x1x182xf32, #tpu.memory_space<vmem>>, %arg6: memref<1x1x182xf32, #tpu.memory_space<vmem>>) attributes {dimension_semantics = [#tpu.dimension_semantics<parallel>], iteration_bounds = array<i64: 6>, scalar_prefetch = 0 : i64, scratch_operands = 0 : i64, tpu.core_type = #tpu.core_type<tc>, window_params = [{transform_indices = @transform_0, window_bounds = array<i64: 1, 192, 192>}, {transform_indices = @transform_1, window_bounds = array<i64: 1, 192, 192>}, {pipeline_mode = #tpu.pipeline_mode<synchronous>, transform_indices = @transform_2, window_bounds = array<i64: 182, 192>}, {pipeline_mode = #tpu.pipeline_mode<synchronous>, transform_indices = @transform_3, window_bounds = array<i64: 192, 182>}, {transform_indices = @transform_4, window_bounds = array<i64: 1, 1, 182>}, {transform_indices = @transform_5, window_bounds = array<i64: 1, 1, 182>}]} {
    %c0 = arith.constant 0 : index
    %c0_0 = arith.constant 0 : index
    %c0_1 = arith.constant 0 : index
    %0 = vector.load %arg1[%c0, %c0_0, %c0_1] : memref<1x192x192xf32, #tpu.memory_space<vmem>>, vector<1x192x192xf32>
    %1 = vector.shape_cast %0 : vector<1x192x192xf32> to vector<192x192xf32>
    %c0_2 = arith.constant 0 : index
    %c0_3 = arith.constant 0 : index
    %c0_4 = arith.constant 0 : index
    %2 = vector.load %arg2[%c0_2, %c0_3, %c0_4] : memref<1x192x192xf32, #tpu.memory_space<vmem>>, vector<1x192x192xf32>
    %3 = vector.shape_cast %2 : vector<1x192x192xf32> to vector<192x192xf32>
    %c0_5 = arith.constant 0 : index
    %c0_6 = arith.constant 0 : index
    %4 = vector.load %arg3[%c0_5, %c0_6] : memref<182x192xf32, #tpu.memory_space<vmem>>, vector<182x192xf32>
    %c0_7 = arith.constant 0 : index
    %c0_8 = arith.constant 0 : index
    %5 = vector.load %arg4[%c0_7, %c0_8] : memref<192x182xf32, #tpu.memory_space<vmem>>, vector<192x182xf32>
    %6 = arith.mulf %1, %1 : vector<192x192xf32>
    %7 = arith.mulf %3, %3 : vector<192x192xf32>
    %8 = arith.mulf %1, %3 : vector<192x192xf32>
    %9 = tpu.concatenate %1, %3, %6, %7, %8 in 0 : vector<192x192xf32>, vector<192x192xf32>, vector<192x192xf32>, vector<192x192xf32>, vector<192x192xf32> -> vector<960x192xf32>
    %cst = arith.constant dense<0.000000e+00> : vector<960x182xf32>
    %10 = tpu.matmul %9, %5, %cst {dimension_numbers = #tpu.dot_dimension_numbers<[1], [0], [0], [1], [0, 0, 1, 1], [], []>} : vector<960x192xf32>, vector<192x182xf32>, vector<960x182xf32> -> vector<960x182xf32>
    %11 = vector.extract_strided_slice %10 {offsets = [0, 0], sizes = [192, 182], strides = [1, 1]} : vector<960x182xf32> to vector<192x182xf32>
    %cst_9 = arith.constant dense<0.000000e+00> : vector<182x182xf32>
    %12 = tpu.matmul %4, %11, %cst_9 {dimension_numbers = #tpu.dot_dimension_numbers<[1], [0], [0], [1], [0, 0, 1, 1], [], []>} : vector<182x192xf32>, vector<192x182xf32>, vector<182x182xf32> -> vector<182x182xf32>
    %13 = vector.extract_strided_slice %10 {offsets = [192, 0], sizes = [192, 182], strides = [1, 1]} : vector<960x182xf32> to vector<192x182xf32>
    %cst_10 = arith.constant dense<0.000000e+00> : vector<182x182xf32>
    %14 = tpu.matmul %4, %13, %cst_10 {dimension_numbers = #tpu.dot_dimension_numbers<[1], [0], [0], [1], [0, 0, 1, 1], [], []>} : vector<182x192xf32>, vector<192x182xf32>, vector<182x182xf32> -> vector<182x182xf32>
    %15 = vector.extract_strided_slice %10 {offsets = [384, 0], sizes = [192, 182], strides = [1, 1]} : vector<960x182xf32> to vector<192x182xf32>
    %cst_11 = arith.constant dense<0.000000e+00> : vector<182x182xf32>
    %16 = tpu.matmul %4, %15, %cst_11 {dimension_numbers = #tpu.dot_dimension_numbers<[1], [0], [0], [1], [0, 0, 1, 1], [], []>} : vector<182x192xf32>, vector<192x182xf32>, vector<182x182xf32> -> vector<182x182xf32>
    %17 = vector.extract_strided_slice %10 {offsets = [576, 0], sizes = [192, 182], strides = [1, 1]} : vector<960x182xf32> to vector<192x182xf32>
    %cst_12 = arith.constant dense<0.000000e+00> : vector<182x182xf32>
    %18 = tpu.matmul %4, %17, %cst_12 {dimension_numbers = #tpu.dot_dimension_numbers<[1], [0], [0], [1], [0, 0, 1, 1], [], []>} : vector<182x192xf32>, vector<192x182xf32>, vector<182x182xf32> -> vector<182x182xf32>
    %19 = vector.extract_strided_slice %10 {offsets = [768, 0], sizes = [192, 182], strides = [1, 1]} : vector<960x182xf32> to vector<192x182xf32>
    %cst_13 = arith.constant dense<0.000000e+00> : vector<182x182xf32>
    %20 = tpu.matmul %4, %19, %cst_13 {dimension_numbers = #tpu.dot_dimension_numbers<[1], [0], [0], [1], [0, 0, 1, 1], [], []>} : vector<182x192xf32>, vector<192x182xf32>, vector<182x182xf32> -> vector<182x182xf32>
    %21 = arith.mulf %12, %12 : vector<182x182xf32>
    %22 = arith.mulf %14, %14 : vector<182x182xf32>
    %23 = arith.mulf %12, %14 : vector<182x182xf32>
    %24 = arith.subf %16, %21 : vector<182x182xf32>
    %25 = arith.subf %18, %22 : vector<182x182xf32>
    %26 = arith.subf %20, %23 : vector<182x182xf32>
    %cst_14 = arith.constant 2.000000e+00 : f32
    %27 = vector.broadcast %cst_14 : f32 to vector<182x182xf32>
    %28 = arith.mulf %27, %26 : vector<182x182xf32>
    %cst_15 = arith.constant 8.99999984E-4 : f32
    %29 = vector.broadcast %cst_15 : f32 to vector<182x182xf32>
    %30 = arith.addf %28, %29 : vector<182x182xf32>
    %31 = arith.addf %24, %25 : vector<182x182xf32>
    %cst_16 = arith.constant 8.99999984E-4 : f32
    %32 = vector.broadcast %cst_16 : f32 to vector<182x182xf32>
    %33 = arith.addf %31, %32 : vector<182x182xf32>
    %34 = arith.divf %30, %33 : vector<182x182xf32>
    %cst_17 = arith.constant 2.000000e+00 : f32
    %35 = vector.broadcast %cst_17 : f32 to vector<182x182xf32>
    %36 = arith.mulf %35, %23 : vector<182x182xf32>
    %cst_18 = arith.constant 9.99999974E-5 : f32
    %37 = vector.broadcast %cst_18 : f32 to vector<182x182xf32>
    %38 = arith.addf %36, %37 : vector<182x182xf32>
    %39 = arith.addf %21, %22 : vector<182x182xf32>
    %cst_19 = arith.constant 9.99999974E-5 : f32
    %40 = vector.broadcast %cst_19 : f32 to vector<182x182xf32>
    %41 = arith.addf %39, %40 : vector<182x182xf32>
    %42 = arith.divf %38, %41 : vector<182x182xf32>
    %43 = arith.mulf %42, %34 : vector<182x182xf32>
    %cst_20 = arith.constant dense<0.000000e+00> : vector<182xf32>
    %44 = vector.multi_reduction <add>, %43, %cst_20 [0] : vector<182x182xf32> to vector<182xf32>
    %45 = vector.shape_cast %44 : vector<182xf32> to vector<1x1x182xf32>
    %c0_21 = arith.constant 0 : index
    %c0_22 = arith.constant 0 : index
    %c0_23 = arith.constant 0 : index
    %46 = vector.load %arg5[%c0_21, %c0_22, %c0_23] : memref<1x1x182xf32, #tpu.memory_space<vmem>>, vector<1x1x182xf32>
    tpu.vector_store %arg5[%c0_21, %c0_22, %c0_23], %45 {strides = array<i32>} : memref<1x1x182xf32, #tpu.memory_space<vmem>>, vector<1x1x182xf32>,
    %cst_24 = arith.constant dense<0.000000e+00> : vector<182xf32>
    %47 = vector.multi_reduction <add>, %34, %cst_24 [0] : vector<182x182xf32> to vector<182xf32>
    %48 = vector.shape_cast %47 : vector<182xf32> to vector<1x1x182xf32>
    %c0_25 = arith.constant 0 : index
    %c0_26 = arith.constant 0 : index
    %c0_27 = arith.constant 0 : index
    %49 = vector.load %arg6[%c0_25, %c0_26, %c0_27] : memref<1x1x182xf32, #tpu.memory_space<vmem>>, vector<1x1x182xf32>
    tpu.vector_store %arg6[%c0_25, %c0_26, %c0_27], %48 {strides = array<i32>} : memref<1x1x182xf32, #tpu.memory_space<vmem>>, vector<1x1x182xf32>,
    return
  }
  func.func @transform_0(%arg0: i32) -> (i32, i32, i32) {
    %c0_i32 = arith.constant 0 : i32
    %c0_i32_0 = arith.constant 0 : i32
    %c0_i32_1 = arith.constant 0 : i32
    return %arg0, %c0_i32, %c0_i32_0 : i32, i32, i32
  }
  func.func @transform_1(%arg0: i32) -> (i32, i32, i32) {
    %c0_i32 = arith.constant 0 : i32
    %c0_i32_0 = arith.constant 0 : i32
    %c0_i32_1 = arith.constant 0 : i32
    return %arg0, %c0_i32, %c0_i32_0 : i32, i32, i32
  }
  func.func @transform_2(%arg0: i32) -> (i32, i32) {
    %c0_i32 = arith.constant 0 : i32
    %c0_i32_0 = arith.constant 0 : i32
    %c0_i32_1 = arith.constant 0 : i32
    return %c0_i32, %c0_i32_0 : i32, i32
  }
  func.func @transform_3(%arg0: i32) -> (i32, i32) {
    %c0_i32 = arith.constant 0 : i32
    %c0_i32_0 = arith.constant 0 : i32
    %c0_i32_1 = arith.constant 0 : i32
    return %c0_i32, %c0_i32_0 : i32, i32
  }
  func.func @transform_4(%arg0: i32) -> (i32, i32, i32) {
    %c0_i32 = arith.constant 0 : i32
    %c0_i32_0 = arith.constant 0 : i32
    %c0_i32_1 = arith.constant 0 : i32
    return %arg0, %c0_i32, %c0_i32_0 : i32, i32, i32
  }
  func.func @transform_5(%arg0: i32) -> (i32, i32, i32) {
    %c0_i32 = arith.constant 0 : i32
    %c0_i32_0 = arith.constant 0 : i32
    %c0_i32_1 = arith.constant 0 : i32
    return %arg0, %c0_i32, %c0_i32_0 : i32, i32, i32
  }
}

module attributes {stable_mosaic.version = 11 : i64} {
  func.func @kernel(%arg0: i32, %arg1: i32, %arg2: memref<1x864x128xf32, #tpu.memory_space<vmem>>, %arg3: memref<1x864x128xf32, #tpu.memory_space<vmem>>, %arg4: memref<1x8x128xf32, #tpu.memory_space<vmem>>) attributes {dimension_semantics = [#tpu.dimension_semantics<parallel>, #tpu.dimension_semantics<arbitrary>], iteration_bounds = array<i64: 2, 1>, scalar_prefetch = 0 : i64, scratch_operands = 0 : i64, tpu.core_type = #tpu.core_type<tc>, window_params = [{transform_indices = @transform_0, window_bounds = array<i64: 1, 864, 128>}, {transform_indices = @transform_1, window_bounds = array<i64: 1, 864, 128>}, {transform_indices = @transform_2, window_bounds = array<i64: 1, 8, 128>}]} {
    %c0_i32 = arith.constant 0 : i32
    %0 = arith.cmpi eq, %arg1, %c0_i32 : i32
    %1 = arith.extui %0 : i1 to i32
    %c0_i32_0 = arith.constant 0 : i32
    %2 = arith.cmpi ne, %1, %c0_i32_0 : i32
    scf.if %2 {
      %cst_12 = arith.constant 0.000000e+00 : f32
      %17 = vector.broadcast %cst_12 : f32 to vector<1x8x128xf32>
      %c0_13 = arith.constant 0 : index
      %c0_14 = arith.constant 0 : index
      %c0_15 = arith.constant 0 : index
      %18 = vector.load %arg4[%c0_13, %c0_14, %c0_15] : memref<1x8x128xf32, #tpu.memory_space<vmem>>, vector<1x8x128xf32>
      tpu.vector_store %arg4[%c0_13, %c0_14, %c0_15], %17 {strides = array<i32>} : memref<1x8x128xf32, #tpu.memory_space<vmem>>, vector<1x8x128xf32>,
    } else {
    }
    %c0 = arith.constant 0 : index
    %c0_1 = arith.constant 0 : index
    %c0_2 = arith.constant 0 : index
    %3 = vector.load %arg2[%c0, %c0_1, %c0_2] : memref<1x864x128xf32, #tpu.memory_space<vmem>>, vector<1x864x128xf32>
    %4 = vector.shape_cast %3 : vector<1x864x128xf32> to vector<864x128xf32>
    %c0_3 = arith.constant 0 : index
    %c0_4 = arith.constant 0 : index
    %c0_5 = arith.constant 0 : index
    %5 = vector.load %arg3[%c0_3, %c0_4, %c0_5] : memref<1x864x128xf32, #tpu.memory_space<vmem>>, vector<1x864x128xf32>
    %6 = vector.shape_cast %5 : vector<1x864x128xf32> to vector<864x128xf32>
    %7 = arith.subf %4, %6 : vector<864x128xf32>
    %8 = arith.mulf %7, %7 : vector<864x128xf32>
    %c0_6 = arith.constant 0 : index
    %c0_7 = arith.constant 0 : index
    %c0_8 = arith.constant 0 : index
    %9 = vector.load %arg4[%c0_6, %c0_7, %c0_8] : memref<1x8x128xf32, #tpu.memory_space<vmem>>, vector<1x8x128xf32>
    %10 = vector.shape_cast %9 : vector<1x8x128xf32> to vector<8x128xf32>
    %11 = vector.shape_cast %8 : vector<864x128xf32> to vector<108x8x128xf32>
    %cst = arith.constant dense<0.000000e+00> : vector<8x128xf32>
    %12 = vector.multi_reduction <add>, %11, %cst [0] : vector<108x8x128xf32> to vector<8x128xf32>
    %13 = arith.addf %10, %12 : vector<8x128xf32>
    %c0_9 = arith.constant 0 : index
    %c0_10 = arith.constant 0 : index
    %c0_11 = arith.constant 0 : index
    %14 = vector.load %arg4[%c0_9, %c0_10, %c0_11] : memref<1x8x128xf32, #tpu.memory_space<vmem>>, vector<1x8x128xf32>
    %15 = vector.shape_cast %14 : vector<1x8x128xf32> to vector<8x128xf32>
    %16 = vector.shape_cast %13 : vector<8x128xf32> to vector<1x8x128xf32>
    tpu.vector_store %arg4[%c0_9, %c0_10, %c0_11], %16 {strides = array<i32>} : memref<1x8x128xf32, #tpu.memory_space<vmem>>, vector<1x8x128xf32>,
    return
  }
  func.func @transform_0(%arg0: i32, %arg1: i32) -> (i32, i32, i32) {
    %c0_i32 = arith.constant 0 : i32
    %c0_i32_0 = arith.constant 0 : i32
    return %arg0, %arg1, %c0_i32 : i32, i32, i32
  }
  func.func @transform_1(%arg0: i32, %arg1: i32) -> (i32, i32, i32) {
    %c0_i32 = arith.constant 0 : i32
    %c0_i32_0 = arith.constant 0 : i32
    return %arg0, %arg1, %c0_i32 : i32, i32, i32
  }
  func.func @transform_2(%arg0: i32, %arg1: i32) -> (i32, i32, i32) {
    %c0_i32 = arith.constant 0 : i32
    %c0_i32_0 = arith.constant 0 : i32
    %c0_i32_1 = arith.constant 0 : i32
    return %arg0, %c0_i32, %c0_i32_0 : i32, i32, i32
  }
}

module attributes {stable_mosaic.version = 11 : i64} {
  func.func @_ssim_channel_kernel(%arg0: i32, %arg1: memref<1x96x96xf32, #tpu.memory_space<vmem>>, %arg2: memref<1x96x96xf32, #tpu.memory_space<vmem>>, %arg3: memref<86x96xf32, #tpu.memory_space<vmem>>, %arg4: memref<96x86xf32, #tpu.memory_space<vmem>>, %arg5: memref<1x1x86xf32, #tpu.memory_space<vmem>>, %arg6: memref<1x1x86xf32, #tpu.memory_space<vmem>>) attributes {dimension_semantics = [#tpu.dimension_semantics<parallel>], iteration_bounds = array<i64: 6>, scalar_prefetch = 0 : i64, scratch_operands = 0 : i64, tpu.core_type = #tpu.core_type<tc>, window_params = [{transform_indices = @transform_0, window_bounds = array<i64: 1, 96, 96>}, {transform_indices = @transform_1, window_bounds = array<i64: 1, 96, 96>}, {pipeline_mode = #tpu.pipeline_mode<synchronous>, transform_indices = @transform_2, window_bounds = array<i64: 86, 96>}, {pipeline_mode = #tpu.pipeline_mode<synchronous>, transform_indices = @transform_3, window_bounds = array<i64: 96, 86>}, {transform_indices = @transform_4, window_bounds = array<i64: 1, 1, 86>}, {transform_indices = @transform_5, window_bounds = array<i64: 1, 1, 86>}]} {
    %c0 = arith.constant 0 : index
    %c0_0 = arith.constant 0 : index
    %c0_1 = arith.constant 0 : index
    %0 = vector.load %arg1[%c0, %c0_0, %c0_1] : memref<1x96x96xf32, #tpu.memory_space<vmem>>, vector<1x96x96xf32>
    %1 = vector.shape_cast %0 : vector<1x96x96xf32> to vector<96x96xf32>
    %c0_2 = arith.constant 0 : index
    %c0_3 = arith.constant 0 : index
    %c0_4 = arith.constant 0 : index
    %2 = vector.load %arg2[%c0_2, %c0_3, %c0_4] : memref<1x96x96xf32, #tpu.memory_space<vmem>>, vector<1x96x96xf32>
    %3 = vector.shape_cast %2 : vector<1x96x96xf32> to vector<96x96xf32>
    %c0_5 = arith.constant 0 : index
    %c0_6 = arith.constant 0 : index
    %4 = vector.load %arg3[%c0_5, %c0_6] : memref<86x96xf32, #tpu.memory_space<vmem>>, vector<86x96xf32>
    %c0_7 = arith.constant 0 : index
    %c0_8 = arith.constant 0 : index
    %5 = vector.load %arg4[%c0_7, %c0_8] : memref<96x86xf32, #tpu.memory_space<vmem>>, vector<96x86xf32>
    %6 = arith.mulf %1, %1 : vector<96x96xf32>
    %7 = arith.mulf %3, %3 : vector<96x96xf32>
    %8 = arith.mulf %1, %3 : vector<96x96xf32>
    %9 = tpu.concatenate %1, %3, %6, %7, %8 in 0 : vector<96x96xf32>, vector<96x96xf32>, vector<96x96xf32>, vector<96x96xf32>, vector<96x96xf32> -> vector<480x96xf32>
    %cst = arith.constant dense<0.000000e+00> : vector<480x86xf32>
    %10 = tpu.matmul %9, %5, %cst {dimension_numbers = #tpu.dot_dimension_numbers<[1], [0], [0], [1], [0, 0, 1, 1], [], []>} : vector<480x96xf32>, vector<96x86xf32>, vector<480x86xf32> -> vector<480x86xf32>
    %11 = vector.extract_strided_slice %10 {offsets = [0, 0], sizes = [96, 86], strides = [1, 1]} : vector<480x86xf32> to vector<96x86xf32>
    %cst_9 = arith.constant dense<0.000000e+00> : vector<86x86xf32>
    %12 = tpu.matmul %4, %11, %cst_9 {dimension_numbers = #tpu.dot_dimension_numbers<[1], [0], [0], [1], [0, 0, 1, 1], [], []>} : vector<86x96xf32>, vector<96x86xf32>, vector<86x86xf32> -> vector<86x86xf32>
    %13 = vector.extract_strided_slice %10 {offsets = [96, 0], sizes = [96, 86], strides = [1, 1]} : vector<480x86xf32> to vector<96x86xf32>
    %cst_10 = arith.constant dense<0.000000e+00> : vector<86x86xf32>
    %14 = tpu.matmul %4, %13, %cst_10 {dimension_numbers = #tpu.dot_dimension_numbers<[1], [0], [0], [1], [0, 0, 1, 1], [], []>} : vector<86x96xf32>, vector<96x86xf32>, vector<86x86xf32> -> vector<86x86xf32>
    %15 = vector.extract_strided_slice %10 {offsets = [192, 0], sizes = [96, 86], strides = [1, 1]} : vector<480x86xf32> to vector<96x86xf32>
    %cst_11 = arith.constant dense<0.000000e+00> : vector<86x86xf32>
    %16 = tpu.matmul %4, %15, %cst_11 {dimension_numbers = #tpu.dot_dimension_numbers<[1], [0], [0], [1], [0, 0, 1, 1], [], []>} : vector<86x96xf32>, vector<96x86xf32>, vector<86x86xf32> -> vector<86x86xf32>
    %17 = vector.extract_strided_slice %10 {offsets = [288, 0], sizes = [96, 86], strides = [1, 1]} : vector<480x86xf32> to vector<96x86xf32>
    %cst_12 = arith.constant dense<0.000000e+00> : vector<86x86xf32>
    %18 = tpu.matmul %4, %17, %cst_12 {dimension_numbers = #tpu.dot_dimension_numbers<[1], [0], [0], [1], [0, 0, 1, 1], [], []>} : vector<86x96xf32>, vector<96x86xf32>, vector<86x86xf32> -> vector<86x86xf32>
    %19 = vector.extract_strided_slice %10 {offsets = [384, 0], sizes = [96, 86], strides = [1, 1]} : vector<480x86xf32> to vector<96x86xf32>
    %cst_13 = arith.constant dense<0.000000e+00> : vector<86x86xf32>
    %20 = tpu.matmul %4, %19, %cst_13 {dimension_numbers = #tpu.dot_dimension_numbers<[1], [0], [0], [1], [0, 0, 1, 1], [], []>} : vector<86x96xf32>, vector<96x86xf32>, vector<86x86xf32> -> vector<86x86xf32>
    %21 = arith.mulf %12, %12 : vector<86x86xf32>
    %22 = arith.mulf %14, %14 : vector<86x86xf32>
    %23 = arith.mulf %12, %14 : vector<86x86xf32>
    %24 = arith.subf %16, %21 : vector<86x86xf32>
    %25 = arith.subf %18, %22 : vector<86x86xf32>
    %26 = arith.subf %20, %23 : vector<86x86xf32>
    %cst_14 = arith.constant 2.000000e+00 : f32
    %27 = vector.broadcast %cst_14 : f32 to vector<86x86xf32>
    %28 = arith.mulf %27, %26 : vector<86x86xf32>
    %cst_15 = arith.constant 8.99999984E-4 : f32
    %29 = vector.broadcast %cst_15 : f32 to vector<86x86xf32>
    %30 = arith.addf %28, %29 : vector<86x86xf32>
    %31 = arith.addf %24, %25 : vector<86x86xf32>
    %cst_16 = arith.constant 8.99999984E-4 : f32
    %32 = vector.broadcast %cst_16 : f32 to vector<86x86xf32>
    %33 = arith.addf %31, %32 : vector<86x86xf32>
    %34 = arith.divf %30, %33 : vector<86x86xf32>
    %cst_17 = arith.constant 2.000000e+00 : f32
    %35 = vector.broadcast %cst_17 : f32 to vector<86x86xf32>
    %36 = arith.mulf %35, %23 : vector<86x86xf32>
    %cst_18 = arith.constant 9.99999974E-5 : f32
    %37 = vector.broadcast %cst_18 : f32 to vector<86x86xf32>
    %38 = arith.addf %36, %37 : vector<86x86xf32>
    %39 = arith.addf %21, %22 : vector<86x86xf32>
    %cst_19 = arith.constant 9.99999974E-5 : f32
    %40 = vector.broadcast %cst_19 : f32 to vector<86x86xf32>
    %41 = arith.addf %39, %40 : vector<86x86xf32>
    %42 = arith.divf %38, %41 : vector<86x86xf32>
    %43 = arith.mulf %42, %34 : vector<86x86xf32>
    %cst_20 = arith.constant dense<0.000000e+00> : vector<86xf32>
    %44 = vector.multi_reduction <add>, %43, %cst_20 [0] : vector<86x86xf32> to vector<86xf32>
    %45 = vector.shape_cast %44 : vector<86xf32> to vector<1x1x86xf32>
    %c0_21 = arith.constant 0 : index
    %c0_22 = arith.constant 0 : index
    %c0_23 = arith.constant 0 : index
    %46 = vector.load %arg5[%c0_21, %c0_22, %c0_23] : memref<1x1x86xf32, #tpu.memory_space<vmem>>, vector<1x1x86xf32>
    tpu.vector_store %arg5[%c0_21, %c0_22, %c0_23], %45 {strides = array<i32>} : memref<1x1x86xf32, #tpu.memory_space<vmem>>, vector<1x1x86xf32>,
    %cst_24 = arith.constant dense<0.000000e+00> : vector<86xf32>
    %47 = vector.multi_reduction <add>, %34, %cst_24 [0] : vector<86x86xf32> to vector<86xf32>
    %48 = vector.shape_cast %47 : vector<86xf32> to vector<1x1x86xf32>
    %c0_25 = arith.constant 0 : index
    %c0_26 = arith.constant 0 : index
    %c0_27 = arith.constant 0 : index
    %49 = vector.load %arg6[%c0_25, %c0_26, %c0_27] : memref<1x1x86xf32, #tpu.memory_space<vmem>>, vector<1x1x86xf32>
    tpu.vector_store %arg6[%c0_25, %c0_26, %c0_27], %48 {strides = array<i32>} : memref<1x1x86xf32, #tpu.memory_space<vmem>>, vector<1x1x86xf32>,
    return
  }
  func.func @transform_0(%arg0: i32) -> (i32, i32, i32) {
    %c0_i32 = arith.constant 0 : i32
    %c0_i32_0 = arith.constant 0 : i32
    %c0_i32_1 = arith.constant 0 : i32
    return %arg0, %c0_i32, %c0_i32_0 : i32, i32, i32
  }
  func.func @transform_1(%arg0: i32) -> (i32, i32, i32) {
    %c0_i32 = arith.constant 0 : i32
    %c0_i32_0 = arith.constant 0 : i32
    %c0_i32_1 = arith.constant 0 : i32
    return %arg0, %c0_i32, %c0_i32_0 : i32, i32, i32
  }
  func.func @transform_2(%arg0: i32) -> (i32, i32) {
    %c0_i32 = arith.constant 0 : i32
    %c0_i32_0 = arith.constant 0 : i32
    %c0_i32_1 = arith.constant 0 : i32
    return %c0_i32, %c0_i32_0 : i32, i32
  }
  func.func @transform_3(%arg0: i32) -> (i32, i32) {
    %c0_i32 = arith.constant 0 : i32
    %c0_i32_0 = arith.constant 0 : i32
    %c0_i32_1 = arith.constant 0 : i32
    return %c0_i32, %c0_i32_0 : i32, i32
  }
  func.func @transform_4(%arg0: i32) -> (i32, i32, i32) {
    %c0_i32 = arith.constant 0 : i32
    %c0_i32_0 = arith.constant 0 : i32
    %c0_i32_1 = arith.constant 0 : i32
    return %arg0, %c0_i32, %c0_i32_0 : i32, i32, i32
  }
  func.func @transform_5(%arg0: i32) -> (i32, i32, i32) {
    %c0_i32 = arith.constant 0 : i32
    %c0_i32_0 = arith.constant 0 : i32
    %c0_i32_1 = arith.constant 0 : i32
    return %arg0, %c0_i32, %c0_i32_0 : i32, i32, i32
  }
}

</mosaic_0001>

<bundles_post_ra>
// kernel: run.6
= control target key start
LH: loop header
LB: loop body
LE: loop exit
PB: predicated region body
PF: predicated region fallthrough
CT: control target
= control target key end

     0   :  { %vm12_vm0 = vcmask 23552   ;;  %v64_v0 = vmov 0.0   ;;  %s110_s0 = inlined_call_operand.vmem [shape: f32[1,48,3], index: 0, kind: input, shape index: {}]   ;;  %s111_s1 = inlined_call_operand.vmem [shape: f32[1,8,3], index: 1, kind: output, shape index: {}]  }
   0x1   :  { %13 = vst.msk [vmem:[%s111_s1] sm:$0xff] %vm12_vm0, %v64_v0  ;;  %v14_v1 = vld [vmem:[%s110_s0] sm:$0xff]  ;;  %v15_v2 = vld [vmem:[%s110_s0 + $0x8] sm:$0xff]  ;;  %v16_v3 = vld [vmem:[%s110_s0 + $0x10] sm:$0xff] }
   0x2   :  { %v17_v4 = vld [vmem:[%s110_s0 + $0x18] sm:$0xff]  ;;  %52 = vlog2.f32 %v14_v1  ;;  %v18_v5 = vld [vmem:[%s110_s0 + $0x20] sm:$0xff]  ;;  %v19_v6 = vld [vmem:[%s110_s0 + $0x28] sm:$0xff] }
   0x3   :  { %54 = vlog2.f32 %v15_v2 }
   0x4   :  { %56 = vlog2.f32 %v16_v3 }
   0x5   :  { %58 = vlog2.f32 %v17_v4 }
   0x6   :  { %60 = vlog2.f32 %v18_v5 }
   0x7   :  { %62 = vlog2.f32 %v19_v6 }
   0x8   :  { %v32_v29 = vld [vmem:[%s111_s1] sm:$0xff] }
   0xc   :  { %v53_v7 = vpop.eup %52 }
   0xd   :  { %v55_v8 = vpop.eup %54  ;;  %v21_v9 = vmul.f32 0.6931472, %v53_v7 }
   0xe   :  { %v57_v10 = vpop.eup %56  ;;  %v23_v11 = vmul.f32 0.6931472, %v55_v8 }
   0xf   :  { %v59_v12 = vpop.eup %58  ;;  %v25_v13 = vmul.f32 0.6931472, %v57_v10  ;;  %v34_v14 = vsel %vm12_vm0, %v21_v9, 0.0 }
  0x10   :  { %v61_v15 = vpop.eup %60  ;;  %v27_v16 = vmul.f32 0.6931472, %v59_v12  ;;  %v35_v17 = vsel %vm12_vm0, %v23_v11, 0.0 }
  0x11   :  { %v63_v18 = vpop.eup %62  ;;  %v29_v19 = vmul.f32 0.6931472, %v61_v15  ;;  %v36_v20 = vadd.f32 %v35_v17, %v34_v14  ;;  %v37_v21 = vsel %vm12_vm0, %v25_v13, 0.0 }
  0x12   :  { %v31_v22 = vmul.f32 0.6931472, %v63_v18  ;;  %v39_v23 = vsel %vm12_vm0, %v27_v16, 0.0 }
  0x13   :  { %v38_v24 = vadd.f32 %v37_v21, %v36_v20  ;;  %v41_v25 = vsel %vm12_vm0, %v29_v19, 0.0 }
  0x14   :  { %v43_v27 = vsel %vm12_vm0, %v31_v22, 0.0 }
  0x15   :  { %v40_v26 = vadd.f32 %v39_v23, %v38_v24 }
  0x17   :  { %v42_v28 = vadd.f32 %v41_v25, %v40_v26 }
  0x19   :  { %v44_v30 = vadd.f32 %v43_v27, %v42_v28 }
  0x1b   :  { %v45_v31 = vadd.f32 %v44_v30, %v32_v29 }
  0x1d   :  { %46 = vst.msk [vmem:[%s111_s1] sm:$0xff] %vm12_vm0, %v45_v31 }

// kernel: run.5
= control target key start
LH: loop header
LB: loop body
LE: loop exit
PB: predicated region body
PF: predicated region fallthrough
CT: control target
= control target key end

     0   :  { %v58_v0 = vmov 0.0   ;;  %vm32_vm0 = vcmask 1043456   ;;  %s93_s1 = inlined_call_operand.vmem [shape: f32[1,8,128], index: 1, kind: output, shape index: {}]   ;;  %s94_s0 = inlined_call_operand.vmem [shape: f32[1,36,128], index: 0, kind: input, shape index: {}]  }
   0x1   :  { %12 = vst [vmem:[%s93_s1] sm:$0xff] %v58_v0  ;;  %v13_v1 = vld [vmem:[%s94_s0] sm:$0xff]  ;;  %v14_v2 = vld [vmem:[%s94_s0 + $0x8] sm:$0xff]  ;;  %v15_v3 = vld [vmem:[%s94_s0 + $0x10] sm:$0xff] }
   0x2   :  { %v16_v4 = vld [vmem:[%s94_s0 + $0x18] sm:$0xff]  ;;  %48 = vlog2.f32 %v13_v1  ;;  %v17_v5 = vld [vmem:[%s94_s0 + $0x20] sm:$0xf] }
   0x3   :  { %50 = vlog2.f32 %v14_v2 }
   0x4   :  { %52 = vlog2.f32 %v15_v3 }
   0x5   :  { %54 = vlog2.f32 %v16_v4 }
   0x6   :  { %56 = vlog2.f32 %v17_v5 }
   0x8   :  { %v28_v26 = vld [vmem:[%s93_s1] sm:$0x1] }
   0xc   :  { %v49_v6 = vpop.eup %48 }
   0xd   :  { %v51_v7 = vpop.eup %50  ;;  %v19_v8 = vmul.f32 0.6931472, %v49_v6 }
   0xe   :  { %v53_v9 = vpop.eup %52  ;;  %v21_v10 = vmul.f32 0.6931472, %v51_v7 }
   0xf   :  { %v55_v11 = vpop.eup %54  ;;  %v23_v12 = vmul.f32 0.6931472, %v53_v9 }
  0x10   :  { %v57_v13 = vpop.eup %56  ;;  %v25_v14 = vmul.f32 0.6931472, %v55_v11  ;;  %v29_v15 = vadd.f32 %v21_v10, %v19_v8 }
  0x11   :  { %v27_v16 = vmul.f32 0.6931472, %v57_v13 }
  0x12   :  { %v30_v17 = vadd.f32 %v29_v15, %v23_v12 }
  0x13   :  { %v33_v18 = vsel %vm32_vm0, %v27_v16, 0.0 }
  0x14   :  { %v31_v19 = vadd.f32 %v30_v17, %v25_v14 }
  0x16   :  { %v34_v20 = vadd.f32 %v33_v18, %v31_v19 }
  0x18   :  { %v35_v21 = vrot.slane %v34_v20, 4 }
  0x1a   :  { %v36_v22 = vadd.f32 %v35_v21, %v34_v20 }
  0x1c   :  { %v37_v23 = vrot.slane %v36_v22, 2 }
  0x1e   :  { %v38_v24 = vadd.f32 %v37_v23, %v36_v22 }
  0x20   :  { %v39_v25 = vrot.slane %v38_v24, 1 }
  0x22   :  { %v40_v27 = vadd.f32 %v39_v25, %v38_v24 }
  0x24   :  { %v41_v28 = vadd.f32 %v40_v27, %v28_v26 }
  0x26   :  { %42 = vst [vmem:[%s93_s1] sm:$0x1] %v41_v28 }

// kernel: run.9
= control target key start
LH: loop header
LB: loop body
LE: loop exit
PB: predicated region body
PF: predicated region fallthrough
CT: control target
= control target key end

     0   :  { %s913_s9 = smov 0   ;;  %s915_s10 = smov 0   ;;  %s1473_s0 = inlined_call_operand.vmem [shape: f32[2,864,128], index: 0, kind: input, shape index: {}]   ;;  %s1474_s1 = inlined_call_operand.vmem [shape: f32[2,864,128], index: 1, kind: input, shape index: {}]   ;;  %s1475_s2 = inlined_call_operand.vmem [shape: f32[2,8,128], index: 2, kind: output, shape index: {}]  }
   0x1   :  { %s917_s11 = smov 0  }
   0x2 LB: > { %s24_s12 = sadd.s32 1, %s892_s10  ;;  %p842_p0 = scmp.ge.s32.totalorder %s896_s11, 1  ;;  %s896_s11 = sphi %s917_s11, %s12_s11   ;;  %s892_s10 = sphi %s915_s10, %s1557_s10   ;;  %s888_s9 = sphi %s913_s9, %s1556_s9  }
   0x3   : > { %p26_p1 = scmp.ge.s32.totalorder %s24_s12, 2  ;;  %p148_p2 = scmp.lt.s32.totalorder %s896_s11, 3 }
   0x5   : > { %s1559_s12 = smov (%p26_p1, %s24_s12), 0  ;;  %p149_p3 = pnand %p842_p0, %p148_p2 }
   0x7   : > { %152 = sbr.rel (%p149_p3) target bundleno = 295 (0x127), region = 28 }
   0xe   : > { %p183_p4 = scmp.lt.s32.totalorder %s888_s9, 1 }
  0x10   : > { %s1561_s9 = smov (!%p183_p4, %s888_s9), 1 }
  0x11   : > { %s848_s13 = smul.u32 864, %s1561_s9  ;;  %s845_s20 = sshll.u32 %s1561_s9, 3 }
  0x12   : > { %s205_s23 = scalar_lea.vmem %s1475_s2, %s845_s20 }
  0x13   : > { %s937_s16 = scalar_lea.vmem %s1473_s0, %s848_s13  ;;  %s951_s19 = scalar_lea.vmem %s1474_s1, %s848_s13 }
  0x14   : > { %v244_v0 = vld [vmem:[%s937_s16 + $0x108] sm:$0xff]  ;;  %v245_v1 = vld [vmem:[%s937_s16 + $0x110] sm:$0xff]  ;;  %v246_v2 = vld [vmem:[%s937_s16 + $0x118] sm:$0xff] }
  0x15   : > { %v247_v3 = vld [vmem:[%s937_s16 + $0x120] sm:$0xff]  ;;  %v248_v4 = vld [vmem:[%s937_s16 + $0x128] sm:$0xff]  ;;  %v249_v5 = vld [vmem:[%s937_s16 + $0x130] sm:$0xff] }
  0x16   : > { %v250_v6 = vld [vmem:[%s937_s16 + $0x138] sm:$0xff]  ;;  %v251_v7 = vld [vmem:[%s937_s16 + $0x140] sm:$0xff]  ;;  %v252_v8 = vld [vmem:[%s937_s16 + $0x148] sm:$0xff] }
  0x17   : > { %v253_v9 = vld [vmem:[%s937_s16 + $0x150] sm:$0xff]  ;;  %v254_v10 = vld [vmem:[%s937_s16 + $0x158] sm:$0xff]  ;;  %v255_v11 = vld [vmem:[%s937_s16 + $0x160] sm:$0xff] }
  0x18   : > { %v256_v12 = vld [vmem:[%s937_s16 + $0x168] sm:$0xff]  ;;  %v257_v13 = vld [vmem:[%s937_s16 + $0x170] sm:$0xff]  ;;  %v258_v14 = vld [vmem:[%s937_s16 + $0x178] sm:$0xff] }
  0x19   : > { %v352_v15 = vld [vmem:[%s951_s19 + $0x108] sm:$0xff]  ;;  %v353_v16 = vld [vmem:[%s951_s19 + $0x110] sm:$0xff]  ;;  %v354_v17 = vld [vmem:[%s951_s19 + $0x118] sm:$0xff] }
  0x1a   : > { %v259_v18 = vld [vmem:[%s937_s16 + $0x180] sm:$0xff]  ;;  %v260_v19 = vld [vmem:[%s937_s16 + $0x188] sm:$0xff]  ;;  %v261_v20 = vld [vmem:[%s937_s16 + $0x190] sm:$0xff]  ;;  %v968_v24 = vsub.f32 %v244_v0, %v352_v15  ;;  %v970_v25 = vsub.f32 %v245_v1, %v353_v16  ;;  %v972_v26 = vsub.f32 %v246_v2, %v354_v17 }
  0x1b   : > { %v355_v21 = vld [vmem:[%s951_s19 + $0x120] sm:$0xff]  ;;  %v356_v22 = vld [vmem:[%s951_s19 + $0x128] sm:$0xff]  ;;  %v357_v23 = vld [vmem:[%s951_s19 + $0x130] sm:$0xff] }
  0x1c   : > { %v262_v27 = vld [vmem:[%s937_s16 + $0x198] sm:$0xff]  ;;  %v263_v28 = vld [vmem:[%s937_s16 + $0x1a0] sm:$0xff]  ;;  %v264_v29 = vld [vmem:[%s937_s16 + $0x1a8] sm:$0xff]  ;;  %v980_v33 = vsub.f32 %v247_v3, %v355_v21  ;;  %v982_v34 = vsub.f32 %v248_v4, %v356_v22  ;;  %v984_v35 = vsub.f32 %v249_v5, %v357_v23 }
  0x1d   : > { %v358_v30 = vld [vmem:[%s951_s19 + $0x138] sm:$0xff]  ;;  %v359_v31 = vld [vmem:[%s951_s19 + $0x140] sm:$0xff]  ;;  %v360_v32 = vld [vmem:[%s951_s19 + $0x148] sm:$0xff] }
  0x1e   : > { %v265_v36 = vld [vmem:[%s937_s16 + $0x1b0] sm:$0xff]  ;;  %v266_v37 = vld [vmem:[%s937_s16 + $0x1b8] sm:$0xff]  ;;  %v267_v38 = vld [vmem:[%s937_s16 + $0x1c0] sm:$0xff]  ;;  %v992_v42 = vsub.f32 %v250_v6, %v358_v30  ;;  %v994_v43 = vsub.f32 %v251_v7, %v359_v31  ;;  %v996_v44 = vsub.f32 %v252_v8, %v360_v32 }
  0x1f   : > { %v361_v39 = vld [vmem:[%s951_s19 + $0x150] sm:$0xff]  ;;  %v362_v40 = vld [vmem:[%s951_s19 + $0x158] sm:$0xff]  ;;  %v363_v41 = vld [vmem:[%s951_s19 + $0x160] sm:$0xff] }
  0x20   : > { %v268_v45 = vld [vmem:[%s937_s16 + $0x1c8] sm:$0xff]  ;;  %v269_v46 = vld [vmem:[%s937_s16 + $0x1d0] sm:$0xff]  ;;  %v270_v47 = vld [vmem:[%s937_s16 + $0x1d8] sm:$0xff]  ;;  %v1004_v51 = vsub.f32 %v253_v9, %v361_v39  ;;  %v1006_v52 = vsub.f32 %v254_v10, %v362_v40  ;;  %v1008_v53 = vsub.f32 %v255_v11, %v363_v41 }
  0x21   : > { %v364_v48 = vld [vmem:[%s951_s19 + $0x168] sm:$0xff]  ;;  %v365_v49 = vld [vmem:[%s951_s19 + $0x170] sm:$0xff]  ;;  %v366_v50 = vld [vmem:[%s951_s19 + $0x178] sm:$0xff] }
  0x22   : > { %v271_v54 = vld [vmem:[%s937_s16 + $0x1e0] sm:$0xff]  ;;  %v272_v55 = vld [vmem:[%s937_s16 + $0x1e8] sm:$0xff]  ;;  %v273_v56 = vld [vmem:[%s937_s16 + $0x1f0] sm:$0xff]  ;;  %v1016_v60 = vsub.f32 %v256_v12, %v364_v48  ;;  %v1018_v61 = vsub.f32 %v257_v13, %v365_v49  ;;  %v1020_v62 = vsub.f32 %v258_v14, %v366_v50 }
  0x23   : > { %v367_v57 = vld [vmem:[%s951_s19 + $0x180] sm:$0xff]  ;;  %v368_v58 = vld [vmem:[%s951_s19 + $0x188] sm:$0xff]  ;;  %v369_v59 = vld [vmem:[%s951_s19 + $0x190] sm:$0xff] }
  0x24   : > { %v274_v63 = vld [vmem:[%s937_s16 + $0x1f8] sm:$0xff]  ;;  %v275_v0 = vld [vmem:[%s937_s16 + $0x200] sm:$0xff]  ;;  %v276_v1 = vld [vmem:[%s937_s16 + $0x208] sm:$0xff]  ;;  %v1028_v5 = vsub.f32 %v259_v18, %v367_v57  ;;  %v1030_v6 = vsub.f32 %v260_v19, %v368_v58  ;;  %v1032_v7 = vsub.f32 %v261_v20, %v369_v59 }
  0x25   : > { %v370_v2 = vld [vmem:[%s951_s19 + $0x198] sm:$0xff]  ;;  %v371_v3 = vld [vmem:[%s951_s19 + $0x1a0] sm:$0xff]  ;;  %v372_v4 = vld [vmem:[%s951_s19 + $0x1a8] sm:$0xff] }
  0x26   : > { %v277_v8 = vld [vmem:[%s937_s16 + $0x210] sm:$0xff]  ;;  %v278_v9 = vld [vmem:[%s937_s16 + $0x218] sm:$0xff]  ;;  %v279_v10 = vld [vmem:[%s937_s16 + $0x220] sm:$0xff]  ;;  %v1040_v14 = vsub.f32 %v262_v27, %v370_v2  ;;  %v1042_v15 = vsub.f32 %v263_v28, %v371_v3  ;;  %v1044_v16 = vsub.f32 %v264_v29, %v372_v4 }
  0x27   : > { %v373_v11 = vld [vmem:[%s951_s19 + $0x1b0] sm:$0xff]  ;;  %v374_v12 = vld [vmem:[%s951_s19 + $0x1b8] sm:$0xff]  ;;  %v375_v13 = vld [vmem:[%s951_s19 + $0x1c0] sm:$0xff] }
  0x28   : > { %v280_v17 = vld [vmem:[%s937_s16 + $0x228] sm:$0xff]  ;;  %v281_v18 = vld [vmem:[%s937_s16 + $0x230] sm:$0xff]  ;;  %v282_v19 = vld [vmem:[%s937_s16 + $0x238] sm:$0xff]  ;;  %v1052_v23 = vsub.f32 %v265_v36, %v373_v11  ;;  %v1054_v27 = vsub.f32 %v266_v37, %v374_v12  ;;  %v1056_v28 = vsub.f32 %v267_v38, %v375_v13 }
  0x29   : > { %v376_v20 = vld [vmem:[%s951_s19 + $0x1c8] sm:$0xff]  ;;  %v377_v21 = vld [vmem:[%s951_s19 + $0x1d0] sm:$0xff]  ;;  %v378_v22 = vld [vmem:[%s951_s19 + $0x1d8] sm:$0xff] }
  0x2a   : > { %v283_v29 = vld [vmem:[%s937_s16 + $0x240] sm:$0xff]  ;;  %v284_v30 = vld [vmem:[%s937_s16 + $0x248] sm:$0xff]  ;;  %v285_v31 = vld [vmem:[%s937_s16 + $0x250] sm:$0xff]  ;;  %v1064_v41 = vsub.f32 %v268_v45, %v376_v20  ;;  %v1066_v36 = vsub.f32 %v269_v46, %v377_v21  ;;  %v1068_v37 = vsub.f32 %v270_v47, %v378_v22 }
  0x2b   : > { %v379_v32 = vld [vmem:[%s951_s19 + $0x1e0] sm:$0xff]  ;;  %v380_v39 = vld [vmem:[%s951_s19 + $0x1e8] sm:$0xff]  ;;  %v381_v40 = vld [vmem:[%s951_s19 + $0x1f0] sm:$0xff] }
  0x2c   : > { %v286_v38 = vld [vmem:[%s937_s16 + $0x258] sm:$0xff]  ;;  %v287_v48 = vld [vmem:[%s937_s16 + $0x260] sm:$0xff]  ;;  %v288_v49 = vld [vmem:[%s937_s16 + $0x268] sm:$0xff]  ;;  %v1076_v59 = vsub.f32 %v271_v54, %v379_v32  ;;  %v1078_v45 = vsub.f32 %v272_v55, %v380_v39  ;;  %v1080_v46 = vsub.f32 %v273_v56, %v381_v40 }
  0x2d   : > { %v382_v50 = vld [vmem:[%s951_s19 + $0x1f8] sm:$0xff]  ;;  %v383_v57 = vld [vmem:[%s951_s19 + $0x200] sm:$0xff]  ;;  %v384_v58 = vld [vmem:[%s951_s19 + $0x208] sm:$0xff] }
  0x2e   : > { %1476 = vst [vmem:[#allocation2_spill] sm:$0xff] %v1080_v46  ;;  %v289_v47 = vld [vmem:[%s937_s16 + $0x270] sm:$0xff]  ;;  %v290_v2 = vld [vmem:[%s937_s16 + $0x278] sm:$0xff]  ;;  %v291_v3 = vld [vmem:[%s937_s16 + $0x280] sm:$0xff]  ;;  %v1088_v13 = vsub.f32 %v274_v63, %v382_v50  ;;  %v1090_v54 = vsub.f32 %v275_v0, %v383_v57  ;;  %v1092_v55 = vsub.f32 %v276_v1, %v384_v58 }
  0x2f   : > { %v385_v4 = vld [vmem:[%s951_s19 + $0x210] sm:$0xff]  ;;  %v386_v11 = vld [vmem:[%s951_s19 + $0x218] sm:$0xff]  ;;  %v387_v12 = vld [vmem:[%s951_s19 + $0x220] sm:$0xff] }
  0x30   : > { %1477 = vst [vmem:[#allocation3_spill] sm:$0xff] %v1088_v13  ;;  %1478 = vst [vmem:[#allocation4_spill] sm:$0xff] %v1090_v54  ;;  %v292_v56 = vld [vmem:[%s937_s16 + $0x288] sm:$0xff]  ;;  %v293_v20 = vld [vmem:[%s937_s16 + $0x290] sm:$0xff]  ;;  %v1100_v40 = vsub.f32 %v277_v8, %v385_v4  ;;  %v1102_v63 = vsub.f32 %v278_v9, %v386_v11  ;;  %v1104_v0 = vsub.f32 %v279_v10, %v387_v12 }
  0x31   : > { %1479 = vst [vmem:[#allocation5_spill] sm:$0xff] %v1092_v55  ;;  %v294_v21 = vld [vmem:[%s937_s16 + $0x298] sm:$0xff]  ;;  %v388_v22 = vld [vmem:[%s951_s19 + $0x228] sm:$0xff]  ;;  %v389_v32 = vld [vmem:[%s951_s19 + $0x230] sm:$0xff] }
  0x32   : > { %v390_v39 = vld [vmem:[%s951_s19 + $0x238] sm:$0xff]  ;;  %1480 = vst [vmem:[#allocation6_spill] sm:$0xff] %v1100_v40  ;;  %1481 = vst [vmem:[#allocation7_spill] sm:$0xff] %v1102_v63  ;;  %v295_v1 = vld [vmem:[%s937_s16 + $0x2a0] sm:$0xff]  ;;  %v1112_v13 = vsub.f32 %v280_v17, %v388_v22  ;;  %v1114_v8 = vsub.f32 %v281_v18, %v389_v32 }
  0x33   : > { %1482 = vst [vmem:[#allocation8_spill] sm:$0xff] %v1104_v0  ;;  %v296_v50 = vld [vmem:[%s937_s16 + $0x2a8] sm:$0xff]  ;;  %v297_v57 = vld [vmem:[%s937_s16 + $0x2b0] sm:$0xff]  ;;  %v391_v58 = vld [vmem:[%s951_s19 + $0x240] sm:$0xff]  ;;  %v1116_v9 = vsub.f32 %v282_v19, %v390_v39 }
  0x34   : > { %v392_v55 = vld [vmem:[%s951_s19 + $0x248] sm:$0xff]  ;;  %v393_v54 = vld [vmem:[%s951_s19 + $0x250] sm:$0xff]  ;;  %1483 = vst [vmem:[#allocation9_spill] sm:$0xff] %v1112_v13  ;;  %1484 = vst [vmem:[#allocation10_spill] sm:$0xff] %v1114_v8  ;;  %v1124_v40 = vsub.f32 %v283_v29, %v391_v58 }
  0x35   : > { %1485 = vst [vmem:[#allocation11_spill] sm:$0xff] %v1116_v9  ;;  %v298_v10 = vld [vmem:[%s937_s16 + $0x2b8] sm:$0xff]  ;;  %v299_v4 = vld [vmem:[%s937_s16 + $0x2c0] sm:$0xff]  ;;  %v300_v11 = vld [vmem:[%s937_s16 + $0x2c8] sm:$0xff]  ;;  %v1126_v17 = vsub.f32 %v284_v30, %v392_v55  ;;  %v1128_v18 = vsub.f32 %v285_v31, %v393_v54 }
  0x36   : > { %v394_v12 = vld [vmem:[%s951_s19 + $0x258] sm:$0xff]  ;;  %v395_v0 = vld [vmem:[%s951_s19 + $0x260] sm:$0xff]  ;;  %v396_v63 = vld [vmem:[%s951_s19 + $0x268] sm:$0xff]  ;;  %1486 = vst [vmem:[#allocation12_spill] sm:$0xff] %v1124_v40 }
  0x37   : > { %1487 = vst [vmem:[#allocation13_spill] sm:$0xff] %v1126_v17  ;;  %1488 = vst [vmem:[#allocation14_spill] sm:$0xff] %v1128_v18  ;;  %v301_v19 = vld [vmem:[%s937_s16 + $0x2d0] sm:$0xff]  ;;  %v302_v22 = vld [vmem:[%s937_s16 + $0x2d8] sm:$0xff]  ;;  %v1136_v13 = vsub.f32 %v286_v38, %v394_v12  ;;  %v1138_v29 = vsub.f32 %v287_v48, %v395_v0  ;;  %v1140_v30 = vsub.f32 %v288_v49, %v396_v63 }
  0x38   : > { %v303_v32 = vld [vmem:[%s937_s16 + $0x2e0] sm:$0xff]  ;;  %v397_v39 = vld [vmem:[%s951_s19 + $0x270] sm:$0xff]  ;;  %v398_v9 = vld [vmem:[%s951_s19 + $0x278] sm:$0xff] }
  0x39   : > { %v399_v8 = vld [vmem:[%s951_s19 + $0x280] sm:$0xff]  ;;  %1489 = vst [vmem:[#allocation15_spill] sm:$0xff] %v1136_v13  ;;  %1490 = vst [vmem:[#allocation16_spill] sm:$0xff] %v1138_v29  ;;  %v304_v31 = vld [vmem:[%s937_s16 + $0x2e8] sm:$0xff]  ;;  %v1148_v40 = vsub.f32 %v289_v47, %v397_v39  ;;  %v1150_v38 = vsub.f32 %v290_v2, %v398_v9 }
  0x3a   : > { %1491 = vst [vmem:[#allocation17_spill] sm:$0xff] %v1140_v30  ;;  %v305_v54 = vld [vmem:[%s937_s16 + $0x2f0] sm:$0xff]  ;;  %v306_v55 = vld [vmem:[%s937_s16 + $0x2f8] sm:$0xff]  ;;  %v400_v58 = vld [vmem:[%s951_s19 + $0x288] sm:$0xff]  ;;  %v1152_v48 = vsub.f32 %v291_v3, %v399_v8 }
  0x3b   : > { %v401_v18 = vld [vmem:[%s951_s19 + $0x290] sm:$0xff]  ;;  %v402_v17 = vld [vmem:[%s951_s19 + $0x298] sm:$0xff]  ;;  %1492 = vst [vmem:[#allocation18_spill] sm:$0xff] %v1148_v40  ;;  %1493 = vst [vmem:[#allocation19_spill] sm:$0xff] %v1150_v38  ;;  %v1160_v13 = vsub.f32 %v292_v56, %v400_v58 }
  0x3c   : > { %1494 = vst [vmem:[#allocation20_spill] sm:$0xff] %v1152_v48  ;;  %v307_v49 = vld [vmem:[%s937_s16 + $0x300] sm:$0xff]  ;;  %v308_v63 = vld [vmem:[%s937_s16 + $0x308] sm:$0xff]  ;;  %v309_v0 = vld [vmem:[%s937_s16 + $0x310] sm:$0xff]  ;;  %v1162_v47 = vsub.f32 %v293_v20, %v401_v18  ;;  %v1164_v2 = vsub.f32 %v294_v21, %v402_v17 }
  0x3d   : > { %v403_v12 = vld [vmem:[%s951_s19 + $0x2a0] sm:$0xff]  ;;  %v404_v30 = vld [vmem:[%s951_s19 + $0x2a8] sm:$0xff]  ;;  %v405_v29 = vld [vmem:[%s951_s19 + $0x2b0] sm:$0xff]  ;;  %1495 = vst [vmem:[#allocation21_spill] sm:$0xff] %v1160_v13 }
  0x3e   : > { %1496 = vst [vmem:[#allocation22_spill] sm:$0xff] %v1162_v47  ;;  %1497 = vst [vmem:[#allocation23_spill] sm:$0xff] %v1164_v2  ;;  %v310_v3 = vld [vmem:[%s937_s16 + $0x318] sm:$0xff]  ;;  %v311_v8 = vld [vmem:[%s937_s16 + $0x320] sm:$0xff]  ;;  %v1172_v40 = vsub.f32 %v295_v1, %v403_v12  ;;  %v1174_v56 = vsub.f32 %v296_v50, %v404_v30  ;;  %v1176_v20 = vsub.f32 %v297_v57, %v405_v29 }
  0x3f   : > { %v312_v9 = vld [vmem:[%s937_s16 + $0x328] sm:$0xff]  ;;  %v406_v39 = vld [vmem:[%s951_s19 + $0x2b8] sm:$0xff]  ;;  %v407_v48 = vld [vmem:[%s951_s19 + $0x2c0] sm:$0xff] }
  0x40   : > { %v408_v38 = vld [vmem:[%s951_s19 + $0x2c8] sm:$0xff]  ;;  %1498 = vst [vmem:[#allocation24_spill] sm:$0xff] %v1172_v40  ;;  %1499 = vst [vmem:[#allocation25_spill] sm:$0xff] %v1174_v56  ;;  %v313_v21 = vld [vmem:[%s937_s16 + $0x330] sm:$0xff]  ;;  %v1184_v13 = vsub.f32 %v298_v10, %v406_v39  ;;  %v1186_v46 = vsub.f32 %v299_v4, %v407_v48 }
  0x41   : > { %1500 = vst [vmem:[#allocation26_spill] sm:$0xff] %v1176_v20  ;;  %v314_v17 = vld [vmem:[%s937_s16 + $0x338] sm:$0xff]  ;;  %v315_v18 = vld [vmem:[%s937_s16 + $0x340] sm:$0xff]  ;;  %v409_v58 = vld [vmem:[%s951_s19 + $0x2d0] sm:$0xff]  ;;  %v1188_v1 = vsub.f32 %v300_v11, %v408_v38 }
  0x42   : > { %v410_v2 = vld [vmem:[%s951_s19 + $0x2d8] sm:$0xff]  ;;  %v411_v47 = vld [vmem:[%s951_s19 + $0x2e0] sm:$0xff]  ;;  %v316_v50 = vld [vmem:[%s937_s16 + $0x348] sm:$0xff]  ;;  %v1196_v56 = vsub.f32 %v301_v19, %v409_v58 }
  0x43   : > { %1501 = vst [vmem:[#allocation27_spill] sm:$0xff] %v1188_v1  ;;  %v317_v57 = vld [vmem:[%s937_s16 + $0x350] sm:$0xff]  ;;  %v318_v29 = vld [vmem:[%s937_s16 + $0x358] sm:$0xff]  ;;  %v412_v30 = vld [vmem:[%s951_s19 + $0x2e8] sm:$0xff]  ;;  %v1198_v40 = vsub.f32 %v302_v22, %v410_v2  ;;  %v1200_v10 = vsub.f32 %v303_v32, %v411_v47 }
  0x44   : > { %v413_v12 = vld [vmem:[%s951_s19 + $0x2f0] sm:$0xff]  ;;  %v414_v20 = vld [vmem:[%s951_s19 + $0x2f8] sm:$0xff]  ;;  %1502 = vst [vmem:[#allocation28_spill] sm:$0xff] %v1196_v56  ;;  %v415_v4 = vld [vmem:[%s951_s19 + $0x300] sm:$0xff]  ;;  %v1205_v48 = vsub.f32 %v304_v31, %v412_v30 }
  0x45   : > { %v416_v11 = vld [vmem:[%s951_s19 + $0x308] sm:$0xff]  ;;  %v417_v38 = vld [vmem:[%s951_s19 + $0x310] sm:$0xff]  ;;  %v1207_v39 = vsub.f32 %v305_v54, %v413_v12  ;;  %v1209_v1 = vsub.f32 %v306_v55, %v414_v20  ;;  %v418_v19 = vld [vmem:[%s951_s19 + $0x318] sm:$0xff]  ;;  %v1214_v22 = vsub.f32 %v307_v49, %v415_v4 }
  0x46   : > { %v419_v58 = vld [vmem:[%s951_s19 + $0x320] sm:$0xff]  ;;  %v420_v56 = vld [vmem:[%s951_s19 + $0x328] sm:$0xff]  ;;  %v1216_v2 = vsub.f32 %v308_v63, %v416_v11  ;;  %v1218_v32 = vsub.f32 %v309_v0, %v417_v38  ;;  %v421_v47 = vld [vmem:[%s951_s19 + $0x330] sm:$0xff]  ;;  %v1223_v54 = vsub.f32 %v310_v3, %v418_v19 }
  0x47   : > { %1503 = vst [vmem:[#allocation29_spill] sm:$0xff] %v1209_v1  ;;  %1504 = vst [vmem:[#allocation30_spill] sm:$0xff] %v1214_v22  ;;  %v422_v31 = vld [vmem:[%s951_s19 + $0x338] sm:$0xff]  ;;  %v423_v30 = vld [vmem:[%s951_s19 + $0x340] sm:$0xff]  ;;  %v1225_v55 = vsub.f32 %v311_v8, %v419_v58  ;;  %v1227_v20 = vsub.f32 %v312_v9, %v420_v56  ;;  %v1232_v12 = vsub.f32 %v313_v21, %v421_v47 }
  0x48   : > { %1505 = vst [vmem:[#allocation31_spill] sm:$0xff] %v1216_v2  ;;  %1506 = vst [vmem:[#allocation32_spill] sm:$0xff] %v1218_v32  ;;  %v424_v49 = vld [vmem:[%s951_s19 + $0x348] sm:$0xff]  ;;  %v425_v63 = vld [vmem:[%s951_s19 + $0x350] sm:$0xff]  ;;  %v1234_v4 = vsub.f32 %v314_v17, %v422_v31  ;;  %v1236_v11 = vsub.f32 %v315_v18, %v423_v30 }
  0x49   : > { %1507 = vst [vmem:[#allocation33_spill] sm:$0xff] %v1223_v54  ;;  %1508 = vst [vmem:[#allocation34_spill] sm:$0xff] %v1225_v55  ;;  %v426_v0 = vld [vmem:[%s951_s19 + $0x358] sm:$0xff]  ;;  %v1238_v3 = vsub.f32 %v316_v50, %v424_v49  ;;  %v1240_v8 = vsub.f32 %v317_v57, %v425_v63  ;;  %v211_v9 = vld [vmem:[%s937_s16] sm:$0xff] }
  0x4a   : > { %1509 = vst [vmem:[#allocation35_spill] sm:$0xff] %v1227_v20  ;;  %1510 = vst [vmem:[#allocation36_spill] sm:$0xff] %v1232_v12  ;;  %v1242_v38 = vsub.f32 %v318_v29, %v426_v0  ;;  %v212_v56 = vld [vmem:[%s937_s16 + $0x8] sm:$0xff]  ;;  %v319_v19 = vld [vmem:[%s951_s19] sm:$0xff] }
  0x4b   : > { %1511 = vst [vmem:[#allocation37_spill] sm:$0xff] %v1234_v4  ;;  %1512 = vst [vmem:[#allocation38_spill] sm:$0xff] %v1236_v11  ;;  %v320_v58 = vld [vmem:[%s951_s19 + $0x8] sm:$0xff]  ;;  %v213_v21 = vld [vmem:[%s937_s16 + $0x10] sm:$0xff]  ;;  %v427_v47 = vsub.f32 %v211_v9, %v319_v19 }
  0x4c   : > { %1513 = vst [vmem:[#allocation39_spill] sm:$0xff] %v1238_v3  ;;  %1514 = vst [vmem:[#allocation40_spill] sm:$0xff] %v1240_v8  ;;  %v321_v17 = vld [vmem:[%s951_s19 + $0x10] sm:$0xff]  ;;  %v428_v18 = vsub.f32 %v212_v56, %v320_v58  ;;  %v214_v31 = vld [vmem:[%s937_s16 + $0x18] sm:$0xff] }
  0x4d   : > { %1515 = vst [vmem:[#allocation41_spill] sm:$0xff] %v1242_v38  ;;  %v322_v30 = vld [vmem:[%s951_s19 + $0x18] sm:$0xff]  ;;  %v429_v50 = vsub.f32 %v213_v21, %v321_v17  ;;  %v215_v57 = vld [vmem:[%s937_s16 + $0x20] sm:$0xff]  ;;  %v535_v63 = vmul.f32 %v427_v47, %v427_v47  ;;  %v216_v38 = vld [vmem:[%s937_s16 + $0x28] sm:$0xff] }
  0x4e   : > { %v323_v29 = vld [vmem:[%s951_s19 + $0x20] sm:$0xff]  ;;  %v430_v49 = vsub.f32 %v214_v31, %v322_v30  ;;  %v536_v0 = vmul.f32 %v428_v18, %v428_v18  ;;  %v324_v8 = vld [vmem:[%s951_s19 + $0x28] sm:$0xff]  ;;  %v217_v4 = vld [vmem:[%s937_s16 + $0x30] sm:$0xff] }
  0x4f   : > { %v431_v3 = vsub.f32 %v215_v57, %v323_v29  ;;  %v537_v11 = vmul.f32 %v429_v50, %v429_v50  ;;  %v325_v9 = vld [vmem:[%s951_s19 + $0x30] sm:$0xff]  ;;  %v432_v56 = vsub.f32 %v216_v38, %v324_v8  ;;  %v218_v21 = vld [vmem:[%s937_s16 + $0x38] sm:$0xff]  ;;  %v219_v18 = vld [vmem:[%s937_s16 + $0x40] sm:$0xff] }
  0x50   : > { %v538_v19 = vmul.f32 %v430_v49, %v430_v49  ;;  %v644_v58 = vadd.f32 %v536_v0, %v535_v63  ;;  %v326_v17 = vld [vmem:[%s951_s19 + $0x38] sm:$0xff]  ;;  %v433_v31 = vsub.f32 %v217_v4, %v325_v9  ;;  %v327_v12 = vld [vmem:[%s951_s19 + $0x40] sm:$0xff]  ;;  %v220_v20 = vld [vmem:[%s937_s16 + $0x48] sm:$0xff] }
  0x51   : > { %v539_v47 = vmul.f32 %v431_v3, %v431_v3  ;;  %v434_v57 = vsub.f32 %v218_v21, %v326_v17  ;;  %v540_v50 = vmul.f32 %v432_v56, %v432_v56  ;;  %v328_v8 = vld [vmem:[%s951_s19 + $0x48] sm:$0xff]  ;;  %v435_v38 = vsub.f32 %v219_v18, %v327_v12  ;;  %v221_v0 = vld [vmem:[%s937_s16 + $0x50] sm:$0xff]  ;;  %v330_v21 = vld [vmem:[%s951_s19 + $0x58] sm:$0xff] }
  0x52   : > { %v645_v30 = vadd.f32 %v644_v58, %v537_v11  ;;  %v541_v49 = vmul.f32 %v433_v31, %v433_v31  ;;  %v329_v4 = vld [vmem:[%s951_s19 + $0x50] sm:$0xff]  ;;  %v436_v3 = vsub.f32 %v220_v20, %v328_v8  ;;  %v222_v58 = vld [vmem:[%s937_s16 + $0x58] sm:$0xff]  ;;  %v331_v12 = vld [vmem:[%s951_s19 + $0x60] sm:$0xff] }
  0x53   : > { %v542_v11 = vmul.f32 %v434_v57, %v434_v57  ;;  %v437_v56 = vsub.f32 %v221_v0, %v329_v4  ;;  %v438_v31 = vsub.f32 %v222_v58, %v330_v21  ;;  %v332_v20 = vld [vmem:[%s951_s19 + $0x68] sm:$0xff]  ;;  %v333_v0 = vld [vmem:[%s951_s19 + $0x70] sm:$0xff]  ;;  %v334_v58 = vld [vmem:[%s951_s19 + $0x78] sm:$0xff] }
  0x54   : > { %v646_v29 = vadd.f32 %v645_v30, %v538_v19  ;;  %v543_v19 = vmul.f32 %v435_v38, %v435_v38  ;;  %v223_v30 = vld [vmem:[%s937_s16 + $0x60] sm:$0xff]  ;;  %v349_v55 = vld [vmem:[%s951_s19 + $0xf0] sm:$0xff] }
  0x55   : > { %v439_v57 = vsub.f32 %v223_v30, %v331_v12  ;;  %v335_v30 = vld [vmem:[%s951_s19 + $0x80] sm:$0xff] }
  0x56   : > { %v647_v63 = vadd.f32 %v646_v29, %v539_v47  ;;  %v544_v47 = vmul.f32 %v436_v3, %v436_v3  ;;  %v224_v29 = vld [vmem:[%s937_s16 + $0x68] sm:$0xff] }
  0x57   : > { %v440_v38 = vsub.f32 %v224_v29, %v332_v20  ;;  %v336_v29 = vld [vmem:[%s951_s19 + $0x88] sm:$0xff] }
  0x58   : > { %v648_v9 = vadd.f32 %v647_v63, %v540_v50  ;;  %v545_v50 = vmul.f32 %v437_v56, %v437_v56  ;;  %v225_v63 = vld [vmem:[%s937_s16 + $0x70] sm:$0xff] }
  0x59   : > { %v441_v3 = vsub.f32 %v225_v63, %v333_v0  ;;  %v337_v63 = vld [vmem:[%s951_s19 + $0x90] sm:$0xff] }
  0x5a   : > { %v649_v17 = vadd.f32 %v648_v9, %v541_v49  ;;  %v546_v49 = vmul.f32 %v438_v31, %v438_v31  ;;  %v226_v9 = vld [vmem:[%s937_s16 + $0x78] sm:$0xff] }
  0x5b   : > { %v442_v56 = vsub.f32 %v226_v9, %v334_v58  ;;  %v338_v9 = vld [vmem:[%s951_s19 + $0x98] sm:$0xff] }
  0x5c   : > { %v650_v18 = vadd.f32 %v649_v17, %v542_v11  ;;  %v547_v11 = vmul.f32 %v439_v57, %v439_v57  ;;  %v227_v17 = vld [vmem:[%s937_s16 + $0x80] sm:$0xff] }
  0x5d   : > { %v443_v31 = vsub.f32 %v227_v17, %v335_v30  ;;  %v339_v17 = vld [vmem:[%s951_s19 + $0xa0] sm:$0xff] }
  0x5e   : > { %v651_v8 = vadd.f32 %v650_v18, %v543_v19  ;;  %v548_v19 = vmul.f32 %v440_v38, %v440_v38  ;;  %v228_v18 = vld [vmem:[%s937_s16 + $0x88] sm:$0xff] }
  0x5f   : > { %v444_v57 = vsub.f32 %v228_v18, %v336_v29  ;;  %v340_v18 = vld [vmem:[%s951_s19 + $0xa8] sm:$0xff] }
  0x60   : > { %v652_v4 = vadd.f32 %v651_v8, %v544_v47  ;;  %v549_v47 = vmul.f32 %v441_v3, %v441_v3  ;;  %v229_v8 = vld [vmem:[%s937_s16 + $0x90] sm:$0xff] }
  0x61   : > { %v445_v38 = vsub.f32 %v229_v8, %v337_v63  ;;  %v341_v8 = vld [vmem:[%s951_s19 + $0xb0] sm:$0xff] }
  0x62   : > { %v653_v21 = vadd.f32 %v652_v4, %v545_v50  ;;  %v550_v50 = vmul.f32 %v442_v56, %v442_v56  ;;  %v230_v4 = vld [vmem:[%s937_s16 + $0x98] sm:$0xff] }
  0x63   : > { %v446_v3 = vsub.f32 %v230_v4, %v338_v9  ;;  %v342_v4 = vld [vmem:[%s951_s19 + $0xb8] sm:$0xff] }
  0x64   : > { %v654_v12 = vadd.f32 %v653_v21, %v546_v49  ;;  %v551_v49 = vmul.f32 %v443_v31, %v443_v31  ;;  %v231_v21 = vld [vmem:[%s937_s16 + $0xa0] sm:$0xff] }
  0x65   : > { %v447_v56 = vsub.f32 %v231_v21, %v339_v17  ;;  %v343_v21 = vld [vmem:[%s951_s19 + $0xc0] sm:$0xff] }
  0x66   : > { %v655_v20 = vadd.f32 %v654_v12, %v547_v11  ;;  %v552_v11 = vmul.f32 %v444_v57, %v444_v57  ;;  %v232_v12 = vld [vmem:[%s937_s16 + $0xa8] sm:$0xff] }
  0x67   : > { %v448_v31 = vsub.f32 %v232_v12, %v340_v18  ;;  %v344_v12 = vld [vmem:[%s951_s19 + $0xc8] sm:$0xff] }
  0x68   : > { %v656_v0 = vadd.f32 %v655_v20, %v548_v19  ;;  %v553_v19 = vmul.f32 %v445_v38, %v445_v38  ;;  %v233_v20 = vld [vmem:[%s937_s16 + $0xb0] sm:$0xff] }
  0x69   : > { %v449_v57 = vsub.f32 %v233_v20, %v341_v8  ;;  %v345_v20 = vld [vmem:[%s951_s19 + $0xd0] sm:$0xff] }
  0x6a   : > { %v657_v58 = vadd.f32 %v656_v0, %v549_v47  ;;  %v554_v47 = vmul.f32 %v446_v3, %v446_v3  ;;  %v234_v0 = vld [vmem:[%s937_s16 + $0xb8] sm:$0xff] }
  0x6b   : > { %v450_v38 = vsub.f32 %v234_v0, %v342_v4  ;;  %v346_v0 = vld [vmem:[%s951_s19 + $0xd8] sm:$0xff] }
  0x6c   : > { %v658_v30 = vadd.f32 %v657_v58, %v550_v50  ;;  %v555_v50 = vmul.f32 %v447_v56, %v447_v56  ;;  %v235_v58 = vld [vmem:[%s937_s16 + $0xc0] sm:$0xff] }
  0x6d   : > { %v451_v3 = vsub.f32 %v235_v58, %v343_v21  ;;  %v347_v58 = vld [vmem:[%s951_s19 + $0xe0] sm:$0xff] }
  0x6e   : > { %v659_v29 = vadd.f32 %v658_v30, %v551_v49  ;;  %v556_v49 = vmul.f32 %v448_v31, %v448_v31  ;;  %v236_v30 = vld [vmem:[%s937_s16 + $0xc8] sm:$0xff] }
  0x6f   : > { %v452_v56 = vsub.f32 %v236_v30, %v344_v12  ;;  %v348_v30 = vld [vmem:[%s951_s19 + $0xe8] sm:$0xff] }
  0x70   : > { %v660_v63 = vadd.f32 %v659_v29, %v552_v11  ;;  %v557_v11 = vmul.f32 %v449_v57, %v449_v57  ;;  %v237_v29 = vld [vmem:[%s937_s16 + $0xd0] sm:$0xff] }
  0x71   : > { %v453_v31 = vsub.f32 %v237_v29, %v345_v20  ;;  %v350_v20 = vld [vmem:[%s951_s19 + $0xf8] sm:$0xff] }
  0x72   : > { %v661_v9 = vadd.f32 %v660_v63, %v553_v19  ;;  %v558_v19 = vmul.f32 %v450_v38, %v450_v38  ;;  %v238_v63 = vld [vmem:[%s937_s16 + $0xd8] sm:$0xff] }
  0x73   : > { %v454_v57 = vsub.f32 %v238_v63, %v346_v0  ;;  %v243_v63 = vld [vmem:[%s937_s16 + $0x100] sm:$0xff] }
  0x74   : > { %v662_v17 = vadd.f32 %v661_v9, %v554_v47  ;;  %v559_v47 = vmul.f32 %v451_v3, %v451_v3  ;;  %v239_v9 = vld [vmem:[%s937_s16 + $0xe0] sm:$0xff] }
  0x75   : > { %v455_v38 = vsub.f32 %v239_v9, %v347_v58  ;;  %v562_v29 = vmul.f32 %v454_v57, %v454_v57  ;;  %v568_v57 = vmul.f32 %v968_v24, %v968_v24  ;;  %v573_v24 = vmul.f32 %v984_v35, %v984_v35 }
  0x76   : > { %v663_v18 = vadd.f32 %v662_v17, %v555_v50  ;;  %v560_v50 = vmul.f32 %v452_v56, %v452_v56  ;;  %v240_v17 = vld [vmem:[%s937_s16 + $0xe8] sm:$0xff]  ;;  %v351_v56 = vld [vmem:[%s951_s19 + $0x100] sm:$0xff]  ;;  %v578_v35 = vmul.f32 %v1006_v52, %v1006_v52  ;;  %v583_v52 = vmul.f32 %v1028_v5, %v1028_v5 }
  0x77   : > { %v456_v54 = vsub.f32 %v240_v17, %v348_v30  ;;  %v563_v32 = vmul.f32 %v455_v38, %v455_v38  ;;  %v459_v22 = vsub.f32 %v243_v63, %v351_v56  ;;  %v570_v30 = vmul.f32 %v972_v26, %v972_v26 }
  0x78   : > { %v664_v8 = vadd.f32 %v663_v18, %v556_v49  ;;  %v561_v49 = vmul.f32 %v453_v31, %v453_v31  ;;  %v241_v18 = vld [vmem:[%s937_s16 + $0xf0] sm:$0xff]  ;;  %v575_v26 = vmul.f32 %v994_v43, %v994_v43  ;;  %v580_v43 = vmul.f32 %v1016_v60, %v1016_v60 }
  0x79   : > { %v564_v0 = vmul.f32 %v456_v54, %v456_v54  ;;  %v567_v58 = vmul.f32 %v459_v22, %v459_v22  ;;  %v572_v22 = vmul.f32 %v982_v34, %v982_v34  ;;  %v577_v34 = vmul.f32 %v1004_v51, %v1004_v51 }
  0x7a   : > { %v665_v4 = vadd.f32 %v664_v8, %v557_v11  ;;  %v242_v11 = vld [vmem:[%s937_s16 + $0xf8] sm:$0xff]  ;;  %v457_v8 = vsub.f32 %v241_v18, %v349_v55  ;;  %v569_v55 = vmul.f32 %v970_v25, %v970_v25  ;;  %v574_v25 = vmul.f32 %v992_v42, %v992_v42 }
  0x7b   : > { %v579_v42 = vmul.f32 %v1008_v53, %v1008_v53  ;;  %v582_v51 = vmul.f32 %v1020_v62, %v1020_v62  ;;  %v584_v53 = vmul.f32 %v1030_v6, %v1030_v6  ;;  %v585_v60 = vmul.f32 %v1032_v7, %v1032_v7 }
  0x7c   : > { %v666_v21 = vadd.f32 %v665_v4, %v558_v19  ;;  %v458_v19 = vsub.f32 %v242_v11, %v350_v20  ;;  %v565_v1 = vmul.f32 %v457_v8, %v457_v8  ;;  %v587_v62 = vmul.f32 %v1042_v15, %v1042_v15 }
  0x7d   : > { %v588_v5 = vmul.f32 %v1044_v16, %v1044_v16  ;;  %v589_v6 = vmul.f32 %v1052_v23, %v1052_v23  ;;  %v590_v7 = vmul.f32 %v1054_v27, %v1054_v27  ;;  %v592_v15 = vmul.f32 %v1064_v41, %v1064_v41 }
  0x7e   : > { %v667_v12 = vadd.f32 %v666_v21, %v559_v47  ;;  %v566_v31 = vmul.f32 %v458_v19, %v458_v19  ;;  %v593_v16 = vmul.f32 %v1066_v36, %v1066_v36  ;;  %v594_v23 = vmul.f32 %v1068_v37, %v1068_v37 }
  0x7f   : > { %v595_v27 = vmul.f32 %v1076_v59, %v1076_v59 }
  0x80   : > { %v668_v3 = vadd.f32 %v667_v12, %v560_v50 }
  0x82   : > { %v669_v2 = vadd.f32 %v668_v3, %v561_v49 }
  0x84   : > { %v670_v4 = vadd.f32 %v669_v2, %v562_v29  ;;  %v571_v2 = vmul.f32 %v980_v33, %v980_v33  ;;  %v576_v33 = vmul.f32 %v996_v44, %v996_v44  ;;  %v581_v44 = vmul.f32 %v1018_v61, %v1018_v61 }
  0x85   : > { %v586_v61 = vmul.f32 %v1040_v14, %v1040_v14  ;;  %v591_v14 = vmul.f32 %v1056_v28, %v1056_v28  ;;  %v596_v28 = vmul.f32 %v1078_v45, %v1078_v45 }
  0x86   : > { %v671_v9 = vadd.f32 %v670_v4, %v563_v32 }
  0x88   : > { %v672_v47 = vadd.f32 %v671_v9, %v564_v0 }
  0x8a   : > { %v673_v21 = vadd.f32 %v672_v47, %v565_v1 }
  0x8c   : > { %v674_v50 = vadd.f32 %v673_v21, %v566_v31 }
  0x8e   : > { %v675_v17 = vadd.f32 %v674_v50, %v567_v58 }
  0x90   : > { %v676_v54 = vadd.f32 %v675_v17, %v568_v57 }
  0x92   : > { %v677_v32 = vadd.f32 %v676_v54, %v569_v55  ;;  %v1516_v54 = vld [vmem:[#allocation2_spill] sm:$0xff] }
  0x93   : > { %v597_v41 = vmul.f32 %v1516_v54, %v1516_v54 }
  0x94   : > { %v678_v1 = vadd.f32 %v677_v32, %v570_v30  ;;  %v1517_v32 = vld [vmem:[#allocation3_spill] sm:$0xff] }
  0x95   : > { %v598_v36 = vmul.f32 %v1517_v32, %v1517_v32 }
  0x96   : > { %v679_v38 = vadd.f32 %v678_v1, %v571_v2  ;;  %v1518_v1 = vld [vmem:[#allocation4_spill] sm:$0xff] }
  0x97   : > { %v599_v37 = vmul.f32 %v1518_v1, %v1518_v1 }
  0x98   : > { %v680_v49 = vadd.f32 %v679_v38, %v572_v22  ;;  %v1519_v38 = vld [vmem:[#allocation5_spill] sm:$0xff] }
  0x99   : > { %v600_v59 = vmul.f32 %v1519_v38, %v1519_v38 }
  0x9a   : > { %v681_v12 = vadd.f32 %v680_v49, %v573_v24  ;;  %v1520_v49 = vld [vmem:[#allocation6_spill] sm:$0xff] }
  0x9b   : > { %v601_v45 = vmul.f32 %v1520_v49, %v1520_v49 }
  0x9c   : > { %v682_v18 = vadd.f32 %v681_v12, %v574_v25  ;;  %v1521_v12 = vld [vmem:[#allocation7_spill] sm:$0xff] }
  0x9e   : > { %v683_v29 = vadd.f32 %v682_v18, %v575_v26 }
  0xa0   : > { %v684_v3 = vadd.f32 %v683_v29, %v576_v33  ;;  %v602_v33 = vmul.f32 %v1521_v12, %v1521_v12 }
  0xa2   : > { %v685_v11 = vadd.f32 %v684_v3, %v577_v34  ;;  %v1522_v34 = vld [vmem:[#allocation8_spill] sm:$0xff]  ;;  %v1523_v3 = vld [vmem:[#allocation9_spill] sm:$0xff] }
  0xa3   : > { %v603_v29 = vmul.f32 %v1522_v34, %v1522_v34 }
  0xa4   : > { %v686_v20 = vadd.f32 %v685_v11, %v578_v35 }
  0xa6   : > { %v687_v8 = vadd.f32 %v686_v20, %v579_v42  ;;  %v604_v42 = vmul.f32 %v1523_v3, %v1523_v3  ;;  %v1541_v3 = vld [vmem:[#allocation27_spill] sm:$0xff] }
  0xa8   : > { %v688_v63 = vadd.f32 %v687_v8, %v580_v43  ;;  %v1524_v43 = vld [vmem:[#allocation10_spill] sm:$0xff]  ;;  %v1525_v8 = vld [vmem:[#allocation11_spill] sm:$0xff] }
  0xa9   : > { %v605_v20 = vmul.f32 %v1524_v43, %v1524_v43  ;;  %v1542_v43 = vld [vmem:[#allocation28_spill] sm:$0xff] }
  0xaa   : > { %v689_v56 = vadd.f32 %v688_v63, %v581_v44 }
  0xac   : > { %v690_v19 = vadd.f32 %v689_v56, %v582_v51  ;;  %v606_v51 = vmul.f32 %v1525_v8, %v1525_v8  ;;  %v626_v8 = vmul.f32 %v1198_v40, %v1198_v40 }
  0xae   : > { %v691_v0 = vadd.f32 %v690_v19, %v583_v52  ;;  %v1526_v52 = vld [vmem:[#allocation12_spill] sm:$0xff]  ;;  %v1527_v19 = vld [vmem:[#allocation13_spill] sm:$0xff] }
  0xaf   : > { %v607_v56 = vmul.f32 %v1526_v52, %v1526_v52 }
  0xb0   : > { %v692_v4 = vadd.f32 %v691_v0, %v584_v53 }
  0xb2   : > { %v693_v9 = vadd.f32 %v692_v4, %v585_v60  ;;  %v608_v60 = vmul.f32 %v1527_v19, %v1527_v19  ;;  %v1543_v19 = vld [vmem:[#allocation29_spill] sm:$0xff] }
  0xb4   : > { %v694_v31 = vadd.f32 %v693_v9, %v586_v61  ;;  %v1528_v61 = vld [vmem:[#allocation14_spill] sm:$0xff]  ;;  %v1529_v9 = vld [vmem:[#allocation15_spill] sm:$0xff] }
  0xb5   : > { %v609_v4 = vmul.f32 %v1528_v61, %v1528_v61  ;;  %v1544_v61 = vld [vmem:[#allocation30_spill] sm:$0xff] }
  0xb6   : > { %v695_v47 = vadd.f32 %v694_v31, %v587_v62  ;;  %v631_v40 = vmul.f32 %v1544_v61, %v1544_v61 }
  0xb8   : > { %v696_v58 = vadd.f32 %v695_v47, %v588_v5  ;;  %v610_v5 = vmul.f32 %v1529_v9, %v1529_v9 }
  0xba   : > { %v697_v21 = vadd.f32 %v696_v58, %v589_v6  ;;  %v1530_v6 = vld [vmem:[#allocation16_spill] sm:$0xff]  ;;  %v1531_v58 = vld [vmem:[#allocation17_spill] sm:$0xff] }
  0xbb   : > { %v611_v47 = vmul.f32 %v1530_v6, %v1530_v6  ;;  %v1547_v6 = vld [vmem:[#allocation33_spill] sm:$0xff] }
  0xbc   : > { %v698_v57 = vadd.f32 %v697_v21, %v590_v7 }
  0xbe   : > { %v699_v50 = vadd.f32 %v698_v57, %v591_v14  ;;  %v612_v14 = vmul.f32 %v1531_v58, %v1531_v58 }
  0xc0   : > { %v700_v55 = vadd.f32 %v699_v50, %v592_v15  ;;  %v1532_v15 = vld [vmem:[#allocation18_spill] sm:$0xff]  ;;  %v1533_v50 = vld [vmem:[#allocation19_spill] sm:$0xff] }
  0xc1   : > { %v613_v57 = vmul.f32 %v1532_v15, %v1532_v15 }
  0xc2   : > { %v701_v17 = vadd.f32 %v700_v55, %v593_v16 }
  0xc4   : > { %v702_v30 = vadd.f32 %v701_v17, %v594_v23  ;;  %v614_v23 = vmul.f32 %v1533_v50, %v1533_v50 }
  0xc6   : > { %v703_v2 = vadd.f32 %v702_v30, %v595_v27  ;;  %v1534_v27 = vld [vmem:[#allocation20_spill] sm:$0xff]  ;;  %v1535_v30 = vld [vmem:[#allocation21_spill] sm:$0xff] }
  0xc7   : > { %v615_v17 = vmul.f32 %v1534_v27, %v1534_v27  ;;  %v616_v54 = vmul.f32 %v1535_v30, %v1535_v30 }
  0xc8   : > { %v704_v22 = vadd.f32 %v703_v2, %v596_v28  ;;  %v1536_v2 = vld [vmem:[#allocation22_spill] sm:$0xff] }
  0xc9   : > { %v617_v32 = vmul.f32 %v1536_v2, %v1536_v2 }
  0xca   : > { %v705_v24 = vadd.f32 %v704_v22, %v597_v41  ;;  %v1537_v22 = vld [vmem:[#allocation23_spill] sm:$0xff] }
  0xcb   : > { %v618_v1 = vmul.f32 %v1537_v22, %v1537_v22 }
  0xcc   : > { %v706_v25 = vadd.f32 %v705_v24, %v598_v36  ;;  %v1538_v24 = vld [vmem:[#allocation24_spill] sm:$0xff] }
  0xcd   : > { %v619_v38 = vmul.f32 %v1538_v24, %v1538_v24 }
  0xce   : > { %v707_v26 = vadd.f32 %v706_v25, %v599_v37  ;;  %v1539_v25 = vld [vmem:[#allocation25_spill] sm:$0xff] }
  0xcf   : > { %v620_v49 = vmul.f32 %v1539_v25, %v1539_v25 }
  0xd0   : > { %v708_v18 = vadd.f32 %v707_v26, %v600_v59  ;;  %v1540_v26 = vld [vmem:[#allocation26_spill] sm:$0xff] }
  0xd1   : > { %v621_v12 = vmul.f32 %v1540_v26, %v1540_v26 }
  0xd2   : > { %v709_v35 = vadd.f32 %v708_v18, %v601_v45  ;;  %v622_v18 = vmul.f32 %v1184_v13, %v1184_v13  ;;  %v627_v13 = vmul.f32 %v1200_v10, %v1200_v10 }
  0xd4   : > { %v710_v11 = vadd.f32 %v709_v35, %v602_v33 }
  0xd6   : > { %v711_v44 = vadd.f32 %v710_v11, %v603_v29  ;;  %v623_v29 = vmul.f32 %v1186_v46, %v1186_v46  ;;  %v628_v46 = vmul.f32 %v1205_v48, %v1205_v48 }
  0xd8   : > { %v712_v63 = vadd.f32 %v711_v44, %v604_v42  ;;  %v624_v42 = vmul.f32 %v1541_v3, %v1541_v3 }
  0xda   : > { %v713_v53 = vadd.f32 %v712_v63, %v605_v20  ;;  %v625_v20 = vmul.f32 %v1542_v43, %v1542_v43 }
  0xdc   : > { %v714_v0 = vadd.f32 %v713_v53, %v606_v51 }
  0xde   : > { %v715_v62 = vadd.f32 %v714_v0, %v607_v56  ;;  %v629_v56 = vmul.f32 %v1207_v39, %v1207_v39  ;;  %v634_v39 = vmul.f32 %v1547_v6, %v1547_v6 }
  0xe0   : > { %v716_v31 = vadd.f32 %v715_v62, %v608_v60  ;;  %v630_v60 = vmul.f32 %v1543_v19, %v1543_v19  ;;  %v1545_v62 = vld [vmem:[#allocation31_spill] sm:$0xff] }
  0xe1   : > { %v632_v10 = vmul.f32 %v1545_v62, %v1545_v62 }
  0xe2   : > { %v717_v7 = vadd.f32 %v716_v31, %v609_v4 }
  0xe4   : > { %v718_v21 = vadd.f32 %v717_v7, %v610_v5  ;;  %v1546_v5 = vld [vmem:[#allocation32_spill] sm:$0xff]  ;;  %v1548_v7 = vld [vmem:[#allocation34_spill] sm:$0xff] }
  0xe5   : > { %v633_v48 = vmul.f32 %v1546_v5, %v1546_v5  ;;  %v635_v58 = vmul.f32 %v1548_v7, %v1548_v7 }
  0xe6   : > { %v719_v16 = vadd.f32 %v718_v21, %v611_v47  ;;  %v1549_v21 = vld [vmem:[#allocation35_spill] sm:$0xff] }
  0xe7   : > { %v636_v15 = vmul.f32 %v1549_v21, %v1549_v21 }
  0xe8   : > { %v720_v55 = vadd.f32 %v719_v16, %v612_v14  ;;  %v1550_v16 = vld [vmem:[#allocation36_spill] sm:$0xff] }
  0xe9   : > { %v637_v50 = vmul.f32 %v1550_v16, %v1550_v16 }
  0xea   : > { %v721_v28 = vadd.f32 %v720_v55, %v613_v57  ;;  %v1551_v55 = vld [vmem:[#allocation37_spill] sm:$0xff] }
  0xeb   : > { %v638_v27 = vmul.f32 %v1551_v55, %v1551_v55 }
  0xec   : > { %v722_v41 = vadd.f32 %v721_v28, %v614_v23  ;;  %v1552_v28 = vld [vmem:[#allocation38_spill] sm:$0xff] }
  0xed   : > { %v639_v30 = vmul.f32 %v1552_v28, %v1552_v28 }
  0xee   : > { %v723_v36 = vadd.f32 %v722_v41, %v615_v17  ;;  %v1553_v41 = vld [vmem:[#allocation39_spill] sm:$0xff] }
  0xef   : > { %v640_v2 = vmul.f32 %v1553_v41, %v1553_v41 }
  0xf0   : > { %v724_v37 = vadd.f32 %v723_v36, %v616_v54  ;;  %v1554_v36 = vld [vmem:[#allocation40_spill] sm:$0xff] }
  0xf1   : > { %v641_v22 = vmul.f32 %v1554_v36, %v1554_v36 }
  0xf2   : > { %v725_v59 = vadd.f32 %v724_v37, %v617_v32  ;;  %v1555_v37 = vld [vmem:[#allocation41_spill] sm:$0xff] }
  0xf3   : > { %v642_v24 = vmul.f32 %v1555_v37, %v1555_v37 }
  0xf4   : > { %v726_v45 = vadd.f32 %v725_v59, %v618_v1 }
  0xf6   : > { %v727_v33 = vadd.f32 %v726_v45, %v619_v38 }
  0xf8   : > { %v728_v34 = vadd.f32 %v727_v33, %v620_v49 }
  0xfa   : > { %v729_v35 = vadd.f32 %v728_v34, %v621_v12 }
  0xfc   : > { %v730_v11 = vadd.f32 %v729_v35, %v622_v18 }
  0xfe   : > { %v731_v44 = vadd.f32 %v730_v11, %v623_v29 }
 0x100   : > { %v732_v51 = vadd.f32 %v731_v44, %v624_v42 }
 0x102   : > { %v733_v63 = vadd.f32 %v732_v51, %v625_v20 }
 0x104   : > { %v734_v52 = vadd.f32 %v733_v63, %v626_v8 }
 0x106   : > { %v735_v53 = vadd.f32 %v734_v52, %v627_v13 }
 0x108   : > { %v736_v0 = vadd.f32 %v735_v53, %v628_v46 }
 0x10a   : > { %v737_v4 = vadd.f32 %v736_v0, %v629_v56 }
 0x10c   : > { %v738_v9 = vadd.f32 %v737_v4, %v630_v60 }
 0x10e   : > { %v739_v31 = vadd.f32 %v738_v9, %v631_v40 }
 0x110   : > { %v740_v47 = vadd.f32 %v739_v31, %v632_v10 }
 0x112   : > { %v741_v14 = vadd.f32 %v740_v47, %v633_v48 }
 0x114   : > { %v742_v57 = vadd.f32 %v741_v14, %v634_v39 }
 0x116   : > { %v743_v23 = vadd.f32 %v742_v57, %v635_v58 }
 0x118   : > { %v744_v17 = vadd.f32 %v743_v23, %v636_v15 }
 0x11a   : > { %v745_v54 = vadd.f32 %v744_v17, %v637_v50 }
 0x11c   : > { %v746_v32 = vadd.f32 %v745_v54, %v638_v27 }
 0x11e   : > { %v747_v1 = vadd.f32 %v746_v32, %v639_v30 }
 0x120   : > { %v748_v38 = vadd.f32 %v747_v1, %v640_v2 }
 0x122   : > { %v749_v59 = vadd.f32 %v748_v38, %v641_v22 }
 0x124   : > { %v750_v25 = vadd.f32 %v749_v59, %v642_v24 }
 0x126   : > { %752 = vst [vmem:[%s205_s23] sm:$0xff] %v750_v25 }
 0x127 PF: > { %s12_s11 = sadd.s32 1, %s896_s11   ;;  %s1556_s9 = smov %s892_s10 }
 0x128   : > { %p9_p5 = scmp.ge.s32.totalorder %s12_s11, 4   ;;  %s1557_s10 = smov %s1559_s12 }
 0x12a   :  { %11 = sbr.rel (!%p9_p5) target bundleno = 2 (0x2), region = 65 }

// kernel: run.7
= control target key start
LH: loop header
LB: loop body
LE: loop exit
PB: predicated region body
PF: predicated region fallthrough
CT: control target
= control target key end

     0   :  { %11 = vsyncpa [#allocation3], 0  ;;  %s8455_s0 = inlined_call_operand.vmem [shape: f32[6,192,192], index: 0, kind: input, shape index: {}]   ;;  %s8456_s1 = inlined_call_operand.vmem [shape: f32[6,192,192], index: 1, kind: input, shape index: {}]   ;;  %s8457_s2 = inlined_call_operand.vmem [shape: f32[182,192], index: 2, kind: input, shape index: {}]   ;;  %s8458_s3 = inlined_call_operand.vmem [shape: f32[192,182], index: 3, kind: input, shape index: {}]   ;;  %s8459_s4 = inlined_call_operand.hbm [shape: f32[6,1,182], index: 4, kind: output, shape index: {0}]   ;;  %s8460_s5 = inlined_call_operand.vmem [shape: f32[6,1,182], index: 5, kind: output, shape index: {1}]  }
   0x1   :  { %13 = vsyncpa [#allocation3 + $0x1], 0  ;;  %s5036_s18 = smov 0   ;;  %s5038_s19 = smov 0  }
   0x2   :  { %s5040_s20 = smov 0   ;;  %s5042_s21 = smov 0  }
   0x3 LB: > { %s5057_s22 = sadd.s32 4294967295, %s5002_s21   ;;  %s4014_s23 = sadd.s32 4294967294, %s5002_s21   ;;  %s5002_s21 = sphi %s5042_s21, %s9309_s21   ;;  %s4998_s20 = sphi %s5040_s20, %s9308_s20   ;;  %s4994_s19 = sphi %s5038_s19, %s9307_s19   ;;  %s4990_s18 = sphi %s5036_s18, %s9306_s18  }
   0x4   : > { %s5061_s24 = sadd.s32 1, %s5002_s21   ;;  %s120_s25 = sadd.s32 1, %s4998_s20 }
   0x5   : > { %s117_s26 = ssub.s32 %s5002_s21, %s5061_s24  ;;  %p130_p0 = scmp.ne.s32.totalorder %s4998_s20, %s4994_s19 }
   0x6   : > { %p118_p1 = scmp.eq.s32.totalorder %s117_s26, 0  ;;  %p131_p2 = scmp.eq.s32.totalorder %s5057_s22, 5 }
   0x7   : > { %p136_p3 = scmp.ne.s32.totalorder %s4994_s19, %s4990_s18  ;;  %p137_p4 = scmp.eq.s32.totalorder %s4014_s23, 5 }
   0x8   : > { %s5072_s27 = scalar_select %p118_p1, %s4998_s20, %s120_s25  }
   0x9   : > { %p5074_p5 = por %p131_p2, %p130_p0  ;;  %p5078_p6 = por %p137_p4, %p136_p3 }
   0xa   : > { %p4017_p7 = scmp.ge.s32.totalorder %s5002_s21, 1  ;;  %p203_p8 = scmp.lt.s32.totalorder %s5002_s21, 7 }
   0xc   : > { %p204_p9 = pnand %p4017_p7, %p203_p8 }
   0xe   : > { %207 = sbr.rel (%p204_p9) target bundleno = 1129 (0x469), region = 36 }
  0x15   : > { %v397_v0 = vld [vmem:[%s8458_s3 + $0x8] sm:$0xff]  ;;  %v399_v1 = vld [vmem:[%s8458_s3 + $0x18] sm:$0xff]  ;;  %v396_v2 = vld [vmem:[%s8458_s3] sm:$0xff]  ;;  %p240_p10 = scmp.lt.s32.totalorder %s5057_s22, 5  ;;  %vm588_vm0 = vcmask 523264   ;;  %vm3722_vm1 = vcmask 441344  }
  0x16   : > { %v4263_v3 = vpack.c.bf16 %v399_v1, %v397_v0  ;;  %v398_v4 = vld [vmem:[%s8458_s3 + $0x10] sm:$0xff]  ;;  %v401_v5 = vld [vmem:[%s8458_s3 + $0x28] sm:$0xff]  ;;  %v403_v6 = vld [vmem:[%s8458_s3 + $0x38] sm:$0xff]  ;;  %vm3713_vm2 = vcmask 1045504   ;;  %vm3766_vm3 = vcmask 439296   ;;  %s4262_s14 = sshll.u32 %s5057_s22, 5 }
  0x17   : > { %v4265_v7 = vpack.c.bf16 %v398_v4, %v396_v2  ;;  %v4267_v8 = vpack.c.bf16 %v403_v6, %v401_v5  ;;  %v400_v9 = vld [vmem:[%s8458_s3 + $0x20] sm:$0xff]  ;;  %v402_v10 = vld [vmem:[%s8458_s3 + $0x30] sm:$0xff]  ;;  %v405_v11 = vld [vmem:[%s8458_s3 + $0x48] sm:$0xff]  ;;  %s5124_s13 = scalar_select %p240_p10, %s5057_s22, 5 }
  0x18   : > { %4264 = vmatprep.subr.bf16.mxu0 %v4263_v3  ;;  %v407_v12 = vld [vmem:[%s8458_s3 + $0x58] sm:$0xff]  ;;  %v4269_v13 = vpack.c.bf16 %v402_v10, %v400_v9  ;;  %v404_v15 = vld [vmem:[%s8458_s3 + $0x40] sm:$0xff]  ;;  %v406_v16 = vld [vmem:[%s8458_s3 + $0x50] sm:$0xff]  ;;  %s8411_s8 = scalar_lea.hbm %s8459_s4, %s4262_s14  ;;  %s5005_s9 = smov [#allocation2]  }
  0x19   : > { %4266 = vmatpush1.bf16.msra.mxu0 %v4265_v7  ;;  %v4271_v14 = vpack.c.bf16 %v407_v12, %v405_v11  ;;  %v409_v17 = vld [vmem:[%s8458_s3 + $0x68] sm:$0xff]  ;;  %v411_v18 = vld [vmem:[%s8458_s3 + $0x78] sm:$0xff]  ;;  %v4273_v19 = vpack.c.bf16 %v406_v16, %v404_v15  ;;  %v408_v21 = vld [vmem:[%s8458_s3 + $0x60] sm:$0xff]  ;;  %s4551_s6 = smul.u32 384, %s5124_s13  ;;  %s4021_s12 = sshll.u32 %s5124_s13, 1 }
  0x1a   : > { %4268 = vmatprep.subr.bf16.mxu0 %v4267_v8  ;;  %v4275_v20 = vpack.c.bf16 %v411_v18, %v409_v17  ;;  %v410_v22 = vld [vmem:[%s8458_s3 + $0x70] sm:$0xff]  ;;  %v413_v23 = vld [vmem:[%s8458_s3 + $0x88] sm:$0xff]  ;;  %v415_v24 = vld [vmem:[%s8458_s3 + $0x98] sm:$0xff]  ;;  %s253_s26 = scalar_lea.vmem %s8460_s5, %s4021_s12 }
  0x1b   : > { %v4277_v25 = vpack.c.bf16 %v410_v22, %v408_v21  ;;  %v4279_v26 = vpack.c.bf16 %v415_v24, %v413_v23  ;;  %v412_v27 = vld [vmem:[%s8458_s3 + $0x80] sm:$0xff]  ;;  %v414_v28 = vld [vmem:[%s8458_s3 + $0x90] sm:$0xff]  ;;  %s5156_s23 = scalar_lea.vmem %s8455_s0, %s4551_s6  ;;  %v417_v29 = vld [vmem:[%s8458_s3 + $0xa8] sm:$0xff]  ;;  %s5456_s10 = scalar_lea.vmem %s8456_s1, %s4551_s6 }
  0x1c   : > { %v419_v30 = vld [vmem:[%s8458_s3 + $0xb8] sm:$0xff]  ;;  %v4281_v31 = vpack.c.bf16 %v414_v28, %v412_v27  ;;  %v5165_v32 = vld [vmem:[%s5156_s23 + $0x8] sm:$0xff]  ;;  %v416_v34 = vld [vmem:[%s8458_s3 + $0xa0] sm:$0xff]  ;;  %s4944_s6 = sshll.u32 %s5005_s9, 4  ;;  %s4945_s6 = int_to_ptr.vmem [resolvable:$false] %s4944_s6 }
  0x1d   : > { %4270 = vmatpush1.bf16.msra.mxu0 %v4269_v13  ;;  %v4283_v33 = vpack.c.bf16 %v419_v30, %v417_v29  ;;  %v418_v35 = vld [vmem:[%s8458_s3 + $0xb0] sm:$0xff]  ;;  %4022 = vmatprep.mubr.msk.f32.mxu0 %vm588_vm0, %v5165_v32  ;;  %v421_v36 = vld [vmem:[%s8458_s3 + $0xc8] sm:$0xff]  ;;  %v423_v37 = vld [vmem:[%s8458_s3 + $0xd8] sm:$0xff] }
  0x1e   : > { %4272 = vmatprep.subr.bf16.mxu0 %v4271_v14  ;;  %v4285_v38 = vpack.c.bf16 %v418_v35, %v416_v34  ;;  %v4287_v39 = vpack.c.bf16 %v423_v37, %v421_v36  ;;  %v420_v40 = vld [vmem:[%s8458_s3 + $0xc0] sm:$0xff]  ;;  %v422_v41 = vld [vmem:[%s8458_s3 + $0xd0] sm:$0xff]  ;;  %v425_v42 = vld [vmem:[%s8458_s3 + $0xe8] sm:$0xff] }
  0x1f   : > { %v427_v43 = vld [vmem:[%s8458_s3 + $0xf8] sm:$0xff]  ;;  %v4289_v44 = vpack.c.bf16 %v422_v41, %v420_v40  ;;  %v424_v46 = vld [vmem:[%s8458_s3 + $0xe0] sm:$0xff]  ;;  %v426_v47 = vld [vmem:[%s8458_s3 + $0xf0] sm:$0xff] }
  0x20   : > { %v4291_v45 = vpack.c.bf16 %v427_v43, %v425_v42  ;;  %v429_v48 = vld [vmem:[%s8458_s3 + $0x108] sm:$0xff]  ;;  %v431_v49 = vld [vmem:[%s8458_s3 + $0x118] sm:$0xff]  ;;  %v4293_v50 = vpack.c.bf16 %v426_v47, %v424_v46  ;;  %v428_v52 = vld [vmem:[%s8458_s3 + $0x100] sm:$0xff] }
  0x21   : > { %4274 = vmatpush1.bf16.msra.mxu0 %v4273_v19  ;;  %v4295_v51 = vpack.c.bf16 %v431_v49, %v429_v48  ;;  %v430_v53 = vld [vmem:[%s8458_s3 + $0x110] sm:$0xff]  ;;  %v433_v54 = vld [vmem:[%s8458_s3 + $0x128] sm:$0xff]  ;;  %v435_v55 = vld [vmem:[%s8458_s3 + $0x138] sm:$0xff] }
  0x22   : > { %4276 = vmatprep.subr.bf16.mxu0 %v4275_v20  ;;  %v4297_v56 = vpack.c.bf16 %v430_v53, %v428_v52  ;;  %v4299_v57 = vpack.c.bf16 %v435_v55, %v433_v54  ;;  %v432_v58 = vld [vmem:[%s8458_s3 + $0x120] sm:$0xff]  ;;  %v434_v59 = vld [vmem:[%s8458_s3 + $0x130] sm:$0xff]  ;;  %v437_v60 = vld [vmem:[%s8458_s3 + $0x148] sm:$0xff] }
  0x23   : > { %v439_v61 = vld [vmem:[%s8458_s3 + $0x158] sm:$0xff]  ;;  %v4301_v62 = vpack.c.bf16 %v434_v59, %v432_v58  ;;  %v436_v0 = vld [vmem:[%s8458_s3 + $0x140] sm:$0xff]  ;;  %v438_v1 = vld [vmem:[%s8458_s3 + $0x150] sm:$0xff] }
  0x24   : > { %v4303_v63 = vpack.c.bf16 %v439_v61, %v437_v60  ;;  %v441_v2 = vld [vmem:[%s8458_s3 + $0x168] sm:$0xff]  ;;  %v443_v3 = vld [vmem:[%s8458_s3 + $0x178] sm:$0xff]  ;;  %v4305_v4 = vpack.c.bf16 %v438_v1, %v436_v0  ;;  %v440_v6 = vld [vmem:[%s8458_s3 + $0x160] sm:$0xff] }
  0x25   : > { %4278 = vmatpush1.bf16.msra.mxu0 %v4277_v25  ;;  %v4307_v5 = vpack.c.bf16 %v443_v3, %v441_v2  ;;  %v442_v7 = vld [vmem:[%s8458_s3 + $0x170] sm:$0xff]  ;;  %v5248_v9 = vld [vmem:[%s5156_s23] sm:$0xff]  ;;  %v5251_v10 = vld [vmem:[%s5156_s23 + $0x18] sm:$0xff] }
  0x26   : > { %4280 = vmatprep.subr.bf16.mxu0 %v4279_v26  ;;  %v4309_v8 = vpack.c.bf16 %v442_v7, %v440_v6  ;;  %v5257_v11 = vld [vmem:[%s5156_s23 + $0x10] sm:$0xff]  ;;  %v5260_v12 = vld [vmem:[%s5156_s23 + $0x28] sm:$0xff]  ;;  %v5266_v13 = vld [vmem:[%s5156_s23 + $0x20] sm:$0xff] }
  0x27   : > { %v5269_v14 = vld [vmem:[%s5156_s23 + $0x38] sm:$0xff]  ;;  %v5275_v15 = vld [vmem:[%s5156_s23 + $0x30] sm:$0xff]  ;;  %v5278_v16 = vld [vmem:[%s5156_s23 + $0x48] sm:$0xff] }
  0x28   : > { %v5284_v17 = vld [vmem:[%s5156_s23 + $0x40] sm:$0xff]  ;;  %v5287_v18 = vld [vmem:[%s5156_s23 + $0x58] sm:$0xff]  ;;  %v5293_v19 = vld [vmem:[%s5156_s23 + $0x50] sm:$0xff] }
  0x29   : > { %4282 = vmatpush1.bf16.msra.mxu0 %v4281_v31  ;;  %v5296_v20 = vld [vmem:[%s5156_s23 + $0x68] sm:$0xff]  ;;  %v5302_v21 = vld [vmem:[%s5156_s23 + $0x60] sm:$0xff]  ;;  %v5305_v22 = vld [vmem:[%s5156_s23 + $0x78] sm:$0xff] }
  0x2a   : > { %4284 = vmatprep.subr.bf16.mxu0 %v4283_v33  ;;  %v5311_v23 = vld [vmem:[%s5156_s23 + $0x70] sm:$0xff]  ;;  %v5314_v24 = vld [vmem:[%s5156_s23 + $0x88] sm:$0xff]  ;;  %v5320_v25 = vld [vmem:[%s5156_s23 + $0x80] sm:$0xff] }
  0x2b   : > { %v5323_v26 = vld [vmem:[%s5156_s23 + $0x98] sm:$0xff]  ;;  %v5329_v27 = vld [vmem:[%s5156_s23 + $0x90] sm:$0xff]  ;;  %v5332_v28 = vld [vmem:[%s5156_s23 + $0xa8] sm:$0xff] }
  0x2c   : > { %v5338_v29 = vld [vmem:[%s5156_s23 + $0xa0] sm:$0xff]  ;;  %v5341_v30 = vld [vmem:[%s5156_s23 + $0xb8] sm:$0xff]  ;;  %v5347_v31 = vld [vmem:[%s5156_s23 + $0xb0] sm:$0xff] }
  0x2d   : > { %4286 = vmatpush1.bf16.msra.mxu0 %v4285_v38  ;;  %v5350_v33 = vld [vmem:[%s5156_s23 + $0xc8] sm:$0xff]  ;;  %v5356_v34 = vld [vmem:[%s5156_s23 + $0xc0] sm:$0xff]  ;;  %v5359_v35 = vld [vmem:[%s5156_s23 + $0xd8] sm:$0xff] }
  0x2e   : > { %4288 = vmatprep.subr.bf16.mxu0 %v4287_v39  ;;  %v5365_v36 = vld [vmem:[%s5156_s23 + $0xd0] sm:$0xff]  ;;  %v5368_v37 = vld [vmem:[%s5156_s23 + $0xe8] sm:$0xff]  ;;  %v5374_v38 = vld [vmem:[%s5156_s23 + $0xe0] sm:$0xff] }
  0x2f   : > { %v5377_v39 = vld [vmem:[%s5156_s23 + $0xf8] sm:$0xff]  ;;  %v5383_v40 = vld [vmem:[%s5156_s23 + $0xf0] sm:$0xff]  ;;  %v5386_v41 = vld [vmem:[%s5156_s23 + $0x108] sm:$0xff] }
  0x30   : > { %v5392_v42 = vld [vmem:[%s5156_s23 + $0x100] sm:$0xff]  ;;  %v5395_v43 = vld [vmem:[%s5156_s23 + $0x118] sm:$0xff]  ;;  %v5419_v48 = vld [vmem:[%s5156_s23 + $0x130] sm:$0xff] }
  0x31   : > { %4290 = vmatpush1.bf16.msra.mxu0 %v4289_v44  ;;  %v5401_v44 = vld [vmem:[%s5156_s23 + $0x110] sm:$0xff]  ;;  %v5410_v46 = vld [vmem:[%s5156_s23 + $0x120] sm:$0xff]  ;;  %v5413_v47 = vld [vmem:[%s5156_s23 + $0x138] sm:$0xff] }
  0x32   : > { %4292 = vmatprep.subr.bf16.mxu0 %v4291_v45  ;;  %v5404_v45 = vld [vmem:[%s5156_s23 + $0x128] sm:$0xff]  ;;  %v5437_v52 = vld [vmem:[%s5156_s23 + $0x150] sm:$0xff]  ;;  %v5446_v54 = vld [vmem:[%s5156_s23 + $0x160] sm:$0xff] }
  0x33   : > { %v5422_v49 = vld [vmem:[%s5156_s23 + $0x148] sm:$0xff]  ;;  %v5449_v55 = vld [vmem:[%s5156_s23 + $0x178] sm:$0xff]  ;;  %v5471_v58 = vld [vmem:[%s5456_s10] sm:$0xff] }
  0x34   : > { %v5440_v53 = vld [vmem:[%s5156_s23 + $0x168] sm:$0xff]  ;;  %v5474_v59 = vld [vmem:[%s5456_s10 + $0x18] sm:$0xff]  ;;  %v5480_v60 = vld [vmem:[%s5456_s10 + $0x10] sm:$0xff] }
  0x35   : > { %4294 = vmatpush1.bf16.msra.mxu0 %v4293_v50  ;;  %v5428_v50 = vld [vmem:[%s5156_s23 + $0x140] sm:$0xff]  ;;  %v5483_v61 = vld [vmem:[%s5456_s10 + $0x28] sm:$0xff]  ;;  %v5498_v0 = vld [vmem:[%s5456_s10 + $0x30] sm:$0xff] }
  0x36   : > { %4296 = vmatprep.subr.bf16.mxu0 %v4295_v51  ;;  %v5431_v51 = vld [vmem:[%s5156_s23 + $0x158] sm:$0xff]  ;;  %v5501_v1 = vld [vmem:[%s5456_s10 + $0x48] sm:$0xff]  ;;  %v5507_v2 = vld [vmem:[%s5456_s10 + $0x40] sm:$0xff] }
  0x37   : > { %v5510_v3 = vld [vmem:[%s5456_s10 + $0x58] sm:$0xff]  ;;  %v5525_v6 = vld [vmem:[%s5456_s10 + $0x60] sm:$0xff] }
  0x38   : > { %8698 = vst [vmem:[#allocation5_spill] sm:$0xff] %v5510_v3  ;;  %8701 = vst [vmem:[#allocation8_spill] sm:$0xff] %v5525_v6  ;;  %v5528_v7 = vld [vmem:[%s5456_s10 + $0x78] sm:$0xff] }
  0x39   : > { %4298 = vmatpush1.bf16.msra.mxu0 %v4297_v56  ;;  %v5462_v56 = vld [vmem:[%s5156_s23 + $0x170] sm:$0xff]  ;;  %8702 = vst [vmem:[#allocation9_spill] sm:$0xff] %v5528_v7 }
  0x3a   : > { %4300 = vmatprep.subr.bf16.mxu0 %v4299_v57  ;;  %v5465_v57 = vld [vmem:[%s5456_s10 + $0x8] sm:$0xff] }
  0x3d   : > { %4302 = vmatpush1.bf16.msra.mxu0 %v4301_v62  ;;  %v5489_v62 = vld [vmem:[%s5456_s10 + $0x20] sm:$0xff] }
  0x3e   : > { %4304 = vmatprep.subr.bf16.mxu0 %v4303_v63  ;;  %v5492_v63 = vld [vmem:[%s5456_s10 + $0x38] sm:$0xff] }
  0x41   : > { %4306 = vmatpush1.bf16.msra.mxu0 %v4305_v4  ;;  %v5516_v4 = vld [vmem:[%s5456_s10 + $0x50] sm:$0xff] }
  0x42   : > { %4308 = vmatprep.subr.bf16.mxu0 %v4307_v5  ;;  %8699 = vst [vmem:[#allocation6_spill] sm:$0xff] %v5516_v4  ;;  %v5519_v5 = vld [vmem:[%s5456_s10 + $0x68] sm:$0xff] }
  0x43   : > { %8700 = vst [vmem:[#allocation7_spill] sm:$0xff] %v5519_v5 }
  0x45   : > { %4310 = vmatpush1.bf16.msra.mxu0 %v4309_v8  ;;  %v5534_v8 = vld [vmem:[%s5456_s10 + $0x70] sm:$0xff] }
  0x46   : > { %8703 = vst [vmem:[#allocation10_spill] sm:$0xff] %v5534_v8 }
  0x48   : > { %1014 = vmatmul.mubr.f32.vlgmr.msra.gmra.mrb[0].mxu0 %v5248_v9 }
  0x49   : > { %4023 = vmatprep.mubr.msk.f32.mxu0 %vm588_vm0, %v5251_v10 }
  0x4c   : > { %1020 = vmatmul.mubr.f32.gmra.mrb[2].mxu0 %v5257_v11 }
  0x4d   : > { %4024 = vmatprep.mubr.msk.f32.mxu0 %vm588_vm0, %v5260_v12 }
  0x50   : > { %1026 = vmatmul.mubr.f32.gmra.mrb[4].mxu0 %v5266_v13 }
  0x51   : > { %4025 = vmatprep.mubr.msk.f32.mxu0 %vm588_vm0, %v5269_v14 }
  0x54   : > { %1032 = vmatmul.mubr.f32.gmra.mrb[6].mxu0 %v5275_v15 }
  0x55   : > { %4026 = vmatprep.mubr.msk.f32.mxu0 %vm588_vm0, %v5278_v16 }
  0x58   : > { %1038 = vmatmul.mubr.f32.gmra.mrb[8].mxu0 %v5284_v17 }
  0x59   : > { %4027 = vmatprep.mubr.msk.f32.mxu0 %vm588_vm0, %v5287_v18 }
  0x5c   : > { %1044 = vmatmul.mubr.f32.gmra.mrb[10].mxu0 %v5293_v19 }
  0x5d   : > { %4028 = vmatprep.mubr.msk.f32.mxu0 %vm588_vm0, %v5296_v20 }
  0x60   : > { %1050 = vmatmul.mubr.f32.gmra.mrb[12].mxu0 %v5302_v21 }
  0x61   : > { %4029 = vmatprep.mubr.msk.f32.mxu0 %vm588_vm0, %v5305_v22 }
  0x64   : > { %1056 = vmatmul.mubr.f32.gmra.mrb[14].mxu0 %v5311_v23 }
  0x65   : > { %4030 = vmatprep.mubr.msk.f32.mxu0 %vm588_vm0, %v5314_v24 }
  0x68   : > { %1062 = vmatmul.mubr.f32.gmra.mrb[16].mxu0 %v5320_v25 }
  0x69   : > { %4031 = vmatprep.mubr.msk.f32.mxu0 %vm588_vm0, %v5323_v26 }
  0x6c   : > { %1068 = vmatmul.mubr.f32.gmra.mrb[18].mxu0 %v5329_v27 }
  0x6d   : > { %4032 = vmatprep.mubr.msk.f32.mxu0 %vm588_vm0, %v5332_v28 }
  0x70   : > { %1074 = vmatmul.mubr.f32.gmra.mrb[20].mxu0 %v5338_v29 }
  0x71   : > { %4033 = vmatprep.mubr.msk.f32.mxu0 %vm588_vm0, %v5341_v30 }
  0x74   : > { %1080 = vmatmul.mubr.f32.gmra.mrb[22].mxu0 %v5347_v31 }
  0x75   : > { %4034 = vmatprep.mubr.msk.f32.mxu0 %vm588_vm0, %v5350_v33 }
  0x78   : > { %1086 = vmatmul.mubr.f32.gmra.mrb[24].mxu0 %v5356_v34 }
  0x79   : > { %4035 = vmatprep.mubr.msk.f32.mxu0 %vm588_vm0, %v5359_v35 }
  0x7c   : > { %1092 = vmatmul.mubr.f32.gmra.mrb[26].mxu0 %v5365_v36 }
  0x7d   : > { %4036 = vmatprep.mubr.msk.f32.mxu0 %vm588_vm0, %v5368_v37 }
  0x80   : > { %1098 = vmatmul.mubr.f32.gmra.mrb[28].mxu0 %v5374_v38 }
  0x81   : > { %4037 = vmatprep.mubr.msk.f32.mxu0 %vm588_vm0, %v5377_v39 }
  0x84   : > { %1104 = vmatmul.mubr.f32.gmra.mrb[30].mxu0 %v5383_v40 }
  0x85   : > { %4038 = vmatprep.mubr.msk.f32.mxu0 %vm588_vm0, %v5386_v41 }
  0x88   : > { %1110 = vmatmul.mubr.f32.gmra.mrb[32].mxu0 %v5392_v42 }
  0x89   : > { %4039 = vmatprep.mubr.msk.f32.mxu0 %vm588_vm0, %v5395_v43 }
  0x8c   : > { %1116 = vmatmul.mubr.f32.gmra.mrb[34].mxu0 %v5401_v44 }
  0x8d   : > { %4040 = vmatprep.mubr.msk.f32.mxu0 %vm588_vm0, %v5404_v45 }
  0x90   : > { %1122 = vmatmul.mubr.f32.gmra.mrb[36].mxu0 %v5410_v46 }
  0x91   : > { %4041 = vmatprep.mubr.msk.f32.mxu0 %vm588_vm0, %v5413_v47 }
  0x94   : > { %1128 = vmatmul.mubr.f32.gmra.mrb[38].mxu0 %v5419_v48 }
  0x95   : > { %4042 = vmatprep.mubr.msk.f32.mxu0 %vm588_vm0, %v5422_v49 }
  0x98   : > { %1134 = vmatmul.mubr.f32.gmra.mrb[40].mxu0 %v5428_v50 }
  0x99   : > { %4043 = vmatprep.mubr.msk.f32.mxu0 %vm588_vm0, %v5431_v51 }
  0x9c   : > { %1140 = vmatmul.mubr.f32.gmra.mrb[42].mxu0 %v5437_v52 }
  0x9d   : > { %4044 = vmatprep.mubr.msk.f32.mxu0 %vm588_vm0, %v5440_v53 }
  0xa0   : > { %1146 = vmatmul.mubr.f32.gmra.mrb[44].mxu0 %v5446_v54 }
  0xa1   : > { %4045 = vmatprep.mubr.msk.f32.mxu0 %vm588_vm0, %v5449_v55 }
  0xa4   : > { %1152 = vmatmul.mubr.f32.gmra.mrb[46].mxu0 %v5462_v56 }
  0xa5   : > { %4046 = vmatprep.mubr.msk.f32.mxu0 %vm588_vm0, %v5465_v57 }
  0xa8   : > { %1158 = vmatmul.mubr.f32.gmra.mrb[48].mxu0 %v5471_v58 }
  0xa9   : > { %4047 = vmatprep.mubr.msk.f32.mxu0 %vm588_vm0, %v5474_v59 }
  0xac   : > { %1164 = vmatmul.mubr.f32.gmra.mrb[50].mxu0 %v5480_v60 }
  0xad   : > { %4048 = vmatprep.mubr.msk.f32.mxu0 %vm588_vm0, %v5483_v61 }
  0xb0   : > { %1170 = vmatmul.mubr.f32.gmra.mrb[52].mxu0 %v5489_v62 }
  0xb1   : > { %4049 = vmatprep.mubr.msk.f32.mxu0 %vm588_vm0, %v5492_v63 }
  0xb4   : > { %1176 = vmatmul.mubr.f32.gmra.mrb[54].mxu0 %v5498_v0 }
  0xb5   : > { %4050 = vmatprep.mubr.msk.f32.mxu0 %vm588_vm0, %v5501_v1 }
  0xb8   : > { %1182 = vmatmul.mubr.f32.gmra.mrb[56].mxu0 %v5507_v2 }
  0xb9   : > { %4051 = vmatprep.mubr.msk.f32.mxu0 %vm588_vm0, %v5510_v3  ;;  %v5537_v3 = vld [vmem:[%s5456_s10 + $0x88] sm:$0xff] }
  0xba   : > { %8704 = vst [vmem:[#allocation11_spill] sm:$0xff] %v5537_v3 }
  0xbc   : > { %1188 = vmatmul.mubr.f32.gmra.mrb[58].mxu0 %v5516_v4  ;;  %v5546_v4 = vld [vmem:[%s5456_s10 + $0x98] sm:$0xff] }
  0xbd   : > { %4052 = vmatprep.mubr.msk.f32.mxu0 %vm588_vm0, %v5519_v5  ;;  %v5543_v5 = vld [vmem:[%s5456_s10 + $0x80] sm:$0xff]  ;;  %8706 = vst [vmem:[#allocation13_spill] sm:$0xff] %v5546_v4 }
  0xbe   : > { %8705 = vst [vmem:[#allocation12_spill] sm:$0xff] %v5543_v5 }
  0xc0   : > { %1194 = vmatmul.mubr.f32.gmra.mrb[60].mxu0 %v5525_v6  ;;  %v5555_v6 = vld [vmem:[%s5456_s10 + $0xa8] sm:$0xff] }
  0xc1   : > { %4053 = vmatprep.mubr.msk.f32.mxu0 %vm588_vm0, %v5528_v7  ;;  %v5552_v7 = vld [vmem:[%s5456_s10 + $0x90] sm:$0xff]  ;;  %8708 = vst [vmem:[#allocation15_spill] sm:$0xff] %v5555_v6 }
  0xc2   : > { %8707 = vst [vmem:[#allocation14_spill] sm:$0xff] %v5552_v7 }
  0xc4   : > { %1200 = vmatmul.mubr.f32.gmra.mrb[62].mxu0 %v5534_v8  ;;  %v5564_v8 = vld [vmem:[%s5456_s10 + $0xb8] sm:$0xff] }
  0xc5   : > { %4054 = vmatprep.mubr.msk.f32.mxu0 %vm588_vm0, %v5537_v3  ;;  %v5561_v3 = vld [vmem:[%s5456_s10 + $0xa0] sm:$0xff]  ;;  %8710 = vst [vmem:[#allocation17_spill] sm:$0xff] %v5564_v8 }
  0xc6   : > { %8709 = vst [vmem:[#allocation16_spill] sm:$0xff] %v5561_v3 }
  0xc8   : > { %1206 = vmatmul.mubr.f32.gmra.mrb[64].mxu0 %v5543_v5  ;;  %v5573_v5 = vld [vmem:[%s5456_s10 + $0xc8] sm:$0xff] }
  0xc9   : > { %4055 = vmatprep.mubr.msk.f32.mxu0 %vm588_vm0, %v5546_v4  ;;  %v5570_v4 = vld [vmem:[%s5456_s10 + $0xb0] sm:$0xff]  ;;  %8712 = vst [vmem:[#allocation19_spill] sm:$0xff] %v5573_v5 }
  0xca   : > { %8711 = vst [vmem:[#allocation18_spill] sm:$0xff] %v5570_v4 }
  0xcc   : > { %1212 = vmatmul.mubr.f32.gmra.mrb[66].mxu0 %v5552_v7  ;;  %v5582_v7 = vld [vmem:[%s5456_s10 + $0xd8] sm:$0xff] }
  0xcd   : > { %4056 = vmatprep.mubr.msk.f32.mxu0 %vm588_vm0, %v5555_v6  ;;  %v5579_v6 = vld [vmem:[%s5456_s10 + $0xc0] sm:$0xff]  ;;  %8714 = vst [vmem:[#allocation21_spill] sm:$0xff] %v5582_v7 }
  0xce   : > { %8713 = vst [vmem:[#allocation20_spill] sm:$0xff] %v5579_v6 }
  0xd0   : > { %1218 = vmatmul.mubr.f32.gmra.mrb[68].mxu0 %v5561_v3  ;;  %v5591_v3 = vld [vmem:[%s5456_s10 + $0xe8] sm:$0xff] }
  0xd1   : > { %4057 = vmatprep.mubr.msk.f32.mxu0 %vm588_vm0, %v5564_v8  ;;  %v5588_v8 = vld [vmem:[%s5456_s10 + $0xd0] sm:$0xff]  ;;  %8716 = vst [vmem:[#allocation23_spill] sm:$0xff] %v5591_v3 }
  0xd2   : > { %8715 = vst [vmem:[#allocation22_spill] sm:$0xff] %v5588_v8 }
  0xd4   : > { %1224 = vmatmul.mubr.f32.gmra.mrb[70].mxu0 %v5570_v4  ;;  %v5600_v4 = vld [vmem:[%s5456_s10 + $0xf8] sm:$0xff] }
  0xd5   : > { %4058 = vmatprep.mubr.msk.f32.mxu0 %vm588_vm0, %v5573_v5  ;;  %v5597_v5 = vld [vmem:[%s5456_s10 + $0xe0] sm:$0xff]  ;;  %8718 = vst [vmem:[#allocation25_spill] sm:$0xff] %v5600_v4 }
  0xd6   : > { %8717 = vst [vmem:[#allocation24_spill] sm:$0xff] %v5597_v5 }
  0xd8   : > { %1230 = vmatmul.mubr.f32.gmra.mrb[72].mxu0 %v5579_v6  ;;  %v5609_v6 = vld [vmem:[%s5456_s10 + $0x108] sm:$0xff] }
  0xd9   : > { %4059 = vmatprep.mubr.msk.f32.mxu0 %vm588_vm0, %v5582_v7  ;;  %v5606_v7 = vld [vmem:[%s5456_s10 + $0xf0] sm:$0xff]  ;;  %8720 = vst [vmem:[#allocation27_spill] sm:$0xff] %v5609_v6 }
  0xda   : > { %8719 = vst [vmem:[#allocation26_spill] sm:$0xff] %v5606_v7 }
  0xdc   : > { %1236 = vmatmul.mubr.f32.gmra.mrb[74].mxu0 %v5588_v8  ;;  %v5618_v8 = vld [vmem:[%s5456_s10 + $0x118] sm:$0xff] }
  0xdd   : > { %4060 = vmatprep.mubr.msk.f32.mxu0 %vm588_vm0, %v5591_v3  ;;  %v5615_v3 = vld [vmem:[%s5456_s10 + $0x100] sm:$0xff]  ;;  %8722 = vst [vmem:[#allocation29_spill] sm:$0xff] %v5618_v8 }
  0xde   : > { %8721 = vst [vmem:[#allocation28_spill] sm:$0xff] %v5615_v3 }
  0xe0   : > { %1242 = vmatmul.mubr.f32.gmra.mrb[76].mxu0 %v5597_v5  ;;  %v5627_v5 = vld [vmem:[%s5456_s10 + $0x128] sm:$0xff] }
  0xe1   : > { %4061 = vmatprep.mubr.msk.f32.mxu0 %vm588_vm0, %v5600_v4  ;;  %v5624_v4 = vld [vmem:[%s5456_s10 + $0x110] sm:$0xff]  ;;  %8724 = vst [vmem:[#allocation31_spill] sm:$0xff] %v5627_v5 }
  0xe2   : > { %8723 = vst [vmem:[#allocation30_spill] sm:$0xff] %v5624_v4 }
  0xe4   : > { %1248 = vmatmul.mubr.f32.gmra.mrb[78].mxu0 %v5606_v7  ;;  %v5636_v7 = vld [vmem:[%s5456_s10 + $0x138] sm:$0xff] }
  0xe5   : > { %4062 = vmatprep.mubr.msk.f32.mxu0 %vm588_vm0, %v5609_v6  ;;  %v5633_v6 = vld [vmem:[%s5456_s10 + $0x120] sm:$0xff]  ;;  %8726 = vst [vmem:[#allocation33_spill] sm:$0xff] %v5636_v7 }
  0xe6   : > { %8725 = vst [vmem:[#allocation32_spill] sm:$0xff] %v5633_v6 }
  0xe8   : > { %1254 = vmatmul.mubr.f32.gmra.mrb[80].mxu0 %v5615_v3  ;;  %v5645_v3 = vld [vmem:[%s5456_s10 + $0x148] sm:$0xff] }
  0xe9   : > { %4063 = vmatprep.mubr.msk.f32.mxu0 %vm588_vm0, %v5618_v8  ;;  %v5642_v8 = vld [vmem:[%s5456_s10 + $0x130] sm:$0xff]  ;;  %8728 = vst [vmem:[#allocation35_spill] sm:$0xff] %v5645_v3 }
  0xea   : > { %8727 = vst [vmem:[#allocation34_spill] sm:$0xff] %v5642_v8 }
  0xec   : > { %1260 = vmatmul.mubr.f32.gmra.mrb[82].mxu0 %v5624_v4  ;;  %v5654_v4 = vld [vmem:[%s5456_s10 + $0x158] sm:$0xff] }
  0xed   : > { %4064 = vmatprep.mubr.msk.f32.mxu0 %vm588_vm0, %v5627_v5  ;;  %v5651_v5 = vld [vmem:[%s5456_s10 + $0x140] sm:$0xff]  ;;  %8730 = vst [vmem:[#allocation37_spill] sm:$0xff] %v5654_v4 }
  0xee   : > { %8729 = vst [vmem:[#allocation36_spill] sm:$0xff] %v5651_v5 }
  0xf0   : > { %1266 = vmatmul.mubr.f32.gmra.mrb[84].mxu0 %v5633_v6  ;;  %v5663_v6 = vld [vmem:[%s5456_s10 + $0x168] sm:$0xff] }
  0xf1   : > { %4065 = vmatprep.mubr.msk.f32.mxu0 %vm588_vm0, %v5636_v7  ;;  %v5660_v7 = vld [vmem:[%s5456_s10 + $0x150] sm:$0xff]  ;;  %8732 = vst [vmem:[#allocation39_spill] sm:$0xff] %v5663_v6 }
  0xf2   : > { %8731 = vst [vmem:[#allocation38_spill] sm:$0xff] %v5660_v7 }
  0xf4   : > { %1272 = vmatmul.mubr.f32.gmra.mrb[86].mxu0 %v5642_v8  ;;  %v5669_v8 = vld [vmem:[%s5456_s10 + $0x160] sm:$0xff] }
  0xf5   : > { %4066 = vmatprep.mubr.msk.f32.mxu0 %vm588_vm0, %v5645_v3  ;;  %8733 = vst [vmem:[#allocation40_spill] sm:$0xff] %v5669_v8  ;;  %v5672_v3 = vld [vmem:[%s5456_s10 + $0x178] sm:$0xff] }
  0xf6   : > { %8734 = vst [vmem:[#allocation41_spill] sm:$0xff] %v5672_v3 }
  0xf8   : > { %1278 = vmatmul.mubr.f32.gmra.mrb[88].mxu0 %v5651_v5  ;;  %v445_v5 = vmul.f32 %v5165_v32, %v5165_v32  ;;  %v447_v32 = vmul.f32 %v5251_v10, %v5251_v10  ;;  %v450_v10 = vmul.f32 %v5275_v15, %v5275_v15  ;;  %v457_v15 = vmul.f32 %v5296_v20, %v5296_v20 }
  0xf9   : > { %4067 = vmatprep.mubr.msk.f32.mxu0 %vm588_vm0, %v5654_v4  ;;  %v5680_v4 = vld [vmem:[%s5456_s10 + $0x170] sm:$0xff]  ;;  %v461_v20 = vmul.f32 %v5314_v24, %v5314_v24  ;;  %v462_v24 = vmul.f32 %v5329_v27, %v5329_v27 }
  0xfc   : > { %1284 = vmatmul.mubr.f32.gmra.mrb[90].mxu0 %v5660_v7  ;;  %v5685_v7 = vld [vmem:[%s8457_s2 + $0x8] sm:$0xff] }
  0xfd   : > { %4068 = vmatprep.mubr.msk.f32.mxu0 %vm588_vm0, %v5663_v6  ;;  %8735 = vst [vmem:[#allocation42_spill] sm:$0xff] %v5685_v7  ;;  %4142 = vmatprep.mubr.msk.f32.mxu1 %vm588_vm0, %v5685_v7  ;;  %v449_v6 = vmul.f32 %v5260_v12, %v5260_v12  ;;  %v448_v7 = vmul.f32 %v5266_v13, %v5266_v13 }
  0xfe   : > { %v452_v12 = vmul.f32 %v5284_v17, %v5284_v17  ;;  %v455_v13 = vmul.f32 %v5287_v18, %v5287_v18  ;;  %v456_v17 = vmul.f32 %v5302_v21, %v5302_v21  ;;  %v459_v18 = vmul.f32 %v5305_v22, %v5305_v22 }
  0xff   : > { %v460_v22 = vmul.f32 %v5320_v25, %v5320_v25 }
 0x100   : > { %1290 = vmatmul.mubr.f32.gmra.mrb[92].mxu0 %v5669_v8  ;;  %v444_v8 = vmul.f32 %v5248_v9, %v5248_v9  ;;  %v451_v9 = vmul.f32 %v5269_v14, %v5269_v14  ;;  %v454_v14 = vmul.f32 %v5293_v19, %v5293_v19  ;;  %v458_v19 = vmul.f32 %v5311_v23, %v5311_v23 }
 0x101   : > { %4069 = vmatprep.mubr.msk.f32.mxu0 %vm588_vm0, %v5672_v3  ;;  %v446_v3 = vmul.f32 %v5257_v11, %v5257_v11  ;;  %v453_v11 = vmul.f32 %v5278_v16, %v5278_v16 }
 0x104   : > { %1296 = vmatmul.mubr.f32.gmra.mrb[94].mxu0 %v5680_v4 }
 0x105   : > { %4070 = vmatprep.mubr.msk.f32.mxu0 %vm588_vm0, %v445_v5 }
 0x108   : > { %1302 = vmatmul.mubr.f32.gmra.mrb[96].mxu0 %v444_v8 }
 0x109   : > { %4071 = vmatprep.mubr.msk.f32.mxu0 %vm588_vm0, %v447_v32 }
 0x10c   : > { %1308 = vmatmul.mubr.f32.gmra.mrb[98].mxu0 %v446_v3 }
 0x10d   : > { %4072 = vmatprep.mubr.msk.f32.mxu0 %vm588_vm0, %v449_v6 }
 0x110   : > { %1314 = vmatmul.mubr.f32.gmra.mrb[100].mxu0 %v448_v7 }
 0x111   : > { %4073 = vmatprep.mubr.msk.f32.mxu0 %vm588_vm0, %v451_v9  ;;  %v463_v9 = vmul.f32 %v5323_v26, %v5323_v26  ;;  %v464_v26 = vmul.f32 %v5338_v29, %v5338_v29 }
 0x114   : > { %1320 = vmatmul.mubr.f32.gmra.mrb[102].mxu0 %v450_v10 }
 0x115   : > { %4074 = vmatprep.mubr.msk.f32.mxu0 %vm588_vm0, %v453_v11 }
 0x118   : > { %1326 = vmatmul.mubr.f32.gmra.mrb[104].mxu0 %v452_v12  ;;  %v465_v12 = vmul.f32 %v5332_v28, %v5332_v28  ;;  %v466_v28 = vmul.f32 %v5347_v31, %v5347_v31 }
 0x119   : > { %4075 = vmatprep.mubr.msk.f32.mxu0 %vm588_vm0, %v455_v13 }
 0x11b   : > { %v1015_v16 = vpop.f32.mrb[0].mxu0 }
 0x11c   : > { %v1017_v3 = vpop.f32.mrb[1].mxu0  ;;  %1332 = vmatmul.mubr.f32.gmra.mrb[106].mxu0 %v454_v14 }
 0x11d   : > { %4076 = vmatprep.mubr.msk.f32.mxu0 %vm588_vm0, %v457_v15  ;;  %v467_v15 = vmul.f32 %v5341_v30, %v5341_v30  ;;  %v468_v30 = vmul.f32 %v5356_v34, %v5356_v34 }
 0x11f   : > { %v1021_v5 = vpop.f32.mrb[2].mxu0 }
 0x120   : > { %v4313_v6 = vpack.c.bf16 %v1021_v5, %v1015_v16  ;;  %v1023_v7 = vpop.f32.mrb[3].mxu0  ;;  %1338 = vmatmul.mubr.f32.gmra.mrb[108].mxu0 %v456_v17  ;;  %v469_v17 = vmul.f32 %v5350_v33, %v5350_v33  ;;  %v470_v33 = vmul.f32 %v5365_v36, %v5365_v36 }
 0x121   : > { %4077 = vmatprep.mubr.msk.f32.mxu0 %vm588_vm0, %v459_v18  ;;  %v4311_v8 = vpack.c.bf16 %v1023_v7, %v1017_v3 }
 0x123   : > { %v1027_v32 = vpop.f32.mrb[4].mxu0  ;;  %4312 = vmatprep.subr.bf16.mxu1 %v4311_v8 }
 0x124   : > { %v1029_v21 = vpop.f32.mrb[5].mxu0  ;;  %1344 = vmatmul.mubr.f32.gmra.mrb[110].mxu0 %v458_v19  ;;  %4314 = vmatpush1.bf16.msra.mxu1 %v4313_v6  ;;  %v471_v6 = vmul.f32 %v5359_v35, %v5359_v35  ;;  %v472_v35 = vmul.f32 %v5374_v38, %v5374_v38 }
 0x125   : > { %4078 = vmatprep.mubr.msk.f32.mxu0 %vm588_vm0, %v461_v20  ;;  %v473_v20 = vmul.f32 %v5368_v37, %v5368_v37  ;;  %v474_v37 = vmul.f32 %v5383_v40, %v5383_v40 }
 0x127   : > { %v1033_v23 = vpop.f32.mrb[6].mxu0 }
 0x128   : > { %v4317_v10 = vpack.c.bf16 %v1033_v23, %v1027_v32  ;;  %v1035_v11 = vpop.f32.mrb[7].mxu0  ;;  %1350 = vmatmul.mubr.f32.gmra.mrb[112].mxu0 %v460_v22  ;;  %v477_v23 = vmul.f32 %v5386_v41, %v5386_v41  ;;  %v478_v41 = vmul.f32 %v5401_v44, %v5401_v44 }
 0x129   : > { %v4315_v13 = vpack.c.bf16 %v1035_v11, %v1029_v21  ;;  %4079 = vmatprep.mubr.msk.f32.mxu0 %vm588_vm0, %v463_v9  ;;  %v475_v21 = vmul.f32 %v5377_v39, %v5377_v39  ;;  %v476_v39 = vmul.f32 %v5392_v42, %v5392_v42 }
 0x12b   : > { %v1039_v14 = vpop.f32.mrb[8].mxu0  ;;  %4316 = vmatprep.subr.bf16.mxu1 %v4315_v13 }
 0x12c   : > { %v1041_v25 = vpop.f32.mrb[9].mxu0  ;;  %1356 = vmatmul.mubr.f32.gmra.mrb[114].mxu0 %v462_v24  ;;  %4318 = vmatpush1.bf16.msra.mxu1 %v4317_v10  ;;  %v479_v24 = vmul.f32 %v5395_v43, %v5395_v43  ;;  %v480_v43 = vmul.f32 %v5410_v46, %v5410_v46 }
 0x12d   : > { %4080 = vmatprep.mubr.msk.f32.mxu0 %vm588_vm0, %v465_v12 }
 0x12f   : > { %v1045_v27 = vpop.f32.mrb[10].mxu0 }
 0x130   : > { %v4321_v16 = vpack.c.bf16 %v1045_v27, %v1039_v14  ;;  %v1047_v3 = vpop.f32.mrb[11].mxu0  ;;  %1362 = vmatmul.mubr.f32.gmra.mrb[116].mxu0 %v464_v26  ;;  %v481_v14 = vmul.f32 %v5404_v45, %v5404_v45  ;;  %v482_v45 = vmul.f32 %v5419_v48, %v5419_v48 }
 0x131   : > { %v4319_v18 = vpack.c.bf16 %v1047_v3, %v1041_v25  ;;  %4081 = vmatprep.mubr.msk.f32.mxu0 %vm588_vm0, %v467_v15  ;;  %v483_v15 = vmul.f32 %v5413_v47, %v5413_v47  ;;  %v485_v3 = vmul.f32 %v5422_v49, %v5422_v49  ;;  %v484_v47 = vmul.f32 %v5428_v50, %v5428_v50 }
 0x132   : > { %v486_v49 = vmul.f32 %v5437_v52, %v5437_v52 }
 0x133   : > { %v1051_v5 = vpop.f32.mrb[12].mxu0  ;;  %4320 = vmatprep.subr.bf16.mxu1 %v4319_v18  ;;  %v487_v18 = vmul.f32 %v5431_v51, %v5431_v51  ;;  %v488_v51 = vmul.f32 %v5446_v54, %v5446_v54 }
 0x134   : > { %v1053_v29 = vpop.f32.mrb[13].mxu0  ;;  %1368 = vmatmul.mubr.f32.gmra.mrb[118].mxu0 %v466_v28  ;;  %4322 = vmatpush1.bf16.msra.mxu1 %v4321_v16 }
 0x135   : > { %4082 = vmatprep.mubr.msk.f32.mxu0 %vm588_vm0, %v469_v17 }
 0x137   : > { %v1057_v31 = vpop.f32.mrb[14].mxu0 }
 0x138   : > { %v4325_v7 = vpack.c.bf16 %v1057_v31, %v1051_v5  ;;  %v1059_v19 = vpop.f32.mrb[15].mxu0  ;;  %1374 = vmatmul.mubr.f32.gmra.mrb[120].mxu0 %v468_v30  ;;  %v489_v30 = vmul.f32 %v5440_v53, %v5440_v53  ;;  %v490_v53 = vmul.f32 %v5462_v56, %v5462_v56 }
 0x139   : > { %v4323_v8 = vpack.c.bf16 %v1059_v19, %v1053_v29  ;;  %4083 = vmatprep.mubr.msk.f32.mxu0 %vm588_vm0, %v471_v6 }
 0x13b   : > { %v1063_v32 = vpop.f32.mrb[16].mxu0  ;;  %4324 = vmatprep.subr.bf16.mxu1 %v4323_v8 }
 0x13c   : > { %v1065_v34 = vpop.f32.mrb[17].mxu0  ;;  %1380 = vmatmul.mubr.f32.gmra.mrb[122].mxu0 %v470_v33  ;;  %4326 = vmatpush1.bf16.msra.mxu1 %v4325_v7  ;;  %v491_v7 = vmul.f32 %v5449_v55, %v5449_v55  ;;  %v492_v55 = vmul.f32 %v5471_v58, %v5471_v58 }
 0x13d   : > { %4084 = vmatprep.mubr.msk.f32.mxu0 %vm588_vm0, %v473_v20  ;;  %v493_v20 = vmul.f32 %v5465_v57, %v5465_v57  ;;  %v494_v57 = vmul.f32 %v5480_v60, %v5480_v60 }
 0x13f   : > { %v1069_v36 = vpop.f32.mrb[18].mxu0 }
 0x140   : > { %v4329_v22 = vpack.c.bf16 %v1069_v36, %v1063_v32  ;;  %v1071_v9 = vpop.f32.mrb[19].mxu0  ;;  %1386 = vmatmul.mubr.f32.gmra.mrb[124].mxu0 %v472_v35  ;;  %v497_v36 = vmul.f32 %v5483_v61, %v5483_v61  ;;  %v498_v61 = vmul.f32 %v5498_v0, %v5498_v0 }
 0x141   : > { %v4327_v10 = vpack.c.bf16 %v1071_v9, %v1065_v34  ;;  %4085 = vmatprep.mubr.msk.f32.mxu0 %vm588_vm0, %v475_v21  ;;  %v495_v34 = vmul.f32 %v5474_v59, %v5474_v59  ;;  %v496_v59 = vmul.f32 %v5489_v62, %v5489_v62 }
 0x143   : > { %v1075_v11 = vpop.f32.mrb[20].mxu0  ;;  %4328 = vmatprep.subr.bf16.mxu1 %v4327_v10 }
 0x144   : > { %v1077_v38 = vpop.f32.mrb[21].mxu0  ;;  %1392 = vmatmul.mubr.f32.gmra.mrb[126].mxu0 %v474_v37  ;;  %4330 = vmatpush1.bf16.msra.mxu1 %v4329_v22  ;;  %v499_v37 = vmul.f32 %v5492_v63, %v5492_v63  ;;  %v500_v63 = vmul.f32 %v5507_v2, %v5507_v2 }
 0x145   : > { %4086 = vmatprep.mubr.msk.f32.mxu0 %vm588_vm0, %v477_v23 }
 0x147   : > { %v1081_v40 = vpop.f32.mrb[22].mxu0 }
 0x148   : > { %v4333_v12 = vpack.c.bf16 %v1081_v40, %v1075_v11  ;;  %v1083_v13 = vpop.f32.mrb[23].mxu0  ;;  %1398 = vmatmul.mubr.f32.gmra.mrb[128].mxu0 %v476_v39  ;;  %v501_v11 = vmul.f32 %v5501_v1, %v5501_v1  ;;  %v8737_v1 = vld [vmem:[#allocation6_spill] sm:$0xff] }
 0x149   : > { %v4331_v25 = vpack.c.bf16 %v1083_v13, %v1077_v38  ;;  %4087 = vmatprep.mubr.msk.f32.mxu0 %vm588_vm0, %v479_v24  ;;  %v8736_v24 = vld [vmem:[#allocation5_spill] sm:$0xff] }
 0x14a   : > { %v503_v40 = vmul.f32 %v8736_v24, %v8736_v24  ;;  %v5943_v24 = vld [vmem:[%s8457_s2 + $0x68] sm:$0xff] }
 0x14b   : > { %v1087_v26 = vpop.f32.mrb[24].mxu0  ;;  %4332 = vmatprep.subr.bf16.mxu1 %v4331_v25 }
 0x14c   : > { %v1089_v42 = vpop.f32.mrb[25].mxu0  ;;  %1404 = vmatmul.mubr.f32.gmra.mrb[130].mxu0 %v478_v41  ;;  %4334 = vmatpush1.bf16.msra.mxu1 %v4333_v12  ;;  %v502_v41 = vmul.f32 %v8737_v1, %v8737_v1  ;;  %v5951_v1 = vld [vmem:[%s8457_s2 + $0x60] sm:$0xff] }
 0x14d   : > { %4088 = vmatprep.mubr.msk.f32.mxu0 %vm588_vm0, %v481_v14  ;;  %v8738_v14 = vld [vmem:[#allocation7_spill] sm:$0xff] }
 0x14e   : > { %v505_v25 = vmul.f32 %v8738_v14, %v8738_v14 }
 0x14f   : > { %v1093_v44 = vpop.f32.mrb[26].mxu0 }
 0x150   : > { %v4337_v27 = vpack.c.bf16 %v1093_v44, %v1087_v26  ;;  %v1095_v16 = vpop.f32.mrb[27].mxu0  ;;  %1410 = vmatmul.mubr.f32.gmra.mrb[132].mxu0 %v480_v43  ;;  %v8739_v43 = vld [vmem:[#allocation8_spill] sm:$0xff] }
 0x151   : > { %v4335_v28 = vpack.c.bf16 %v1095_v16, %v1089_v42  ;;  %4089 = vmatprep.mubr.msk.f32.mxu0 %vm588_vm0, %v483_v15  ;;  %v504_v15 = vmul.f32 %v8739_v43, %v8739_v43  ;;  %v5845_v44 = vld [vmem:[%s8457_s2] sm:$0xff]  ;;  %v8753_v43 = vld [vmem:[#allocation22_spill] sm:$0xff] }
 0x153   : > { %v1099_v17 = vpop.f32.mrb[28].mxu0  ;;  %4336 = vmatprep.subr.bf16.mxu1 %v4335_v28 }
 0x154   : > { %v1101_v46 = vpop.f32.mrb[29].mxu0  ;;  %1416 = vmatmul.mubr.f32.gmra.mrb[134].mxu0 %v482_v45  ;;  %4338 = vmatpush1.bf16.msra.mxu1 %v4337_v27  ;;  %v8740_v27 = vld [vmem:[#allocation9_spill] sm:$0xff]  ;;  %v5853_v45 = vld [vmem:[%s8457_s2 + $0x18] sm:$0xff] }
 0x155   : > { %4090 = vmatprep.mubr.msk.f32.mxu0 %vm588_vm0, %v485_v3  ;;  %v507_v16 = vmul.f32 %v8740_v27, %v8740_v27  ;;  %v5971_v27 = vld [vmem:[%s8457_s2 + $0x70] sm:$0xff] }
 0x157   : > { %v1105_v48 = vpop.f32.mrb[30].mxu0 }
 0x158   : > { %v4341_v5 = vpack.c.bf16 %v1105_v48, %v1099_v17  ;;  %v1107_v29 = vpop.f32.mrb[31].mxu0  ;;  %1422 = vmatmul.mubr.f32.gmra.mrb[136].mxu0 %v484_v47  ;;  %v8742_v48 = vld [vmem:[#allocation11_spill] sm:$0xff] }
 0x159   : > { %v4339_v6 = vpack.c.bf16 %v1107_v29, %v1101_v46  ;;  %4091 = vmatprep.mubr.msk.f32.mxu0 %vm588_vm0, %v487_v18  ;;  %v8741_v46 = vld [vmem:[#allocation10_spill] sm:$0xff] }
 0x15a   : > { %v506_v47 = vmul.f32 %v8741_v46, %v8741_v46  ;;  %v5863_v18 = vld [vmem:[%s8457_s2 + $0x10] sm:$0xff] }
 0x15b   : > { %v1111_v31 = vpop.f32.mrb[32].mxu0  ;;  %4340 = vmatprep.subr.bf16.mxu1 %v4339_v6 }
 0x15c   : > { %v1113_v50 = vpop.f32.mrb[33].mxu0  ;;  %1428 = vmatmul.mubr.f32.gmra.mrb[138].mxu0 %v486_v49  ;;  %4342 = vmatpush1.bf16.msra.mxu1 %v4341_v5  ;;  %v509_v5 = vmul.f32 %v8742_v48, %v8742_v48  ;;  %v5871_v49 = vld [vmem:[%s8457_s2 + $0x28] sm:$0xff]  ;;  %v8755_v48 = vld [vmem:[#allocation24_spill] sm:$0xff] }
 0x15d   : > { %4092 = vmatprep.mubr.msk.f32.mxu0 %vm588_vm0, %v489_v30 }
 0x15f   : > { %v1117_v52 = vpop.f32.mrb[34].mxu0 }
 0x160   : > { %v4345_v19 = vpack.c.bf16 %v1117_v52, %v1111_v31  ;;  %v1119_v33 = vpop.f32.mrb[35].mxu0  ;;  %1434 = vmatmul.mubr.f32.gmra.mrb[140].mxu0 %v488_v51  ;;  %v8743_v31 = vld [vmem:[#allocation12_spill] sm:$0xff] }
 0x161   : > { %v4343_v8 = vpack.c.bf16 %v1119_v33, %v1113_v50  ;;  %4093 = vmatprep.mubr.msk.f32.mxu0 %vm588_vm0, %v491_v7  ;;  %v508_v50 = vmul.f32 %v8743_v31, %v8743_v31  ;;  %v5879_v51 = vld [vmem:[%s8457_s2 + $0x20] sm:$0xff]  ;;  %v5997_v31 = vld [vmem:[%s8457_s2 + $0x98] sm:$0xff] }
 0x162   : > { %v8744_v7 = vld [vmem:[#allocation13_spill] sm:$0xff] }
 0x163   : > { %v1123_v32 = vpop.f32.mrb[36].mxu0  ;;  %4344 = vmatprep.subr.bf16.mxu1 %v4343_v8  ;;  %v511_v52 = vmul.f32 %v8744_v7, %v8744_v7  ;;  %v8745_v8 = vld [vmem:[#allocation14_spill] sm:$0xff] }
 0x164   : > { %v1125_v54 = vpop.f32.mrb[37].mxu0  ;;  %1440 = vmatmul.mubr.f32.gmra.mrb[142].mxu0 %v490_v53  ;;  %4346 = vmatpush1.bf16.msra.mxu1 %v4345_v19  ;;  %v5889_v19 = vld [vmem:[%s8457_s2 + $0x38] sm:$0xff] }
 0x165   : > { %4094 = vmatprep.mubr.msk.f32.mxu0 %vm588_vm0, %v493_v20 }
 0x167   : > { %v1129_v56 = vpop.f32.mrb[38].mxu0 }
 0x168   : > { %v4349_v35 = vpack.c.bf16 %v1129_v56, %v1123_v32  ;;  %v1131_v21 = vpop.f32.mrb[39].mxu0  ;;  %1446 = vmatmul.mubr.f32.gmra.mrb[144].mxu0 %v492_v55  ;;  %v510_v32 = vmul.f32 %v8745_v8, %v8745_v8  ;;  %v8746_v55 = vld [vmem:[#allocation15_spill] sm:$0xff] }
 0x169   : > { %v4347_v22 = vpack.c.bf16 %v1131_v21, %v1125_v54  ;;  %4095 = vmatprep.mubr.msk.f32.mxu0 %vm588_vm0, %v495_v34  ;;  %v5899_v54 = vld [vmem:[%s8457_s2 + $0x30] sm:$0xff]  ;;  %v513_v34 = vmul.f32 %v8746_v55, %v8746_v55 }
 0x16a   : > { %v8758_v8 = vld [vmem:[#allocation27_spill] sm:$0xff] }
 0x16b   : > { %v1135_v9 = vpop.f32.mrb[40].mxu0  ;;  %4348 = vmatprep.subr.bf16.mxu1 %v4347_v22 }
 0x16c   : > { %v1137_v58 = vpop.f32.mrb[41].mxu0  ;;  %1452 = vmatmul.mubr.f32.gmra.mrb[146].mxu0 %v494_v57  ;;  %4350 = vmatpush1.bf16.msra.mxu1 %v4349_v35  ;;  %v5907_v35 = vld [vmem:[%s8457_s2 + $0x48] sm:$0xff] }
 0x16d   : > { %4096 = vmatprep.mubr.msk.f32.mxu0 %vm588_vm0, %v497_v36  ;;  %v8747_v36 = vld [vmem:[#allocation16_spill] sm:$0xff] }
 0x16e   : > { %v512_v22 = vmul.f32 %v8747_v36, %v8747_v36 }
 0x16f   : > { %v1141_v60 = vpop.f32.mrb[42].mxu0 }
 0x170   : > { %v4353_v23 = vpack.c.bf16 %v1141_v60, %v1135_v9  ;;  %v1143_v10 = vpop.f32.mrb[43].mxu0  ;;  %1458 = vmatmul.mubr.f32.gmra.mrb[148].mxu0 %v496_v59  ;;  %v5915_v9 = vld [vmem:[%s8457_s2 + $0x40] sm:$0xff] }
 0x171   : > { %v4351_v38 = vpack.c.bf16 %v1143_v10, %v1137_v58  ;;  %4097 = vmatprep.mubr.msk.f32.mxu0 %vm588_vm0, %v499_v37  ;;  %v8748_v58 = vld [vmem:[#allocation17_spill] sm:$0xff]  ;;  %v5925_v37 = vld [vmem:[%s8457_s2 + $0x58] sm:$0xff] }
 0x172   : > { %v515_v59 = vmul.f32 %v8748_v58, %v8748_v58  ;;  %v8760_v58 = vld [vmem:[#allocation29_spill] sm:$0xff] }
 0x173   : > { %v1147_v39 = vpop.f32.mrb[44].mxu0  ;;  %4352 = vmatprep.subr.bf16.mxu1 %v4351_v38  ;;  %v5935_v38 = vld [vmem:[%s8457_s2 + $0x50] sm:$0xff] }
 0x174   : > { %v1149_v62 = vpop.f32.mrb[45].mxu0  ;;  %1464 = vmatmul.mubr.f32.gmra.mrb[150].mxu0 %v498_v61  ;;  %4354 = vmatpush1.bf16.msra.mxu1 %v4353_v23  ;;  %v8749_v61 = vld [vmem:[#allocation18_spill] sm:$0xff] }
 0x175   : > { %4098 = vmatprep.mubr.msk.f32.mxu0 %vm588_vm0, %v501_v11  ;;  %v514_v11 = vmul.f32 %v8749_v61, %v8749_v61 }
 0x177   : > { %v1153_v0 = vpop.f32.mrb[46].mxu0 }
 0x178   : > { %v4357_v12 = vpack.c.bf16 %v1153_v0, %v1147_v39  ;;  %v1155_v13 = vpop.f32.mrb[47].mxu0  ;;  %1470 = vmatmul.mubr.f32.gmra.mrb[152].mxu0 %v500_v63  ;;  %v8750_v39 = vld [vmem:[#allocation19_spill] sm:$0xff] }
 0x179   : > { %v4355_v26 = vpack.c.bf16 %v1155_v13, %v1149_v62  ;;  %4099 = vmatprep.mubr.msk.f32.mxu0 %vm588_vm0, %v503_v40  ;;  %v517_v62 = vmul.f32 %v8750_v39, %v8750_v39 }
 0x17b   : > { %v1159_v42 = vpop.f32.mrb[48].mxu0  ;;  %4356 = vmatprep.subr.bf16.mxu1 %v4355_v26 }
 0x17c   : > { %v1161_v2 = vpop.f32.mrb[49].mxu0  ;;  %1476 = vmatmul.mubr.f32.gmra.mrb[154].mxu0 %v502_v41  ;;  %4358 = vmatpush1.bf16.msra.mxu1 %v4357_v12  ;;  %v8751_v12 = vld [vmem:[#allocation20_spill] sm:$0xff]  ;;  %v8752_v41 = vld [vmem:[#allocation21_spill] sm:$0xff] }
 0x17d   : > { %4100 = vmatprep.mubr.msk.f32.mxu0 %vm588_vm0, %v505_v25  ;;  %v516_v13 = vmul.f32 %v8751_v12, %v8751_v12  ;;  %v519_v14 = vmul.f32 %v8752_v41, %v8752_v41  ;;  %v5961_v25 = vld [vmem:[%s8457_s2 + $0x78] sm:$0xff]  ;;  %v6051_v12 = vld [vmem:[%s8457_s2 + $0xc8] sm:$0xff] }
 0x17f   : > { %v1165_v3 = vpop.f32.mrb[50].mxu0  ;;  %1868 = vmatmul.mubr.f32.vlgmr.msra.gmra.mrb[0].mxu1 %v5845_v44 }
 0x180   : > { %v4361_v28 = vpack.c.bf16 %v1165_v3, %v1159_v42  ;;  %v1167_v17 = vpop.f32.mrb[51].mxu0  ;;  %1482 = vmatmul.mubr.f32.gmra.mrb[156].mxu0 %v504_v15  ;;  %4143 = vmatprep.mubr.msk.f32.mxu1 %vm588_vm0, %v5853_v45  ;;  %v518_v15 = vmul.f32 %v8753_v43, %v8753_v43 }
 0x181   : > { %v4359_v29 = vpack.c.bf16 %v1167_v17, %v1161_v2  ;;  %4101 = vmatprep.mubr.msk.f32.mxu0 %vm588_vm0, %v507_v16  ;;  %v8754_v16 = vld [vmem:[#allocation23_spill] sm:$0xff]  ;;  %v5979_v17 = vld [vmem:[%s8457_s2 + $0x88] sm:$0xff] }
 0x182   : > { %v521_v3 = vmul.f32 %v8754_v16, %v8754_v16 }
 0x183   : > { %v1171_v30 = vpop.f32.mrb[52].mxu0  ;;  %4360 = vmatprep.subr.bf16.mxu1 %v4359_v29  ;;  %1874 = vmatmul.mubr.f32.gmra.mrb[2].mxu1 %v5863_v18  ;;  %v5987_v29 = vld [vmem:[%s8457_s2 + $0x80] sm:$0xff] }
 0x184   : > { %v1173_v6 = vpop.f32.mrb[53].mxu0  ;;  %1488 = vmatmul.mubr.f32.gmra.mrb[158].mxu0 %v506_v47  ;;  %4362 = vmatpush1.bf16.msra.mxu1 %v4361_v28 }
 0x185   : > { %4102 = vmatprep.mubr.msk.f32.mxu0 %vm588_vm0, %v509_v5  ;;  %4144 = vmatprep.mubr.msk.f32.mxu1 %vm588_vm0, %v5871_v49  ;;  %v520_v5 = vmul.f32 %v8755_v48, %v8755_v48  ;;  %v6079_v48 = vld [vmem:[%s8457_s2 + $0xd0] sm:$0xff] }
 0x187   : > { %v1177_v33 = vpop.f32.mrb[54].mxu0  ;;  %1880 = vmatmul.mubr.f32.gmra.mrb[4].mxu1 %v5879_v51 }
 0x188   : > { %v4365_v53 = vpack.c.bf16 %v1177_v33, %v1171_v30  ;;  %v1179_v20 = vpop.f32.mrb[55].mxu0  ;;  %1494 = vmatmul.mubr.f32.gmra.mrb[160].mxu0 %v508_v50  ;;  %4145 = vmatprep.mubr.msk.f32.mxu1 %vm588_vm0, %v5889_v19  ;;  %v8756_v30 = vld [vmem:[#allocation25_spill] sm:$0xff]  ;;  %v8757_v33 = vld [vmem:[#allocation26_spill] sm:$0xff] }
 0x189   : > { %v4363_v56 = vpack.c.bf16 %v1179_v20, %v1173_v6  ;;  %4103 = vmatprep.mubr.msk.f32.mxu0 %vm588_vm0, %v511_v52  ;;  %v523_v6 = vmul.f32 %v8756_v30, %v8756_v30  ;;  %v6007_v20 = vld [vmem:[%s8457_s2 + $0x90] sm:$0xff] }
 0x18b   : > { %v1183_v21 = vpop.f32.mrb[56].mxu0  ;;  %4364 = vmatprep.subr.bf16.mxu1 %v4363_v56  ;;  %1886 = vmatmul.mubr.f32.gmra.mrb[6].mxu1 %v5899_v54 }
 0x18c   : > { %v1185_v57 = vpop.f32.mrb[57].mxu0  ;;  %1500 = vmatmul.mubr.f32.gmra.mrb[162].mxu0 %v510_v32  ;;  %4366 = vmatpush1.bf16.msra.mxu1 %v4365_v53  ;;  %v522_v53 = vmul.f32 %v8757_v33, %v8757_v33  ;;  %v525_v32 = vmul.f32 %v8758_v8, %v8758_v8  ;;  %v8767_v33 = vld [vmem:[#allocation36_spill] sm:$0xff] }
 0x18d   : > { %4104 = vmatprep.mubr.msk.f32.mxu0 %vm588_vm0, %v513_v34  ;;  %4146 = vmatprep.mubr.msk.f32.mxu1 %vm588_vm0, %v5907_v35  ;;  %v6015_v34 = vld [vmem:[%s8457_s2 + $0xa8] sm:$0xff]  ;;  %v6095_v8 = vld [vmem:[%s8457_s2 + $0xe0] sm:$0xff] }
 0x18f   : > { %v1189_v60 = vpop.f32.mrb[58].mxu0  ;;  %1892 = vmatmul.mubr.f32.gmra.mrb[8].mxu1 %v5915_v9 }
 0x190   : > { %v4369_v23 = vpack.c.bf16 %v1189_v60, %v1183_v21  ;;  %v1191_v10 = vpop.f32.mrb[59].mxu0  ;;  %1506 = vmatmul.mubr.f32.gmra.mrb[164].mxu0 %v512_v22  ;;  %4147 = vmatprep.mubr.msk.f32.mxu1 %vm588_vm0, %v5925_v37  ;;  %v6023_v22 = vld [vmem:[%s8457_s2 + $0xa0] sm:$0xff]  ;;  %v6033_v60 = vld [vmem:[%s8457_s2 + $0xb8] sm:$0xff] }
 0x191   : > { %v4367_v63 = vpack.c.bf16 %v1191_v10, %v1185_v57  ;;  %4105 = vmatprep.mubr.msk.f32.mxu0 %vm588_vm0, %v515_v59  ;;  %v8759_v57 = vld [vmem:[#allocation28_spill] sm:$0xff]  ;;  %v527_v59 = vmul.f32 %v8760_v58, %v8760_v58  ;;  %v8769_v58 = vld [vmem:[#allocation38_spill] sm:$0xff] }
 0x192   : > { %v524_v36 = vmul.f32 %v8759_v57, %v8759_v57 }
 0x193   : > { %v1195_v40 = vpop.f32.mrb[60].mxu0  ;;  %4368 = vmatprep.subr.bf16.mxu1 %v4367_v63  ;;  %1898 = vmatmul.mubr.f32.gmra.mrb[10].mxu1 %v5935_v38  ;;  %v8762_v63 = vld [vmem:[#allocation31_spill] sm:$0xff] }
 0x194   : > { %v1197_v0 = vpop.f32.mrb[61].mxu0  ;;  %1512 = vmatmul.mubr.f32.gmra.mrb[166].mxu0 %v514_v11  ;;  %4370 = vmatpush1.bf16.msra.mxu1 %v4369_v23  ;;  %v8761_v11 = vld [vmem:[#allocation30_spill] sm:$0xff] }
 0x195   : > { %4106 = vmatprep.mubr.msk.f32.mxu0 %vm588_vm0, %v517_v62  ;;  %4148 = vmatprep.mubr.msk.f32.mxu1 %vm588_vm0, %v5943_v24  ;;  %v526_v39 = vmul.f32 %v8761_v11, %v8761_v11  ;;  %v6043_v62 = vld [vmem:[%s8457_s2 + $0xb0] sm:$0xff] }
 0x197   : > { %v1201_v26 = vpop.f32.mrb[62].mxu0  ;;  %1904 = vmatmul.mubr.f32.gmra.mrb[12].mxu1 %v5951_v1 }
 0x198   : > { %v4373_v42 = vpack.c.bf16 %v1201_v26, %v1195_v40  ;;  %v1203_v2 = vpop.f32.mrb[63].mxu0  ;;  %1518 = vmatmul.mubr.f32.gmra.mrb[168].mxu0 %v516_v13  ;;  %4149 = vmatprep.mubr.msk.f32.mxu1 %vm588_vm0, %v5961_v25  ;;  %v529_v40 = vmul.f32 %v8762_v63, %v8762_v63 }
 0x199   : > { %v4371_v28 = vpack.c.bf16 %v1203_v2, %v1197_v0  ;;  %4107 = vmatprep.mubr.msk.f32.mxu0 %vm588_vm0, %v519_v14  ;;  %v8763_v14 = vld [vmem:[#allocation32_spill] sm:$0xff]  ;;  %v8764_v2 = vld [vmem:[#allocation33_spill] sm:$0xff] }
 0x19a   : > { %v528_v26 = vmul.f32 %v8763_v14, %v8763_v14  ;;  %v531_v43 = vmul.f32 %v8764_v2, %v8764_v2  ;;  %v8772_v14 = vld [vmem:[#allocation41_spill] sm:$0xff]  ;;  %v6141_v2 = vld [vmem:[%s8457_s2 + $0x118] sm:$0xff] }
 0x19b   : > { %v1207_v46 = vpop.f32.mrb[64].mxu0  ;;  %4372 = vmatprep.subr.bf16.mxu1 %v4371_v28  ;;  %1910 = vmatmul.mubr.f32.gmra.mrb[14].mxu1 %v5971_v27 }
 0x19c   : > { %v1209_v47 = vpop.f32.mrb[65].mxu0  ;;  %1524 = vmatmul.mubr.f32.gmra.mrb[170].mxu0 %v518_v15  ;;  %4374 = vmatpush1.bf16.msra.mxu1 %v4373_v42  ;;  %v6059_v42 = vld [vmem:[%s8457_s2 + $0xc0] sm:$0xff]  ;;  %v6069_v15 = vld [vmem:[%s8457_s2 + $0xd8] sm:$0xff] }
 0x19d   : > { %4108 = vmatprep.mubr.msk.f32.mxu0 %vm588_vm0, %v521_v3  ;;  %4150 = vmatprep.mubr.msk.f32.mxu1 %vm588_vm0, %v5979_v17 }
 0x19f   : > { %v1213_v50 = vpop.f32.mrb[66].mxu0  ;;  %1916 = vmatmul.mubr.f32.gmra.mrb[16].mxu1 %v5987_v29 }
 0x1a0   : > { %v4377_v7 = vpack.c.bf16 %v1213_v50, %v1207_v46  ;;  %v1215_v52 = vpop.f32.mrb[67].mxu0  ;;  %1530 = vmatmul.mubr.f32.gmra.mrb[172].mxu0 %v520_v5  ;;  %4151 = vmatprep.mubr.msk.f32.mxu1 %vm588_vm0, %v5997_v31  ;;  %v8765_v46 = vld [vmem:[#allocation34_spill] sm:$0xff]  ;;  %v8766_v5 = vld [vmem:[#allocation35_spill] sm:$0xff] }
 0x1a1   : > { %v4375_v55 = vpack.c.bf16 %v1215_v52, %v1209_v47  ;;  %4109 = vmatprep.mubr.msk.f32.mxu0 %vm588_vm0, %v523_v6  ;;  %v530_v47 = vmul.f32 %v8765_v46, %v8765_v46  ;;  %v533_v30 = vmul.f32 %v8766_v5, %v8766_v5  ;;  %v6087_v50 = vld [vmem:[%s8457_s2 + $0xe8] sm:$0xff]  ;;  %v6151_v46 = vld [vmem:[%s8457_s2 + $0x110] sm:$0xff] }
 0x1a2   : > { %v4777_v5 = vld [vmem:[%s5456_s10 + $0x8] sm:$0xff] }
 0x1a3   : > { %v1219_v56 = vpop.f32.mrb[68].mxu0  ;;  %4376 = vmatprep.subr.bf16.mxu1 %v4375_v55  ;;  %1922 = vmatmul.mubr.f32.gmra.mrb[18].mxu1 %v6007_v20 }
 0x1a4   : > { %v1221_v21 = vpop.f32.mrb[69].mxu0  ;;  %1536 = vmatmul.mubr.f32.gmra.mrb[174].mxu0 %v522_v53  ;;  %4378 = vmatpush1.bf16.msra.mxu1 %v4377_v7  ;;  %v532_v53 = vmul.f32 %v8767_v33, %v8767_v33  ;;  %v4778_v33 = vld [vmem:[%s5156_s23] sm:$0xff] }
 0x1a5   : > { %4110 = vmatprep.mubr.msk.f32.mxu0 %vm588_vm0, %v525_v32  ;;  %4152 = vmatprep.mubr.msk.f32.mxu1 %vm588_vm0, %v6015_v34  ;;  %v8768_v32 = vld [vmem:[#allocation37_spill] sm:$0xff] }
 0x1a6   : > { %v535_v55 = vmul.f32 %v8768_v32, %v8768_v32 }
 0x1a7   : > { %v1225_v23 = vpop.f32.mrb[70].mxu0  ;;  %1928 = vmatmul.mubr.f32.gmra.mrb[20].mxu1 %v6023_v22 }
 0x1a8   : > { %v4381_v10 = vpack.c.bf16 %v1225_v23, %v1219_v56  ;;  %v1227_v61 = vpop.f32.mrb[71].mxu0  ;;  %1542 = vmatmul.mubr.f32.gmra.mrb[176].mxu0 %v524_v36  ;;  %4153 = vmatprep.mubr.msk.f32.mxu1 %vm588_vm0, %v6033_v60  ;;  %v6105_v56 = vld [vmem:[%s8457_s2 + $0xf8] sm:$0xff]  ;;  %v6115_v23 = vld [vmem:[%s8457_s2 + $0xf0] sm:$0xff] }
 0x1a9   : > { %v4379_v0 = vpack.c.bf16 %v1227_v61, %v1221_v21  ;;  %4111 = vmatprep.mubr.msk.f32.mxu0 %vm588_vm0, %v527_v59  ;;  %v534_v59 = vmul.f32 %v8769_v58, %v8769_v58  ;;  %v6177_v58 = vld [vmem:[%s8457_s2 + $0x138] sm:$0xff] }
 0x1ab   : > { %v1231_v13 = vpop.f32.mrb[72].mxu0  ;;  %4380 = vmatprep.subr.bf16.mxu1 %v4379_v0  ;;  %1934 = vmatmul.mubr.f32.gmra.mrb[22].mxu1 %v6043_v62  ;;  %v8771_v0 = vld [vmem:[#allocation40_spill] sm:$0xff] }
 0x1ac   : > { %v1233_v41 = vpop.f32.mrb[73].mxu0  ;;  %1548 = vmatmul.mubr.f32.gmra.mrb[178].mxu0 %v526_v39  ;;  %4382 = vmatpush1.bf16.msra.mxu1 %v4381_v10  ;;  %v8770_v10 = vld [vmem:[#allocation39_spill] sm:$0xff]  ;;  %v6123_v39 = vld [vmem:[%s8457_s2 + $0x108] sm:$0xff] }
 0x1ad   : > { %4112 = vmatprep.mubr.msk.f32.mxu0 %vm588_vm0, %v529_v40  ;;  %4154 = vmatprep.mubr.msk.f32.mxu1 %vm588_vm0, %v6051_v12  ;;  %v537_v61 = vmul.f32 %v8770_v10, %v8770_v10 }
 0x1af   : > { %v1237_v16 = vpop.f32.mrb[74].mxu0  ;;  %1940 = vmatmul.mubr.f32.gmra.mrb[24].mxu1 %v6059_v42 }
 0x1b0   : > { %v4385_v3 = vpack.c.bf16 %v1237_v16, %v1231_v13  ;;  %v1239_v28 = vpop.f32.mrb[75].mxu0  ;;  %1554 = vmatmul.mubr.f32.gmra.mrb[180].mxu0 %v528_v26  ;;  %4155 = vmatprep.mubr.msk.f32.mxu1 %vm588_vm0, %v6069_v15  ;;  %v536_v13 = vmul.f32 %v8771_v0, %v8771_v0  ;;  %v539_v26 = vmul.f32 %v8772_v14, %v8772_v14  ;;  %v6187_v0 = vld [vmem:[%s8457_s2 + $0x130] sm:$0xff]  ;;  %v4785_v14 = vld [vmem:[%s5456_s10 + $0x28] sm:$0xff] }
 0x1b1   : > { %v4383_v6 = vpack.c.bf16 %v1239_v28, %v1233_v41  ;;  %4113 = vmatprep.mubr.msk.f32.mxu0 %vm588_vm0, %v531_v43  ;;  %v6131_v41 = vld [vmem:[%s8457_s2 + $0x100] sm:$0xff]  ;;  %v538_v28 = vmul.f32 %v5680_v4, %v5680_v4  ;;  %v6159_v4 = vld [vmem:[%s8457_s2 + $0x128] sm:$0xff] }
 0x1b3   : > { %v1243_v7 = vpop.f32.mrb[76].mxu0  ;;  %4384 = vmatprep.subr.bf16.mxu1 %v4383_v6  ;;  %1946 = vmatmul.mubr.f32.gmra.mrb[26].mxu1 %v6079_v48 }
 0x1b4   : > { %v1245_v52 = vpop.f32.mrb[77].mxu0  ;;  %1560 = vmatmul.mubr.f32.gmra.mrb[182].mxu0 %v530_v47  ;;  %4386 = vmatpush1.bf16.msra.mxu1 %v4385_v3  ;;  %v4776_v47 = vld [vmem:[%s5156_s23 + $0x8] sm:$0xff] }
 0x1b5   : > { %4114 = vmatprep.mubr.msk.f32.mxu0 %vm588_vm0, %v533_v30  ;;  %4156 = vmatprep.mubr.msk.f32.mxu1 %vm588_vm0, %v6087_v50  ;;  %v541_v30 = vmul.f32 %v4777_v5, %v4776_v47  ;;  %v4786_v47 = vld [vmem:[%s5156_s23 + $0x20] sm:$0xff] }
 0x1b6   : > { %v4787_v5 = vld [vmem:[%s5456_s10 + $0x20] sm:$0xff] }
 0x1b7   : > { %v1249_v21 = vpop.f32.mrb[78].mxu0  ;;  %1952 = vmatmul.mubr.f32.gmra.mrb[28].mxu1 %v6095_v8 }
 0x1b8   : > { %v4389_v57 = vpack.c.bf16 %v1249_v21, %v1243_v7  ;;  %v1251_v36 = vpop.f32.mrb[79].mxu0  ;;  %1566 = vmatmul.mubr.f32.gmra.mrb[184].mxu0 %v532_v53  ;;  %4157 = vmatprep.mubr.msk.f32.mxu1 %vm588_vm0, %v6105_v56  ;;  %v4779_v53 = vld [vmem:[%s5456_s10] sm:$0xff]  ;;  %v4780_v21 = vld [vmem:[%s5156_s23 + $0x18] sm:$0xff] }
 0x1b9   : > { %v4387_v11 = vpack.c.bf16 %v1251_v36, %v1245_v52  ;;  %4115 = vmatprep.mubr.msk.f32.mxu0 %vm588_vm0, %v535_v55  ;;  %v540_v32 = vmul.f32 %v4779_v53, %v4778_v33  ;;  %v6167_v55 = vld [vmem:[%s8457_s2 + $0x120] sm:$0xff]  ;;  %v6213_v53 = vld [vmem:[%s8457_s2 + $0x158] sm:$0xff] }
 0x1bb   : > { %v1255_v63 = vpop.f32.mrb[80].mxu0  ;;  %4388 = vmatprep.subr.bf16.mxu1 %v4387_v11  ;;  %1958 = vmatmul.mubr.f32.gmra.mrb[30].mxu1 %v6115_v23  ;;  %v4782_v11 = vld [vmem:[%s5156_s23 + $0x10] sm:$0xff] }
 0x1bc   : > { %v1257_v40 = vpop.f32.mrb[81].mxu0  ;;  %1572 = vmatmul.mubr.f32.gmra.mrb[186].mxu0 %v534_v59  ;;  %4390 = vmatpush1.bf16.msra.mxu1 %v4389_v57  ;;  %v4781_v57 = vld [vmem:[%s5456_s10 + $0x18] sm:$0xff] }
 0x1bd   : > { %4116 = vmatprep.mubr.msk.f32.mxu0 %vm588_vm0, %v537_v61  ;;  %4158 = vmatprep.mubr.msk.f32.mxu1 %vm588_vm0, %v6123_v39  ;;  %v543_v36 = vmul.f32 %v4781_v57, %v4780_v21 }
 0x1bf   : > { %v1261_v43 = vpop.f32.mrb[82].mxu0  ;;  %1964 = vmatmul.mubr.f32.gmra.mrb[32].mxu1 %v6131_v41 }
 0x1c0   : > { %v4393_v16 = vpack.c.bf16 %v1261_v43, %v1255_v63  ;;  %v1263_v3 = vpop.f32.mrb[83].mxu0  ;;  %1578 = vmatmul.mubr.f32.gmra.mrb[188].mxu0 %v536_v13  ;;  %4159 = vmatprep.mubr.msk.f32.mxu1 %vm588_vm0, %v6141_v2  ;;  %v4783_v63 = vld [vmem:[%s5456_s10 + $0x10] sm:$0xff]  ;;  %v4784_v13 = vld [vmem:[%s5156_s23 + $0x28] sm:$0xff] }
 0x1c1   : > { %v4391_v6 = vpack.c.bf16 %v1263_v3, %v1257_v40  ;;  %4117 = vmatprep.mubr.msk.f32.mxu0 %vm588_vm0, %v539_v26  ;;  %v542_v40 = vmul.f32 %v4783_v63, %v4782_v11  ;;  %v545_v26 = vmul.f32 %v4785_v14, %v4784_v13  ;;  %v4792_v11 = vld [vmem:[%s5156_s23 + $0x48] sm:$0xff] }
 0x1c2   : > { %v4793_v63 = vld [vmem:[%s5456_s10 + $0x48] sm:$0xff] }
 0x1c3   : > { %v1267_v7 = vpop.f32.mrb[84].mxu0  ;;  %4392 = vmatprep.subr.bf16.mxu1 %v4391_v6  ;;  %1970 = vmatmul.mubr.f32.gmra.mrb[34].mxu1 %v6151_v46  ;;  %v6203_v6 = vld [vmem:[%s8457_s2 + $0x140] sm:$0xff]  ;;  %v6231_v14 = vld [vmem:[%s8457_s2 + $0x168] sm:$0x3f] }
 0x1c4   : > { %v1269_v52 = vpop.f32.mrb[85].mxu0  ;;  %1584 = vmatmul.mubr.f32.gmra.mrb[190].mxu0 %v538_v28  ;;  %4394 = vmatpush1.bf16.msra.mxu1 %v4393_v16  ;;  %v6195_v16 = vld [vmem:[%s8457_s2 + $0x148] sm:$0xff] }
 0x1c5   : > { %4118 = vmatprep.mubr.msk.f32.mxu0 %vm588_vm0, %v541_v30  ;;  %4160 = vmatprep.mubr.msk.f32.mxu1 %vm588_vm0, %v6159_v4  ;;  %v544_v30 = vmul.f32 %v4787_v5, %v4786_v47  ;;  %v4795_v47 = vld [vmem:[%s5456_s10 + $0x40] sm:$0xff] }
 0x1c7   : > { %v1273_v59 = vpop.f32.mrb[86].mxu0  ;;  %1976 = vmatmul.mubr.f32.gmra.mrb[36].mxu1 %v6167_v55 }
 0x1c8   : > { %v4397_v10 = vpack.c.bf16 %v1273_v59, %v1267_v7  ;;  %v1275_v61 = vpop.f32.mrb[87].mxu0  ;;  %1590 = vmatmul.mubr.f32.gmra.mrb[192].mxu0 %v540_v32  ;;  %4161 = vmatprep.mubr.msk.f32.mxu1 %vm588_vm0, %v6177_v58  ;;  %v4788_v7 = vld [vmem:[%s5156_s23 + $0x38] sm:$0xff]  ;;  %v4791_v59 = vld [vmem:[%s5456_s10 + $0x30] sm:$0xff] }
 0x1c9   : > { %v4395_v43 = vpack.c.bf16 %v1275_v61, %v1269_v52  ;;  %4119 = vmatprep.mubr.msk.f32.mxu0 %vm588_vm0, %v543_v36  ;;  %v4789_v52 = vld [vmem:[%s5456_s10 + $0x38] sm:$0xff]  ;;  %v4790_v36 = vld [vmem:[%s5156_s23 + $0x30] sm:$0xff] }
 0x1ca   : > { %v547_v33 = vmul.f32 %v4789_v52, %v4788_v7  ;;  %v6223_v61 = vld [vmem:[%s8457_s2 + $0x150] sm:$0xff]  ;;  %v4797_v7 = vld [vmem:[%s5456_s10 + $0x58] sm:$0xff] }
 0x1cb   : > { %v1279_v3 = vpop.f32.mrb[88].mxu0  ;;  %4396 = vmatprep.subr.bf16.mxu1 %v4395_v43  ;;  %1982 = vmatmul.mubr.f32.gmra.mrb[38].mxu1 %v6187_v0 }
 0x1cc   : > { %v1281_v28 = vpop.f32.mrb[89].mxu0  ;;  %1596 = vmatmul.mubr.f32.gmra.mrb[194].mxu0 %v542_v40  ;;  %4398 = vmatpush1.bf16.msra.mxu1 %v4397_v10  ;;  %v546_v10 = vmul.f32 %v4791_v59, %v4790_v36  ;;  %v549_v40 = vmul.f32 %v4793_v63, %v4792_v11  ;;  %v4799_v36 = vld [vmem:[%s5456_s10 + $0x50] sm:$0xff]  ;;  %v4800_v11 = vld [vmem:[%s5156_s23 + $0x68] sm:$0xff] }
 0x1cd   : > { %4120 = vmatprep.mubr.msk.f32.mxu0 %vm588_vm0, %v545_v26  ;;  %4162 = vmatprep.mubr.msk.f32.mxu1 %vm588_vm0, %v6195_v16  ;;  %v4801_v63 = vld [vmem:[%s5456_s10 + $0x68] sm:$0xff] }
 0x1cf   : > { %v1285_v32 = vpop.f32.mrb[90].mxu0  ;;  %1988 = vmatmul.mubr.f32.gmra.mrb[40].mxu1 %v6203_v6 }
 0x1d0   : > { %v4401_v21 = vpack.c.bf16 %v1285_v32, %v1279_v3  ;;  %v1287_v57 = vpop.f32.mrb[91].mxu0  ;;  %1602 = vmatmul.mubr.f32.gmra.mrb[196].mxu0 %v544_v30  ;;  %4163 = vmatprep.mubr.msk.f32.mxu1 %vm588_vm0, %v6213_v53  ;;  %v4794_v3 = vld [vmem:[%s5156_s23 + $0x40] sm:$0xff]  ;;  %v4796_v30 = vld [vmem:[%s5156_s23 + $0x58] sm:$0xff] }
 0x1d1   : > { %v4399_v13 = vpack.c.bf16 %v1287_v57, %v1281_v28  ;;  %4121 = vmatprep.mubr.msk.f32.mxu0 %vm588_vm0, %v547_v33  ;;  %v548_v5 = vmul.f32 %v4795_v47, %v4794_v3  ;;  %v6239_v28 = vld [vmem:[%s8457_s2 + $0x160] sm:$0x3f]  ;;  %v551_v52 = vmul.f32 %v4797_v7, %v4796_v30  ;;  %v4798_v57 = vld [vmem:[%s5156_s23 + $0x50] sm:$0xff]  ;;  %v4804_v7 = vld [vmem:[%s5156_s23 + $0x78] sm:$0xff] }
 0x1d2   : > { %v550_v59 = vmul.f32 %v4799_v36, %v4798_v57  ;;  %v4802_v47 = vld [vmem:[%s5156_s23 + $0x60] sm:$0xff]  ;;  %v4807_v36 = vld [vmem:[%s5456_s10 + $0x70] sm:$0xff] }
 0x1d3   : > { %v1291_v26 = vpop.f32.mrb[92].mxu0  ;;  %4400 = vmatprep.subr.bf16.mxu1 %v4399_v13  ;;  %1994 = vmatmul.mubr.f32.gmra.mrb[42].mxu1 %v6223_v61 }
 0x1d4   : > { %v1293_v43 = vpop.f32.mrb[93].mxu0  ;;  %1608 = vmatmul.mubr.f32.gmra.mrb[198].mxu0 %v546_v10  ;;  %4402 = vmatpush1.bf16.msra.mxu1 %v4401_v21  ;;  %v8773_v10 = vld [vmem:[#allocation42_spill] sm:$0xff] }
 0x1d5   : > { %4122 = vmatprep.mubr.msk.f32.mxu0 %vm588_vm0, %v549_v40  ;;  %4164 = vmatprep.mubr.msk.f32.mxu1 %vm588_vm0, %v6231_v14  ;;  %v553_v40 = vmul.f32 %v4801_v63, %v4800_v11  ;;  %v4809_v11 = vld [vmem:[%s5456_s10 + $0x88] sm:$0xff] }
 0x1d7   : > { %v1297_v33 = vpop.f32.mrb[94].mxu0  ;;  %2000 = vmatmul.mubr.f32.gmra.mrb[44].mxu1 %v6239_v28 }
 0x1d8   : > { %v4405_v32 = vpack.c.bf16 %v1297_v33, %v1291_v26  ;;  %v1299_v21 = vpop.f32.mrb[95].mxu0  ;;  %1614 = vmatmul.mubr.f32.gmra.mrb[200].mxu0 %v548_v5  ;;  %4165 = vmatprep.mubr.msk.f32.mxu1 %vm588_vm0, %v8773_v10  ;;  %v4803_v5 = vld [vmem:[%s5456_s10 + $0x60] sm:$0xff]  ;;  %v4805_v33 = vld [vmem:[%s5456_s10 + $0x78] sm:$0xff]  ;;  %v4808_v10 = vld [vmem:[%s5156_s23 + $0x88] sm:$0xff] }
 0x1d9   : > { %v4403_v13 = vpack.c.bf16 %v1299_v21, %v1293_v43  ;;  %4123 = vmatprep.mubr.msk.f32.mxu0 %vm588_vm0, %v551_v52  ;;  %v552_v30 = vmul.f32 %v4803_v5, %v4802_v47  ;;  %v555_v57 = vmul.f32 %v4805_v33, %v4804_v7  ;;  %v557_v63 = vmul.f32 %v4809_v11, %v4808_v10  ;;  %v4810_v47 = vld [vmem:[%s5156_s23 + $0x80] sm:$0xff]  ;;  %v4812_v7 = vld [vmem:[%s5156_s23 + $0x98] sm:$0xff]  ;;  %v4817_v10 = vld [vmem:[%s5456_s10 + $0xa8] sm:$0xff] }
 0x1da   : > { %v4811_v5 = vld [vmem:[%s5456_s10 + $0x80] sm:$0xff]  ;;  %v4813_v33 = vld [vmem:[%s5456_s10 + $0x98] sm:$0xff] }
 0x1db   : > { %v1303_v3 = vpop.f32.mrb[96].mxu0  ;;  %4404 = vmatprep.subr.bf16.mxu1 %v4403_v13 }
 0x1dc   : > { %v1305_v26 = vpop.f32.mrb[97].mxu0  ;;  %1620 = vmatmul.mubr.f32.gmra.mrb[202].mxu0 %v550_v59  ;;  %4406 = vmatpush1.bf16.msra.mxu1 %v4405_v32  ;;  %v4806_v32 = vld [vmem:[%s5156_s23 + $0x70] sm:$0xff] }
 0x1dd   : > { %4124 = vmatprep.mubr.msk.f32.mxu0 %vm588_vm0, %v553_v40  ;;  %v554_v59 = vmul.f32 %v4807_v36, %v4806_v32  ;;  %v4815_v32 = vld [vmem:[%s5456_s10 + $0x90] sm:$0xff] }
 0x1df   : > { %v1309_v43 = vpop.f32.mrb[98].mxu0  ;;  %2071 = vmatmul.mubr.f32.vlgmr.msra.gmra.mrb[46].mxu1 %v5845_v44 }
 0x1e0   : > { %v4409_v52 = vpack.c.bf16 %v1309_v43, %v1303_v3  ;;  %v1311_v21 = vpop.f32.mrb[99].mxu0  ;;  %1626 = vmatmul.mubr.f32.gmra.mrb[204].mxu0 %v552_v30  ;;  %4166 = vmatprep.mubr.msk.f32.mxu1 %vm588_vm0, %v5853_v45  ;;  %v556_v30 = vmul.f32 %v4811_v5, %v4810_v47  ;;  %v559_v43 = vmul.f32 %v4813_v33, %v4812_v7  ;;  %v4818_v47 = vld [vmem:[%s5156_s23 + $0xa0] sm:$0xff]  ;;  %v4820_v7 = vld [vmem:[%s5156_s23 + $0xb8] sm:$0xff] }
 0x1e1   : > { %v4407_v40 = vpack.c.bf16 %v1311_v21, %v1305_v26  ;;  %4125 = vmatprep.mubr.msk.f32.mxu0 %vm588_vm0, %v555_v57  ;;  %v4819_v5 = vld [vmem:[%s5456_s10 + $0xa0] sm:$0xff]  ;;  %v4821_v33 = vld [vmem:[%s5456_s10 + $0xb8] sm:$0xff] }
 0x1e3   : > { %v1315_v13 = vpop.f32.mrb[100].mxu0  ;;  %2077 = vmatmul.mubr.f32.gmra.mrb[48].mxu1 %v5863_v18  ;;  %4408 = vmatprep.subr.bf16.mxu1 %v4407_v40 }
 0x1e4   : > { %v1317_v3 = vpop.f32.mrb[101].mxu0  ;;  %1632 = vmatmul.mubr.f32.gmra.mrb[206].mxu0 %v554_v59  ;;  %4410 = vmatpush1.bf16.msra.mxu1 %v4409_v52  ;;  %v4814_v52 = vld [vmem:[%s5156_s23 + $0x90] sm:$0xff]  ;;  %v4816_v59 = vld [vmem:[%s5156_s23 + $0xa8] sm:$0xff] }
 0x1e5   : > { %4167 = vmatprep.mubr.msk.f32.mxu1 %vm588_vm0, %v5871_v49  ;;  %4126 = vmatprep.mubr.msk.f32.mxu0 %vm588_vm0, %v557_v63  ;;  %v558_v36 = vmul.f32 %v4815_v32, %v4814_v52  ;;  %v561_v11 = vmul.f32 %v4817_v10, %v4816_v59  ;;  %v4823_v52 = vld [vmem:[%s5456_s10 + $0xb0] sm:$0xff]  ;;  %v4825_v59 = vld [vmem:[%s5456_s10 + $0xc8] sm:$0xff] }
 0x1e7   : > { %v1321_v26 = vpop.f32.mrb[102].mxu0  ;;  %2083 = vmatmul.mubr.f32.gmra.mrb[50].mxu1 %v5879_v51 }
 0x1e8   : > { %v4413_v57 = vpack.c.bf16 %v1321_v26, %v1315_v13  ;;  %v1323_v21 = vpop.f32.mrb[103].mxu0  ;;  %1638 = vmatmul.mubr.f32.gmra.mrb[208].mxu0 %v556_v30  ;;  %4168 = vmatprep.mubr.msk.f32.mxu1 %vm588_vm0, %v5889_v19  ;;  %v560_v30 = vmul.f32 %v4819_v5, %v4818_v47  ;;  %v563_v26 = vmul.f32 %v4821_v33, %v4820_v7  ;;  %v4826_v47 = vld [vmem:[%s5156_s23 + $0xc0] sm:$0xff]  ;;  %v4828_v7 = vld [vmem:[%s5156_s23 + $0xd8] sm:$0xff] }
 0x1e9   : > { %v4411_v63 = vpack.c.bf16 %v1323_v21, %v1317_v3  ;;  %4127 = vmatprep.mubr.msk.f32.mxu0 %vm588_vm0, %v559_v43  ;;  %v4827_v5 = vld [vmem:[%s5456_s10 + $0xc0] sm:$0xff]  ;;  %v4829_v33 = vld [vmem:[%s5456_s10 + $0xd8] sm:$0xff] }
 0x1eb   : > { %v1327_v40 = vpop.f32.mrb[104].mxu0  ;;  %2089 = vmatmul.mubr.f32.gmra.mrb[52].mxu1 %v5899_v54  ;;  %4412 = vmatprep.subr.bf16.mxu1 %v4411_v63 }
 0x1ec   : > { %v1329_v13 = vpop.f32.mrb[105].mxu0  ;;  %1644 = vmatmul.mubr.f32.gmra.mrb[210].mxu0 %v558_v36  ;;  %4414 = vmatpush1.bf16.msra.mxu1 %v4413_v57  ;;  %v4822_v57 = vld [vmem:[%s5156_s23 + $0xb0] sm:$0xff]  ;;  %v4824_v36 = vld [vmem:[%s5156_s23 + $0xc8] sm:$0xff] }
 0x1ed   : > { %4169 = vmatprep.mubr.msk.f32.mxu1 %vm588_vm0, %v5907_v35  ;;  %4128 = vmatprep.mubr.msk.f32.mxu0 %vm588_vm0, %v561_v11  ;;  %v562_v32 = vmul.f32 %v4823_v52, %v4822_v57  ;;  %v565_v10 = vmul.f32 %v4825_v59, %v4824_v36  ;;  %v4831_v57 = vld [vmem:[%s5456_s10 + $0xd0] sm:$0xff]  ;;  %v4833_v36 = vld [vmem:[%s5456_s10 + $0xe8] sm:$0xff] }
 0x1ef   : > { %v1333_v3 = vpop.f32.mrb[106].mxu0  ;;  %2095 = vmatmul.mubr.f32.gmra.mrb[54].mxu1 %v5915_v9 }
 0x1f0   : > { %v4417_v43 = vpack.c.bf16 %v1333_v3, %v1327_v40  ;;  %v1335_v21 = vpop.f32.mrb[107].mxu0  ;;  %1650 = vmatmul.mubr.f32.gmra.mrb[212].mxu0 %v560_v30  ;;  %4170 = vmatprep.mubr.msk.f32.mxu1 %vm588_vm0, %v5925_v37  ;;  %v564_v30 = vmul.f32 %v4827_v5, %v4826_v47  ;;  %v567_v3 = vmul.f32 %v4829_v33, %v4828_v7  ;;  %v4834_v47 = vld [vmem:[%s5156_s23 + $0xe0] sm:$0xff]  ;;  %v4836_v7 = vld [vmem:[%s5156_s23 + $0xf8] sm:$0xff] }
 0x1f1   : > { %v4415_v11 = vpack.c.bf16 %v1335_v21, %v1329_v13  ;;  %4129 = vmatprep.mubr.msk.f32.mxu0 %vm588_vm0, %v563_v26  ;;  %v4835_v5 = vld [vmem:[%s5456_s10 + $0xe0] sm:$0xff]  ;;  %v4837_v33 = vld [vmem:[%s5456_s10 + $0xf8] sm:$0xff] }
 0x1f3   : > { %v1339_v63 = vpop.f32.mrb[108].mxu0  ;;  %2101 = vmatmul.mubr.f32.gmra.mrb[56].mxu1 %v5935_v38  ;;  %4416 = vmatprep.subr.bf16.mxu1 %v4415_v11 }
 0x1f4   : > { %v1341_v40 = vpop.f32.mrb[109].mxu0  ;;  %1656 = vmatmul.mubr.f32.gmra.mrb[214].mxu0 %v562_v32  ;;  %4418 = vmatpush1.bf16.msra.mxu1 %v4417_v43  ;;  %v4830_v43 = vld [vmem:[%s5156_s23 + $0xd0] sm:$0xff]  ;;  %v4832_v32 = vld [vmem:[%s5156_s23 + $0xe8] sm:$0xff] }
 0x1f5   : > { %4171 = vmatprep.mubr.msk.f32.mxu1 %vm588_vm0, %v5943_v24  ;;  %4130 = vmatprep.mubr.msk.f32.mxu0 %vm588_vm0, %v565_v10  ;;  %v566_v52 = vmul.f32 %v4831_v57, %v4830_v43  ;;  %v569_v59 = vmul.f32 %v4833_v36, %v4832_v32  ;;  %v4839_v43 = vld [vmem:[%s5456_s10 + $0xf0] sm:$0xff]  ;;  %v4841_v32 = vld [vmem:[%s5456_s10 + $0x108] sm:$0xff] }
 0x1f7   : > { %v1345_v13 = vpop.f32.mrb[110].mxu0  ;;  %2107 = vmatmul.mubr.f32.gmra.mrb[58].mxu1 %v5951_v1 }
 0x1f8   : > { %v4421_v26 = vpack.c.bf16 %v1345_v13, %v1339_v63  ;;  %v1347_v21 = vpop.f32.mrb[111].mxu0  ;;  %1662 = vmatmul.mubr.f32.gmra.mrb[216].mxu0 %v564_v30  ;;  %4172 = vmatprep.mubr.msk.f32.mxu1 %vm588_vm0, %v5961_v25  ;;  %v568_v30 = vmul.f32 %v4835_v5, %v4834_v47  ;;  %v571_v13 = vmul.f32 %v4837_v33, %v4836_v7  ;;  %v4842_v47 = vld [vmem:[%s5156_s23 + $0x100] sm:$0xff]  ;;  %v4844_v7 = vld [vmem:[%s5156_s23 + $0x118] sm:$0xff] }
 0x1f9   : > { %v4419_v10 = vpack.c.bf16 %v1347_v21, %v1341_v40  ;;  %4131 = vmatprep.mubr.msk.f32.mxu0 %vm588_vm0, %v567_v3  ;;  %v4843_v5 = vld [vmem:[%s5456_s10 + $0x100] sm:$0xff]  ;;  %v4845_v33 = vld [vmem:[%s5456_s10 + $0x118] sm:$0xff] }
 0x1fb   : > { %v1351_v11 = vpop.f32.mrb[112].mxu0  ;;  %2113 = vmatmul.mubr.f32.gmra.mrb[60].mxu1 %v5971_v27  ;;  %4420 = vmatprep.subr.bf16.mxu1 %v4419_v10 }
 0x1fc   : > { %v1353_v63 = vpop.f32.mrb[113].mxu0  ;;  %1668 = vmatmul.mubr.f32.gmra.mrb[218].mxu0 %v566_v52  ;;  %4422 = vmatpush1.bf16.msra.mxu1 %v4421_v26  ;;  %v4838_v26 = vld [vmem:[%s5156_s23 + $0xf0] sm:$0xff]  ;;  %v4840_v52 = vld [vmem:[%s5156_s23 + $0x108] sm:$0xff] }
 0x1fd   : > { %4173 = vmatprep.mubr.msk.f32.mxu1 %vm588_vm0, %v5979_v17  ;;  %4132 = vmatprep.mubr.msk.f32.mxu0 %vm588_vm0, %v569_v59  ;;  %v570_v57 = vmul.f32 %v4839_v43, %v4838_v26  ;;  %v573_v36 = vmul.f32 %v4841_v32, %v4840_v52  ;;  %v4847_v26 = vld [vmem:[%s5456_s10 + $0x110] sm:$0xff]  ;;  %v4849_v52 = vld [vmem:[%s5456_s10 + $0x128] sm:$0xff] }
 0x1ff   : > { %v1357_v40 = vpop.f32.mrb[114].mxu0  ;;  %2119 = vmatmul.mubr.f32.gmra.mrb[62].mxu1 %v5987_v29 }
 0x200   : > { %v4425_v3 = vpack.c.bf16 %v1357_v40, %v1351_v11  ;;  %v1359_v21 = vpop.f32.mrb[115].mxu0  ;;  %1674 = vmatmul.mubr.f32.gmra.mrb[220].mxu0 %v568_v30  ;;  %4174 = vmatprep.mubr.msk.f32.mxu1 %vm588_vm0, %v5997_v31  ;;  %v572_v30 = vmul.f32 %v4843_v5, %v4842_v47  ;;  %v575_v40 = vmul.f32 %v4845_v33, %v4844_v7  ;;  %v4850_v47 = vld [vmem:[%s5156_s23 + $0x120] sm:$0xff]  ;;  %v4852_v7 = vld [vmem:[%s5156_s23 + $0x138] sm:$0xff] }
 0x201   : > { %v4423_v59 = vpack.c.bf16 %v1359_v21, %v1353_v63  ;;  %4133 = vmatprep.mubr.msk.f32.mxu0 %vm588_vm0, %v571_v13  ;;  %v4851_v5 = vld [vmem:[%s5456_s10 + $0x120] sm:$0xff]  ;;  %v4853_v33 = vld [vmem:[%s5456_s10 + $0x138] sm:$0xff] }
 0x203   : > { %v1363_v10 = vpop.f32.mrb[116].mxu0  ;;  %2125 = vmatmul.mubr.f32.gmra.mrb[64].mxu1 %v6007_v20  ;;  %4424 = vmatprep.subr.bf16.mxu1 %v4423_v59 }
 0x204   : > { %v1365_v11 = vpop.f32.mrb[117].mxu0  ;;  %1680 = vmatmul.mubr.f32.gmra.mrb[222].mxu0 %v570_v57  ;;  %4426 = vmatpush1.bf16.msra.mxu1 %v4425_v3  ;;  %v4846_v3 = vld [vmem:[%s5156_s23 + $0x110] sm:$0xff]  ;;  %v4848_v57 = vld [vmem:[%s5156_s23 + $0x128] sm:$0xff] }
 0x205   : > { %4175 = vmatprep.mubr.msk.f32.mxu1 %vm588_vm0, %v6015_v34  ;;  %4134 = vmatprep.mubr.msk.f32.mxu0 %vm588_vm0, %v573_v36  ;;  %v574_v43 = vmul.f32 %v4847_v26, %v4846_v3  ;;  %v577_v32 = vmul.f32 %v4849_v52, %v4848_v57  ;;  %v4855_v3 = vld [vmem:[%s5456_s10 + $0x130] sm:$0xff]  ;;  %v4857_v57 = vld [vmem:[%s5456_s10 + $0x148] sm:$0xff] }
 0x207   : > { %v1369_v63 = vpop.f32.mrb[118].mxu0  ;;  %2131 = vmatmul.mubr.f32.gmra.mrb[66].mxu1 %v6023_v22 }
 0x208   : > { %v4429_v13 = vpack.c.bf16 %v1369_v63, %v1363_v10  ;;  %v1371_v21 = vpop.f32.mrb[119].mxu0  ;;  %1686 = vmatmul.mubr.f32.gmra.mrb[224].mxu0 %v572_v30  ;;  %4176 = vmatprep.mubr.msk.f32.mxu1 %vm588_vm0, %v6033_v60  ;;  %v576_v30 = vmul.f32 %v4851_v5, %v4850_v47  ;;  %v579_v63 = vmul.f32 %v4853_v33, %v4852_v7  ;;  %v4858_v47 = vld [vmem:[%s5156_s23 + $0x140] sm:$0xff]  ;;  %v4860_v7 = vld [vmem:[%s5156_s23 + $0x158] sm:$0xff] }
 0x209   : > { %v4427_v36 = vpack.c.bf16 %v1371_v21, %v1365_v11  ;;  %4135 = vmatprep.mubr.msk.f32.mxu0 %vm588_vm0, %v575_v40  ;;  %v4859_v5 = vld [vmem:[%s5456_s10 + $0x140] sm:$0xff]  ;;  %v4861_v33 = vld [vmem:[%s5456_s10 + $0x158] sm:$0xff] }
 0x20b   : > { %v1375_v59 = vpop.f32.mrb[120].mxu0  ;;  %2137 = vmatmul.mubr.f32.gmra.mrb[68].mxu1 %v6043_v62  ;;  %4428 = vmatprep.subr.bf16.mxu1 %v4427_v36 }
 0x20c   : > { %v1377_v10 = vpop.f32.mrb[121].mxu0  ;;  %1692 = vmatmul.mubr.f32.gmra.mrb[226].mxu0 %v574_v43  ;;  %4430 = vmatpush1.bf16.msra.mxu1 %v4429_v13  ;;  %v4854_v13 = vld [vmem:[%s5156_s23 + $0x130] sm:$0xff]  ;;  %v4856_v43 = vld [vmem:[%s5156_s23 + $0x148] sm:$0xff] }
 0x20d   : > { %4177 = vmatprep.mubr.msk.f32.mxu1 %vm588_vm0, %v6051_v12  ;;  %4136 = vmatprep.mubr.msk.f32.mxu0 %vm588_vm0, %v577_v32  ;;  %v578_v26 = vmul.f32 %v4855_v3, %v4854_v13  ;;  %v581_v52 = vmul.f32 %v4857_v57, %v4856_v43  ;;  %v4863_v13 = vld [vmem:[%s5456_s10 + $0x150] sm:$0xff]  ;;  %v4865_v43 = vld [vmem:[%s5456_s10 + $0x168] sm:$0xff] }
 0x20f   : > { %v1381_v11 = vpop.f32.mrb[122].mxu0  ;;  %2143 = vmatmul.mubr.f32.gmra.mrb[70].mxu1 %v6059_v42 }
 0x210   : > { %v4433_v40 = vpack.c.bf16 %v1381_v11, %v1375_v59  ;;  %v1383_v21 = vpop.f32.mrb[123].mxu0  ;;  %1698 = vmatmul.mubr.f32.gmra.mrb[228].mxu0 %v576_v30  ;;  %4178 = vmatprep.mubr.msk.f32.mxu1 %vm588_vm0, %v6069_v15  ;;  %v580_v30 = vmul.f32 %v4859_v5, %v4858_v47  ;;  %v583_v11 = vmul.f32 %v4861_v33, %v4860_v7  ;;  %v4866_v47 = vld [vmem:[%s5156_s23 + $0x160] sm:$0xff]  ;;  %v4868_v7 = vld [vmem:[%s5156_s23 + $0x178] sm:$0xff] }
 0x211   : > { %v4431_v32 = vpack.c.bf16 %v1383_v21, %v1377_v10  ;;  %4137 = vmatprep.mubr.msk.f32.mxu0 %vm588_vm0, %v579_v63  ;;  %v4867_v5 = vld [vmem:[%s5456_s10 + $0x160] sm:$0xff]  ;;  %v4869_v33 = vld [vmem:[%s5456_s10 + $0x178] sm:$0xff] }
 0x213   : > { %v1387_v36 = vpop.f32.mrb[124].mxu0  ;;  %2149 = vmatmul.mubr.f32.gmra.mrb[72].mxu1 %v6079_v48  ;;  %4432 = vmatprep.subr.bf16.mxu1 %v4431_v32 }
 0x214   : > { %v1389_v59 = vpop.f32.mrb[125].mxu0  ;;  %1704 = vmatmul.mubr.f32.gmra.mrb[230].mxu0 %v578_v26  ;;  %4434 = vmatpush1.bf16.msra.mxu1 %v4433_v40  ;;  %v4862_v40 = vld [vmem:[%s5156_s23 + $0x150] sm:$0xff]  ;;  %v4864_v26 = vld [vmem:[%s5156_s23 + $0x168] sm:$0xff] }
 0x215   : > { %4179 = vmatprep.mubr.msk.f32.mxu1 %vm588_vm0, %v6087_v50  ;;  %4138 = vmatprep.mubr.msk.f32.mxu0 %vm588_vm0, %v581_v52  ;;  %v582_v3 = vmul.f32 %v4863_v13, %v4862_v40  ;;  %v585_v57 = vmul.f32 %v4865_v43, %v4864_v26  ;;  %v4871_v40 = vld [vmem:[%s5456_s10 + $0x170] sm:$0xff]  ;;  %s231_s10 = sand.u32 1, %s4994_s19  }
 0x216   : > { %s4018_s11 = sshll.u32 %s231_s10, 1  ;;  %s3898_s22 = scalar_lea.sflag [#allocation3], %s231_s10 }
 0x217   : > { %v1393_v10 = vpop.f32.mrb[126].mxu0  ;;  %2155 = vmatmul.mubr.f32.gmra.mrb[74].mxu1 %v6095_v8  ;;  %s233_s15 = scalar_lea.vmem [#allocation2], %s4018_s11 }
 0x218   : > { %v4437_v63 = vpack.c.bf16 %v1393_v10, %v1387_v36  ;;  %v1395_v21 = vpop.f32.mrb[127].mxu0  ;;  %1710 = vmatmul.mubr.f32.gmra.mrb[232].mxu0 %v580_v30  ;;  %4180 = vmatprep.mubr.msk.f32.mxu1 %vm588_vm0, %v6105_v56  ;;  %v584_v30 = vmul.f32 %v4867_v5, %v4866_v47  ;;  %v587_v10 = vmul.f32 %v4869_v33, %v4868_v7  ;;  %s3916_s16 = sshll.u32 %s233_s15, 4  ;;  %s8413_s16 = int_to_ptr.vmem [resolvable:$true] %s3916_s16 }
 0x219   : > { %v4435_v52 = vpack.c.bf16 %v1395_v21, %v1389_v59  ;;  %4139 = vmatprep.mubr.msk.f32.mxu0 %vm588_vm0, %v583_v11  ;;  %s4940_s13 = scalar_lea.vmem %s8413_s16, 32  ;;  %p4947_p0 = scmp.lt.s32.totalorder %s8413_s16, %s4945_s6 }
 0x21a   : > { %p4941_p11 = scmp.ne.s32.totalorder %s8413_s16, %s4940_s13 }
 0x21b   : > { %v1399_v32 = vpop.f32.mrb[128].mxu0  ;;  %2161 = vmatmul.mubr.f32.gmra.mrb[76].mxu1 %v6115_v23  ;;  %4436 = vmatprep.subr.bf16.mxu1 %v4435_v52 }
 0x21c   : > { %v1401_v36 = vpop.f32.mrb[129].mxu0  ;;  %1716 = vmatmul.mubr.f32.gmra.mrb[234].mxu0 %v582_v3  ;;  %4438 = vmatpush1.bf16.msra.mxu1 %v4437_v63  ;;  %v4870_v63 = vld [vmem:[%s5156_s23 + $0x170] sm:$0xff]  ;;  %p4942_p12 = pnand %p4941_p11, %p5074_p5  ;;  %s4946_s23 = scalar_lea.vmem %s4945_s6, 64 }
 0x21d   : > { %4181 = vmatprep.mubr.msk.f32.mxu1 %vm588_vm0, %v6123_v39  ;;  %4140 = vmatprep.mubr.msk.f32.mxu0 %vm588_vm0, %v585_v57  ;;  %v586_v13 = vmul.f32 %v4871_v40, %v4870_v63  ;;  %p4948_p1 = scmp.lt.s32.totalorder %s4946_s23, %s4940_s13 }
 0x21e   : > { %p4943_p13 = pneg %p4942_p12 }
 0x21f   : > { %v1405_v59 = vpop.f32.mrb[130].mxu0  ;;  %2167 = vmatmul.mubr.f32.gmra.mrb[78].mxu1 %v6131_v41  ;;  %p4949_p2 = por %p4948_p1, %p4947_p0 }
 0x220   : > { %v4441_v11 = vpack.c.bf16 %v1405_v59, %v1399_v32  ;;  %v1407_v21 = vpop.f32.mrb[131].mxu0  ;;  %1722 = vmatmul.mubr.f32.gmra.mrb[236].mxu0 %v584_v30  ;;  %4182 = vmatprep.mubr.msk.f32.mxu1 %vm588_vm0, %v6141_v2 }
 0x221   : > { %v4439_v3 = vpack.c.bf16 %v1407_v21, %v1401_v36  ;;  %4141 = vmatprep.mubr.msk.f32.mxu0 %vm588_vm0, %v587_v10  ;;  %p4950_p3 = pnand %p4949_p2, %p4943_p13 }
 0x223   : > { %v1411_v26 = vpop.f32.mrb[132].mxu0  ;;  %2173 = vmatmul.mubr.f32.gmra.mrb[80].mxu1 %v6151_v46  ;;  %4440 = vmatprep.subr.bf16.mxu1 %v4439_v3 }
 0x224   : > { %v1413_v43 = vpop.f32.mrb[133].mxu0  ;;  %1728 = vmatmul.mubr.f32.gmra.mrb[238].mxu0 %v586_v13  ;;  %4442 = vmatpush1.bf16.msra.mxu1 %v4441_v11  ;;  %v6412_v13 = vld [vmem:[%s8457_s2 + $0x8] sm:$0xff] }
 0x225   : > { %4183 = vmatprep.mubr.msk.f32.mxu1 %vm588_vm0, %v6159_v4 }
 0x227   : > { %v1417_v57 = vpop.f32.mrb[134].mxu0  ;;  %2179 = vmatmul.mubr.f32.gmra.mrb[82].mxu1 %v6167_v55 }
 0x228   : > { %v4445_v52 = vpack.c.bf16 %v1417_v57, %v1411_v26  ;;  %v1419_v32 = vpop.f32.mrb[135].mxu0  ;;  %4184 = vmatprep.mubr.msk.f32.mxu1 %vm588_vm0, %v6177_v58 }
 0x229   : > { %v4443_v36 = vpack.c.bf16 %v1419_v32, %v1413_v43 }
 0x22b   : > { %v1423_v47 = vpop.f32.mrb[136].mxu0  ;;  %2185 = vmatmul.mubr.f32.gmra.mrb[84].mxu1 %v6187_v0  ;;  %4444 = vmatprep.subr.bf16.mxu1 %v4443_v36 }
 0x22c   : > { %v1425_v5 = vpop.f32.mrb[137].mxu0  ;;  %4446 = vmatpush1.bf16.msra.mxu1 %v4445_v52  ;;  %4185 = vmatprep.mubr.msk.f32.mxu1 %vm588_vm0, %v6195_v16 }
 0x22f   : > { %v1429_v30 = vpop.f32.mrb[138].mxu0  ;;  %2191 = vmatmul.mubr.f32.gmra.mrb[86].mxu1 %v6203_v6 }
 0x230   : > { %v4449_v7 = vpack.c.bf16 %v1429_v30, %v1423_v47  ;;  %v1431_v33 = vpop.f32.mrb[139].mxu0  ;;  %4186 = vmatprep.mubr.msk.f32.mxu1 %vm588_vm0, %v6213_v53 }
 0x231   : > { %v4447_v10 = vpack.c.bf16 %v1431_v33, %v1425_v5 }
 0x233   : > { %v1435_v59 = vpop.f32.mrb[140].mxu0  ;;  %2197 = vmatmul.mubr.f32.gmra.mrb[88].mxu1 %v6223_v61  ;;  %4448 = vmatprep.subr.bf16.mxu1 %v4447_v10 }
 0x234   : > { %v1437_v11 = vpop.f32.mrb[141].mxu0  ;;  %4450 = vmatpush1.bf16.msra.mxu1 %v4449_v7  ;;  %4187 = vmatprep.mubr.msk.f32.mxu1 %vm588_vm0, %v6231_v14 }
 0x237   : > { %v1441_v21 = vpop.f32.mrb[142].mxu0  ;;  %2203 = vmatmul.mubr.f32.gmra.mrb[90].mxu1 %v6239_v28 }
 0x238   : > { %v4453_v63 = vpack.c.bf16 %v1441_v21, %v1435_v59  ;;  %v1443_v40 = vpop.f32.mrb[143].mxu0  ;;  %4188 = vmatprep.mubr.msk.f32.mxu1 %vm588_vm0, %v6412_v13 }
 0x239   : > { %v4451_v3 = vpack.c.bf16 %v1443_v40, %v1437_v11 }
 0x23b   : > { %v1447_v26 = vpop.f32.mrb[144].mxu0  ;;  %4452 = vmatprep.subr.bf16.mxu1 %v4451_v3 }
 0x23c   : > { %v1449_v43 = vpop.f32.mrb[145].mxu0  ;;  %4454 = vmatpush1.bf16.msra.mxu1 %v4453_v63 }
 0x23f   : > { %v1453_v57 = vpop.f32.mrb[146].mxu0  ;;  %2274 = vmatmul.mubr.f32.vlgmr.msra.gmra.mrb[92].mxu1 %v5845_v44 }
 0x240   : > { %v4457_v52 = vpack.c.bf16 %v1453_v57, %v1447_v26  ;;  %v1455_v32 = vpop.f32.mrb[147].mxu0  ;;  %4189 = vmatprep.mubr.msk.f32.mxu1 %vm588_vm0, %v5853_v45 }
 0x241   : > { %v4455_v36 = vpack.c.bf16 %v1455_v32, %v1449_v43 }
 0x243   : > { %v1459_v47 = vpop.f32.mrb[148].mxu0  ;;  %2280 = vmatmul.mubr.f32.gmra.mrb[94].mxu1 %v5863_v18  ;;  %4456 = vmatprep.subr.bf16.mxu1 %v4455_v36 }
 0x244   : > { %v1461_v5 = vpop.f32.mrb[149].mxu0  ;;  %4458 = vmatpush1.bf16.msra.mxu1 %v4457_v52  ;;  %4190 = vmatprep.mubr.msk.f32.mxu1 %vm588_vm0, %v5871_v49 }
 0x247   : > { %v1465_v30 = vpop.f32.mrb[150].mxu0  ;;  %2286 = vmatmul.mubr.f32.gmra.mrb[96].mxu1 %v5879_v51 }
 0x248   : > { %v4461_v7 = vpack.c.bf16 %v1465_v30, %v1459_v47  ;;  %v1467_v44 = vpop.f32.mrb[151].mxu0  ;;  %4191 = vmatprep.mubr.msk.f32.mxu1 %vm588_vm0, %v5889_v19 }
 0x249   : > { %v4459_v33 = vpack.c.bf16 %v1467_v44, %v1461_v5 }
 0x24b   : > { %v1471_v45 = vpop.f32.mrb[152].mxu0  ;;  %2292 = vmatmul.mubr.f32.gmra.mrb[98].mxu1 %v5899_v54  ;;  %4460 = vmatprep.subr.bf16.mxu1 %v4459_v33 }
 0x24c   : > { %v1473_v18 = vpop.f32.mrb[153].mxu0  ;;  %4462 = vmatpush1.bf16.msra.mxu1 %v4461_v7  ;;  %4192 = vmatprep.mubr.msk.f32.mxu1 %vm588_vm0, %v5907_v35 }
 0x24f   : > { %v1477_v10 = vpop.f32.mrb[154].mxu0  ;;  %2298 = vmatmul.mubr.f32.gmra.mrb[100].mxu1 %v5915_v9 }
 0x250   : > { %v4465_v49 = vpack.c.bf16 %v1477_v10, %v1471_v45  ;;  %v1479_v51 = vpop.f32.mrb[155].mxu0  ;;  %4193 = vmatprep.mubr.msk.f32.mxu1 %vm588_vm0, %v5925_v37 }
 0x251   : > { %v4463_v59 = vpack.c.bf16 %v1479_v51, %v1473_v18 }
 0x252   : > { %v6431_v19 = vpop.f32.mrb[0].mxu1 }
 0x253   : > { %v1483_v11 = vpop.f32.mrb[156].mxu0  ;;  %2304 = vmatmul.mubr.f32.gmra.mrb[102].mxu1 %v5935_v38  ;;  %4464 = vmatprep.subr.bf16.mxu1 %v4463_v59  ;;  %v6434_v54 = vpop.f32.mrb[1].mxu1 }
 0x254   : > { %v1485_v21 = vpop.f32.mrb[157].mxu0  ;;  %4466 = vmatpush1.bf16.msra.mxu1 %v4465_v49  ;;  %4194 = vmatprep.mubr.msk.f32.mxu1 %vm588_vm0, %v5943_v24 }
 0x256   : > { %v6438_v35 = vpop.f32.mrb[2].mxu1 }
 0x257   : > { %v1489_v9 = vpop.f32.mrb[158].mxu0  ;;  %2310 = vmatmul.mubr.f32.gmra.mrb[104].mxu1 %v5951_v1  ;;  %v6441_v37 = vpop.f32.mrb[3].mxu1 }
 0x258   : > { %v4469_v63 = vpack.c.bf16 %v1489_v9, %v1483_v11  ;;  %v1491_v40 = vpop.f32.mrb[159].mxu0  ;;  %4195 = vmatprep.mubr.msk.f32.mxu1 %vm588_vm0, %v5961_v25 }
 0x259   : > { %v4467_v38 = vpack.c.bf16 %v1491_v40, %v1485_v21 }
 0x25a   : > { %v6445_v3 = vpop.f32.mrb[4].mxu1 }
 0x25b   : > { %v1495_v26 = vpop.f32.mrb[160].mxu0  ;;  %2316 = vmatmul.mubr.f32.gmra.mrb[106].mxu1 %v5971_v27  ;;  %4468 = vmatprep.subr.bf16.mxu1 %v4467_v38  ;;  %v6448_v24 = vpop.f32.mrb[5].mxu1 }
 0x25c   : > { %v1497_v43 = vpop.f32.mrb[161].mxu0  ;;  %4470 = vmatpush1.bf16.msra.mxu1 %v4469_v63  ;;  %4196 = vmatprep.mubr.msk.f32.mxu1 %vm588_vm0, %v5979_v17 }
 0x25e   : > { %v6452_v1 = vpop.f32.mrb[6].mxu1 }
 0x25f   : > { %v1501_v57 = vpop.f32.mrb[162].mxu0  ;;  %2322 = vmatmul.mubr.f32.gmra.mrb[108].mxu1 %v5987_v29  ;;  %v6455_v25 = vpop.f32.mrb[7].mxu1 }
 0x260   : > { %v4473_v52 = vpack.c.bf16 %v1501_v57, %v1495_v26  ;;  %v1503_v32 = vpop.f32.mrb[163].mxu0  ;;  %4197 = vmatprep.mubr.msk.f32.mxu1 %vm588_vm0, %v5997_v31 }
 0x261   : > { %v4471_v27 = vpack.c.bf16 %v1503_v32, %v1497_v43 }
 0x262   : > { %v6459_v36 = vpop.f32.mrb[8].mxu1 }
 0x263   : > { %v1507_v47 = vpop.f32.mrb[164].mxu0  ;;  %2328 = vmatmul.mubr.f32.gmra.mrb[110].mxu1 %v6007_v20  ;;  %4472 = vmatprep.subr.bf16.mxu1 %v4471_v27  ;;  %v6462_v17 = vpop.f32.mrb[9].mxu1 }
 0x264   : > { %v1509_v5 = vpop.f32.mrb[165].mxu0  ;;  %4474 = vmatpush1.bf16.msra.mxu1 %v4473_v52  ;;  %4198 = vmatprep.mubr.msk.f32.mxu1 %vm588_vm0, %v6015_v34 }
 0x266   : > { %v6466_v29 = vpop.f32.mrb[10].mxu1 }
 0x267   : > { %v1513_v30 = vpop.f32.mrb[166].mxu0  ;;  %2334 = vmatmul.mubr.f32.gmra.mrb[112].mxu1 %v6023_v22  ;;  %v6469_v31 = vpop.f32.mrb[11].mxu1 }
 0x268   : > { %v4477_v7 = vpack.c.bf16 %v1513_v30, %v1507_v47  ;;  %v1515_v44 = vpop.f32.mrb[167].mxu0  ;;  %4199 = vmatprep.mubr.msk.f32.mxu1 %vm588_vm0, %v6033_v60 }
 0x269   : > { %v4475_v20 = vpack.c.bf16 %v1515_v44, %v1509_v5 }
 0x26a   : > { %v6473_v33 = vpop.f32.mrb[12].mxu1 }
 0x26b   : > { %v1519_v45 = vpop.f32.mrb[168].mxu0  ;;  %2340 = vmatmul.mubr.f32.gmra.mrb[114].mxu1 %v6043_v62  ;;  %4476 = vmatprep.subr.bf16.mxu1 %v4475_v20  ;;  %v6476_v34 = vpop.f32.mrb[13].mxu1 }
 0x26c   : > { %v1521_v18 = vpop.f32.mrb[169].mxu0  ;;  %4478 = vmatpush1.bf16.msra.mxu1 %v4477_v7  ;;  %4200 = vmatprep.mubr.msk.f32.mxu1 %vm588_vm0, %v6051_v12 }
 0x26e   : > { %v6480_v22 = vpop.f32.mrb[14].mxu1 }
 0x26f   : > { %v1525_v10 = vpop.f32.mrb[170].mxu0  ;;  %2346 = vmatmul.mubr.f32.gmra.mrb[116].mxu1 %v6059_v42  ;;  %v6483_v60 = vpop.f32.mrb[15].mxu1 }
 0x270   : > { %8774 = vst [vmem:[#allocation5_spill] sm:$0xff] %v6483_v60  ;;  %v4481_v49 = vpack.c.bf16 %v1525_v10, %v1519_v45  ;;  %v1527_v51 = vpop.f32.mrb[171].mxu0  ;;  %4201 = vmatprep.mubr.msk.f32.mxu1 %vm588_vm0, %v6069_v15 }
 0x271   : > { %v4479_v62 = vpack.c.bf16 %v1527_v51, %v1521_v18 }
 0x272   : > { %v6487_v59 = vpop.f32.mrb[16].mxu1 }
 0x273   : > { %8775 = vst [vmem:[#allocation6_spill] sm:$0xff] %v6487_v59  ;;  %v1531_v11 = vpop.f32.mrb[172].mxu0  ;;  %2352 = vmatmul.mubr.f32.gmra.mrb[118].mxu1 %v6079_v48  ;;  %4480 = vmatprep.subr.bf16.mxu1 %v4479_v62  ;;  %v6490_v12 = vpop.f32.mrb[17].mxu1 }
 0x274   : > { %v1533_v21 = vpop.f32.mrb[173].mxu0  ;;  %4482 = vmatpush1.bf16.msra.mxu1 %v4481_v49  ;;  %4202 = vmatprep.mubr.msk.f32.mxu1 %vm588_vm0, %v6087_v50 }
 0x276   : > { %v6494_v42 = vpop.f32.mrb[18].mxu1 }
 0x277   : > { %8776 = vst [vmem:[#allocation7_spill] sm:$0xff] %v6494_v42  ;;  %v1537_v9 = vpop.f32.mrb[174].mxu0  ;;  %2358 = vmatmul.mubr.f32.gmra.mrb[120].mxu1 %v6095_v8  ;;  %v6497_v15 = vpop.f32.mrb[19].mxu1 }
 0x278   : > { %8777 = vst [vmem:[#allocation8_spill] sm:$0xff] %v6497_v15  ;;  %v4485_v63 = vpack.c.bf16 %v1537_v9, %v1531_v11  ;;  %v1539_v40 = vpop.f32.mrb[175].mxu0  ;;  %4203 = vmatprep.mubr.msk.f32.mxu1 %vm588_vm0, %v6105_v56 }
 0x279   : > { %v4483_v48 = vpack.c.bf16 %v1539_v40, %v1533_v21 }
 0x27a   : > { %v6501_v38 = vpop.f32.mrb[20].mxu1 }
 0x27b   : > { %v1543_v26 = vpop.f32.mrb[176].mxu0  ;;  %2364 = vmatmul.mubr.f32.gmra.mrb[122].mxu1 %v6115_v23  ;;  %4484 = vmatprep.subr.bf16.mxu1 %v4483_v48  ;;  %v6504_v50 = vpop.f32.mrb[21].mxu1 }
 0x27c   : > { %8778 = vst [vmem:[#allocation9_spill] sm:$0xff] %v6504_v50  ;;  %v1545_v43 = vpop.f32.mrb[177].mxu0  ;;  %4486 = vmatpush1.bf16.msra.mxu1 %v4485_v63  ;;  %4204 = vmatprep.mubr.msk.f32.mxu1 %vm588_vm0, %v6123_v39 }
 0x27e   : > { %v6508_v8 = vpop.f32.mrb[22].mxu1 }
 0x27f   : > { %v1549_v57 = vpop.f32.mrb[178].mxu0  ;;  %2370 = vmatmul.mubr.f32.gmra.mrb[124].mxu1 %v6131_v41  ;;  %v6511_v56 = vpop.f32.mrb[23].mxu1 }
 0x280   : > { %v4489_v52 = vpack.c.bf16 %v1549_v57, %v1543_v26  ;;  %v1551_v32 = vpop.f32.mrb[179].mxu0  ;;  %4205 = vmatprep.mubr.msk.f32.mxu1 %vm588_vm0, %v6141_v2 }
 0x281   : > { %v4487_v23 = vpack.c.bf16 %v1551_v32, %v1545_v43 }
 0x282   : > { %v6515_v27 = vpop.f32.mrb[24].mxu1 }
 0x283   : > { %8779 = vst [vmem:[#allocation10_spill] sm:$0xff] %v6515_v27  ;;  %v1555_v47 = vpop.f32.mrb[180].mxu0  ;;  %2376 = vmatmul.mubr.f32.gmra.mrb[126].mxu1 %v6151_v46  ;;  %4488 = vmatprep.subr.bf16.mxu1 %v4487_v23  ;;  %v6518_v39 = vpop.f32.mrb[25].mxu1 }
 0x284   : > { %v1557_v5 = vpop.f32.mrb[181].mxu0  ;;  %4490 = vmatpush1.bf16.msra.mxu1 %v4489_v52  ;;  %4206 = vmatprep.mubr.msk.f32.mxu1 %vm588_vm0, %v6159_v4 }
 0x286   : > { %v6522_v41 = vpop.f32.mrb[26].mxu1 }
 0x287   : > { %v1561_v30 = vpop.f32.mrb[182].mxu0  ;;  %2382 = vmatmul.mubr.f32.gmra.mrb[128].mxu1 %v6167_v55  ;;  %v6525_v2 = vpop.f32.mrb[27].mxu1 }
 0x288   : > { %8780 = vst [vmem:[#allocation11_spill] sm:$0xff] %v6525_v2  ;;  %v4493_v7 = vpack.c.bf16 %v1561_v30, %v1555_v47  ;;  %v1563_v44 = vpop.f32.mrb[183].mxu0  ;;  %4207 = vmatprep.mubr.msk.f32.mxu1 %vm588_vm0, %v6177_v58  ;;  %v4874_v47 = vld [vmem:[%s8457_s2 + $0x18] sm:$0xff] }
 0x289   : > { %v4491_v46 = vpack.c.bf16 %v1563_v44, %v1557_v5  ;;  %v4875_v44 = vld [vmem:[%s8457_s2 + $0x10] sm:$0xff] }
 0x28a   : > { %v6529_v20 = vpop.f32.mrb[28].mxu1 }
 0x28b   : > { %v1567_v45 = vpop.f32.mrb[184].mxu0  ;;  %2388 = vmatmul.mubr.f32.gmra.mrb[130].mxu1 %v6187_v0  ;;  %4492 = vmatprep.subr.bf16.mxu1 %v4491_v46  ;;  %v6532_v4 = vpop.f32.mrb[29].mxu1 }
 0x28c   : > { %v1569_v18 = vpop.f32.mrb[185].mxu0  ;;  %4494 = vmatpush1.bf16.msra.mxu1 %v4493_v7  ;;  %4208 = vmatprep.mubr.msk.f32.mxu1 %vm588_vm0, %v6195_v16 }
 0x28e   : > { %v6536_v55 = vpop.f32.mrb[30].mxu1 }
 0x28f   : > { %v1573_v10 = vpop.f32.mrb[186].mxu0  ;;  %2394 = vmatmul.mubr.f32.gmra.mrb[132].mxu1 %v6203_v6  ;;  %v6539_v58 = vpop.f32.mrb[31].mxu1 }
 0x290   : > { %8781 = vst [vmem:[#allocation12_spill] sm:$0xff] %v6539_v58  ;;  %v4497_v49 = vpack.c.bf16 %v1573_v10, %v1567_v45  ;;  %v1575_v51 = vpop.f32.mrb[187].mxu0  ;;  %4209 = vmatprep.mubr.msk.f32.mxu1 %vm588_vm0, %v6213_v53 }
 0x291   : > { %v4495_v0 = vpack.c.bf16 %v1575_v51, %v1569_v18  ;;  %v4876_v18 = vld [vmem:[%s8457_s2 + $0x28] sm:$0xff]  ;;  %v4877_v51 = vld [vmem:[%s8457_s2 + $0x20] sm:$0xff] }
 0x292   : > { %v6543_v62 = vpop.f32.mrb[32].mxu1 }
 0x293   : > { %v1579_v11 = vpop.f32.mrb[188].mxu0  ;;  %2400 = vmatmul.mubr.f32.gmra.mrb[134].mxu1 %v6223_v61  ;;  %4496 = vmatprep.subr.bf16.mxu1 %v4495_v0  ;;  %v6546_v16 = vpop.f32.mrb[33].mxu1 }
 0x294   : > { %8782 = vst [vmem:[#allocation13_spill] sm:$0xff] %v6546_v16  ;;  %v1581_v21 = vpop.f32.mrb[189].mxu0  ;;  %4498 = vmatpush1.bf16.msra.mxu1 %v4497_v49  ;;  %4210 = vmatprep.mubr.msk.f32.mxu1 %vm588_vm0, %v6231_v14 }
 0x296   : > { %v6550_v6 = vpop.f32.mrb[34].mxu1 }
 0x297   : > { %v1585_v9 = vpop.f32.mrb[190].mxu0  ;;  %2406 = vmatmul.mubr.f32.gmra.mrb[136].mxu1 %v6239_v28  ;;  %v6553_v53 = vpop.f32.mrb[35].mxu1  ;;  %v4873_v28 = vld [vmem:[%s8457_s2] sm:$0xff] }
 0x298   : > { %8783 = vst [vmem:[#allocation14_spill] sm:$0xff] %v6553_v53  ;;  %v4501_v63 = vpack.c.bf16 %v1585_v9, %v1579_v11  ;;  %v1587_v40 = vpop.f32.mrb[191].mxu0  ;;  %4211 = vmatprep.mubr.msk.f32.mxu1 %vm588_vm0, %v6412_v13  ;;  %v4878_v9 = vld [vmem:[%s8457_s2 + $0x38] sm:$0xff] }
 0x299   : > { %v4499_v61 = vpack.c.bf16 %v1587_v40, %v1581_v21 }
 0x29a   : > { %v6557_v48 = vpop.f32.mrb[36].mxu1 }
 0x29b   : > { %8784 = vst [vmem:[#allocation15_spill] sm:$0xff] %v6557_v48  ;;  %v1591_v26 = vpop.f32.mrb[192].mxu0  ;;  %4500 = vmatprep.subr.bf16.mxu1 %v4499_v61  ;;  %v6559_v43 = vpop.f32.mrb[37].mxu1  ;;  %v6598_v61 = vmul.f32 %v6431_v19, %v6431_v19 }
 0x29c   : > { %v1593_v14 = vpop.f32.mrb[193].mxu0  ;;  %4502 = vmatpush1.bf16.msra.mxu1 %v4501_v63 }
 0x29d   : > { %8789 = vst [vmem:[#allocation20_spill] sm:$0xff] %v6598_v61 }
 0x29e   : > { %v6561_v57 = vpop.f32.mrb[38].mxu1 }
 0x29f   : > { %v1597_v52 = vpop.f32.mrb[194].mxu0  ;;  %2477 = vmatmul.mubr.f32.vlgmr.msra.gmra.mrb[138].mxu1 %v4873_v28  ;;  %v6566_v32 = vpop.f32.mrb[39].mxu1 }
 0x2a0   : > { %v4505_v13 = vpack.c.bf16 %v1597_v52, %v1591_v26  ;;  %v1599_v23 = vpop.f32.mrb[195].mxu0  ;;  %4212 = vmatprep.mubr.msk.f32.mxu1 %vm588_vm0, %v4874_v47  ;;  %v6602_v26 = vmul.f32 %v6434_v54, %v6434_v54  ;;  %v4879_v52 = vld [vmem:[%s8457_s2 + $0x30] sm:$0xff]  ;;  %v6619_v47 = vmul.f32 %v6445_v3, %v6445_v3 }
 0x2a1   : > { %v4503_v5 = vpack.c.bf16 %v1599_v23, %v1593_v14  ;;  %v6615_v23 = vmul.f32 %v6441_v37, %v6441_v37 }
 0x2a2   : > { %v6572_v30 = vpop.f32.mrb[40].mxu1  ;;  %8790 = vst [vmem:[#allocation21_spill] sm:$0xff] %v6602_v26  ;;  %8794 = vst [vmem:[#allocation25_spill] sm:$0xff] %v6619_v47 }
 0x2a3   : > { %v1603_v7 = vpop.f32.mrb[196].mxu0  ;;  %2483 = vmatmul.mubr.f32.gmra.mrb[140].mxu1 %v4875_v44  ;;  %4504 = vmatprep.subr.bf16.mxu1 %v4503_v5  ;;  %v6577_v46 = vpop.f32.mrb[41].mxu1  ;;  %8793 = vst [vmem:[#allocation24_spill] sm:$0xff] %v6615_v23  ;;  %v6627_v44 = vmul.f32 %v6448_v24, %v6448_v24 }
 0x2a4   : > { %8785 = vst [vmem:[#allocation16_spill] sm:$0xff] %v6577_v46  ;;  %v1605_v45 = vpop.f32.mrb[197].mxu0  ;;  %4506 = vmatpush1.bf16.msra.mxu1 %v4505_v13  ;;  %4213 = vmatprep.mubr.msk.f32.mxu1 %vm588_vm0, %v4876_v18  ;;  %v6611_v13 = vmul.f32 %v6438_v35, %v6438_v35  ;;  %v6635_v18 = vmul.f32 %v6455_v25, %v6455_v25 }
 0x2a5   : > { %8795 = vst [vmem:[#allocation26_spill] sm:$0xff] %v6627_v44  ;;  %v6682_v46 = vmul.f32 %v6494_v42, %v6494_v42  ;;  %v6698_v42 = vmul.f32 %v6504_v50, %v6504_v50 }
 0x2a6   : > { %v6583_v10 = vpop.f32.mrb[42].mxu1  ;;  %8792 = vst [vmem:[#allocation23_spill] sm:$0xff] %v6611_v13 }
 0x2a7   : > { %8786 = vst [vmem:[#allocation17_spill] sm:$0xff] %v6583_v10  ;;  %v1609_v49 = vpop.f32.mrb[198].mxu0  ;;  %2489 = vmatmul.mubr.f32.gmra.mrb[142].mxu1 %v4877_v51  ;;  %v6588_v0 = vpop.f32.mrb[43].mxu1  ;;  %v6643_v51 = vmul.f32 %v6462_v17, %v6462_v17  ;;  %v6678_v10 = vmul.f32 %v6490_v12, %v6490_v12  ;;  %8799 = vst [vmem:[#allocation30_spill] sm:$0xff] %v6682_v46 }
 0x2a8   : > { %8787 = vst [vmem:[#allocation18_spill] sm:$0xff] %v6588_v0  ;;  %v4509_v11 = vpack.c.bf16 %v1609_v49, %v1603_v7  ;;  %v1611_v21 = vpop.f32.mrb[199].mxu0  ;;  %4214 = vmatprep.mubr.msk.f32.mxu1 %vm588_vm0, %v4878_v9  ;;  %v4880_v7 = vld [vmem:[%s8457_s2 + $0x48] sm:$0xff]  ;;  %v6639_v49 = vmul.f32 %v6459_v36, %v6459_v36  ;;  %v6655_v9 = vmul.f32 %v6473_v33, %v6473_v33  ;;  %v4881_v0 = vld [vmem:[%s8457_s2 + $0x40] sm:$0xff]  ;;  %8802 = vst [vmem:[#allocation33_spill] sm:$0xff] %v6698_v42 }
 0x2a9   : > { %v4507_v63 = vpack.c.bf16 %v1611_v21, %v1605_v45  ;;  %v6631_v45 = vmul.f32 %v6452_v1, %v6452_v1  ;;  %v6651_v21 = vmul.f32 %v6469_v31, %v6469_v31  ;;  %8798 = vst [vmem:[#allocation29_spill] sm:$0xff] %v6678_v10  ;;  %v6718_v42 = vmul.f32 %v6522_v41, %v6522_v41 }
 0x2aa   : > { %v6594_v40 = vpop.f32.mrb[44].mxu1 }
 0x2ab   : > { %8788 = vst [vmem:[#allocation19_spill] sm:$0xff] %v6594_v40  ;;  %v1615_v14 = vpop.f32.mrb[200].mxu0  ;;  %2495 = vmatmul.mubr.f32.gmra.mrb[144].mxu1 %v4879_v52  ;;  %4508 = vmatprep.subr.bf16.mxu1 %v4507_v63  ;;  %v6607_v28 = vpop.f32.mrb[45].mxu1  ;;  %v6659_v63 = vmul.f32 %v6476_v34, %v6476_v34  ;;  %v6663_v52 = vmul.f32 %v6480_v22, %v6480_v22  ;;  %8807 = vst [vmem:[#allocation38_spill] sm:$0xff] %v6718_v42 }
 0x2ac   : > { %8791 = vst [vmem:[#allocation22_spill] sm:$0xff] %v6607_v28  ;;  %v1617_v5 = vpop.f32.mrb[201].mxu0  ;;  %4510 = vmatpush1.bf16.msra.mxu1 %v4509_v11  ;;  %4215 = vmatprep.mubr.msk.f32.mxu1 %vm588_vm0, %v4880_v7  ;;  %v6647_v11 = vmul.f32 %v6466_v29, %v6466_v29  ;;  %v6667_v7 = vmul.f32 %v6483_v60, %v6483_v60  ;;  %v4882_v60 = vld [vmem:[%s8457_s2 + $0x58] sm:$0xff] }
 0x2ad   : > { %v6671_v28 = vmul.f32 %v6487_v59, %v6487_v59  ;;  %v6736_v42 = vmul.f32 %v6529_v20, %v6529_v20 }
 0x2ae   : > { %8796 = vst [vmem:[#allocation27_spill] sm:$0xff] %v6667_v7  ;;  %v6686_v7 = vmul.f32 %v6497_v15, %v6497_v15  ;;  %v6702_v15 = vmul.f32 %v6508_v8, %v6508_v8 }
 0x2af   : > { %8797 = vst [vmem:[#allocation28_spill] sm:$0xff] %v6671_v28  ;;  %v1621_v40 = vpop.f32.mrb[202].mxu0  ;;  %2501 = vmatmul.mubr.f32.gmra.mrb[146].mxu1 %v4881_v0  ;;  %v6694_v0 = vmul.f32 %v6501_v38, %v6501_v38  ;;  %8811 = vst [vmem:[#allocation42_spill] sm:$0xff] %v6736_v42 }
 0x2b0   : > { %8800 = vst [vmem:[#allocation31_spill] sm:$0xff] %v6686_v7  ;;  %v4513_v59 = vpack.c.bf16 %v1621_v40, %v1615_v14  ;;  %v1623_v28 = vpop.f32.mrb[203].mxu0  ;;  %4216 = vmatprep.mubr.msk.f32.mxu1 %vm588_vm0, %v4882_v60  ;;  %8803 = vst [vmem:[#allocation34_spill] sm:$0xff] %v6702_v15  ;;  %v6706_v14 = vmul.f32 %v6511_v56, %v6511_v56  ;;  %v6710_v60 = vmul.f32 %v6515_v27, %v6515_v27 }
 0x2b1   : > { %8801 = vst [vmem:[#allocation32_spill] sm:$0xff] %v6694_v0  ;;  %v4511_v40 = vpack.c.bf16 %v1623_v28, %v1617_v5  ;;  %v6714_v0 = vmul.f32 %v6518_v39, %v6518_v39  ;;  %v6722_v28 = vmul.f32 %v6525_v2, %v6525_v2 }
 0x2b2   : > { %8804 = vst [vmem:[#allocation35_spill] sm:$0xff] %v6706_v14  ;;  %8805 = vst [vmem:[#allocation36_spill] sm:$0xff] %v6710_v60  ;;  %v2072_v50 = vpop.f32.mrb[46].mxu1 }
 0x2b3   : > { %8806 = vst [vmem:[#allocation37_spill] sm:$0xff] %v6714_v0  ;;  %8808 = vst [vmem:[#allocation39_spill] sm:$0xff] %v6722_v28  ;;  %v6724_v5 = vmul.f32 %v2072_v50, %v2072_v50  ;;  %v6727_v14 = vmul.f32 %v2072_v50, %v6431_v19  ;;  %v6729_v27 = vpop.f32.mrb[204].mxu0  ;;  %v2074_v60 = vpop.f32.mrb[47].mxu1  ;;  %v4883_v0 = vld [vmem:[%s8457_s2 + $0x50] sm:$0xff]  ;;  %4512 = vmatprep.subr.bf16.mxu1 %v4511_v40  ;;  %v4884_v50 = vld [vmem:[%s8457_s2 + $0x68] sm:$0xff]  ;;  %v6753_v40 = vmul.f32 %v6536_v55, %v6536_v55 }
 0x2b4   : > { %2507 = vmatmul.mubr.f32.gmra.mrb[148].mxu1 %v4883_v0  ;;  %v6738_v2 = vmul.f32 %v2074_v60, %v2074_v60  ;;  %v6741_v28 = vmul.f32 %v2074_v60, %v6434_v54  ;;  %v1629_v19 = vpop.f32.mrb[205].mxu0  ;;  %v6749_v0 = vmul.f32 %v6532_v4, %v6532_v4  ;;  %v6757_v54 = vmul.f32 %v6539_v58, %v6539_v58 }
 0x2b5   : > { %8809 = vst [vmem:[#allocation40_spill] sm:$0xff] %v6724_v5  ;;  %8810 = vst [vmem:[#allocation41_spill] sm:$0xff] %v6727_v14  ;;  %4514 = vmatpush1.bf16.msra.mxu1 %v4513_v59  ;;  %4217 = vmatprep.mubr.msk.f32.mxu1 %vm588_vm0, %v4884_v50  ;;  %v3462_v59 = vadd.f32 %v6724_v5, %v6598_v61  ;;  %v6763_v60 = vmul.f32 %v6543_v62, %v6543_v62 }
 0x2b6   : > { %8812 = vst [vmem:[#allocation43_spill] sm:$0xff] %v6738_v2  ;;  %8813 = vst [vmem:[#allocation44_spill] sm:$0xff] %v6741_v28  ;;  %v6767_v50 = vmul.f32 %v6546_v16, %v6546_v16  ;;  %v2078_v58 = vpop.f32.mrb[48].mxu1 }
 0x2b7   : > { %8814 = vst [vmem:[#allocation45_spill] sm:$0xff] %v6749_v0  ;;  %8815 = vst [vmem:[#allocation46_spill] sm:$0xff] %v6753_v40  ;;  %v6771_v0 = vmul.f32 %v6550_v6, %v6550_v6  ;;  %v3463_v40 = vadd.f32 %v6738_v2, %v6602_v26  ;;  %v3508_v5 = vadd.f32 0.0001, %v3462_v59  ;;  %v6779_v61 = vmul.f32 %v2078_v58, %v2078_v58  ;;  %v1633_v16 = vpop.f32.mrb[206].mxu0 }
 0x2b8   : > { %8816 = vst [vmem:[#allocation47_spill] sm:$0xff] %v6757_v54  ;;  %8817 = vst [vmem:[#allocation48_spill] sm:$0xff] %v6763_v60  ;;  %v6777_v54 = vmul.f32 %v6553_v53, %v6553_v53  ;;  %v6782_v60 = vmul.f32 %v2078_v58, %v6438_v35  ;;  %v6789_v2 = vmul.f32 %v6557_v48, %v6557_v48  ;;  %v1635_v53 = vpop.f32.mrb[207].mxu0  ;;  %v4886_v35 = vld [vmem:[%s8457_s2 + $0x78] sm:$0xff]  ;;  %v3370_v58 = vmul.f32 2.0, %v6727_v14 }
 0x2b9   : > { %8818 = vst [vmem:[#allocation49_spill] sm:$0xff] %v6767_v50  ;;  %8819 = vst [vmem:[#allocation50_spill] sm:$0xff] %v6771_v0  ;;  %v2080_v50 = vpop.f32.mrb[49].mxu1  ;;  %v4885_v0 = vld [vmem:[%s8457_s2 + $0x60] sm:$0xff]  ;;  %v3509_v26 = vadd.f32 0.0001, %v3463_v40  ;;  %4592 = vrcp.f32 %v3508_v5  ;;  %v4515_v40 = vpack.c.bf16 %v1635_v53, %v1629_v19  ;;  %v6813_v5 = vmul.f32 %v6561_v57, %v6561_v57 }
 0x2ba   : > { %8820 = vst [vmem:[#allocation51_spill] sm:$0xff] %v6777_v54  ;;  %8821 = vst [vmem:[#allocation52_spill] sm:$0xff] %v6779_v61  ;;  %2513 = vmatmul.mubr.f32.gmra.mrb[150].mxu1 %v4885_v0  ;;  %v4517_v54 = vpack.c.bf16 %v1633_v16, %v6729_v27  ;;  %v6792_v59 = vmul.f32 %v2080_v50, %v2080_v50  ;;  %v3464_v0 = vadd.f32 %v6779_v61, %v6611_v13  ;;  %v2084_v48 = vpop.f32.mrb[50].mxu1 }
 0x2bb   : > { %8822 = vst [vmem:[#allocation53_spill] sm:$0xff] %v6782_v60  ;;  %8823 = vst [vmem:[#allocation54_spill] sm:$0xff] %v6789_v2  ;;  %4218 = vmatprep.mubr.msk.f32.mxu1 %vm588_vm0, %v4886_v35  ;;  %v6802_v2 = vmul.f32 %v2080_v50, %v6441_v37  ;;  %v3371_v27 = vmul.f32 2.0, %v6741_v28  ;;  %4594 = vrcp.f32 %v3509_v26  ;;  %v6809_v35 = vmul.f32 %v6559_v43, %v6559_v43  ;;  %v6817_v37 = vpop.f32.mrb[208].mxu0  ;;  %v4887_v26 = vld [vmem:[%s8457_s2 + $0x70] sm:$0xff] }
 0x2bc   : > { %8824 = vst [vmem:[#allocation55_spill] sm:$0xff] %v6792_v59  ;;  %v3465_v16 = vadd.f32 %v6792_v59, %v6615_v23  ;;  %8826 = vst [vmem:[#allocation57_spill] sm:$0xff] %v6813_v5  ;;  %v3510_v14 = vadd.f32 0.0001, %v3464_v0  ;;  %v6815_v61 = vmul.f32 %v2084_v48, %v2084_v48  ;;  %v3372_v53 = vmul.f32 2.0, %v6782_v60  ;;  %v2086_v59 = vpop.f32.mrb[51].mxu1  ;;  %4516 = vmatprep.subr.bf16.mxu1 %v4515_v40 }
 0x2bd   : > { %8825 = vst [vmem:[#allocation56_spill] sm:$0xff] %v6802_v2  ;;  %v3373_v19 = vmul.f32 2.0, %v6802_v2  ;;  %v6825_v28 = vmul.f32 %v2084_v48, %v6445_v3  ;;  %v1641_v0 = vpop.f32.mrb[209].mxu0  ;;  %v4888_v23 = vld [vmem:[%s8457_s2 + $0x88] sm:$0xff]  ;;  %v6837_v2 = vmul.f32 %v2086_v59, %v2086_v59  ;;  %4518 = vmatpush1.bf16.msra.mxu1 %v4517_v54  ;;  %v3416_v3 = vadd.f32 0.0001, %v3370_v58 }
 0x2be   : > { %8827 = vst [vmem:[#allocation58_spill] sm:$0xff] %v6815_v61  ;;  %2519 = vmatmul.mubr.f32.gmra.mrb[152].mxu1 %v4887_v26  ;;  %v3511_v50 = vadd.f32 0.0001, %v3465_v16  ;;  %v6833_v26 = vmul.f32 %v6566_v32, %v6566_v32  ;;  %4596 = vrcp.f32 %v3510_v14  ;;  %v3466_v16 = vadd.f32 %v6815_v61, %v6619_v47  ;;  %v2090_v60 = vpop.f32.mrb[52].mxu1  ;;  %v4889_v54 = vld [vmem:[%s8457_s2 + $0x80] sm:$0xff] }
 0x2bf   : > { %8828 = vst [vmem:[#allocation59_spill] sm:$0xff] %v6825_v28  ;;  %4219 = vmatprep.mubr.msk.f32.mxu1 %vm588_vm0, %v4888_v23  ;;  %8830 = vst [vmem:[#allocation61_spill] sm:$0xff] %v6837_v2  ;;  %v3417_v48 = vadd.f32 0.0001, %v3371_v27  ;;  %v6840_v40 = vmul.f32 %v2086_v59, %v6448_v24  ;;  %v3467_v23 = vadd.f32 %v6837_v2, %v6627_v44  ;;  %v1645_v61 = vpop.f32.mrb[210].mxu0  ;;  %v2092_v47 = vpop.f32.mrb[53].mxu1 }
 0x2c0   : > { %8829 = vst [vmem:[#allocation60_spill] sm:$0xff] %v6833_v26  ;;  %4598 = vrcp.f32 %v3511_v50  ;;  %v3512_v13 = vadd.f32 0.0001, %v3466_v16  ;;  %v6844_v5 = vmul.f32 %v2090_v60, %v2090_v60  ;;  %v6847_v14 = vmul.f32 %v2090_v60, %v6452_v1  ;;  %v1647_v50 = vpop.f32.mrb[211].mxu0  ;;  %v4890_v16 = vld [vmem:[%s8457_s2 + $0x98] sm:$0xff] }
 0x2c1   : > { %8831 = vst [vmem:[#allocation62_spill] sm:$0xff] %v6840_v40  ;;  %v3418_v58 = vadd.f32 0.0001, %v3372_v53  ;;  %v3419_v24 = vadd.f32 0.0001, %v3373_v19  ;;  %v4521_v59 = vpack.c.bf16 %v1645_v61, %v6817_v37  ;;  %v6853_v27 = vmul.f32 %v2092_v47, %v2092_v47 }
 0x2c2   : > { %8832 = vst [vmem:[#allocation63_spill] sm:$0xff] %v6844_v5  ;;  %8833 = vst [vmem:[#allocation64_spill] sm:$0xff] %v6847_v14  ;;  %2525 = vmatmul.mubr.f32.gmra.mrb[154].mxu1 %v4889_v54  ;;  %v3374_v1 = vmul.f32 2.0, %v6825_v28  ;;  %4600 = vrcp.f32 %v3512_v13  ;;  %v3513_v60 = vadd.f32 0.0001, %v3467_v23  ;;  %v3468_v54 = vadd.f32 %v6844_v5, %v6631_v45  ;;  %v2096_v2 = vpop.f32.mrb[54].mxu1 }
 0x2c3   : > { %8834 = vst [vmem:[#allocation65_spill] sm:$0xff] %v6853_v27  ;;  %4220 = vmatprep.mubr.msk.f32.mxu1 %vm588_vm0, %v4890_v16  ;;  %v3375_v53 = vmul.f32 2.0, %v6840_v40  ;;  %v6864_v61 = vmul.f32 %v2092_v47, %v6455_v25  ;;  %v3469_v37 = vadd.f32 %v6853_v27, %v6635_v18  ;;  %v4519_v19 = vpack.c.bf16 %v1647_v50, %v1641_v0  ;;  %v4593_v44 = vpop.eup %4592  ;;  %v6871_v23 = vpop.f32.mrb[212].mxu0  ;;  %v4891_v25 = vld [vmem:[%s8457_s2 + $0x90] sm:$0xff] }
 0x2c4   : > { %4602 = vrcp.f32 %v3513_v60  ;;  %v3376_v16 = vmul.f32 2.0, %v6847_v14  ;;  %v3514_v28 = vadd.f32 0.0001, %v3468_v54  ;;  %v6869_v13 = vmul.f32 %v2096_v2, %v2096_v2  ;;  %v2098_v5 = vpop.f32.mrb[55].mxu1  ;;  %v1653_v54 = vpop.f32.mrb[213].mxu0  ;;  %v4892_v14 = vld [vmem:[%s8457_s2 + $0xa8] sm:$0xff] }
 0x2c5   : > { %8835 = vst [vmem:[#allocation66_spill] sm:$0xff] %v6864_v61  ;;  %v4595_v47 = vpop.eup %4594  ;;  %v6876_v40 = vmul.f32 %v4593_v44, %v3416_v3  ;;  %v3377_v0 = vmul.f32 2.0, %v6864_v61  ;;  %v3515_v50 = vadd.f32 0.0001, %v3469_v37  ;;  %v6880_v60 = vmul.f32 %v2096_v2, %v6459_v36  ;;  %4520 = vmatprep.subr.bf16.mxu1 %v4519_v19 }
 0x2c6   : > { %8836 = vst [vmem:[#allocation67_spill] sm:$0xff] %v6869_v13  ;;  %2531 = vmatmul.mubr.f32.gmra.mrb[156].mxu1 %v4891_v25  ;;  %v6886_v27 = vmul.f32 %v4595_v47, %v3417_v48  ;;  %4604 = vrcp.f32 %v3514_v28  ;;  %v3470_v44 = vadd.f32 %v6869_v13, %v6639_v49  ;;  %v6890_v3 = vmul.f32 %v2098_v5, %v2098_v5  ;;  %v2102_v19 = vpop.f32.mrb[56].mxu1 }
 0x2c7   : > { %8837 = vst [vmem:[#allocation68_spill] sm:$0xff] %v6876_v40  ;;  %8838 = vst [vmem:[#allocation69_spill] sm:$0xff] %v6880_v60  ;;  %4221 = vmatprep.mubr.msk.f32.mxu1 %vm588_vm0, %v4892_v14  ;;  %4522 = vmatpush1.bf16.msra.mxu1 %v4521_v59  ;;  %v3420_v37 = vadd.f32 0.0001, %v3374_v1  ;;  %v3421_v36 = vadd.f32 0.0001, %v3375_v53  ;;  %4606 = vrcp.f32 %v3515_v50  ;;  %v6893_v2 = vmul.f32 %v2098_v5, %v6462_v17 }
 0x2c8   : > { %8839 = vst [vmem:[#allocation70_spill] sm:$0xff] %v6886_v27  ;;  %8840 = vst [vmem:[#allocation71_spill] sm:$0xff] %v6890_v3  ;;  %v4597_v25 = vpop.eup %4596  ;;  %v3516_v61 = vadd.f32 0.0001, %v3470_v44  ;;  %v3471_v48 = vadd.f32 %v6890_v3, %v6643_v51  ;;  %v6897_v14 = vmul.f32 %v2102_v19, %v2102_v19  ;;  %v6900_v28 = vmul.f32 %v2102_v19, %v6466_v29  ;;  %v1657_v47 = vpop.f32.mrb[214].mxu0  ;;  %v4893_v59 = vld [vmem:[%s8457_s2 + $0xa0] sm:$0xff] }
 0x2c9   : > { %8841 = vst [vmem:[#allocation72_spill] sm:$0xff] %v6893_v2  ;;  %v2104_v27 = vpop.f32.mrb[57].mxu1  ;;  %v6905_v5 = vmul.f32 %v4597_v25, %v3418_v58  ;;  %v3422_v1 = vadd.f32 0.0001, %v3376_v16  ;;  %v3423_v53 = vadd.f32 0.0001, %v3377_v0  ;;  %v4525_v50 = vpack.c.bf16 %v1657_v47, %v6871_v23 }
 0x2ca   : > { %8842 = vst [vmem:[#allocation73_spill] sm:$0xff] %v6897_v14  ;;  %8843 = vst [vmem:[#allocation74_spill] sm:$0xff] %v6900_v28  ;;  %2537 = vmatmul.mubr.f32.gmra.mrb[158].mxu1 %v4893_v59  ;;  %v4599_v17 = vpop.eup %4598  ;;  %v1659_v44 = vpop.f32.mrb[215].mxu0  ;;  %v6911_v29 = vld [vmem:[%s8457_s2 + $0xb8] sm:$0xff]  ;;  %v3378_v59 = vmul.f32 2.0, %v6880_v60  ;;  %4608 = vrcp.f32 %v3516_v61  ;;  %v3379_v16 = vmul.f32 2.0, %v6893_v2  ;;  %v3472_v23 = vadd.f32 %v6897_v14, %v6647_v11 }
 0x2cb   : > { %8844 = vst [vmem:[#allocation75_spill] sm:$0xff] %v6905_v5  ;;  %4222 = vmatprep.mubr.msk.f32.mxu1 %vm588_vm0, %v6911_v29  ;;  %v6915_v19 = vmul.f32 %v4599_v17, %v3419_v24  ;;  %v3517_v58 = vadd.f32 0.0001, %v3471_v48  ;;  %v6921_v0 = vmul.f32 %v2104_v27, %v2104_v27  ;;  %v6924_v25 = vmul.f32 %v2104_v27, %v6469_v31  ;;  %v2108_v47 = vpop.f32.mrb[58].mxu1  ;;  %v6929_v61 = vpop.f32.mrb[216].mxu0  ;;  %v6934_v2 = vld [vmem:[%s8457_s2 + $0xb0] sm:$0xff] }
 0x2cc   : > { %v4601_v5 = vpop.eup %4600  ;;  %v3380_v24 = vmul.f32 2.0, %v6900_v28  ;;  %v4523_v17 = vpack.c.bf16 %v1659_v44, %v1653_v54  ;;  %v2110_v48 = vpop.f32.mrb[59].mxu1  ;;  %8849 = vst [vmem:[#allocation80_spill] sm:$0xff] %v6934_v2  ;;  %v3518_v27 = vadd.f32 0.0001, %v3472_v23  ;;  %v6945_v28 = vld [vmem:[%s8457_s2 + $0xc8] sm:$0xff]  ;;  %v6950_v40 = vmul.f32 %v2108_v47, %v6473_v33 }
 0x2cd   : > { %8845 = vst [vmem:[#allocation76_spill] sm:$0xff] %v6915_v19  ;;  %8846 = vst [vmem:[#allocation77_spill] sm:$0xff] %v6921_v0  ;;  %4610 = vrcp.f32 %v3517_v58  ;;  %v6927_v19 = vmul.f32 %v2108_v47, %v2108_v47  ;;  %v6937_v31 = vmul.f32 %v4601_v5, %v3420_v37  ;;  %v3381_v58 = vmul.f32 2.0, %v6924_v25  ;;  %v1665_v44 = vpop.f32.mrb[217].mxu0 }
 0x2ce   : > { %8847 = vst [vmem:[#allocation78_spill] sm:$0xff] %v6924_v25  ;;  %2543 = vmatmul.mubr.f32.gmra.mrb[160].mxu1 %v6934_v2  ;;  %v3473_v54 = vadd.f32 %v6921_v0, %v6651_v21  ;;  %8851 = vst [vmem:[#allocation82_spill] sm:$0xff] %v6945_v28  ;;  %v4603_v60 = vpop.eup %4602  ;;  %v6954_v5 = vmul.f32 %v2110_v48, %v2110_v48  ;;  %v6957_v23 = vmul.f32 %v2110_v48, %v6476_v34  ;;  %v2114_v14 = vpop.f32.mrb[60].mxu1 }
 0x2cf   : > { %8848 = vst [vmem:[#allocation79_spill] sm:$0xff] %v6927_v19  ;;  %8850 = vst [vmem:[#allocation81_spill] sm:$0xff] %v6937_v31  ;;  %4223 = vmatprep.mubr.msk.f32.mxu1 %vm588_vm0, %v6945_v28  ;;  %v3474_v37 = vadd.f32 %v6927_v19, %v6655_v9  ;;  %4524 = vmatprep.subr.bf16.mxu1 %v4523_v17  ;;  %v6959_v25 = vmul.f32 %v4603_v60, %v3421_v36  ;;  %v3424_v31 = vadd.f32 0.0001, %v3378_v59  ;;  %v1669_v34 = vpop.f32.mrb[218].mxu0  ;;  %v2116_v48 = vpop.f32.mrb[61].mxu1 }
 0x2d0   : > { %8852 = vst [vmem:[#allocation83_spill] sm:$0xff] %v6950_v40  ;;  %8853 = vst [vmem:[#allocation84_spill] sm:$0xff] %v6954_v5  ;;  %4612 = vrcp.f32 %v3518_v27  ;;  %v3519_v0 = vadd.f32 0.0001, %v3473_v54  ;;  %4526 = vmatpush1.bf16.msra.mxu1 %v4525_v50  ;;  %v4605_v3 = vpop.eup %4604  ;;  %v6963_v33 = vmul.f32 %v6572_v30, %v6572_v30  ;;  %v3425_v47 = vadd.f32 0.0001, %v3379_v16 }
 0x2d1   : > { %8854 = vst [vmem:[#allocation85_spill] sm:$0xff] %v6957_v23  ;;  %8855 = vst [vmem:[#allocation86_spill] sm:$0xff] %v6959_v25  ;;  %v3520_v19 = vadd.f32 0.0001, %v3474_v37  ;;  %v3475_v13 = vadd.f32 %v6954_v5, %v6659_v63  ;;  %v6970_v60 = vld [vmem:[%s8457_s2 + $0xc0] sm:$0xff]  ;;  %v4607_v36 = vpop.eup %4606  ;;  %v6973_v50 = vmul.f32 %v4605_v3, %v3422_v1  ;;  %v6975_v59 = vmul.f32 %v2114_v14, %v2114_v14  ;;  %v1671_v17 = vpop.f32.mrb[219].mxu0 }
 0x2d2   : > { %8856 = vst [vmem:[#allocation87_spill] sm:$0xff] %v6963_v33  ;;  %8857 = vst [vmem:[#allocation88_spill] sm:$0xff] %v6970_v60  ;;  %2549 = vmatmul.mubr.f32.gmra.mrb[162].mxu1 %v6970_v60  ;;  %4614 = vrcp.f32 %v3519_v0  ;;  %v6978_v16 = vmul.f32 %v2114_v14, %v6480_v22  ;;  %v6983_v27 = vld [vmem:[%s8457_s2 + $0xd8] sm:$0xff]  ;;  %v6987_v54 = vmul.f32 %v4607_v36, %v3423_v53  ;;  %v3426_v37 = vadd.f32 0.0001, %v3380_v24  ;;  %v8864_v60 = vld [vmem:[#allocation5_spill] sm:$0xff] }
 0x2d3   : > { %8858 = vst [vmem:[#allocation89_spill] sm:$0xff] %v6973_v50  ;;  %8859 = vst [vmem:[#allocation90_spill] sm:$0xff] %v6975_v59  ;;  %4224 = vmatprep.mubr.msk.f32.mxu1 %vm588_vm0, %v6983_v27  ;;  %v3427_v3 = vadd.f32 0.0001, %v3381_v58  ;;  %4616 = vrcp.f32 %v3520_v19  ;;  %v3382_v1 = vmul.f32 2.0, %v6950_v40  ;;  %v3476_v22 = vadd.f32 %v6975_v59, %v6663_v52  ;;  %v2120_v50 = vpop.f32.mrb[62].mxu1 }
 0x2d4   : > { %8860 = vst [vmem:[#allocation91_spill] sm:$0xff] %v6978_v16  ;;  %8861 = vst [vmem:[#allocation92_spill] sm:$0xff] %v6983_v27  ;;  %v3521_v0 = vadd.f32 0.0001, %v3475_v13  ;;  %v4529_v14 = vpack.c.bf16 %v1669_v34, %v6929_v61  ;;  %v4609_v25 = vpop.eup %4608  ;;  %v6993_v5 = vmul.f32 %v2116_v48, %v2116_v48  ;;  %v6996_v28 = vmul.f32 %v2116_v48, %v8864_v60  ;;  %v7000_v24 = vpop.f32.mrb[220].mxu0  ;;  %v7005_v13 = vld [vmem:[%s8457_s2 + $0xd0] sm:$0xff] }
 0x2d5   : > { %8862 = vst [vmem:[#allocation93_spill] sm:$0xff] %v6987_v54  ;;  %v4527_v53 = vpack.c.bf16 %v1671_v17, %v1665_v44  ;;  %v6998_v36 = vmul.f32 %v2120_v50, %v2120_v50  ;;  %v2122_v19 = vpop.f32.mrb[63].mxu1  ;;  %8867 = vst [vmem:[#allocation96_spill] sm:$0xff] %v7005_v13  ;;  %v7008_v61 = vmul.f32 %v4609_v25, %v3424_v31  ;;  %v3383_v58 = vmul.f32 2.0, %v6957_v23  ;;  %v7011_v48 = vpop.f32.mrb[221].mxu0  ;;  %v7016_v44 = vld [vmem:[%s8457_s2 + $0xe8] sm:$0xff] }
 0x2d6   : > { %8863 = vst [vmem:[#allocation94_spill] sm:$0xff] %v6993_v5  ;;  %8865 = vst [vmem:[#allocation5_spill] sm:$0xff] %v6996_v28  ;;  %2555 = vmatmul.mubr.f32.gmra.mrb[164].mxu1 %v7005_v13  ;;  %4618 = vrcp.f32 %v3521_v0  ;;  %v3522_v34 = vadd.f32 0.0001, %v3476_v22  ;;  %v3384_v17 = vmul.f32 2.0, %v6978_v16  ;;  %v8870_v40 = vld [vmem:[#allocation27_spill] sm:$0xff]  ;;  %v7030_v54 = vmul.f32 %v2122_v19, %v2122_v19 }
 0x2d7   : > { %8866 = vst [vmem:[#allocation95_spill] sm:$0xff] %v6998_v36  ;;  %8868 = vst [vmem:[#allocation97_spill] sm:$0xff] %v7008_v61  ;;  %4225 = vmatprep.mubr.msk.f32.mxu1 %vm588_vm0, %v7016_v44  ;;  %v4611_v60 = vpop.eup %4610  ;;  %v3477_v25 = vadd.f32 %v6993_v5, %v8870_v40  ;;  %v8871_v31 = vld [vmem:[#allocation6_spill] sm:$0xff]  ;;  %v8873_v0 = vld [vmem:[#allocation28_spill] sm:$0xff]  ;;  %4528 = vmatprep.subr.bf16.mxu1 %v4527_v53  ;;  %v7033_v59 = vmul.f32 %v2122_v19, %v6490_v12  ;;  %v2126_v16 = vpop.f32.mrb[64].mxu1 }
 0x2d8   : > { %8869 = vst [vmem:[#allocation98_spill] sm:$0xff] %v7016_v44  ;;  %v7024_v23 = vmul.f32 %v2120_v50, %v8871_v31  ;;  %v3478_v22 = vadd.f32 %v6998_v36, %v8873_v0  ;;  %v7028_v61 = vmul.f32 %v4611_v60, %v3425_v47  ;;  %4620 = vrcp.f32 %v3522_v34  ;;  %8875 = vst [vmem:[#allocation100_spill] sm:$0xff] %v7030_v54  ;;  %v8877_v44 = vld [vmem:[#allocation16_spill] sm:$0xff]  ;;  %v1681_v36 = vpop.f32.mrb[222].mxu0  ;;  %v8881_v34 = vld [vmem:[#allocation7_spill] sm:$0xff] }
 0x2d9   : > { %8876 = vst [vmem:[#allocation101_spill] sm:$0xff] %v7033_v59  ;;  %4530 = vmatpush1.bf16.msra.mxu1 %v4529_v14  ;;  %v7037_v5 = vmul.f32 %v8877_v44, %v8877_v44  ;;  %v3428_v50 = vadd.f32 0.0001, %v3382_v1  ;;  %v3523_v31 = vadd.f32 0.0001, %v3477_v25  ;;  %v7039_v13 = vmul.f32 %v2126_v16, %v2126_v16  ;;  %v7044_v47 = vld [vmem:[%s8457_s2 + $0xe0] sm:$0xff] }
 0x2da   : > { %8872 = vst [vmem:[#allocation6_spill] sm:$0xff] %v7024_v23  ;;  %8874 = vst [vmem:[#allocation99_spill] sm:$0xff] %v7028_v61  ;;  %2561 = vmatmul.mubr.f32.gmra.mrb[166].mxu1 %v7044_v47  ;;  %v4613_v12 = vpop.eup %4612  ;;  %v3429_v53 = vadd.f32 0.0001, %v3383_v58  ;;  %v3524_v14 = vadd.f32 0.0001, %v3478_v22  ;;  %v3479_v19 = vadd.f32 %v7030_v54, %v6678_v10  ;;  %v7050_v60 = vmul.f32 %v2126_v16, %v8881_v34 }
 0x2db   : > { %8878 = vst [vmem:[#allocation16_spill] sm:$0xff] %v7037_v5  ;;  %8879 = vst [vmem:[#allocation102_spill] sm:$0xff] %v7039_v13  ;;  %v2128_v1 = vpop.f32.mrb[65].mxu1  ;;  %v1683_v25 = vpop.f32.mrb[223].mxu0  ;;  %v7055_v61 = vld [vmem:[%s8457_s2 + $0xf8] sm:$0xff]  ;;  %4622 = vrcp.f32 %v3523_v31  ;;  %v3480_v22 = vadd.f32 %v7039_v13, %v6682_v46  ;;  %v3385_v16 = vmul.f32 2.0, %v6996_v28 }
 0x2dc   : > { %8880 = vst [vmem:[#allocation103_spill] sm:$0xff] %v7044_v47  ;;  %8882 = vst [vmem:[#allocation7_spill] sm:$0xff] %v7050_v60  ;;  %4226 = vmatprep.mubr.msk.f32.mxu1 %vm588_vm0, %v7055_v61  ;;  %v7059_v47 = vmul.f32 %v4613_v12, %v3426_v37  ;;  %v3430_v58 = vadd.f32 0.0001, %v3384_v17  ;;  %v4615_v54 = vpop.eup %4614  ;;  %v3386_v34 = vmul.f32 2.0, %v7024_v23  ;;  %4624 = vrcp.f32 %v3524_v14  ;;  %v2132_v10 = vpop.f32.mrb[66].mxu1 }
 0x2dd   : > { %8883 = vst [vmem:[#allocation104_spill] sm:$0xff] %v7055_v61  ;;  %v3525_v27 = vadd.f32 0.0001, %v3479_v19  ;;  %v4617_v0 = vpop.eup %4616  ;;  %v7065_v40 = vmul.f32 %v4615_v54, %v3427_v3  ;;  %v3526_v2 = vadd.f32 0.0001, %v3480_v22  ;;  %v4533_v37 = vpack.c.bf16 %v1681_v36, %v7000_v24  ;;  %v7070_v17 = vpop.f32.mrb[224].mxu0 }
 0x2de   : > { %8884 = vst [vmem:[#allocation105_spill] sm:$0xff] %v7059_v47  ;;  %v7068_v12 = vmul.f32 %v2128_v1, %v2128_v1  ;;  %v2134_v31 = vpop.f32.mrb[67].mxu1  ;;  %v7075_v28 = vld [vmem:[%s8457_s2 + $0xf0] sm:$0xff]  ;;  %v7078_v14 = vmul.f32 %v4617_v0, %v3428_v50  ;;  %v3387_v54 = vmul.f32 2.0, %v7033_v59  ;;  %v8889_v3 = vld [vmem:[#allocation8_spill] sm:$0xff]  ;;  %v7084_v36 = vpop.f32.mrb[225].mxu0  ;;  %v4531_v50 = vpack.c.bf16 %v1683_v25, %v7011_v48 }
 0x2df   : > { %8885 = vst [vmem:[#allocation106_spill] sm:$0xff] %v7065_v40  ;;  %8887 = vst [vmem:[#allocation108_spill] sm:$0xff] %v7075_v28  ;;  %2567 = vmatmul.mubr.f32.gmra.mrb[168].mxu1 %v7075_v28  ;;  %4626 = vrcp.f32 %v3525_v27  ;;  %v7082_v19 = vmul.f32 %v2128_v1, %v8889_v3  ;;  %v7089_v24 = vld [vmem:[%s8457_s2 + $0x108] sm:$0xff]  ;;  %v7096_v27 = vmul.f32 %v2132_v10, %v2132_v10  ;;  %v3388_v22 = vmul.f32 2.0, %v7050_v60  ;;  %v2138_v40 = vpop.f32.mrb[68].mxu1  ;;  %v7113_v13 = vpop.f32.mrb[226].mxu0 }
 0x2e0   : > { %8886 = vst [vmem:[#allocation107_spill] sm:$0xff] %v7068_v12  ;;  %8888 = vst [vmem:[#allocation109_spill] sm:$0xff] %v7078_v14  ;;  %4227 = vmatprep.mubr.msk.f32.mxu1 %vm588_vm0, %v7089_v24  ;;  %4628 = vrcp.f32 %v3526_v2  ;;  %v3481_v0 = vadd.f32 %v7068_v12, %v6686_v7  ;;  %v4619_v1 = vpop.eup %4618  ;;  %v7100_v3 = vmul.f32 %v2132_v10, %v6501_v38  ;;  %v8895_v23 = vld [vmem:[#allocation9_spill] sm:$0xff]  ;;  %v8898_v12 = vld [vmem:[#allocation32_spill] sm:$0xff]  ;;  %4532 = vmatprep.subr.bf16.mxu1 %v4531_v50  ;;  %v2140_v60 = vpop.f32.mrb[69].mxu1 }
 0x2e1   : > { %8890 = vst [vmem:[#allocation8_spill] sm:$0xff] %v7082_v19  ;;  %8891 = vst [vmem:[#allocation110_spill] sm:$0xff] %v7089_v24  ;;  %v7102_v59 = vmul.f32 %v2134_v31, %v2134_v31  ;;  %v7105_v14 = vmul.f32 %v2134_v31, %v8895_v23  ;;  %v7107_v2 = vmul.f32 %v4619_v1, %v3429_v53  ;;  %v7118_v38 = vld [vmem:[%s8457_s2 + $0x100] sm:$0xff]  ;;  %v3431_v31 = vadd.f32 0.0001, %v3385_v16 }
 0x2e2   : > { %8892 = vst [vmem:[#allocation111_spill] sm:$0xff] %v7096_v27  ;;  %8893 = vst [vmem:[#allocation112_spill] sm:$0xff] %v7100_v3  ;;  %v3527_v47 = vadd.f32 0.0001, %v3481_v0  ;;  %v3482_v48 = vadd.f32 %v7096_v27, %v8898_v12  ;;  %v7111_v25 = vmul.f32 %v2138_v40, %v2138_v40  ;;  %v4621_v10 = vpop.eup %4620  ;;  %v8901_v23 = vld [vmem:[#allocation17_spill] sm:$0xff]  ;;  %4534 = vmatpush1.bf16.msra.mxu1 %v4533_v37  ;;  %v7130_v27 = vld [vmem:[%s8457_s2 + $0x118] sm:$0xff] }
 0x2e3   : > { %8894 = vst [vmem:[#allocation113_spill] sm:$0xff] %v7102_v59  ;;  %8896 = vst [vmem:[#allocation9_spill] sm:$0xff] %v7105_v14  ;;  %2573 = vmatmul.mubr.f32.gmra.mrb[170].mxu1 %v7118_v38  ;;  %v7123_v53 = vmul.f32 %v8901_v23, %v8901_v23  ;;  %v3432_v0 = vadd.f32 0.0001, %v3386_v34  ;;  %v8903_v50 = vld [vmem:[#allocation33_spill] sm:$0xff]  ;;  %v7137_v16 = vmul.f32 %v2138_v40, %v6508_v8  ;;  %v7151_v8 = vld [vmem:[%s8457_s2 + $0x110] sm:$0xff] }
 0x2e4   : > { %8897 = vst [vmem:[#allocation114_spill] sm:$0xff] %v7107_v2  ;;  %8899 = vst [vmem:[#allocation115_spill] sm:$0xff] %v7111_v25  ;;  %v3483_v1 = vadd.f32 %v7102_v59, %v8903_v50  ;;  %v1695_v2 = vpop.f32.mrb[227].mxu0  ;;  %4228 = vmatprep.mubr.msk.f32.mxu1 %vm588_vm0, %v7130_v27  ;;  %4630 = vrcp.f32 %v3527_v47  ;;  %v3528_v24 = vadd.f32 0.0001, %v3482_v48  ;;  %v3484_v37 = vadd.f32 %v7111_v25, %v6702_v15  ;;  %v2144_v47 = vpop.f32.mrb[70].mxu1 }
 0x2e5   : > { %8900 = vst [vmem:[#allocation116_spill] sm:$0xff] %v7118_v38  ;;  %8902 = vst [vmem:[#allocation17_spill] sm:$0xff] %v7123_v53  ;;  %v7134_v38 = vmul.f32 %v4621_v10, %v3430_v58  ;;  %v3433_v34 = vadd.f32 0.0001, %v3387_v54  ;;  %v3434_v28 = vadd.f32 0.0001, %v3388_v22  ;;  %v4623_v61 = vpop.eup %4622  ;;  %v7144_v58 = vmul.f32 %v2140_v60, %v2140_v60 }
 0x2e6   : > { %8904 = vst [vmem:[#allocation117_spill] sm:$0xff] %v7130_v27  ;;  %8906 = vst [vmem:[#allocation119_spill] sm:$0xff] %v7137_v16  ;;  %v3529_v59 = vadd.f32 0.0001, %v3483_v1  ;;  %v3389_v50 = vmul.f32 2.0, %v7082_v19  ;;  %4632 = vrcp.f32 %v3528_v24  ;;  %v4537_v27 = vpack.c.bf16 %v7113_v13, %v7070_v17  ;;  %v7146_v48 = vpop.f32.mrb[228].mxu0  ;;  %v4625_v40 = vpop.eup %4624 }
 0x2e7   : > { %8905 = vst [vmem:[#allocation118_spill] sm:$0xff] %v7134_v38  ;;  %8907 = vst [vmem:[#allocation120_spill] sm:$0xff] %v7144_v58  ;;  %2579 = vmatmul.mubr.f32.gmra.mrb[172].mxu1 %v7151_v8  ;;  %v7154_v54 = vmul.f32 %v4623_v61, %v3431_v31  ;;  %v3530_v24 = vadd.f32 0.0001, %v3484_v37  ;;  %v7157_v22 = vmul.f32 %v2140_v60, %v6511_v56  ;;  %v2146_v13 = vpop.f32.mrb[71].mxu1  ;;  %v7159_v17 = vpop.f32.mrb[229].mxu0 }
 0x2e8   : > { %8908 = vst [vmem:[#allocation121_spill] sm:$0xff] %v7151_v8  ;;  %4634 = vrcp.f32 %v3529_v59  ;;  %v7164_v10 = vld [vmem:[%s8457_s2 + $0x128] sm:$0xff]  ;;  %v7168_v1 = vmul.f32 %v4625_v40, %v3432_v0  ;;  %v3390_v61 = vmul.f32 2.0, %v7100_v3  ;;  %v8913_v59 = vld [vmem:[#allocation35_spill] sm:$0xff]  ;;  %v4535_v56 = vpack.c.bf16 %v1695_v2, %v7084_v36  ;;  %v2150_v25 = vpop.f32.mrb[72].mxu1  ;;  %v1705_v36 = vpop.f32.mrb[230].mxu0 }
 0x2e9   : > { %8909 = vst [vmem:[#allocation122_spill] sm:$0xff] %v7154_v54  ;;  %8910 = vst [vmem:[#allocation123_spill] sm:$0xff] %v7157_v22  ;;  %4229 = vmatprep.mubr.msk.f32.mxu1 %vm588_vm0, %v7164_v10  ;;  %v3485_v31 = vadd.f32 %v7144_v58, %v8913_v59  ;;  %v4627_v60 = vpop.eup %4626  ;;  %v3391_v37 = vmul.f32 2.0, %v7105_v14  ;;  %4636 = vrcp.f32 %v3530_v24  ;;  %v7175_v54 = vmul.f32 %v2144_v47, %v2144_v47  ;;  %v8915_v19 = vld [vmem:[#allocation10_spill] sm:$0xff]  ;;  %v2152_v2 = vpop.f32.mrb[73].mxu1  ;;  %v7190_v24 = vld [vmem:[%s8457_s2 + $0x120] sm:$0xff] }
 0x2ea   : > { %8911 = vst [vmem:[#allocation124_spill] sm:$0xff] %v7164_v10  ;;  %8912 = vst [vmem:[#allocation125_spill] sm:$0xff] %v7168_v1  ;;  %v7178_v38 = vmul.f32 %v2144_v47, %v8915_v19  ;;  %v4629_v10 = vpop.eup %4628  ;;  %v7180_v0 = vmul.f32 %v4627_v60, %v3433_v34  ;;  %v7182_v1 = vmul.f32 %v2146_v13, %v2146_v13  ;;  %4536 = vmatprep.subr.bf16.mxu1 %v4535_v56  ;;  %v8921_v19 = vld [vmem:[#allocation18_spill] sm:$0xff]  ;;  %v8924_v60 = vld [vmem:[#allocation36_spill] sm:$0xff]  ;;  %v2156_v58 = vpop.f32.mrb[74].mxu1 }
 0x2eb   : > { %8914 = vst [vmem:[#allocation126_spill] sm:$0xff] %v7175_v54  ;;  %v3531_v40 = vadd.f32 0.0001, %v3485_v31  ;;  %v7185_v3 = vmul.f32 %v2146_v13, %v6518_v39  ;;  %8920 = vst [vmem:[#allocation130_spill] sm:$0xff] %v7190_v24  ;;  %2585 = vmatmul.mubr.f32.gmra.mrb[174].mxu1 %v7190_v24  ;;  %v7195_v34 = vmul.f32 %v8921_v19, %v8921_v19  ;;  %v3435_v31 = vadd.f32 0.0001, %v3389_v50 }
 0x2ec   : > { %8916 = vst [vmem:[#allocation10_spill] sm:$0xff] %v7178_v38  ;;  %8917 = vst [vmem:[#allocation127_spill] sm:$0xff] %v7180_v0  ;;  %v7197_v47 = vmul.f32 %v4629_v10, %v3434_v28  ;;  %v3486_v39 = vadd.f32 %v7175_v54, %v8924_v60  ;;  %4538 = vmatpush1.bf16.msra.mxu1 %v4537_v27  ;;  %v1707_v13 = vpop.f32.mrb[231].mxu0  ;;  %v7204_v56 = vld [vmem:[%s8457_s2 + $0x138] sm:$0xff]  ;;  %v3436_v0 = vadd.f32 0.0001, %v3390_v61 }
 0x2ed   : > { %8918 = vst [vmem:[#allocation128_spill] sm:$0xff] %v7182_v1  ;;  %8919 = vst [vmem:[#allocation129_spill] sm:$0xff] %v7185_v3  ;;  %4230 = vmatprep.mubr.msk.f32.mxu1 %vm588_vm0, %v7204_v56  ;;  %4638 = vrcp.f32 %v3531_v40  ;;  %v8926_v14 = vld [vmem:[#allocation37_spill] sm:$0xff]  ;;  %v7210_v10 = vmul.f32 %v2150_v25, %v2150_v25  ;;  %v3392_v50 = vmul.f32 2.0, %v7137_v16  ;;  %v7214_v27 = vmul.f32 %v2150_v25, %v6522_v41  ;;  %v9044_v7 = vld [vmem:[#allocation108_spill] sm:$0xff] }
 0x2ee   : > { %8922 = vst [vmem:[#allocation18_spill] sm:$0xff] %v7195_v34  ;;  %8923 = vst [vmem:[#allocation131_spill] sm:$0xff] %v7197_v47  ;;  %v3487_v28 = vadd.f32 %v7182_v1, %v8926_v14  ;;  %v3532_v47 = vadd.f32 0.0001, %v3486_v39  ;;  %v4541_v54 = vpack.c.bf16 %v1705_v36, %v7146_v48  ;;  %v4631_v24 = vpop.eup %4630  ;;  %v3437_v8 = vadd.f32 0.0001, %v3391_v37 }
 0x2ef   : > { %8925 = vst [vmem:[#allocation132_spill] sm:$0xff] %v7204_v56  ;;  %8927 = vst [vmem:[#allocation133_spill] sm:$0xff] %v7210_v10  ;;  %v8929_v56 = vld [vmem:[#allocation38_spill] sm:$0xff]  ;;  %v7219_v40 = vmul.f32 %v2152_v2, %v2152_v2  ;;  %v7221_v1 = vpop.f32.mrb[232].mxu0  ;;  %v2158_v14 = vpop.f32.mrb[75].mxu1  ;;  %v7229_v41 = vmul.f32 %v4631_v24, %v3435_v31  ;;  %v3393_v25 = vmul.f32 2.0, %v7157_v22 }
 0x2f0   : > { %8928 = vst [vmem:[#allocation134_spill] sm:$0xff] %v7214_v27  ;;  %v3533_v60 = vadd.f32 0.0001, %v3487_v28  ;;  %v3488_v61 = vadd.f32 %v7210_v10, %v8929_v56  ;;  %v7226_v39 = vld [vmem:[%s8457_s2 + $0x130] sm:$0xff]  ;;  %4640 = vrcp.f32 %v3532_v47  ;;  %v7235_v36 = vpop.f32.mrb[233].mxu0  ;;  %v7240_v28 = vld [vmem:[%s8457_s2 + $0x148] sm:$0xff]  ;;  %v4633_v16 = vpop.eup %4632  ;;  %v4539_v47 = vpack.c.bf16 %v1707_v13, %v7159_v17 }
 0x2f1   : > { %8930 = vst [vmem:[#allocation135_spill] sm:$0xff] %v7219_v40  ;;  %8931 = vst [vmem:[#allocation136_spill] sm:$0xff] %v7226_v39  ;;  %2591 = vmatmul.mubr.f32.gmra.mrb[176].mxu1 %v7226_v39  ;;  %v8933_v48 = vld [vmem:[#allocation11_spill] sm:$0xff]  ;;  %v3394_v10 = vmul.f32 2.0, %v7178_v38  ;;  %v7250_v39 = vmul.f32 %v2156_v58, %v2156_v58  ;;  %v2162_v56 = vpop.f32.mrb[76].mxu1  ;;  %v7268_v13 = vmul.f32 %v2158_v14, %v2158_v14  ;;  %v9053_v46 = vld [vmem:[#allocation124_spill] sm:$0xff] }
 0x2f2   : > { %8932 = vst [vmem:[#allocation137_spill] sm:$0xff] %v7229_v41  ;;  %v7233_v37 = vmul.f32 %v2152_v2, %v8933_v48  ;;  %8935 = vst [vmem:[#allocation138_spill] sm:$0xff] %v7240_v28  ;;  %4231 = vmatprep.mubr.msk.f32.mxu1 %vm588_vm0, %v7240_v28  ;;  %4642 = vrcp.f32 %v3533_v60  ;;  %v3534_v24 = vadd.f32 0.0001, %v3488_v61  ;;  %v8936_v31 = vld [vmem:[#allocation39_spill] sm:$0xff]  ;;  %v4635_v2 = vpop.eup %4634  ;;  %v7247_v48 = vmul.f32 %v4633_v16, %v3436_v0  ;;  %v7257_v61 = vpop.f32.mrb[234].mxu0 }
 0x2f3   : > { %v3489_v22 = vadd.f32 %v7219_v40, %v8936_v31  ;;  %v3438_v41 = vadd.f32 0.0001, %v3392_v50  ;;  %8938 = vst [vmem:[#allocation140_spill] sm:$0xff] %v7250_v39  ;;  %v7252_v59 = vmul.f32 %v4635_v2, %v3437_v8  ;;  %v7255_v60 = vmul.f32 %v2156_v58, %v6529_v20  ;;  %4540 = vmatprep.subr.bf16.mxu1 %v4539_v47  ;;  %v2164_v17 = vpop.f32.mrb[77].mxu1  ;;  %v7262_v16 = vld [vmem:[%s8457_s2 + $0x140] sm:$0xff]  ;;  %v4637_v0 = vpop.eup %4636  ;;  %v7276_v50 = vld [vmem:[%s8457_s2 + $0x158] sm:$0xff] }
 0x2f4   : > { %8934 = vst [vmem:[#allocation11_spill] sm:$0xff] %v7233_v37  ;;  %8937 = vst [vmem:[#allocation139_spill] sm:$0xff] %v7247_v48  ;;  %4644 = vrcp.f32 %v3534_v24  ;;  %v3395_v8 = vmul.f32 2.0, %v7185_v3  ;;  %v7271_v20 = vmul.f32 %v2158_v14, %v6532_v4  ;;  %4542 = vmatpush1.bf16.msra.mxu1 %v4541_v54  ;;  %v1719_v58 = vpop.f32.mrb[235].mxu0  ;;  %v3439_v47 = vadd.f32 0.0001, %v3393_v25 }
 0x2f5   : > { %8939 = vst [vmem:[#allocation141_spill] sm:$0xff] %v7252_v59  ;;  %v3535_v28 = vadd.f32 0.0001, %v3489_v22  ;;  %8940 = vst [vmem:[#allocation142_spill] sm:$0xff] %v7255_v60  ;;  %2597 = vmatmul.mubr.f32.gmra.mrb[178].mxu1 %v7262_v16  ;;  %v3490_v22 = vadd.f32 %v7250_v39, %v6736_v42  ;;  %v7280_v24 = vmul.f32 %v4637_v0, %v3438_v41  ;;  %v3440_v3 = vadd.f32 0.0001, %v3394_v10 }
 0x2f6   : > { %8941 = vst [vmem:[#allocation143_spill] sm:$0xff] %v7262_v16  ;;  %8942 = vst [vmem:[#allocation144_spill] sm:$0xff] %v7268_v13  ;;  %4232 = vmatprep.mubr.msk.f32.mxu1 %vm588_vm0, %v7276_v50  ;;  %v7282_v2 = vmul.f32 %v2162_v56, %v2162_v56  ;;  %v8947_v4 = vld [vmem:[#allocation45_spill] sm:$0xff]  ;;  %v7287_v54 = vmul.f32 %v2162_v56, %v6536_v55  ;;  %v2168_v48 = vpop.f32.mrb[78].mxu1  ;;  %v3396_v39 = vmul.f32 2.0, %v7214_v27  ;;  %v8949_v40 = vld [vmem:[#allocation46_spill] sm:$0xff] }
 0x2f7   : > { %8943 = vst [vmem:[#allocation145_spill] sm:$0xff] %v7271_v20  ;;  %8944 = vst [vmem:[#allocation146_spill] sm:$0xff] %v7276_v50  ;;  %4646 = vrcp.f32 %v3535_v28  ;;  %v3536_v59 = vadd.f32 0.0001, %v3490_v22  ;;  %v3491_v14 = vadd.f32 %v7268_v13, %v8947_v4  ;;  %v4639_v38 = vpop.eup %4638  ;;  %v4545_v25 = vpack.c.bf16 %v7257_v61, %v7221_v1  ;;  %v7296_v10 = vpop.f32.mrb[236].mxu0  ;;  %v7301_v55 = vld [vmem:[%s8457_s2 + $0x150] sm:$0xff] }
 0x2f8   : > { %8945 = vst [vmem:[#allocation147_spill] sm:$0xff] %v7280_v24  ;;  %8946 = vst [vmem:[#allocation148_spill] sm:$0xff] %v7282_v2  ;;  %v3492_v41 = vadd.f32 %v7282_v2, %v8949_v40  ;;  %v7294_v28 = vmul.f32 %v2164_v17, %v2164_v17  ;;  %v2170_v0 = vpop.f32.mrb[79].mxu1  ;;  %v7304_v56 = vmul.f32 %v4639_v38, %v3439_v47  ;;  %v3441_v22 = vadd.f32 0.0001, %v3395_v8  ;;  %v7306_v27 = vpop.f32.mrb[237].mxu0 }
 0x2f9   : > { %8948 = vst [vmem:[#allocation149_spill] sm:$0xff] %v7287_v54  ;;  %8951 = vst [vmem:[#allocation151_spill] sm:$0xff] %v7301_v55  ;;  %2603 = vmatmul.mubr.f32.gmra.mrb[180].mxu1 %v7301_v55  ;;  %4648 = vrcp.f32 %v3536_v59  ;;  %v3537_v24 = vadd.f32 0.0001, %v3491_v14  ;;  %v7311_v1 = vld [vmem:[%s8457_s2 + $0x168] sm:$0x3f]  ;;  %v4543_v47 = vpack.c.bf16 %v1719_v58, %v7235_v36  ;;  %v7322_v14 = vmul.f32 %v2168_v48, %v2168_v48 }
 0x2fa   : > { %8950 = vst [vmem:[#allocation150_spill] sm:$0xff] %v7294_v28  ;;  %8952 = vst [vmem:[#allocation152_spill] sm:$0xff] %v7304_v56  ;;  %4233 = vmatprep.mubr.msk.f32.mxu1 %vm588_vm0, %v7311_v1  ;;  %v3397_v61 = vmul.f32 2.0, %v7233_v37  ;;  %v3538_v2 = vadd.f32 0.0001, %v3492_v41  ;;  %v8954_v13 = vld [vmem:[#allocation12_spill] sm:$0xff]  ;;  %v4641_v8 = vpop.eup %4640  ;;  %v7325_v56 = vmul.f32 %v2168_v48, %v6543_v62 }
 0x2fb   : > { %8953 = vst [vmem:[#allocation153_spill] sm:$0xff] %v7311_v1  ;;  %v7317_v55 = vmul.f32 %v2164_v17, %v8954_v13  ;;  %v8956_v38 = vld [vmem:[#allocation47_spill] sm:$0xff]  ;;  %4650 = vrcp.f32 %v3537_v24  ;;  %8957 = vst [vmem:[#allocation154_spill] sm:$0xff] %v7322_v14  ;;  %v2174_v50 = vpop.f32.mrb[80].mxu1  ;;  %v7327_v16 = vmul.f32 %v4641_v8, %v3440_v3  ;;  %v3442_v41 = vadd.f32 0.0001, %v3396_v39  ;;  %4544 = vmatprep.subr.bf16.mxu1 %v4543_v47 }
 0x2fc   : > { %v3493_v59 = vadd.f32 %v7294_v28, %v8956_v38  ;;  %8958 = vst [vmem:[#allocation155_spill] sm:$0xff] %v7325_v56  ;;  %v4643_v1 = vpop.eup %4642  ;;  %v3398_v17 = vmul.f32 2.0, %v7255_v60  ;;  %4652 = vrcp.f32 %v3538_v2  ;;  %v1729_v13 = vpop.f32.mrb[238].mxu0  ;;  %v7333_v24 = vld [vmem:[%s8457_s2 + $0x160] sm:$0x3f]  ;;  %v3399_v62 = vmul.f32 2.0, %v7271_v20  ;;  %4546 = vmatpush1.bf16.msra.mxu1 %v4545_v25 }
 0x2fd   : > { %8955 = vst [vmem:[#allocation12_spill] sm:$0xff] %v7317_v55  ;;  %8959 = vst [vmem:[#allocation156_spill] sm:$0xff] %v7327_v16  ;;  %v2176_v37 = vpop.f32.mrb[81].mxu1  ;;  %2609 = vmatmul.mubr.f32.gmra.mrb[182].mxu1 %v7333_v24  ;;  %v7336_v36 = vmul.f32 %v4643_v1, %v3441_v22  ;;  %v8962_v3 = vld [vmem:[#allocation48_spill] sm:$0xff]  ;;  %v1731_v58 = vpop.f32.mrb[239].mxu0  ;;  %v4918_v2 = vld [vmem:[%s8457_s2 + $0x8] sm:$0xff]  ;;  %v7346_v16 = vmul.f32 %v2170_v0, %v2170_v0 }
 0x2fe   : > { %8960 = vst [vmem:[#allocation157_spill] sm:$0xff] %v7333_v24  ;;  %v3539_v48 = vadd.f32 0.0001, %v3493_v59  ;;  %v3494_v39 = vadd.f32 %v7322_v14, %v8962_v3  ;;  %4234 = vmatprep.mubr.msk.f32.mxu1 %vm588_vm0, %v4918_v2  ;;  %v4645_v8 = vpop.eup %4644  ;;  %v3400_v60 = vmul.f32 2.0, %v7287_v54  ;;  %v8964_v22 = vld [vmem:[#allocation13_spill] sm:$0xff]  ;;  %v7351_v59 = vmul.f32 %v2174_v50, %v2174_v50  ;;  %v2180_v14 = vpop.f32.mrb[82].mxu1 }
 0x2ff   : > { %8961 = vst [vmem:[#allocation158_spill] sm:$0xff] %v7336_v36  ;;  %8963 = vst [vmem:[#allocation159_spill] sm:$0xff] %v7346_v16  ;;  %v7349_v1 = vmul.f32 %v2170_v0, %v8964_v22  ;;  %v7353_v20 = vmul.f32 %v4645_v8, %v3442_v41  ;;  %v3443_v47 = vadd.f32 0.0001, %v3397_v61  ;;  %v3444_v24 = vadd.f32 0.0001, %v3398_v17 }
 0x300   : > { %8966 = vst [vmem:[#allocation160_spill] sm:$0xff] %v7351_v59  ;;  %4654 = vrcp.f32 %v3539_v48  ;;  %v3540_v36 = vadd.f32 0.0001, %v3494_v39  ;;  %v8968_v2 = vld [vmem:[#allocation49_spill] sm:$0xff]  ;;  %v7358_v54 = vmul.f32 %v2174_v50, %v6550_v6  ;;  %v8970_v38 = vld [vmem:[#allocation50_spill] sm:$0xff]  ;;  %v2182_v25 = vpop.f32.mrb[83].mxu1  ;;  %v4549_v61 = vpack.c.bf16 %v1729_v13, %v7296_v10 }
 0x301   : > { %8965 = vst [vmem:[#allocation13_spill] sm:$0xff] %v7349_v1  ;;  %8967 = vst [vmem:[#allocation161_spill] sm:$0xff] %v7353_v20  ;;  %v4647_v28 = vpop.eup %4646  ;;  %v3495_v3 = vadd.f32 %v7346_v16, %v8968_v2  ;;  %v3496_v0 = vadd.f32 %v7351_v59, %v8970_v38  ;;  %v7365_v41 = vmul.f32 %v2176_v37, %v2176_v37  ;;  %v3445_v48 = vadd.f32 0.0001, %v3399_v62  ;;  %v8973_v8 = vld [vmem:[#allocation14_spill] sm:$0xff]  ;;  %v8975_v50 = vld [vmem:[#allocation51_spill] sm:$0xff] }
 0x302   : > { %8969 = vst [vmem:[#allocation162_spill] sm:$0xff] %v7358_v54  ;;  %v7362_v22 = vmul.f32 %v4647_v28, %v3443_v47  ;;  %4656 = vrcp.f32 %v3540_v36  ;;  %v3446_v39 = vadd.f32 0.0001, %v3400_v60  ;;  %v7368_v20 = vmul.f32 %v2176_v37, %v8973_v8  ;;  %v2186_v36 = vpop.f32.mrb[84].mxu1  ;;  %v8980_v8 = vld [vmem:[#allocation54_spill] sm:$0xff]  ;;  %v9057_v12 = vld [vmem:[#allocation132_spill] sm:$0xff] }
 0x303   : > { %8972 = vst [vmem:[#allocation164_spill] sm:$0xff] %v7365_v41  ;;  %v3541_v17 = vadd.f32 0.0001, %v3495_v3  ;;  %v4649_v16 = vpop.eup %4648  ;;  %v3542_v6 = vadd.f32 0.0001, %v3496_v0  ;;  %v3497_v2 = vadd.f32 %v7365_v41, %v8975_v50  ;;  %v4547_v59 = vpack.c.bf16 %v1731_v58, %v7306_v27  ;;  %v2188_v13 = vpop.f32.mrb[85].mxu1 }
 0x304   : > { %8971 = vst [vmem:[#allocation163_spill] sm:$0xff] %v7362_v22  ;;  %8974 = vst [vmem:[#allocation14_spill] sm:$0xff] %v7368_v20  ;;  %v7373_v28 = vmul.f32 %v2180_v14, %v2180_v14  ;;  %v7375_v47 = vmul.f32 %v4649_v16, %v3444_v24  ;;  %v3401_v10 = vmul.f32 2.0, %v7317_v55  ;;  %v3402_v60 = vmul.f32 2.0, %v7325_v56  ;;  %v8978_v3 = vld [vmem:[#allocation15_spill] sm:$0xff]  ;;  %v9035_v41 = vld [vmem:[#allocation96_spill] sm:$0xff] }
 0x305   : > { %4658 = vrcp.f32 %v3541_v17  ;;  %v4651_v37 = vpop.eup %4650  ;;  %v3543_v62 = vadd.f32 0.0001, %v3497_v2  ;;  %v7380_v0 = vmul.f32 %v2180_v14, %v8978_v3  ;;  %4548 = vmatprep.subr.bf16.mxu1 %v4547_v59  ;;  %v3403_v16 = vmul.f32 2.0, %v7349_v1  ;;  %v2192_v3 = vpop.f32.mrb[86].mxu1  ;;  %v4921_v55 = vld [vmem:[%s8457_s2 + $0x10] sm:$0xff]  ;;  %v9059_v31 = vld [vmem:[#allocation136_spill] sm:$0xff] }
 0x306   : > { %8976 = vst [vmem:[#allocation165_spill] sm:$0xff] %v7373_v28  ;;  %8977 = vst [vmem:[#allocation166_spill] sm:$0xff] %v7375_v47  ;;  %4660 = vrcp.f32 %v3542_v6  ;;  %v3498_v27 = vadd.f32 %v7373_v28, %v8980_v8  ;;  %v4653_v58 = vpop.eup %4652  ;;  %v7384_v22 = vmul.f32 %v4651_v37, %v3445_v48  ;;  %v7387_v24 = vmul.f32 %v2182_v25, %v2182_v25  ;;  %v9033_v28 = vld [vmem:[#allocation92_spill] sm:$0xff] }
 0x307   : > { %8979 = vst [vmem:[#allocation15_spill] sm:$0xff] %v7380_v0  ;;  %v7390_v17 = vmul.f32 %v2182_v25, %v6559_v43  ;;  %4550 = vmatpush1.bf16.msra.mxu1 %v4549_v61  ;;  %v7392_v6 = vmul.f32 %v4653_v58, %v3446_v39  ;;  %v3404_v14 = vmul.f32 2.0, %v7358_v54  ;;  %4662 = vrcp.f32 %v3543_v62  ;;  %v8987_v25 = vld [vmem:[#allocation19_spill] sm:$0xff] }
 0x308   : > { %8981 = vst [vmem:[#allocation167_spill] sm:$0xff] %v7384_v22  ;;  %8982 = vst [vmem:[#allocation168_spill] sm:$0xff] %v7387_v24  ;;  %v3544_v2 = vadd.f32 0.0001, %v3498_v27  ;;  %v3447_v47 = vadd.f32 0.0001, %v3401_v10  ;;  %v3499_v59 = vadd.f32 %v7387_v24, %v6809_v35  ;;  %v7397_v48 = vmul.f32 %v2186_v36, %v2186_v36 }
 0x309   : > { %8983 = vst [vmem:[#allocation169_spill] sm:$0xff] %v7390_v17  ;;  %8984 = vst [vmem:[#allocation170_spill] sm:$0xff] %v7392_v6  ;;  %v7400_v37 = vmul.f32 %v2186_v36, %v6561_v57  ;;  %v2194_v22 = vpop.f32.mrb[87].mxu1  ;;  %v7404_v61 = vmul.f32 %v8987_v25, %v8987_v25  ;;  %v7406_v39 = vmul.f32 %v2188_v13, %v2188_v13  ;;  %v4919_v10 = vld [vmem:[%s8457_s2] sm:$0xff]  ;;  %v3448_v57 = vadd.f32 0.0001, %v3402_v60 }
 0x30a   : > { %8985 = vst [vmem:[#allocation171_spill] sm:$0xff] %v7397_v48  ;;  %v4655_v43 = vpop.eup %4654  ;;  %4664 = vrcp.f32 %v3544_v2  ;;  %v7409_v62 = vmul.f32 %v2188_v13, %v6566_v32  ;;  %2680 = vmatmul.mubr.f32.vlgmr.msra.gmra.mrb[184].mxu1 %v4919_v10  ;;  %v3449_v36 = vadd.f32 0.0001, %v3403_v16  ;;  %v3545_v58 = vadd.f32 0.0001, %v3499_v59  ;;  %v4920_v6 = vld [vmem:[%s8457_s2 + $0x18] sm:$0xff] }
 0x30b   : > { %8986 = vst [vmem:[#allocation172_spill] sm:$0xff] %v7400_v37  ;;  %8988 = vst [vmem:[#allocation19_spill] sm:$0xff] %v7404_v61  ;;  %v7414_v27 = vmul.f32 %v4655_v43, %v3447_v47  ;;  %4235 = vmatprep.mubr.msk.f32.mxu1 %vm588_vm0, %v4920_v6  ;;  %v3450_v54 = vadd.f32 0.0001, %v3404_v14  ;;  %v8992_v32 = vld [vmem:[#allocation57_spill] sm:$0xff]  ;;  %v3501_v1 = vadd.f32 %v7406_v39, %v6833_v26  ;;  %v2198_v47 = vpop.f32.mrb[88].mxu1 }
 0x30c   : > { %8989 = vst [vmem:[#allocation173_spill] sm:$0xff] %v7406_v39  ;;  %8990 = vst [vmem:[#allocation174_spill] sm:$0xff] %v7409_v62  ;;  %v4657_v2 = vpop.eup %4656  ;;  %v3500_v13 = vadd.f32 %v7397_v48, %v8992_v32  ;;  %v7424_v10 = vmul.f32 %v2192_v3, %v2192_v3  ;;  %v3405_v16 = vmul.f32 2.0, %v7368_v20  ;;  %4666 = vrcp.f32 %v3545_v58  ;;  %v2200_v6 = vpop.f32.mrb[89].mxu1 }
 0x30d   : > { %8991 = vst [vmem:[#allocation175_spill] sm:$0xff] %v7414_v27  ;;  %v7426_v60 = vmul.f32 %v4657_v2, %v3448_v57  ;;  %v7430_v59 = vmul.f32 %v2192_v3, %v6572_v30  ;;  %v3406_v14 = vmul.f32 2.0, %v7380_v0  ;;  %v3547_v27 = vadd.f32 0.0001, %v3501_v1  ;;  %v4922_v1 = vld [vmem:[%s8457_s2 + $0x28] sm:$0xff]  ;;  %v2204_v20 = vpop.f32.mrb[90].mxu1 }
 0x30e   : > { %8993 = vst [vmem:[#allocation176_spill] sm:$0xff] %v7424_v10  ;;  %v3546_v43 = vadd.f32 0.0001, %v3500_v13  ;;  %v3502_v56 = vadd.f32 %v7424_v10, %v6963_v33  ;;  %2686 = vmatmul.mubr.f32.gmra.mrb[186].mxu1 %v4921_v55  ;;  %v3407_v2 = vmul.f32 2.0, %v7390_v17  ;;  %v7439_v58 = vmul.f32 %v2194_v22, %v2194_v22  ;;  %v2206_v39 = vpop.f32.mrb[91].mxu1 }
 0x30f   : > { %8994 = vst [vmem:[#allocation177_spill] sm:$0xff] %v7426_v60  ;;  %8995 = vst [vmem:[#allocation178_spill] sm:$0xff] %v7430_v59  ;;  %v4659_v57 = vpop.eup %4658  ;;  %v7442_v30 = vmul.f32 %v2194_v22, %v8877_v44  ;;  %v7444_v3 = vmul.f32 %v2198_v47, %v2198_v47  ;;  %4236 = vmatprep.mubr.msk.f32.mxu1 %vm588_vm0, %v4922_v1  ;;  %v7453_v17 = vmul.f32 %v2198_v47, %v8901_v23  ;;  %v9001_v60 = vld [vmem:[#allocation22_spill] sm:$0xff] }
 0x310   : > { %8996 = vst [vmem:[#allocation179_spill] sm:$0xff] %v7439_v58  ;;  %v4661_v13 = vpop.eup %4660  ;;  %v7450_v0 = vmul.f32 %v4659_v57, %v3449_v36  ;;  %4668 = vrcp.f32 %v3546_v43  ;;  %v3548_v55 = vadd.f32 0.0001, %v3502_v56  ;;  %v7457_v44 = vmul.f32 %v9001_v60, %v9001_v60  ;;  %v4923_v56 = vld [vmem:[%s8457_s2 + $0x20] sm:$0xff] }
 0x311   : > { %8997 = vst [vmem:[#allocation180_spill] sm:$0xff] %v7442_v30  ;;  %8998 = vst [vmem:[#allocation181_spill] sm:$0xff] %v7444_v3  ;;  %v7459_v22 = vmul.f32 %v4661_v13, %v3450_v54  ;;  %v3451_v10 = vadd.f32 0.0001, %v3405_v16  ;;  %4670 = vrcp.f32 %v3547_v27  ;;  %v4663_v48 = vpop.eup %4662  ;;  %v3452_v1 = vadd.f32 0.0001, %v3406_v14 }
 0x312   : > { %8999 = vst [vmem:[#allocation182_spill] sm:$0xff] %v7450_v0  ;;  %9000 = vst [vmem:[#allocation183_spill] sm:$0xff] %v7453_v17  ;;  %4672 = vrcp.f32 %v3548_v55  ;;  %v3503_v36 = vadd.f32 %v7439_v58, %v7037_v5  ;;  %v3504_v23 = vadd.f32 %v7444_v3, %v7123_v53  ;;  %2692 = vmatmul.mubr.f32.gmra.mrb[188].mxu1 %v4923_v56  ;;  %v3453_v54 = vadd.f32 0.0001, %v3407_v2  ;;  %v4924_v14 = vld [vmem:[%s8457_s2 + $0x38] sm:$0xff] }
 0x313   : > { %9002 = vst [vmem:[#allocation22_spill] sm:$0xff] %v7457_v44  ;;  %9003 = vst [vmem:[#allocation184_spill] sm:$0xff] %v7459_v22  ;;  %v7468_v47 = vmul.f32 %v4663_v48, %v3451_v10  ;;  %v7470_v16 = vmul.f32 %v2200_v6, %v2200_v6  ;;  %v7473_v27 = vmul.f32 %v2200_v6, %v8921_v19  ;;  %4237 = vmatprep.mubr.msk.f32.mxu1 %vm588_vm0, %v4924_v14  ;;  %v9031_v58 = vld [vmem:[#allocation88_spill] sm:$0xff] }
 0x314   : > { %v4665_v43 = vpop.eup %4664  ;;  %v3408_v57 = vmul.f32 2.0, %v7400_v37  ;;  %v3549_v13 = vadd.f32 0.0001, %v3503_v36  ;;  %v3550_v55 = vadd.f32 0.0001, %v3504_v23  ;;  %v7480_v56 = vmul.f32 %v2204_v20, %v2204_v20 }
 0x315   : > { %9004 = vst [vmem:[#allocation185_spill] sm:$0xff] %v7468_v47  ;;  %9005 = vst [vmem:[#allocation186_spill] sm:$0xff] %v7470_v16  ;;  %v7482_v48 = vmul.f32 %v4665_v43, %v3452_v1  ;;  %v3409_v10 = vmul.f32 2.0, %v7409_v62  ;;  %v3505_v19 = vadd.f32 %v7470_v16, %v7195_v34  ;;  %v7488_v6 = vmul.f32 %v2204_v20, %v8987_v25  ;;  %v4925_v1 = vld [vmem:[%s8457_s2 + $0x30] sm:$0xff]  ;;  %v4926_v25 = vld [vmem:[%s8457_s2 + $0x48] sm:$0xff] }
 0x316   : > { %9006 = vst [vmem:[#allocation187_spill] sm:$0xff] %v7473_v27  ;;  %9007 = vst [vmem:[#allocation188_spill] sm:$0xff] %v7480_v56  ;;  %4674 = vrcp.f32 %v3549_v13  ;;  %v3506_v2 = vadd.f32 %v7480_v56, %v7404_v61  ;;  %v7492_v14 = vmul.f32 %v2206_v39, %v2206_v39  ;;  %v7495_v36 = vmul.f32 %v2206_v39, %v9001_v60  ;;  %v4667_v23 = vpop.eup %4666  ;;  %v9013_v47 = vld [vmem:[#allocation20_spill] sm:$0xff]  ;;  %v9029_v16 = vld [vmem:[#allocation82_spill] sm:$0xff] }
 0x317   : > { %9008 = vst [vmem:[#allocation189_spill] sm:$0xff] %v7482_v48  ;;  %9009 = vst [vmem:[#allocation190_spill] sm:$0xff] %v7488_v6  ;;  %2698 = vmatmul.mubr.f32.gmra.mrb[190].mxu1 %v4925_v1  ;;  %v3410_v43 = vmul.f32 2.0, %v7430_v59  ;;  %4676 = vrcp.f32 %v3550_v55  ;;  %v3551_v20 = vadd.f32 0.0001, %v3505_v19  ;;  %v7505_v13 = vmul.f32 %v4667_v23, %v3453_v54  ;;  %v7509_v48 = vpop.f32.mrb[92].mxu1 }
 0x318   : > { %9010 = vst [vmem:[#allocation191_spill] sm:$0xff] %v7492_v14  ;;  %9011 = vst [vmem:[#allocation192_spill] sm:$0xff] %v7495_v36  ;;  %4238 = vmatprep.mubr.msk.f32.mxu1 %vm588_vm0, %v4926_v25  ;;  %v3552_v39 = vadd.f32 0.0001, %v3506_v2  ;;  %v3507_v60 = vadd.f32 %v7492_v14, %v7457_v44  ;;  %v3454_v1 = vadd.f32 0.0001, %v3408_v57 }
 0x319   : > { %9012 = vst [vmem:[#allocation193_spill] sm:$0xff] %v7505_v13  ;;  %4678 = vrcp.f32 %v3551_v20  ;;  %v7513_v19 = vpop.f32.mrb[93].mxu1  ;;  %v3455_v62 = vadd.f32 0.0001, %v3409_v10  ;;  %v4927_v54 = vld [vmem:[%s8457_s2 + $0x40] sm:$0xff]  ;;  %v3411_v55 = vmul.f32 2.0, %v7442_v30 }
 0x31a   : > { %v4669_v59 = vpop.eup %4668  ;;  %4680 = vrcp.f32 %v3552_v39  ;;  %v3553_v37 = vadd.f32 0.0001, %v3507_v60  ;;  %v9014_v2 = vld [vmem:[#allocation21_spill] sm:$0xff]  ;;  %v3456_v20 = vadd.f32 0.0001, %v3410_v43  ;;  %v4928_v10 = vld [vmem:[%s8457_s2 + $0x58] sm:$0xff] }
 0x31b   : > { %2704 = vmatmul.mubr.f32.gmra.mrb[192].mxu1 %v4927_v54  ;;  %v4671_v25 = vpop.eup %4670  ;;  %v7520_v57 = vmul.f32 %v4669_v59, %v3454_v1  ;;  %v3412_v54 = vmul.f32 2.0, %v7453_v17  ;;  %v7530_v13 = vpop.f32.mrb[94].mxu1  ;;  %v9018_v59 = vld [vmem:[#allocation23_spill] sm:$0xff]  ;;  %v9021_v30 = vld [vmem:[#allocation25_spill] sm:$0xff]  ;;  %v9079_v34 = vsub.f32 %v7513_v19, %v9014_v2  ;;  %v9084_v19 = vld [vmem:[#allocation58_spill] sm:$0xff] }
 0x31c   : > { %4239 = vmatprep.mubr.msk.f32.mxu1 %vm588_vm0, %v4928_v10  ;;  %v4673_v39 = vpop.eup %4672  ;;  %v7527_v60 = vmul.f32 %v4671_v25, %v3455_v62  ;;  %4682 = vrcp.f32 %v3553_v37  ;;  %v7536_v1 = vpop.f32.mrb[95].mxu1  ;;  %v4929_v10 = vld [vmem:[%s8457_s2 + $0x50] sm:$0xff]  ;;  %v9019_v62 = vld [vmem:[#allocation24_spill] sm:$0xff]  ;;  %v3457_v37 = vadd.f32 0.0001, %v3411_v55  ;;  %v9085_v2 = vld [vmem:[#allocation61_spill] sm:$0xff] }
 0x31d   : > { %9015 = vst [vmem:[#allocation20_spill] sm:$0xff] %v7520_v57  ;;  %v7532_v23 = vmul.f32 %v4673_v39, %v3456_v20  ;;  %v3413_v57 = vmul.f32 2.0, %v7473_v27  ;;  %v4930_v20 = vld [vmem:[%s8457_s2 + $0x68] sm:$0xff]  ;;  %v3458_v43 = vadd.f32 0.0001, %v3412_v54  ;;  %v9028_v14 = vld [vmem:[#allocation27_spill] sm:$0xff] }
 0x31e   : > { %9016 = vst [vmem:[#allocation21_spill] sm:$0xff] %v7527_v60  ;;  %v3414_v60 = vmul.f32 2.0, %v7488_v6  ;;  %v9023_v54 = vld [vmem:[#allocation26_spill] sm:$0xff]  ;;  %v9081_v44 = vld [vmem:[#allocation55_spill] sm:$0xff] }
 0x31f   : > { %9017 = vst [vmem:[#allocation194_spill] sm:$0xff] %v7532_v23  ;;  %2710 = vmatmul.mubr.f32.gmra.mrb[194].mxu1 %v4929_v10  ;;  %v7549_v23 = vpop.f32.mrb[96].mxu1  ;;  %v3415_v10 = vmul.f32 2.0, %v7495_v36  ;;  %v3459_v22 = vadd.f32 0.0001, %v3413_v57  ;;  %v4932_v36 = vld [vmem:[%s8457_s2 + $0x78] sm:$0xff] }
 0x320   : > { %4240 = vmatprep.mubr.msk.f32.mxu1 %vm588_vm0, %v4930_v20  ;;  %v4675_v39 = vpop.eup %4674  ;;  %v7556_v25 = vpop.f32.mrb[97].mxu1  ;;  %v4931_v20 = vld [vmem:[%s8457_s2 + $0x60] sm:$0xff] }
 0x321   : > { %v4677_v27 = vpop.eup %4676  ;;  %v7551_v17 = vmul.f32 %v4675_v39, %v3457_v37  ;;  %v3460_v39 = vadd.f32 0.0001, %v3414_v60  ;;  %v7571_v57 = vpop.f32.mrb[98].mxu1 }
 0x322   : > { %v7558_v6 = vmul.f32 %v4677_v27, %v3458_v43  ;;  %v7577_v0 = vpop.f32.mrb[99].mxu1 }
 0x323   : > { %9020 = vst [vmem:[#allocation23_spill] sm:$0xff] %v7551_v17  ;;  %2716 = vmatmul.mubr.f32.gmra.mrb[196].mxu1 %v4931_v20  ;;  %v4679_v37 = vpop.eup %4678  ;;  %v4933_v17 = vld [vmem:[%s8457_s2 + $0x70] sm:$0xff]  ;;  %v4938_v20 = vld [vmem:[%s8457_s2 + $0xa8] sm:$0xff] }
 0x324   : > { %9022 = vst [vmem:[#allocation24_spill] sm:$0xff] %v7558_v6  ;;  %4241 = vmatprep.mubr.msk.f32.mxu1 %vm588_vm0, %v4932_v36  ;;  %v4681_v55 = vpop.eup %4680  ;;  %v7569_v27 = vmul.f32 %v4679_v37, %v3459_v22  ;;  %v3461_v6 = vadd.f32 0.0001, %v3415_v10  ;;  %v4934_v10 = vld [vmem:[%s8457_s2 + $0x88] sm:$0xff]  ;;  %v9027_v37 = vld [vmem:[#allocation80_spill] sm:$0xff] }
 0x325   : > { %v7573_v43 = vmul.f32 %v4681_v55, %v3460_v39  ;;  %v7590_v55 = vpop.f32.mrb[100].mxu1 }
 0x326   : > { %9024 = vst [vmem:[#allocation25_spill] sm:$0xff] %v7569_v27  ;;  %v4683_v60 = vpop.eup %4682  ;;  %v7594_v39 = vpop.f32.mrb[101].mxu1 }
 0x327   : > { %9025 = vst [vmem:[#allocation26_spill] sm:$0xff] %v7573_v43  ;;  %2722 = vmatmul.mubr.f32.gmra.mrb[198].mxu1 %v4933_v17  ;;  %v7584_v36 = vmul.f32 %v4683_v60, %v3461_v6  ;;  %v4935_v17 = vld [vmem:[%s8457_s2 + $0x80] sm:$0xff]  ;;  %v4936_v60 = vld [vmem:[%s8457_s2 + $0x98] sm:$0xff]  ;;  %v9036_v6 = vld [vmem:[#allocation98_spill] sm:$0xff] }
 0x328   : > { %4242 = vmatprep.mubr.msk.f32.mxu1 %vm588_vm0, %v4934_v10  ;;  %v7605_v10 = vpop.f32.mrb[102].mxu1 }
 0x329   : > { %9026 = vst [vmem:[#allocation195_spill] sm:$0xff] %v7584_v36  ;;  %v7609_v22 = vpop.f32.mrb[103].mxu1 }
 0x32b   : > { %2728 = vmatmul.mubr.f32.gmra.mrb[200].mxu1 %v4935_v17  ;;  %v4937_v17 = vld [vmem:[%s8457_s2 + $0x90] sm:$0xff] }
 0x32c   : > { %4243 = vmatprep.mubr.msk.f32.mxu1 %vm588_vm0, %v4936_v60  ;;  %v7620_v60 = vpop.f32.mrb[104].mxu1 }
 0x32d   : > { %v7624_v36 = vpop.f32.mrb[105].mxu1 }
 0x32e   : > { %v7633_v43 = vpop.f32.mrb[106].mxu1 }
 0x32f   : > { %2734 = vmatmul.mubr.f32.gmra.mrb[202].mxu1 %v4937_v17  ;;  %v4939_v17 = vld [vmem:[%s8457_s2 + $0xa0] sm:$0xff]  ;;  %v7637_v27 = vpop.f32.mrb[107].mxu1 }
 0x330   : > { %4244 = vmatprep.mubr.msk.f32.mxu1 %vm588_vm0, %v4938_v20  ;;  %v9039_v20 = vld [vmem:[#allocation103_spill] sm:$0xff] }
 0x333   : > { %2740 = vmatmul.mubr.f32.gmra.mrb[204].mxu1 %v4939_v17  ;;  %v7644_v17 = vpop.f32.mrb[108].mxu1 }
 0x334   : > { %4245 = vmatprep.mubr.msk.f32.mxu1 %vm588_vm0, %v6911_v29  ;;  %v7648_v3 = vpop.f32.mrb[109].mxu1 }
 0x337   : > { %2746 = vmatmul.mubr.f32.gmra.mrb[206].mxu1 %v9027_v37  ;;  %v7655_v37 = vpop.f32.mrb[110].mxu1 }
 0x338   : > { %4246 = vmatprep.mubr.msk.f32.mxu1 %vm588_vm0, %v9029_v16  ;;  %9034 = vst [vmem:[#allocation80_spill] sm:$0xff] %v7655_v37  ;;  %v7659_v56 = vpop.f32.mrb[111].mxu1  ;;  %v9041_v37 = vld [vmem:[#allocation104_spill] sm:$0xff] }
 0x33b   : > { %2752 = vmatmul.mubr.f32.gmra.mrb[208].mxu1 %v9031_v58  ;;  %v7666_v58 = vpop.f32.mrb[112].mxu1 }
 0x33c   : > { %4247 = vmatprep.mubr.msk.f32.mxu1 %vm588_vm0, %v9033_v28  ;;  %9037 = vst [vmem:[#allocation27_spill] sm:$0xff] %v7666_v58  ;;  %v7670_v24 = vpop.f32.mrb[113].mxu1  ;;  %v9046_v58 = vld [vmem:[#allocation110_spill] sm:$0xff] }
 0x33d   : > { %9038 = vst [vmem:[#allocation82_spill] sm:$0xff] %v7670_v24  ;;  %v9048_v24 = vld [vmem:[#allocation116_spill] sm:$0xff] }
 0x33f   : > { %2758 = vmatmul.mubr.f32.gmra.mrb[210].mxu1 %v9035_v41  ;;  %v7677_v41 = vpop.f32.mrb[114].mxu1 }
 0x340   : > { %4248 = vmatprep.mubr.msk.f32.mxu1 %vm588_vm0, %v9036_v6  ;;  %9042 = vst [vmem:[#allocation88_spill] sm:$0xff] %v7677_v41  ;;  %v7681_v29 = vpop.f32.mrb[115].mxu1  ;;  %v9050_v41 = vld [vmem:[#allocation117_spill] sm:$0xff]  ;;  %v9056_v6 = vld [vmem:[#allocation130_spill] sm:$0xff] }
 0x341   : > { %9043 = vst [vmem:[#allocation92_spill] sm:$0xff] %v7681_v29  ;;  %v9052_v29 = vld [vmem:[#allocation121_spill] sm:$0xff] }
 0x343   : > { %2764 = vmatmul.mubr.f32.gmra.mrb[212].mxu1 %v9039_v20  ;;  %v7688_v20 = vpop.f32.mrb[116].mxu1 }
 0x344   : > { %4249 = vmatprep.mubr.msk.f32.mxu1 %vm588_vm0, %v9041_v37  ;;  %v7692_v16 = vpop.f32.mrb[117].mxu1 }
 0x347   : > { %2770 = vmatmul.mubr.f32.gmra.mrb[214].mxu1 %v9044_v7  ;;  %v7699_v7 = vpop.f32.mrb[118].mxu1 }
 0x348   : > { %4250 = vmatprep.mubr.msk.f32.mxu1 %vm588_vm0, %v9046_v58  ;;  %v7703_v28 = vpop.f32.mrb[119].mxu1  ;;  %v9067_v58 = vld [vmem:[#allocation153_spill] sm:$0xff] }
 0x34b   : > { %2776 = vmatmul.mubr.f32.gmra.mrb[216].mxu1 %v9048_v24  ;;  %v7710_v24 = vpop.f32.mrb[120].mxu1 }
 0x34c   : > { %4251 = vmatprep.mubr.msk.f32.mxu1 %vm588_vm0, %v9050_v41  ;;  %9054 = vst [vmem:[#allocation96_spill] sm:$0xff] %v7710_v24  ;;  %v7714_v15 = vpop.f32.mrb[121].mxu1  ;;  %v9061_v24 = vld [vmem:[#allocation138_spill] sm:$0xff]  ;;  %v9066_v41 = vld [vmem:[#allocation151_spill] sm:$0xff] }
 0x34d   : > { %9055 = vst [vmem:[#allocation98_spill] sm:$0xff] %v7714_v15  ;;  %v9063_v15 = vld [vmem:[#allocation143_spill] sm:$0xff] }
 0x34f   : > { %2782 = vmatmul.mubr.f32.gmra.mrb[218].mxu1 %v9052_v29  ;;  %v7721_v29 = vpop.f32.mrb[122].mxu1 }
 0x350   : > { %4252 = vmatprep.mubr.msk.f32.mxu1 %vm588_vm0, %v9053_v46  ;;  %9058 = vst [vmem:[#allocation103_spill] sm:$0xff] %v7721_v29  ;;  %v7725_v37 = vpop.f32.mrb[123].mxu1  ;;  %v9065_v29 = vld [vmem:[#allocation146_spill] sm:$0xff]  ;;  %v9068_v46 = vld [vmem:[#allocation157_spill] sm:$0xff] }
 0x353   : > { %2788 = vmatmul.mubr.f32.gmra.mrb[220].mxu1 %v9056_v6  ;;  %v7732_v6 = vpop.f32.mrb[124].mxu1 }
 0x354   : > { %4253 = vmatprep.mubr.msk.f32.mxu1 %vm588_vm0, %v9057_v12  ;;  %v7736_v4 = vpop.f32.mrb[125].mxu1 }
 0x357   : > { %2794 = vmatmul.mubr.f32.gmra.mrb[222].mxu1 %v9059_v31  ;;  %v7743_v31 = vpop.f32.mrb[126].mxu1 }
 0x358   : > { %4254 = vmatprep.mubr.msk.f32.mxu1 %vm588_vm0, %v9061_v24  ;;  %v7747_v42 = vpop.f32.mrb[127].mxu1 }
 0x35b   : > { %2800 = vmatmul.mubr.f32.gmra.mrb[224].mxu1 %v9063_v15  ;;  %v7754_v15 = vpop.f32.mrb[128].mxu1 }
 0x35c   : > { %4255 = vmatprep.mubr.msk.f32.mxu1 %vm588_vm0, %v9065_v29  ;;  %v7758_v40 = vpop.f32.mrb[129].mxu1 }
 0x35e   : > { %v7763_v38 = vpop.f32.mrb[130].mxu1 }
 0x35f   : > { %2806 = vmatmul.mubr.f32.gmra.mrb[226].mxu1 %v9066_v41  ;;  %v7767_v12 = vpop.f32.mrb[131].mxu1  ;;  %v9077_v41 = vld [vmem:[#allocation43_spill] sm:$0xff] }
 0x360   : > { %4256 = vmatprep.mubr.msk.f32.mxu1 %vm588_vm0, %v9067_v58  ;;  %9069 = vst [vmem:[#allocation104_spill] sm:$0xff] %v7767_v12 }
 0x362   : > { %v7771_v50 = vpop.f32.mrb[132].mxu1 }
 0x363   : > { %2812 = vmatmul.mubr.f32.gmra.mrb[228].mxu1 %v9068_v46  ;;  %9070 = vst [vmem:[#allocation108_spill] sm:$0xff] %v7771_v50  ;;  %v7775_v8 = vpop.f32.mrb[133].mxu1 }
 0x364   : > { %9071 = vst [vmem:[#allocation110_spill] sm:$0xff] %v7775_v8  ;;  %v9076_v8 = vld [vmem:[#allocation40_spill] sm:$0xff] }
 0x366   : > { %v7779_v24 = vpop.f32.mrb[134].mxu1 }
 0x367   : > { %9072 = vst [vmem:[#allocation116_spill] sm:$0xff] %v7779_v24  ;;  %v7783_v32 = vpop.f32.mrb[135].mxu1  ;;  %v9078_v24 = vsub.f32 %v7509_v48, %v9013_v47 }
 0x368   : > { %9073 = vst [vmem:[#allocation117_spill] sm:$0xff] %v7783_v32 }
 0x36a   : > { %v7787_v26 = vpop.f32.mrb[136].mxu1 }
 0x36b   : > { %9074 = vst [vmem:[#allocation121_spill] sm:$0xff] %v7787_v26  ;;  %v7791_v33 = vpop.f32.mrb[137].mxu1  ;;  %v9080_v26 = vld [vmem:[#allocation52_spill] sm:$0xff] }
 0x36c   : > { %9075 = vst [vmem:[#allocation124_spill] sm:$0xff] %v7791_v33 }
 0x372   : > { %v2478_v5 = vpop.f32.mrb[138].mxu1 }
 0x373   : > { %v3002_v50 = vsub.f32 %v2478_v5, %v9076_v8  ;;  %v2480_v12 = vpop.f32.mrb[139].mxu1  ;;  %v9082_v5 = vsub.f32 %v7530_v13, %v9018_v59  ;;  %v9088_v59 = vld [vmem:[#allocation63_spill] sm:$0xff] }
 0x374   : > { %v3003_v53 = vsub.f32 %v2480_v12, %v9077_v41  ;;  %v9090_v41 = vsub.f32 %v7571_v57, %v6631_v45  ;;  %v9095_v45 = vsub.f32 %v7594_v39, %v6643_v51  ;;  %v9100_v51 = vld [vmem:[#allocation79_spill] sm:$0xff] }
 0x375   : > { %v7800_v58 = vadd.f32 %v3002_v50, %v9078_v24  ;;  %v9083_v50 = vsub.f32 %v7536_v1, %v9019_v62  ;;  %v9089_v62 = vld [vmem:[#allocation65_spill] sm:$0xff] }
 0x376   : > { %v7805_v29 = vadd.f32 %v3003_v53, %v9079_v34  ;;  %v2484_v61 = vpop.f32.mrb[140].mxu1 }
 0x377   : > { %v3004_v32 = vsub.f32 %v2484_v61, %v9080_v26  ;;  %v2486_v46 = vpop.f32.mrb[141].mxu1  ;;  %v9086_v26 = vsub.f32 %v7549_v23, %v9021_v30  ;;  %v9091_v30 = vsub.f32 %v7577_v0, %v6635_v18  ;;  %v9096_v18 = vld [vmem:[#allocation73_spill] sm:$0xff] }
 0x378   : > { %v3005_v33 = vsub.f32 %v2486_v46, %v9081_v44 }
 0x379   : > { %v7812_v8 = vadd.f32 %v3004_v32, %v9082_v5  ;;  %v9087_v32 = vsub.f32 %v7556_v25, %v9023_v54  ;;  %v9092_v25 = vld [vmem:[#allocation67_spill] sm:$0xff] }
 0x37a   : > { %v7817_v47 = vadd.f32 %v3005_v33, %v9083_v50  ;;  %v2490_v48 = vpop.f32.mrb[142].mxu1 }
 0x37b   : > { %v3006_v53 = vsub.f32 %v2490_v48, %v9084_v19  ;;  %v2492_v34 = vpop.f32.mrb[143].mxu1  ;;  %v9093_v48 = vld [vmem:[#allocation71_spill] sm:$0xff] }
 0x37c   : > { %v3007_v12 = vsub.f32 %v2492_v34, %v9085_v2 }
 0x37d   : > { %v7824_v61 = vadd.f32 %v3006_v53, %v9086_v26  ;;  %v9094_v53 = vsub.f32 %v7590_v55, %v6639_v49  ;;  %v9097_v26 = vld [vmem:[#allocation77_spill] sm:$0xff]  ;;  %v9099_v49 = vsub.f32 %v7609_v22, %v6651_v21  ;;  %v9104_v21 = vld [vmem:[#allocation90_spill] sm:$0xff] }
 0x37e   : > { %v7829_v44 = vadd.f32 %v3007_v12, %v9087_v32  ;;  %v2496_v13 = vpop.f32.mrb[144].mxu1 }
 0x37f   : > { %v3008_v33 = vsub.f32 %v2496_v13, %v9088_v59  ;;  %v2498_v1 = vpop.f32.mrb[145].mxu1  ;;  %v9098_v13 = vsub.f32 %v7605_v10, %v6647_v11  ;;  %v9103_v11 = vsub.f32 %v7624_v36, %v6659_v63  ;;  %v9108_v63 = vld [vmem:[#allocation95_spill] sm:$0xff] }
 0x380   : > { %v3009_v24 = vsub.f32 %v2498_v1, %v9089_v62  ;;  %v9101_v62 = vld [vmem:[#allocation84_spill] sm:$0xff] }
 0x381   : > { %v7836_v46 = vadd.f32 %v3008_v33, %v9090_v41  ;;  %v9102_v41 = vsub.f32 %v7620_v60, %v6655_v9  ;;  %v9107_v9 = vsub.f32 %v7637_v27, %v9028_v14  ;;  %v9114_v14 = vld [vmem:[#allocation102_spill] sm:$0xff] }
 0x382   : > { %v7841_v23 = vadd.f32 %v3009_v24, %v9091_v30  ;;  %v2502_v5 = vpop.f32.mrb[146].mxu1 }
 0x383   : > { %v3010_v54 = vsub.f32 %v2502_v5, %v9092_v25  ;;  %v2504_v50 = vpop.f32.mrb[147].mxu1 }
 0x384   : > { %v3011_v19 = vsub.f32 %v2504_v50, %v9093_v48  ;;  %v9106_v48 = vsub.f32 %v7633_v43, %v6663_v52  ;;  %v9112_v52 = vld [vmem:[#allocation29_spill] sm:$0xff] }
 0x385   : > { %v7848_v34 = vadd.f32 %v3010_v54, %v9094_v53  ;;  %v9105_v54 = vld [vmem:[#allocation94_spill] sm:$0xff]  ;;  %v9113_v43 = vsub.f32 %v7648_v3, %v9112_v52  ;;  %v9121_v3 = vld [vmem:[#allocation111_spill] sm:$0xff]  ;;  %v9130_v52 = vld [vmem:[#allocation120_spill] sm:$0xff] }
 0x386   : > { %v7853_v57 = vadd.f32 %v3011_v19, %v9095_v45 }
 0x387   : > { %v2508_v2 = vpop.f32.mrb[148].mxu1 }
 0x388   : > { %v3012_v0 = vsub.f32 %v2508_v2, %v9096_v18  ;;  %v2510_v12 = vpop.f32.mrb[149].mxu1  ;;  %v9109_v2 = vld [vmem:[#allocation100_spill] sm:$0xff] }
 0x389   : > { %v3013_v32 = vsub.f32 %v2510_v12, %v9097_v26 }
 0x38a   : > { %v7860_v59 = vadd.f32 %v3012_v0, %v9098_v13  ;;  %v9110_v0 = vld [vmem:[#allocation28_spill] sm:$0xff] }
 0x38b   : > { %v7865_v55 = vadd.f32 %v3013_v32, %v9099_v49  ;;  %v9111_v12 = vsub.f32 %v7644_v17, %v9110_v0  ;;  %v9119_v17 = vld [vmem:[#allocation31_spill] sm:$0xff] }
 0x38d   : > { %v2514_v33 = vpop.f32.mrb[150].mxu1 }
 0x38e   : > { %v3014_v39 = vsub.f32 %v2514_v33, %v9100_v51  ;;  %v2516_v1 = vpop.f32.mrb[151].mxu1  ;;  %v9115_v33 = vld [vmem:[#allocation107_spill] sm:$0xff] }
 0x38f   : > { %v3015_v24 = vsub.f32 %v2516_v1, %v9101_v62  ;;  %v9117_v1 = vld [vmem:[#allocation30_spill] sm:$0xff] }
 0x390   : > { %v7872_v30 = vadd.f32 %v3014_v39, %v9102_v41  ;;  %v9116_v39 = vld [vmem:[#allocation80_spill] sm:$0xff]  ;;  %v9120_v41 = vsub.f32 %v7659_v56, %v9119_v17  ;;  %v9129_v56 = vld [vmem:[#allocation115_spill] sm:$0xff]  ;;  %v9137_v17 = vld [vmem:[#allocation126_spill] sm:$0xff] }
 0x391   : > { %v7877_v10 = vadd.f32 %v3015_v24, %v9103_v11  ;;  %v2520_v5 = vpop.f32.mrb[152].mxu1  ;;  %v9118_v62 = vsub.f32 %v9116_v39, %v9117_v1 }
 0x392   : > { %v3016_v22 = vsub.f32 %v2520_v5, %v9104_v21  ;;  %v2522_v25 = vpop.f32.mrb[153].mxu1 }
 0x393   : > { %v3017_v50 = vsub.f32 %v2522_v25, %v9105_v54  ;;  %v9122_v25 = vld [vmem:[#allocation113_spill] sm:$0xff] }
 0x394   : > { %v7884_v19 = vadd.f32 %v3016_v22, %v9106_v48  ;;  %v9124_v48 = vld [vmem:[#allocation32_spill] sm:$0xff] }
 0x395   : > { %v7889_v60 = vadd.f32 %v3017_v50, %v9107_v9  ;;  %v2526_v53 = vpop.f32.mrb[154].mxu1  ;;  %v9123_v50 = vld [vmem:[#allocation27_spill] sm:$0xff] }
 0x396   : > { %v3018_v36 = vsub.f32 %v2526_v53, %v9108_v63  ;;  %v2528_v45 = vpop.f32.mrb[155].mxu1  ;;  %v9125_v9 = vsub.f32 %v9123_v50, %v9124_v48  ;;  %v9126_v63 = vld [vmem:[#allocation82_spill] sm:$0xff]  ;;  %v9141_v50 = vld [vmem:[#allocation37_spill] sm:$0xff] }
 0x397   : > { %v3019_v18 = vsub.f32 %v2528_v45, %v9109_v2  ;;  %v9142_v48 = vsub.f32 %v7692_v16, %v9141_v50  ;;  %v9149_v16 = vld [vmem:[#allocation140_spill] sm:$0xff] }
 0x398   : > { %v7896_v26 = vadd.f32 %v3018_v36, %v9111_v12  ;;  %v9127_v36 = vld [vmem:[#allocation33_spill] sm:$0xff] }
 0x399   : > { %v7901_v32 = vadd.f32 %v3019_v18, %v9113_v43  ;;  %v2532_v13 = vpop.f32.mrb[156].mxu1  ;;  %v9128_v45 = vsub.f32 %v9126_v63, %v9127_v36  ;;  %v9143_v36 = vld [vmem:[#allocation133_spill] sm:$0xff] }
 0x39a   : > { %v3020_v27 = vsub.f32 %v2532_v13, %v9114_v14  ;;  %v2534_v49 = vpop.f32.mrb[157].mxu1  ;;  %v9131_v13 = vld [vmem:[#allocation88_spill] sm:$0xff]  ;;  %v9132_v14 = vld [vmem:[#allocation34_spill] sm:$0xff] }
 0x39b   : > { %v3021_v51 = vsub.f32 %v2534_v49, %v9115_v33  ;;  %v9134_v33 = vld [vmem:[#allocation92_spill] sm:$0xff] }
 0x39c   : > { %v7908_v24 = vadd.f32 %v3020_v27, %v9118_v62  ;;  %v9133_v27 = vsub.f32 %v9131_v13, %v9132_v14 }
 0x39d   : > { %v7913_v11 = vadd.f32 %v3021_v51, %v9120_v41  ;;  %v2538_v5 = vpop.f32.mrb[158].mxu1  ;;  %v9135_v51 = vld [vmem:[#allocation35_spill] sm:$0xff] }
 0x39e   : > { %v3022_v21 = vsub.f32 %v2538_v5, %v9121_v3  ;;  %v2540_v22 = vpop.f32.mrb[159].mxu1  ;;  %v9136_v39 = vsub.f32 %v9134_v33, %v9135_v51  ;;  %v9138_v3 = vld [vmem:[#allocation128_spill] sm:$0xff] }
 0x39f   : > { %v3023_v54 = vsub.f32 %v2540_v22, %v9122_v25  ;;  %v9139_v22 = vld [vmem:[#allocation36_spill] sm:$0xff] }
 0x3a0   : > { %v7920_v53 = vadd.f32 %v3022_v21, %v9125_v9  ;;  %v9140_v25 = vsub.f32 %v7688_v20, %v9139_v22  ;;  %v9147_v20 = vld [vmem:[#allocation39_spill] sm:$0xff] }
 0x3a1   : > { %v7925_v2 = vadd.f32 %v3023_v54, %v9128_v45  ;;  %v2544_v18 = vpop.f32.mrb[160].mxu1  ;;  %v9148_v13 = vsub.f32 %v7703_v28, %v9147_v20  ;;  %v9157_v28 = vld [vmem:[#allocation148_spill] sm:$0xff] }
 0x3a2   : > { %v3024_v0 = vsub.f32 %v2544_v18, %v9129_v56  ;;  %v2546_v12 = vpop.f32.mrb[161].mxu1  ;;  %v9144_v56 = vld [vmem:[#allocation135_spill] sm:$0xff] }
 0x3a3   : > { %v3025_v43 = vsub.f32 %v2546_v12, %v9130_v52  ;;  %v9145_v12 = vld [vmem:[#allocation38_spill] sm:$0xff] }
 0x3a4   : > { %v7932_v49 = vadd.f32 %v3024_v0, %v9133_v27  ;;  %v9146_v52 = vsub.f32 %v7699_v7, %v9145_v12  ;;  %v9155_v7 = vld [vmem:[#allocation45_spill] sm:$0xff] }
 0x3a5   : > { %v7937_v1 = vadd.f32 %v3025_v43, %v9136_v39  ;;  %v2550_v62 = vpop.f32.mrb[162].mxu1  ;;  %v9150_v39 = vld [vmem:[#allocation144_spill] sm:$0xff] }
 0x3a6   : > { %v3026_v41 = vsub.f32 %v2550_v62, %v9137_v17  ;;  %v2552_v5 = vpop.f32.mrb[163].mxu1  ;;  %v9151_v17 = vld [vmem:[#allocation96_spill] sm:$0xff] }
 0x3a7   : > { %v3027_v21 = vsub.f32 %v2552_v5, %v9138_v3 }
 0x3a8   : > { %v7944_v54 = vadd.f32 %v3026_v41, %v9140_v25  ;;  %v9152_v41 = vld [vmem:[#allocation42_spill] sm:$0xff] }
 0x3a9   : > { %v7949_v9 = vadd.f32 %v3027_v21, %v9142_v48  ;;  %v2556_v63 = vpop.f32.mrb[164].mxu1  ;;  %v9153_v5 = vsub.f32 %v9151_v17, %v9152_v41  ;;  %v9154_v21 = vld [vmem:[#allocation98_spill] sm:$0xff]  ;;  %v9166_v17 = vld [vmem:[#allocation48_spill] sm:$0xff] }
 0x3aa   : > { %v3028_v45 = vsub.f32 %v2556_v63, %v9143_v36  ;;  %v2558_v18 = vpop.f32.mrb[165].mxu1  ;;  %v9156_v22 = vsub.f32 %v9154_v21, %v9155_v7  ;;  %v9158_v36 = vld [vmem:[#allocation150_spill] sm:$0xff]  ;;  %v9167_v41 = vsub.f32 %v7732_v6, %v9166_v17  ;;  %v9168_v21 = vld [vmem:[#allocation49_spill] sm:$0xff] }
 0x3ab   : > { %v3029_v0 = vsub.f32 %v2558_v18, %v9144_v56  ;;  %v9159_v18 = vld [vmem:[#allocation103_spill] sm:$0xff]  ;;  %v9160_v56 = vld [vmem:[#allocation46_spill] sm:$0xff]  ;;  %v9169_v7 = vsub.f32 %v7736_v4, %v9168_v21  ;;  %v3235_v4 = vadd.f32 0.0009, %v7817_v47  ;;  %v3238_v47 = vadd.f32 0.0009, %v7836_v46 }
 0x3ac   : > { %v7956_v43 = vadd.f32 %v3028_v45, %v9146_v52  ;;  %v9162_v52 = vld [vmem:[#allocation47_spill] sm:$0xff]  ;;  %v9172_v6 = vld [vmem:[#allocation50_spill] sm:$0xff]  ;;  %v3239_v21 = vadd.f32 0.0009, %v7841_v23  ;;  %v3242_v23 = vadd.f32 0.0009, %v7860_v59 }
 0x3ad   : > { %v7961_v14 = vadd.f32 %v3029_v0, %v9148_v13  ;;  %v2562_v27 = vpop.f32.mrb[166].mxu1  ;;  %v9161_v0 = vsub.f32 %v9159_v18, %v9160_v56  ;;  %v9163_v20 = vsub.f32 %v7725_v37, %v9162_v52  ;;  %v3232_v37 = vadd.f32 0.0009, %v7800_v58  ;;  %v9178_v17 = vld [vmem:[#allocation54_spill] sm:$0xff] }
 0x3ae   : > { %v3030_v33 = vsub.f32 %v2562_v27, %v9149_v16  ;;  %v2564_v51 = vpop.f32.mrb[167].mxu1  ;;  %v9164_v16 = vld [vmem:[#allocation154_spill] sm:$0xff]  ;;  %v3234_v56 = vadd.f32 0.0009, %v7812_v8  ;;  %v3237_v8 = vadd.f32 0.0009, %v7829_v44 }
 0x3af   : > { %v3031_v62 = vsub.f32 %v2564_v51, %v9150_v39  ;;  %v9165_v39 = vld [vmem:[#allocation159_spill] sm:$0xff]  ;;  %4684 = vrcp.f32 %v3232_v37  ;;  %v3240_v44 = vadd.f32 0.0009, %v7848_v34  ;;  %v9185_v34 = vld [vmem:[#allocation104_spill] sm:$0xff] }
 0x3b0   : > { %v7968_v3 = vadd.f32 %v3030_v33, %v9153_v5  ;;  %v9181_v37 = vld [vmem:[#allocation171_spill] sm:$0xff] }
 0x3b1   : > { %v7973_v25 = vadd.f32 %v3031_v62, %v9156_v22 }
 0x3b2   : > { %v2568_v50 = vpop.f32.mrb[168].mxu1 }
 0x3b3   : > { %v3032_v48 = vsub.f32 %v2568_v50, %v9157_v28  ;;  %v2570_v63 = vpop.f32.mrb[169].mxu1  ;;  %v9170_v28 = vld [vmem:[#allocation160_spill] sm:$0xff] }
 0x3b4   : > { %v3033_v45 = vsub.f32 %v2570_v63, %v9158_v36  ;;  %v3233_v36 = vadd.f32 0.0009, %v7805_v29  ;;  %v3236_v29 = vadd.f32 0.0009, %v7824_v61  ;;  %v9180_v61 = vsub.f32 %v7758_v40, %v6809_v35 }
 0x3b5   : > { %v7980_v12 = vadd.f32 %v3032_v48, %v9161_v0  ;;  %v9173_v0 = vsub.f32 %v7743_v31, %v9172_v6  ;;  %v9177_v31 = vld [vmem:[#allocation168_spill] sm:$0xff] }
 0x3b6   : > { %v7985_v13 = vadd.f32 %v3033_v45, %v9163_v20  ;;  %v2574_v27 = vpop.f32.mrb[170].mxu1  ;;  %v9171_v45 = vld [vmem:[#allocation164_spill] sm:$0xff]  ;;  %v9174_v20 = vld [vmem:[#allocation51_spill] sm:$0xff]  ;;  %4686 = vrcp.f32 %v3233_v36  ;;  %v9183_v36 = vld [vmem:[#allocation57_spill] sm:$0xff] }
 0x3b7   : > { %v3034_v33 = vsub.f32 %v2574_v27, %v9164_v16  ;;  %v2576_v51 = vpop.f32.mrb[171].mxu1  ;;  %v9175_v27 = vsub.f32 %v7747_v42, %v9174_v20  ;;  %4688 = vrcp.f32 %v3234_v56  ;;  %v9179_v42 = vsub.f32 %v7754_v15, %v9178_v17 }
 0x3b8   : > { %v3035_v62 = vsub.f32 %v2576_v51, %v9165_v39  ;;  %4690 = vrcp.f32 %v3235_v4  ;;  %v3241_v15 = vadd.f32 0.0009, %v7853_v57  ;;  %v9184_v35 = vsub.f32 %v7763_v38, %v9183_v36  ;;  %v9188_v4 = vld [vmem:[#allocation176_spill] sm:$0xff] }
 0x3b9   : > { %v7992_v5 = vadd.f32 %v3034_v33, %v9167_v41  ;;  %v9176_v33 = vld [vmem:[#allocation165_spill] sm:$0xff]  ;;  %4692 = vrcp.f32 %v3236_v29  ;;  %v3244_v57 = vadd.f32 0.0009, %v7872_v30  ;;  %v3245_v38 = vadd.f32 0.0009, %v7877_v10  ;;  %v8051_v29 = vpop.eup %4684 }
 0x3ba   : > { %v7997_v22 = vadd.f32 %v3035_v62, %v9169_v7  ;;  %v2580_v50 = vpop.f32.mrb[172].mxu1  ;;  %4694 = vrcp.f32 %v3237_v8  ;;  %v3247_v30 = vadd.f32 0.0009, %v7889_v60  ;;  %v9197_v60 = vld [vmem:[#allocation186_spill] sm:$0xff] }
 0x3bb   : > { %v3036_v48 = vsub.f32 %v2580_v50, %v9170_v28  ;;  %v2582_v63 = vpop.f32.mrb[173].mxu1  ;;  %4696 = vrcp.f32 %v3238_v47  ;;  %v9194_v47 = vld [vmem:[#allocation16_spill] sm:$0xff] }
 0x3bc   : > { %v3037_v18 = vsub.f32 %v2582_v63, %v9171_v45  ;;  %4698 = vrcp.f32 %v3239_v21  ;;  %v3243_v45 = vadd.f32 0.0009, %v7865_v55  ;;  %v3246_v55 = vadd.f32 0.0009, %v7884_v19 }
 0x3bd   : > { %v8007_v52 = vadd.f32 %v3036_v48, %v9173_v0  ;;  %v9182_v48 = vld [vmem:[#allocation173_spill] sm:$0xff]  ;;  %4700 = vrcp.f32 %v3240_v44  ;;  %v3248_v19 = vadd.f32 0.0009, %v7896_v26 }
 0x3be   : > { %v8013_v58 = vadd.f32 %v3037_v18, %v9175_v27  ;;  %v2586_v16 = vpop.f32.mrb[174].mxu1  ;;  %v9186_v18 = vld [vmem:[#allocation60_spill] sm:$0xff]  ;;  %4702 = vrcp.f32 %v3241_v15  ;;  %v9189_v27 = vld [vmem:[#allocation179_spill] sm:$0xff] }
 0x3bf   : > { %v3038_v51 = vsub.f32 %v2586_v16, %v9176_v33  ;;  %v2588_v39 = vpop.f32.mrb[175].mxu1  ;;  %v9187_v56 = vsub.f32 %v9185_v34, %v9186_v18  ;;  %4704 = vrcp.f32 %v3242_v23  ;;  %v9190_v33 = vld [vmem:[#allocation108_spill] sm:$0xff]  ;;  %v9199_v23 = vld [vmem:[#allocation17_spill] sm:$0xff]  ;;  %v9202_v18 = vld [vmem:[#allocation18_spill] sm:$0xff] }
 0x3c0   : > { %v3039_v62 = vsub.f32 %v2588_v39, %v9177_v31  ;;  %v8059_v31 = vpop.eup %4686  ;;  %4706 = vrcp.f32 %v3243_v45  ;;  %v3251_v45 = vadd.f32 0.0009, %v7913_v11  ;;  %v9201_v34 = vld [vmem:[#allocation117_spill] sm:$0xff]  ;;  %v9205_v11 = vld [vmem:[#allocation191_spill] sm:$0xff] }
 0x3c1   : > { %v8023_v41 = vadd.f32 %v3038_v51, %v9179_v42  ;;  %v9191_v51 = vld [vmem:[#allocation87_spill] sm:$0xff]  ;;  %v8067_v21 = vpop.eup %4688  ;;  %4708 = vrcp.f32 %v3244_v57 }
 0x3c2   : > { %v8029_v7 = vadd.f32 %v3039_v62, %v9180_v61  ;;  %v9192_v39 = vsub.f32 %v9190_v33, %v9191_v51  ;;  %v9193_v62 = vld [vmem:[#allocation110_spill] sm:$0xff]  ;;  %v9196_v61 = vld [vmem:[#allocation181_spill] sm:$0xff]  ;;  %4710 = vrcp.f32 %v3245_v38  ;;  %v3254_v33 = vadd.f32 0.0009, %v7932_v49 }
 0x3c3   : > { %v9195_v10 = vsub.f32 %v9193_v62, %v9194_v47  ;;  %4712 = vrcp.f32 %v3246_v55  ;;  %v9206_v51 = vld [vmem:[#allocation121_spill] sm:$0xff]  ;;  %v3255_v47 = vadd.f32 0.0009, %v7937_v1  ;;  %v3256_v49 = vadd.f32 0.0009, %v7944_v54 }
 0x3c4   : > { %v2592_v50 = vpop.f32.mrb[176].mxu1  ;;  %4714 = vrcp.f32 %v3247_v30  ;;  %v3258_v1 = vadd.f32 0.0009, %v7956_v43  ;;  %v3260_v54 = vadd.f32 0.0009, %v7968_v3 }
 0x3c5   : > { %v3040_v28 = vsub.f32 %v2592_v50, %v9181_v37  ;;  %v2594_v46 = vpop.f32.mrb[177].mxu1  ;;  %v8071_v37 = vpop.eup %4690  ;;  %4716 = vrcp.f32 %v3248_v19  ;;  %v3262_v43 = vadd.f32 0.0009, %v7980_v12  ;;  %v3264_v3 = vadd.f32 0.0009, %v7992_v5 }
 0x3c6   : > { %v3041_v63 = vsub.f32 %v2594_v46, %v9182_v48  ;;  %v8075_v15 = vpop.eup %4692  ;;  %v3250_v48 = vadd.f32 0.0009, %v7908_v24  ;;  %v3252_v24 = vadd.f32 0.0009, %v7920_v53  ;;  %v3267_v5 = vadd.f32 0.0009, %v8013_v58 }
 0x3c7   : > { %v8039_v40 = vadd.f32 %v3040_v28, %v9184_v35  ;;  %v3249_v28 = vadd.f32 0.0009, %v7901_v32  ;;  %v8083_v26 = vpop.eup %4694  ;;  %v9203_v32 = vsub.f32 %v9201_v34, %v9202_v18 }
 0x3c8   : > { %v8045_v6 = vadd.f32 %v3041_v63, %v9187_v56  ;;  %v2598_v0 = vpop.f32.mrb[178].mxu1  ;;  %v9198_v63 = vld [vmem:[#allocation116_spill] sm:$0xff]  ;;  %v8091_v57 = vpop.eup %4696 }
 0x3c9   : > { %v3042_v20 = vsub.f32 %v2598_v0, %v9188_v4  ;;  %v2600_v59 = vpop.f32.mrb[179].mxu1  ;;  %v9200_v36 = vsub.f32 %v9198_v63, %v9199_v23  ;;  %v9204_v4 = vld [vmem:[#allocation188_spill] sm:$0xff]  ;;  %v8095_v38 = vpop.eup %4698  ;;  %4718 = vrcp.f32 %v3249_v28  ;;  %v3270_v58 = vadd.f32 0.0009, %v8039_v40 }
 0x3ca   : > { %v3043_v16 = vsub.f32 %v2600_v59, %v9189_v27  ;;  %v3253_v27 = vadd.f32 0.0009, %v7925_v2  ;;  %v8099_v55 = vpop.eup %4700  ;;  %4720 = vrcp.f32 %v3250_v48 }
 0x3cb   : > { %v8057_v8 = vadd.f32 %v3042_v20, %v9192_v39  ;;  %v9207_v39 = vld [vmem:[#allocation19_spill] sm:$0xff]  ;;  %v8107_v53 = vpop.eup %4702  ;;  %4722 = vrcp.f32 %v3251_v45 }
 0x3cc   : > { %v8065_v17 = vadd.f32 %v3043_v16, %v9195_v10  ;;  %v2604_v42 = vpop.f32.mrb[180].mxu1  ;;  %v9208_v30 = vsub.f32 %v9206_v51, %v9207_v39  ;;  %v9209_v10 = vld [vmem:[#allocation124_spill] sm:$0xff]  ;;  %4724 = vrcp.f32 %v3252_v24 }
 0x3cd   : > { %v3044_v50 = vsub.f32 %v2604_v42, %v9196_v61  ;;  %v2606_v44 = vpop.f32.mrb[181].mxu1  ;;  %v9210_v42 = vld [vmem:[#allocation22_spill] sm:$0xff]  ;;  %v8115_v61 = vpop.eup %4704  ;;  %4726 = vrcp.f32 %v3253_v27 }
 0x3ce   : > { %v3045_v46 = vsub.f32 %v2606_v44, %v9197_v60  ;;  %v9211_v2 = vsub.f32 %v9209_v10, %v9210_v42  ;;  %v3257_v44 = vadd.f32 0.0009, %v7949_v9  ;;  %4728 = vrcp.f32 %v3254_v33 }
 0x3cf   : > { %v8081_v35 = vadd.f32 %v3044_v50, %v9200_v36  ;;  %v8118_v50 = vpop.eup %4706  ;;  %4730 = vrcp.f32 %v3255_v47  ;;  %v3261_v9 = vadd.f32 0.0009, %v7973_v25  ;;  %v3265_v25 = vadd.f32 0.0009, %v7997_v22 }
 0x3d0   : > { %v8089_v56 = vadd.f32 %v3045_v46, %v9203_v32  ;;  %v2610_v0 = vpop.f32.mrb[182].mxu1  ;;  %v8121_v28 = vpop.eup %4708  ;;  %v3259_v46 = vadd.f32 0.0009, %v7961_v14  ;;  %4732 = vrcp.f32 %v3256_v49  ;;  %v3263_v14 = vadd.f32 0.0009, %v7985_v13  ;;  %v9212_v32 = vld [vmem:[#allocation41_spill] sm:$0xff] }
 0x3d1   : > { %v3046_v20 = vsub.f32 %v2610_v0, %v9204_v4  ;;  %v2612_v59 = vpop.f32.mrb[183].mxu1  ;;  %v8124_v60 = vpop.eup %4710  ;;  %4734 = vrcp.f32 %v3257_v44  ;;  %v3266_v4 = vadd.f32 0.0009, %v8007_v52  ;;  %v9213_v13 = vld [vmem:[#allocation44_spill] sm:$0xff]  ;;  %v3268_v22 = vadd.f32 0.0009, %v8023_v41 }
 0x3d2   : > { %v3047_v16 = vsub.f32 %v2612_v59, %v9205_v11  ;;  %v8127_v48 = vpop.eup %4712  ;;  %4736 = vrcp.f32 %v3258_v1  ;;  %v3269_v52 = vadd.f32 0.0009, %v8029_v7  ;;  %v9215_v49 = vld [vmem:[#allocation56_spill] sm:$0xff]  ;;  %v3271_v1 = vadd.f32 0.0009, %v8045_v6 }
 0x3d3   : > { %v8105_v62 = vadd.f32 %v3046_v20, %v9208_v30  ;;  %v8130_v63 = vpop.eup %4714  ;;  %4738 = vrcp.f32 %v3259_v46  ;;  %v9214_v30 = vld [vmem:[#allocation53_spill] sm:$0xff] }
 0x3d4   : > { %v8113_v19 = vadd.f32 %v3047_v16, %v9211_v2  ;;  %v8133_v23 = vpop.eup %4716  ;;  %4740 = vrcp.f32 %v3260_v54 }
 0x3d5   : > { %v8136_v36 = vpop.eup %4718  ;;  %4742 = vrcp.f32 %v3261_v9 }
 0x3d6   : > { %v8139_v45 = vpop.eup %4720  ;;  %4744 = vrcp.f32 %v3262_v43 }
 0x3d7   : > { %v8142_v18 = vpop.eup %4722  ;;  %4746 = vrcp.f32 %v3263_v14 }
 0x3d8   : > { %v8146_v12 = vpop.eup %4724  ;;  %4748 = vrcp.f32 %v3264_v3  ;;  %v9216_v3 = vld [vmem:[#allocation68_spill] sm:$0xff] }
 0x3d9   : > { %v8150_v59 = vpop.eup %4726  ;;  %4750 = vrcp.f32 %v3265_v25 }
 0x3da   : > { %v8153_v11 = vpop.eup %4728  ;;  %4752 = vrcp.f32 %v3266_v4 }
 0x3db   : > { %v8156_v51 = vpop.eup %4730  ;;  %4754 = vrcp.f32 %v3267_v5 }
 0x3dc   : > { %v8160_v42 = vpop.eup %4732  ;;  %4756 = vrcp.f32 %v3268_v22 }
 0x3dd   : > { %v2681_v34 = vpop.f32.mrb[184].mxu1  ;;  %v8164_v41 = vpop.eup %4734  ;;  %4758 = vrcp.f32 %v3269_v52  ;;  %v8186_v52 = vadd.f32 0.0009, %v8065_v17 }
 0x3de   : > { %v3048_v0 = vsub.f32 %v2681_v34, %v9212_v32  ;;  %v2683_v24 = vpop.f32.mrb[185].mxu1  ;;  %v8168_v54 = vpop.eup %4736  ;;  %v9217_v32 = vld [vmem:[#allocation59_spill] sm:$0xff]  ;;  %4760 = vrcp.f32 %v3270_v58 }
 0x3df   : > { %v3049_v20 = vsub.f32 %v2683_v24, %v9213_v13  ;;  %v8171_v40 = vpop.eup %4738  ;;  %4762 = vrcp.f32 %v3271_v1  ;;  %v9221_v1 = vld [vmem:[#allocation64_spill] sm:$0xff] }
 0x3e0   : > { %v3094_v27 = vmul.f32 2.0, %v3048_v0  ;;  %v8175_v24 = vpop.eup %4740 }
 0x3e1   : > { %v3095_v16 = vmul.f32 2.0, %v3049_v20  ;;  %v2687_v33 = vpop.f32.mrb[186].mxu1  ;;  %v9219_v20 = vld [vmem:[#allocation62_spill] sm:$0xff]  ;;  %v8179_v5 = vpop.eup %4742 }
 0x3e2   : > { %v3140_v39 = vadd.f32 0.0009, %v3094_v27  ;;  %v3050_v47 = vsub.f32 %v2687_v33, %v9214_v30  ;;  %v2689_v10 = vpop.f32.mrb[187].mxu1  ;;  %v3272_v27 = vadd.f32 0.0009, %v8057_v8  ;;  %v8183_v33 = vpop.eup %4744 }
 0x3e3   : > { %v3141_v2 = vadd.f32 0.0009, %v3095_v16  ;;  %v3051_v44 = vsub.f32 %v2689_v10, %v9215_v49  ;;  %v8190_v58 = vpop.eup %4746 }
 0x3e4   : > { %v3279_v46 = vmul.f32 %v8051_v29, %v3140_v39  ;;  %v3096_v7 = vmul.f32 2.0, %v3050_v47  ;;  %v9218_v29 = vld [vmem:[#allocation70_spill] sm:$0xff]  ;;  %4764 = vrcp.f32 %v3272_v27 }
 0x3e5   : > { %v3281_v9 = vmul.f32 %v8059_v31, %v3141_v2  ;;  %v3097_v43 = vmul.f32 2.0, %v3051_v44  ;;  %v2693_v14 = vpop.f32.mrb[188].mxu1  ;;  %v9220_v2 = vld [vmem:[#allocation75_spill] sm:$0xff]  ;;  %v9231_v27 = vld [vmem:[#allocation74_spill] sm:$0xff]  ;;  %4766 = vrcp.f32 %v8186_v52  ;;  %v8268_v52 = vadd.f32 0.0009, %v8089_v56 }
 0x3e6   : > { %v3646_v34 = vmul.f32 %v9216_v3, %v3279_v46  ;;  %v3142_v25 = vadd.f32 0.0009, %v3096_v7  ;;  %v3052_v0 = vsub.f32 %v2693_v14, %v9217_v32  ;;  %v2695_v6 = vpop.f32.mrb[189].mxu1  ;;  %v9222_v14 = vld [vmem:[#allocation76_spill] sm:$0xff] }
 0x3e7   : > { %v3647_v4 = vmul.f32 %v9218_v29, %v3281_v9  ;;  %v3143_v13 = vadd.f32 0.0009, %v3097_v43  ;;  %v3053_v31 = vsub.f32 %v2695_v6, %v9219_v20  ;;  %v3827_v39 = vsel %vm3722_vm1, %v3281_v9, 0.0  ;;  %v8194_v43 = vpop.eup %4748 }
 0x3e8   : > { %v3283_v22 = vmul.f32 %v8067_v21, %v3142_v25  ;;  %v3098_v16 = vmul.f32 2.0, %v3052_v0  ;;  %v9223_v25 = vld [vmem:[#allocation66_spill] sm:$0xff]  ;;  %v8199_v32 = vpop.eup %4750 }
 0x3e9   : > { %v3285_v30 = vmul.f32 %v8071_v37, %v3143_v13  ;;  %v3099_v47 = vmul.f32 2.0, %v3053_v31  ;;  %v8202_v13 = vpop.eup %4752  ;;  %v3723_v20 = vsel %vm3722_vm1, %v3647_v4, 0.0 }
 0x3ea   : > { %v2699_v10 = vpop.f32.mrb[190].mxu1  ;;  %v3648_v49 = vmul.f32 %v9220_v2, %v3283_v22  ;;  %v3798_v44 = vadd.f32 %v3283_v22, %v3279_v46  ;;  %v3144_v8 = vadd.f32 0.0009, %v3098_v16  ;;  %v9224_v2 = vld [vmem:[#allocation81_spill] sm:$0xff] }
 0x3eb   : > { %v3054_v21 = vsub.f32 %v2699_v10, %v9221_v1  ;;  %v2701_v7 = vpop.f32.mrb[191].mxu1  ;;  %v3649_v17 = vmul.f32 %v9222_v14, %v3285_v30  ;;  %v3828_v3 = vsel %vm3722_vm1, %v3285_v30, 0.0  ;;  %v3145_v9 = vadd.f32 0.0009, %v3099_v47  ;;  %v8207_v47 = vpop.eup %4754  ;;  %v9226_v14 = vld [vmem:[#allocation69_spill] sm:$0xff] }
 0x3ec   : > { %v3055_v37 = vsub.f32 %v2701_v7, %v9223_v25  ;;  %v3692_v0 = vadd.f32 %v3648_v49, %v3646_v34  ;;  %v3829_v6 = vadd.f32 %v3828_v3, %v3827_v39  ;;  %v3287_v29 = vmul.f32 %v8075_v15, %v3144_v8  ;;  %v8210_v15 = vpop.eup %4756  ;;  %v9225_v8 = vld [vmem:[#allocation86_spill] sm:$0xff] }
 0x3ed   : > { %v3100_v46 = vmul.f32 2.0, %v3054_v21  ;;  %v3724_v31 = vsel %vm3722_vm1, %v3649_v17, 0.0  ;;  %v3289_v22 = vmul.f32 %v8083_v26, %v3145_v9  ;;  %v8215_v26 = vpop.eup %4758 }
 0x3ee   : > { %v3101_v16 = vmul.f32 2.0, %v3055_v37  ;;  %v2705_v30 = vpop.f32.mrb[192].mxu1  ;;  %v3725_v10 = vadd.f32 %v3724_v31, %v3723_v20  ;;  %v3650_v1 = vmul.f32 %v9224_v2, %v3287_v29  ;;  %v3799_v34 = vadd.f32 %v3798_v44, %v3287_v29  ;;  %v9227_v37 = vld [vmem:[#allocation72_spill] sm:$0xff]  ;;  %v8219_v44 = vpop.eup %4760  ;;  %v9229_v2 = vld [vmem:[#allocation89_spill] sm:$0xff] }
 0x3ef   : > { %v3146_v39 = vadd.f32 0.0009, %v3100_v46  ;;  %v2707_v49 = vpop.f32.mrb[193].mxu1  ;;  %v3651_v21 = vmul.f32 %v9225_v8, %v3289_v22  ;;  %v3830_v4 = vsel %vm3722_vm1, %v3289_v22, 0.0  ;;  %v3056_v17 = vsub.f32 %v2705_v30, %v9226_v14 }
 0x3f0   : > { %v3147_v7 = vadd.f32 0.0009, %v3101_v16  ;;  %v3693_v3 = vadd.f32 %v3692_v0, %v3650_v1  ;;  %v3831_v9 = vadd.f32 %v3830_v4, %v3829_v6  ;;  %v3057_v20 = vsub.f32 %v2707_v49, %v9227_v37  ;;  %v8223_v16 = vpop.eup %4762 }
 0x3f1   : > { %v3291_v25 = vmul.f32 %v8091_v57, %v3146_v39  ;;  %v3726_v29 = vsel %vm3722_vm1, %v3651_v21, 0.0  ;;  %v3102_v31 = vmul.f32 2.0, %v3056_v17  ;;  %9228 = vst [vmem:[#allocation130_spill] sm:$0xff] %v8223_v16  ;;  %v9230_v57 = vld [vmem:[#allocation93_spill] sm:$0xff]  ;;  %v8231_v16 = vadd.f32 0.0009, %v8081_v35 }
 0x3f2   : > { %v3293_v46 = vmul.f32 %v8095_v38, %v3147_v7  ;;  %v2711_v22 = vpop.f32.mrb[194].mxu1  ;;  %v3727_v30 = vadd.f32 %v3726_v29, %v3725_v10  ;;  %v3103_v6 = vmul.f32 2.0, %v3057_v20  ;;  %v9232_v7 = vld [vmem:[#allocation78_spill] sm:$0xff] }
 0x3f3   : > { %v3652_v8 = vmul.f32 %v9229_v2, %v3291_v25  ;;  %v3800_v0 = vadd.f32 %v3799_v34, %v3291_v25  ;;  %v2713_v1 = vpop.f32.mrb[195].mxu1  ;;  %v3148_v4 = vadd.f32 0.0009, %v3102_v31  ;;  %v3058_v14 = vsub.f32 %v2711_v22, %v9231_v27  ;;  %v9233_v2 = vld [vmem:[#allocation83_spill] sm:$0xff] }
 0x3f4   : > { %v3653_v39 = vmul.f32 %v9230_v57, %v3293_v46  ;;  %v3832_v49 = vsel %vm3722_vm1, %v3293_v46, 0.0  ;;  %v3149_v38 = vadd.f32 0.0009, %v3103_v6  ;;  %v3059_v17 = vsub.f32 %v2713_v1, %v9232_v7  ;;  %v9235_v57 = vld [vmem:[#allocation85_spill] sm:$0xff] }
 0x3f5   : > { %v3694_v21 = vadd.f32 %v3693_v3, %v3652_v8  ;;  %v3833_v37 = vadd.f32 %v3832_v49, %v3831_v9  ;;  %v3295_v34 = vmul.f32 %v8099_v55, %v3148_v4  ;;  %v3104_v25 = vmul.f32 2.0, %v3058_v14  ;;  %v9234_v9 = vld [vmem:[#allocation97_spill] sm:$0xff]  ;;  %v9236_v49 = vld [vmem:[#allocation99_spill] sm:$0xff] }
 0x3f6   : > { %v3728_v10 = vsel %vm3722_vm1, %v3653_v39, 0.0  ;;  %v2717_v20 = vpop.f32.mrb[196].mxu1  ;;  %v3297_v46 = vmul.f32 %v8107_v53, %v3149_v38  ;;  %v3105_v31 = vmul.f32 2.0, %v3059_v17  ;;  %4768 = vrcp.f32 %v8231_v16 }
 0x3f7   : > { %v3729_v29 = vadd.f32 %v3728_v10, %v3727_v30  ;;  %v3060_v22 = vsub.f32 %v2717_v20, %v9233_v2  ;;  %v2719_v3 = vpop.f32.mrb[197].mxu1  ;;  %v3654_v8 = vmul.f32 %v9234_v9, %v3295_v34  ;;  %v3801_v6 = vadd.f32 %v3800_v0, %v3295_v34  ;;  %v9237_v34 = vld [vmem:[#allocation91_spill] sm:$0xff]  ;;  %v8245_v2 = vpop.eup %4764 }
 0x3f8   : > { %v3150_v1 = vadd.f32 0.0009, %v3104_v25  ;;  %v3061_v35 = vsub.f32 %v2719_v3, %v9235_v57  ;;  %v3655_v27 = vmul.f32 %v9236_v49, %v3297_v46  ;;  %v3834_v39 = vsel %vm3722_vm1, %v3297_v46, 0.0  ;;  %v9238_v46 = vld [vmem:[#allocation105_spill] sm:$0xff] }
 0x3f9   : > { %v3151_v55 = vadd.f32 0.0009, %v3105_v31  ;;  %v3106_v4 = vmul.f32 2.0, %v3060_v22  ;;  %v3695_v14 = vadd.f32 %v3694_v21, %v3654_v8  ;;  %v3835_v30 = vadd.f32 %v3834_v39, %v3833_v37  ;;  %v9239_v37 = vld [vmem:[#allocation106_spill] sm:$0xff]  ;;  %v9240_v49 = vld [vmem:[#allocation5_spill] sm:$0xff] }
 0x3fa   : > { %v3299_v53 = vmul.f32 %v8115_v61, %v3150_v1  ;;  %v3107_v38 = vmul.f32 2.0, %v3061_v35  ;;  %v2723_v7 = vpop.f32.mrb[198].mxu1  ;;  %v3730_v17 = vsel %vm3722_vm1, %v3655_v27, 0.0  ;;  %4770 = vrcp.f32 %v8268_v52 }
 0x3fb   : > { %v3301_v10 = vmul.f32 %v8118_v50, %v3151_v55  ;;  %v3152_v0 = vadd.f32 0.0009, %v3106_v4  ;;  %v3062_v25 = vsub.f32 %v2723_v7, %v9237_v34  ;;  %v2725_v20 = vpop.f32.mrb[199].mxu1  ;;  %v3731_v3 = vadd.f32 %v3730_v17, %v3729_v29  ;;  %v9241_v55 = vld [vmem:[#allocation109_spill] sm:$0xff]  ;;  %v9242_v17 = vld [vmem:[#allocation114_spill] sm:$0xff] }
 0x3fc   : > { %v3656_v31 = vmul.f32 %v9238_v46, %v3299_v53  ;;  %v3802_v22 = vadd.f32 %v3801_v6, %v3299_v53  ;;  %v3153_v21 = vadd.f32 0.0009, %v3107_v38  ;;  %v3063_v27 = vsub.f32 %v2725_v20, %v9240_v49  ;;  %v9243_v34 = vld [vmem:[#allocation6_spill] sm:$0xff]  ;;  %v9247_v49 = vld [vmem:[#allocation8_spill] sm:$0xff] }
 0x3fd   : > { %v3657_v9 = vmul.f32 %v9239_v37, %v3301_v10  ;;  %v3836_v61 = vsel %vm3722_vm1, %v3301_v10, 0.0  ;;  %v3303_v8 = vmul.f32 %v8121_v28, %v3152_v0  ;;  %v3108_v1 = vmul.f32 2.0, %v3062_v25  ;;  %v9245_v37 = vld [vmem:[#allocation118_spill] sm:$0xff] }
 0x3fe   : > { %v3696_v57 = vadd.f32 %v3695_v14, %v3656_v31  ;;  %v3837_v50 = vadd.f32 %v3836_v61, %v3835_v30  ;;  %v3305_v35 = vmul.f32 %v8124_v60, %v3153_v21  ;;  %v2729_v39 = vpop.f32.mrb[200].mxu1  ;;  %v3109_v0 = vmul.f32 2.0, %v3063_v27  ;;  %v9244_v31 = vld [vmem:[#allocation101_spill] sm:$0xff] }
 0x3ff   : > { %v3732_v29 = vsel %vm3722_vm1, %v3657_v9, 0.0  ;;  %v3658_v4 = vmul.f32 %v9241_v55, %v3303_v8  ;;  %v3803_v6 = vadd.f32 %v3802_v22, %v3303_v8  ;;  %v3154_v53 = vadd.f32 0.0009, %v3108_v1  ;;  %v2731_v38 = vpop.f32.mrb[201].mxu1  ;;  %v9248_v55 = vld [vmem:[#allocation122_spill] sm:$0xff] }
 0x400   : > { %v3733_v7 = vadd.f32 %v3732_v29, %v3731_v3  ;;  %v3659_v10 = vmul.f32 %v9242_v17, %v3305_v35  ;;  %v3838_v28 = vsel %vm3722_vm1, %v3305_v35, 0.0  ;;  %v3064_v25 = vsub.f32 %v2729_v39, %v9243_v34  ;;  %v9250_v34 = vld [vmem:[#allocation9_spill] sm:$0xff] }
 0x401   : > { %v3697_v14 = vadd.f32 %v3696_v57, %v3658_v4  ;;  %v3839_v30 = vadd.f32 %v3838_v28, %v3837_v50  ;;  %v3307_v60 = vmul.f32 %v8127_v48, %v3154_v53  ;;  %v3155_v46 = vadd.f32 0.0009, %v3109_v0  ;;  %v9246_v48 = vld [vmem:[#allocation7_spill] sm:$0xff]  ;;  %v9249_v28 = vld [vmem:[#allocation112_spill] sm:$0xff] }
 0x402   : > { %v3734_v20 = vsel %vm3722_vm1, %v3659_v10, 0.0  ;;  %v3065_v22 = vsub.f32 %v2731_v38, %v9244_v31  ;;  %v2735_v21 = vpop.f32.mrb[202].mxu1  ;;  %v3110_v8 = vmul.f32 2.0, %v3064_v25 }
 0x403   : > { %v3735_v3 = vadd.f32 %v3734_v20, %v3733_v7  ;;  %v3660_v9 = vmul.f32 %v9245_v37, %v3307_v60  ;;  %v3804_v61 = vadd.f32 %v3803_v6, %v3307_v60  ;;  %v2737_v1 = vpop.f32.mrb[203].mxu1  ;;  %v3309_v57 = vmul.f32 %v8130_v63, %v3155_v46  ;;  %v9251_v46 = vld [vmem:[#allocation125_spill] sm:$0xff]  ;;  %v9252_v37 = vld [vmem:[#allocation127_spill] sm:$0xff] }
 0x404   : > { %v3111_v50 = vmul.f32 2.0, %v3065_v22  ;;  %v3066_v35 = vsub.f32 %v2735_v21, %v9246_v48  ;;  %v3067_v27 = vsub.f32 %v2737_v1, %v9247_v49  ;;  %v3156_v29 = vadd.f32 0.0009, %v3110_v8  ;;  %v8282_v49 = vpop.eup %4766 }
 0x405   : > { %v3698_v39 = vadd.f32 %v3697_v14, %v3660_v9  ;;  %v3661_v4 = vmul.f32 %v9248_v55, %v3309_v57  ;;  %v3840_v6 = vsel %vm3722_vm1, %v3309_v57, 0.0 }
 0x406   : > { %v3157_v53 = vadd.f32 0.0009, %v3111_v50  ;;  %v3112_v38 = vmul.f32 2.0, %v3066_v35  ;;  %v2741_v7 = vpop.f32.mrb[204].mxu1  ;;  %v3841_v63 = vadd.f32 %v3840_v6, %v3839_v30  ;;  %v3311_v17 = vmul.f32 %v8133_v23, %v3156_v29  ;;  %v9254_v6 = vld [vmem:[#allocation137_spill] sm:$0xff] }
 0x407   : > { %v3113_v10 = vmul.f32 2.0, %v3067_v27  ;;  %v3068_v0 = vsub.f32 %v2741_v7, %v9249_v28  ;;  %v2743_v60 = vpop.f32.mrb[205].mxu1  ;;  %v3736_v16 = vsel %vm3722_vm1, %v3661_v4, 0.0  ;;  %v8290_v28 = vpop.eup %4768 }
 0x408   : > { %v3313_v56 = vmul.f32 %v8136_v36, %v3157_v53  ;;  %v3158_v14 = vadd.f32 0.0009, %v3112_v38  ;;  %v3069_v25 = vsub.f32 %v2743_v60, %v9250_v34  ;;  %v3737_v20 = vadd.f32 %v3736_v16, %v3735_v3  ;;  %v9256_v16 = vld [vmem:[#allocation123_spill] sm:$0xff] }
 0x409   : > { %v3662_v31 = vmul.f32 %v9251_v46, %v3311_v17  ;;  %v3805_v22 = vadd.f32 %v3804_v61, %v3311_v17  ;;  %v3159_v21 = vadd.f32 0.0009, %v3113_v10  ;;  %v3114_v8 = vmul.f32 2.0, %v3068_v0  ;;  %v9253_v61 = vld [vmem:[#allocation131_spill] sm:$0xff] }
 0x40a   : > { %v3663_v30 = vmul.f32 %v9252_v37, %v3313_v56  ;;  %v3842_v23 = vsel %vm3722_vm1, %v3313_v56, 0.0  ;;  %v3315_v9 = vmul.f32 %v8139_v45, %v3158_v14  ;;  %v2747_v1 = vpop.f32.mrb[206].mxu1  ;;  %v3115_v48 = vmul.f32 2.0, %v3069_v25  ;;  %v9257_v14 = vld [vmem:[#allocation10_spill] sm:$0xff]  ;;  %v9258_v46 = vld [vmem:[#allocation139_spill] sm:$0xff] }
 0x40b   : > { %v3699_v57 = vadd.f32 %v3698_v39, %v3662_v31  ;;  %v3843_v50 = vadd.f32 %v3842_v23, %v3841_v63  ;;  %v3317_v36 = vmul.f32 %v8142_v18, %v3159_v21  ;;  %v2749_v35 = vpop.f32.mrb[207].mxu1  ;;  %v3160_v55 = vadd.f32 0.0009, %v3114_v8  ;;  %v9255_v63 = vld [vmem:[#allocation119_spill] sm:$0xff] }
 0x40c   : > { %v3738_v3 = vsel %vm3722_vm1, %v3663_v30, 0.0  ;;  %v3664_v27 = vmul.f32 %v9253_v61, %v3315_v9  ;;  %v3806_v29 = vadd.f32 %v3805_v22, %v3315_v9  ;;  %v3161_v38 = vadd.f32 0.0009, %v3115_v48  ;;  %v9261_v61 = vld [vmem:[#allocation134_spill] sm:$0xff] }
 0x40d   : > { %v3739_v4 = vadd.f32 %v3738_v3, %v3737_v20  ;;  %v3665_v53 = vmul.f32 %v9254_v6, %v3317_v36  ;;  %v3844_v45 = vsel %vm3722_vm1, %v3317_v36, 0.0  ;;  %v3319_v18 = vmul.f32 %v8146_v12, %v3160_v55  ;;  %v9259_v12 = vld [vmem:[#allocation141_spill] sm:$0xff] }
 0x40e   : > { %v3700_v39 = vadd.f32 %v3699_v57, %v3664_v27  ;;  %v3845_v7 = vadd.f32 %v3844_v45, %v3843_v50  ;;  %v3070_v17 = vsub.f32 %v2747_v1, %v9255_v63  ;;  %v2753_v10 = vpop.f32.mrb[208].mxu1  ;;  %v3321_v60 = vmul.f32 %v8150_v59, %v3161_v38  ;;  %v9260_v59 = vld [vmem:[#allocation129_spill] sm:$0xff] }
 0x40f   : > { %v3740_v0 = vsel %vm3722_vm1, %v3665_v53, 0.0  ;;  %v3071_v56 = vsub.f32 %v2749_v35, %v9256_v16  ;;  %v3072_v34 = vsub.f32 %v2753_v10, %v9257_v14  ;;  %v2755_v25 = vpop.f32.mrb[209].mxu1  ;;  %v3666_v31 = vmul.f32 %v9258_v46, %v3319_v18  ;;  %v9262_v53 = vld [vmem:[#allocation11_spill] sm:$0xff]  ;;  %v9264_v16 = vld [vmem:[#allocation152_spill] sm:$0xff] }
 0x410   : > { %v3741_v20 = vadd.f32 %v3740_v0, %v3739_v4  ;;  %v3807_v22 = vadd.f32 %v3806_v29, %v3319_v18  ;;  %v3116_v21 = vmul.f32 2.0, %v3070_v17  ;;  %v3667_v37 = vmul.f32 %v9259_v12, %v3321_v60  ;;  %v9263_v18 = vld [vmem:[#allocation147_spill] sm:$0xff]  ;;  %v9265_v14 = vld [vmem:[#allocation156_spill] sm:$0xff]  ;;  %v9266_v12 = vld [vmem:[#allocation142_spill] sm:$0xff] }
 0x411   : > { %v3846_v30 = vsel %vm3722_vm1, %v3321_v60, 0.0  ;;  %v3117_v23 = vmul.f32 2.0, %v3071_v56  ;;  %v3118_v9 = vmul.f32 2.0, %v3072_v34  ;;  %v3701_v8 = vadd.f32 %v3700_v39, %v3666_v31 }
 0x412   : > { %v3847_v1 = vadd.f32 %v3846_v30, %v3845_v7  ;;  %v3162_v57 = vadd.f32 0.0009, %v3116_v21  ;;  %v3073_v50 = vsub.f32 %v2755_v25, %v9260_v59  ;;  %v2759_v36 = vpop.f32.mrb[210].mxu1  ;;  %v3742_v48 = vsel %vm3722_vm1, %v3667_v37, 0.0 }
 0x413   : > { %v3163_v35 = vadd.f32 0.0009, %v3117_v23  ;;  %v3164_v3 = vadd.f32 0.0009, %v3118_v9  ;;  %v3074_v27 = vsub.f32 %v2759_v36, %v9261_v61  ;;  %v2761_v29 = vpop.f32.mrb[211].mxu1  ;;  %v3743_v55 = vadd.f32 %v3742_v48, %v3741_v20  ;;  %v9267_v9 = vld [vmem:[#allocation158_spill] sm:$0xff] }
 0x414   : > { %v3323_v4 = vmul.f32 %v8153_v11, %v3162_v57  ;;  %v3119_v6 = vmul.f32 2.0, %v3073_v50  ;;  %v3075_v45 = vsub.f32 %v2761_v29, %v9262_v53  ;;  %v9269_v61 = vld [vmem:[#allocation145_spill] sm:$0xff]  ;;  %v9271_v53 = vld [vmem:[#allocation163_spill] sm:$0xff] }
 0x415   : > { %v3325_v38 = vmul.f32 %v8156_v51, %v3163_v35  ;;  %v3327_v39 = vmul.f32 %v8160_v42, %v3164_v3  ;;  %v3120_v7 = vmul.f32 2.0, %v3074_v27  ;;  %v9270_v29 = vld [vmem:[#allocation149_spill] sm:$0xff] }
 0x416   : > { %v3668_v63 = vmul.f32 %v9263_v18, %v3323_v4  ;;  %v3808_v17 = vadd.f32 %v3807_v22, %v3323_v4  ;;  %v3165_v10 = vadd.f32 0.0009, %v3119_v6  ;;  %v3121_v0 = vmul.f32 2.0, %v3075_v45  ;;  %v2765_v60 = vpop.f32.mrb[212].mxu1 }
 0x417   : > { %v3669_v56 = vmul.f32 %v9264_v16, %v3325_v38  ;;  %v3848_v11 = vsel %vm3722_vm1, %v3325_v38, 0.0  ;;  %v3670_v34 = vmul.f32 %v9265_v14, %v3327_v39  ;;  %v3166_v25 = vadd.f32 0.0009, %v3120_v7  ;;  %v2767_v20 = vpop.f32.mrb[213].mxu1 }
 0x418   : > { %v3702_v52 = vadd.f32 %v3701_v8, %v3668_v63  ;;  %v3849_v46 = vadd.f32 %v3848_v11, %v3847_v1  ;;  %v3809_v51 = vadd.f32 %v3808_v17, %v3327_v39  ;;  %v3329_v42 = vmul.f32 %v8164_v41, %v3165_v10  ;;  %v9268_v8 = vld [vmem:[#allocation161_spill] sm:$0xff] }
 0x419   : > { %v3744_v31 = vsel %vm3722_vm1, %v3669_v56, 0.0  ;;  %v3331_v22 = vmul.f32 %v8168_v54, %v3166_v25  ;;  %v3167_v21 = vadd.f32 0.0009, %v3121_v0  ;;  %v3076_v37 = vsub.f32 %v2765_v60, %v9266_v12  ;;  %v9272_v60 = vld [vmem:[#allocation12_spill] sm:$0xff]  ;;  %v9273_v56 = vld [vmem:[#allocation155_spill] sm:$0xff] }
 0x41a   : > { %v3745_v30 = vadd.f32 %v3744_v31, %v3743_v55  ;;  %v3703_v23 = vadd.f32 %v3702_v52, %v3670_v34  ;;  %v3671_v57 = vmul.f32 %v9267_v9, %v3329_v42  ;;  %v3850_v59 = vsel %vm3722_vm1, %v3329_v42, 0.0  ;;  %v2771_v50 = vpop.f32.mrb[214].mxu1  ;;  %v9274_v31 = vld [vmem:[#allocation13_spill] sm:$0xff] }
 0x41b   : > { %v3851_v36 = vadd.f32 %v3850_v59, %v3849_v46  ;;  %v3672_v1 = vmul.f32 %v9268_v8, %v3331_v22  ;;  %v3810_v48 = vadd.f32 %v3809_v51, %v3331_v22  ;;  %v3333_v41 = vmul.f32 %v8171_v40, %v3167_v21  ;;  %v2773_v35 = vpop.f32.mrb[215].mxu1  ;;  %v8324_v40 = vpop.eup %4770  ;;  %v9275_v22 = vld [vmem:[#allocation166_spill] sm:$0xff]  ;;  %v9277_v8 = vld [vmem:[#allocation167_spill] sm:$0xff] }
 0x41c   : > { %v3746_v3 = vsel %vm3722_vm1, %v3671_v57, 0.0  ;;  %v3122_v54 = vmul.f32 2.0, %v3076_v37  ;;  %v3077_v27 = vsub.f32 %v2767_v20, %v9269_v61  ;;  %v3078_v55 = vsub.f32 %v2771_v50, %v9270_v29  ;;  %v9276_v59 = vld [vmem:[#allocation162_spill] sm:$0xff] }
 0x41d   : > { %v3747_v4 = vadd.f32 %v3746_v3, %v3745_v30  ;;  %v3704_v6 = vadd.f32 %v3703_v23, %v3672_v1  ;;  %v3673_v45 = vmul.f32 %v9271_v53, %v3333_v41  ;;  %v3852_v38 = vsel %vm3722_vm1, %v3333_v41, 0.0 }
 0x41e   : > { %v3853_v39 = vadd.f32 %v3852_v38, %v3851_v36  ;;  %v3168_v7 = vadd.f32 0.0009, %v3122_v54  ;;  %v3123_v18 = vmul.f32 2.0, %v3077_v27  ;;  %v3124_v63 = vmul.f32 2.0, %v3078_v55  ;;  %v2777_v17 = vpop.f32.mrb[216].mxu1 }
 0x41f   : > { %v8327_v10 = vadd.f32 0.0009, %v8105_v62  ;;  %v3748_v0 = vsel %vm3722_vm1, %v3673_v45, 0.0  ;;  %v3079_v16 = vsub.f32 %v2773_v35, %v9272_v60  ;;  %v3080_v11 = vsub.f32 %v2777_v17, %v9273_v56  ;;  %v2779_v14 = vpop.f32.mrb[217].mxu1  ;;  %v9278_v35 = vld [vmem:[#allocation170_spill] sm:$0xff] }
 0x420   : > { %v3749_v34 = vadd.f32 %v3748_v0, %v3747_v4  ;;  %v3335_v25 = vmul.f32 %v8175_v24, %v3168_v7  ;;  %v3169_v20 = vadd.f32 0.0009, %v3123_v18  ;;  %v3170_v52 = vadd.f32 0.0009, %v3124_v63  ;;  %v9280_v7 = vld [vmem:[#allocation177_spill] sm:$0xff] }
 0x421   : > { %v8334_v46 = vadd.f32 0.0009, %v8113_v19  ;;  %v3125_v51 = vmul.f32 2.0, %v3079_v16  ;;  %v3126_v42 = vmul.f32 2.0, %v3080_v11  ;;  %v3081_v62 = vsub.f32 %v2779_v14, %v9274_v31  ;;  %v9281_v16 = vld [vmem:[#allocation14_spill] sm:$0xff]  ;;  %v9282_v11 = vld [vmem:[#allocation15_spill] sm:$0xff] }
 0x422   : > { %v3674_v21 = vmul.f32 %v9275_v22, %v3335_v25  ;;  %v3811_v12 = vadd.f32 %v3810_v48, %v3335_v25  ;;  %v3337_v37 = vmul.f32 %v8179_v5, %v3169_v20  ;;  %v3339_v30 = vmul.f32 %v8183_v33, %v3170_v52  ;;  %v2783_v23 = vpop.f32.mrb[218].mxu1  ;;  %v9283_v25 = vld [vmem:[#allocation182_spill] sm:$0xff] }
 0x423   : > { %v3171_v9 = vadd.f32 0.0009, %v3125_v51  ;;  %v3172_v57 = vadd.f32 0.0009, %v3126_v42  ;;  %v3127_v24 = vmul.f32 2.0, %v3081_v62  ;;  %v3082_v50 = vsub.f32 %v2783_v23, %v9276_v59  ;;  %v2785_v36 = vpop.f32.mrb[219].mxu1 }
 0x424   : > { %v3705_v19 = vadd.f32 %v3704_v6, %v3674_v21  ;;  %v3675_v1 = vmul.f32 %v9277_v8, %v3337_v37  ;;  %v3854_v41 = vsel %vm3722_vm1, %v3337_v37, 0.0  ;;  %v3676_v3 = vmul.f32 %v9278_v35, %v3339_v30  ;;  %v9279_v6 = vld [vmem:[#allocation175_spill] sm:$0xff] }
 0x425   : > { %v3855_v54 = vadd.f32 %v3854_v41, %v3853_v39  ;;  %v3812_v48 = vadd.f32 %v3811_v12, %v3339_v30  ;;  %v3341_v5 = vmul.f32 %v8190_v58, %v3171_v9  ;;  %v3343_v33 = vmul.f32 %v8194_v43, %v3172_v57  ;;  %v9285_v30 = vld [vmem:[#allocation184_spill] sm:$0xff] }
 0x426   : > { %v3750_v61 = vsel %vm3722_vm1, %v3675_v1, 0.0  ;;  %v3706_v27 = vadd.f32 %v3705_v19, %v3676_v3  ;;  %v3173_v29 = vadd.f32 0.0009, %v3127_v24  ;;  %v3128_v55 = vmul.f32 2.0, %v3082_v50  ;;  %v2789_v4 = vpop.f32.mrb[220].mxu1  ;;  %v9286_v57 = vld [vmem:[#allocation172_spill] sm:$0xff] }
 0x427   : > { %v3751_v53 = vadd.f32 %v3750_v61, %v3749_v34  ;;  %v3677_v45 = vmul.f32 %v9279_v6, %v3341_v5  ;;  %v3856_v38 = vsel %vm3722_vm1, %v3341_v5, 0.0  ;;  %v3678_v18 = vmul.f32 %v9280_v7, %v3343_v33  ;;  %v2791_v63 = vpop.f32.mrb[221].mxu1  ;;  %v9287_v1 = vld [vmem:[#allocation174_spill] sm:$0xff] }
 0x428   : > { %v3857_v39 = vadd.f32 %v3856_v38, %v3855_v54  ;;  %v3813_v17 = vadd.f32 %v3812_v48, %v3343_v33  ;;  %v3345_v58 = vmul.f32 %v8199_v32, %v3173_v29  ;;  %v3174_v0 = vadd.f32 0.0009, %v3128_v55  ;;  %v9284_v32 = vld [vmem:[#allocation169_spill] sm:$0xff]  ;;  %v9288_v5 = vld [vmem:[#allocation178_spill] sm:$0xff]  ;;  %v9289_v55 = vld [vmem:[#allocation180_spill] sm:$0xff] }
 0x429   : > { %v3752_v43 = vsel %vm3722_vm1, %v3677_v45, 0.0  ;;  %v3707_v60 = vadd.f32 %v3706_v27, %v3678_v18  ;;  %v3083_v56 = vsub.f32 %v2785_v36, %v9281_v16  ;;  %v3084_v14 = vsub.f32 %v2789_v4, %v9282_v11  ;;  %v9291_v45 = vld [vmem:[#allocation189_spill] sm:$0xff] }
 0x42a   : > { %v3753_v34 = vadd.f32 %v3752_v43, %v3751_v53  ;;  %v3679_v20 = vmul.f32 %v9283_v25, %v3345_v58  ;;  %v3858_v52 = vsel %vm3722_vm1, %v3345_v58, 0.0  ;;  %v3347_v51 = vmul.f32 %v8202_v13, %v3174_v0  ;;  %v2795_v42 = vpop.f32.mrb[222].mxu1  ;;  %v9292_v16 = vld [vmem:[#allocation193_spill] sm:$0xff] }
 0x42b   : > { %v3859_v31 = vadd.f32 %v3858_v52, %v3857_v39  ;;  %v3129_v62 = vmul.f32 2.0, %v3083_v56  ;;  %v3130_v22 = vmul.f32 2.0, %v3084_v14  ;;  %v3085_v21 = vsub.f32 %v2791_v63, %v9284_v32  ;;  %v2797_v12 = vpop.f32.mrb[223].mxu1  ;;  %v9293_v14 = vld [vmem:[#allocation20_spill] sm:$0xff] }
 0x42c   : > { %v3754_v37 = vsel %vm3722_vm1, %v3679_v20, 0.0  ;;  %v3680_v23 = vmul.f32 %v9285_v30, %v3347_v51  ;;  %v3814_v9 = vadd.f32 %v3813_v17, %v3347_v51  ;;  %v3086_v24 = vsub.f32 %v2795_v42, %v9286_v57 }
 0x42d   : > { %v3755_v59 = vadd.f32 %v3754_v37, %v3753_v34  ;;  %v3175_v50 = vadd.f32 0.0009, %v3129_v62  ;;  %v3176_v36 = vadd.f32 0.0009, %v3130_v22  ;;  %v3131_v19 = vmul.f32 2.0, %v3085_v21  ;;  %v9295_v62 = vld [vmem:[#allocation183_spill] sm:$0xff] }
 0x42e   : > { %4772 = vrcp.f32 %v8327_v10  ;;  %v3708_v13 = vadd.f32 %v3707_v60, %v3680_v23  ;;  %v3132_v8 = vmul.f32 2.0, %v3086_v24  ;;  %v3087_v41 = vsub.f32 %v2797_v12, %v9287_v1  ;;  %v2801_v35 = vpop.f32.mrb[224].mxu1  ;;  %v9290_v10 = vld [vmem:[#allocation185_spill] sm:$0xff] }
 0x42f   : > { %v3349_v3 = vmul.f32 %v8207_v47, %v3175_v50  ;;  %v3351_v54 = vmul.f32 %v8210_v15, %v3176_v36  ;;  %v3177_v48 = vadd.f32 0.0009, %v3131_v19  ;;  %v3088_v33 = vsub.f32 %v2801_v35, %v9288_v5  ;;  %v2803_v61 = vpop.f32.mrb[225].mxu1  ;;  %v9296_v12 = vld [vmem:[#allocation21_spill] sm:$0xff]  ;;  %v9297_v36 = vld [vmem:[#allocation187_spill] sm:$0xff]  ;;  %v9299_v35 = vld [vmem:[#allocation190_spill] sm:$0xff] }
 0x430   : > { %4774 = vrcp.f32 %v8334_v46  ;;  %v3178_v27 = vadd.f32 0.0009, %v3132_v8  ;;  %v3133_v29 = vmul.f32 2.0, %v3087_v41  ;;  %v3089_v4 = vsub.f32 %v2803_v61, %v9289_v55  ;;  %v9298_v8 = vld [vmem:[#allocation194_spill] sm:$0xff]  ;;  %v9300_v5 = vld [vmem:[#allocation23_spill] sm:$0xff] }
 0x431   : > { %v3681_v53 = vmul.f32 %v9290_v10, %v3349_v3  ;;  %v3860_v6 = vsel %vm3722_vm1, %v3349_v3, 0.0  ;;  %v3682_v38 = vmul.f32 %v9291_v45, %v3351_v54  ;;  %v3815_v7 = vadd.f32 %v3814_v9, %v3351_v54 }
 0x432   : > { %v3861_v47 = vadd.f32 %v3860_v6, %v3859_v31  ;;  %v3353_v15 = vmul.f32 %v8215_v26, %v3177_v48  ;;  %v3355_v18 = vmul.f32 %v8219_v44, %v3178_v27  ;;  %v3179_v63 = vadd.f32 0.0009, %v3133_v29  ;;  %v2807_v39 = vpop.f32.mrb[226].mxu1  ;;  %v9294_v26 = vld [vmem:[#allocation130_spill] sm:$0xff] }
 0x433   : > { %v3756_v46 = vsel %vm3722_vm1, %v3681_v53, 0.0  ;;  %v3709_v17 = vadd.f32 %v3708_v13, %v3682_v38  ;;  %v3134_v58 = vmul.f32 2.0, %v3088_v33  ;;  %v3135_v0 = vmul.f32 2.0, %v3089_v4  ;;  %v2809_v43 = vpop.f32.mrb[227].mxu1  ;;  %v9301_v53 = vld [vmem:[#allocation192_spill] sm:$0xff] }
 0x434   : > { %v3757_v60 = vadd.f32 %v3756_v46, %v3755_v59  ;;  %v3683_v56 = vmul.f32 %v9292_v16, %v3353_v15  ;;  %v3862_v11 = vsel %vm3722_vm1, %v3353_v15, 0.0  ;;  %v3684_v34 = vmul.f32 %v9293_v14, %v3355_v18 }
 0x435   : > { %v3863_v25 = vadd.f32 %v3862_v11, %v3861_v47  ;;  %v3816_v20 = vadd.f32 %v3815_v7, %v3355_v18  ;;  %v3357_v52 = vmul.f32 %v9294_v26, %v3179_v63  ;;  %v3180_v44 = vadd.f32 0.0009, %v3134_v58  ;;  %v9302_v47 = vld [vmem:[#allocation24_spill] sm:$0xff] }
 0x436   : > { %v3758_v51 = vsel %vm3722_vm1, %v3683_v56, 0.0  ;;  %v3710_v42 = vadd.f32 %v3709_v17, %v3684_v34  ;;  %v3181_v31 = vadd.f32 0.0009, %v3135_v0  ;;  %v3090_v22 = vsub.f32 %v2807_v39, %v9295_v62  ;;  %v2813_v32 = vpop.f32.mrb[228].mxu1  ;;  %v9303_v0 = vld [vmem:[#allocation25_spill] sm:$0xff] }
 0x437   : > { %v3759_v21 = vadd.f32 %v3758_v51, %v3757_v60  ;;  %v3685_v37 = vmul.f32 %v9296_v12, %v3357_v52  ;;  %v3864_v30 = vsel %vm3722_vm1, %v3357_v52, 0.0  ;;  %v3359_v23 = vmul.f32 %v8245_v2, %v3180_v44  ;;  %v2815_v9 = vpop.f32.mrb[229].mxu1  ;;  %v9305_v44 = vld [vmem:[#allocation195_spill] sm:$0xff] }
 0x438   : > { %v4773_v57 = vpop.eup %4772  ;;  %v3865_v24 = vadd.f32 %v3864_v30, %v3863_v25  ;;  %v3361_v59 = vmul.f32 %v8282_v49, %v3181_v31  ;;  %v3136_v50 = vmul.f32 2.0, %v3090_v22  ;;  %v3091_v19 = vsub.f32 %v2809_v43, %v9297_v36 }
 0x439   : > { %v3760_v13 = vsel %vm3722_vm1, %v3685_v37, 0.0  ;;  %v3686_v1 = vmul.f32 %v9298_v8, %v3359_v23  ;;  %v3817_v41 = vadd.f32 %v3816_v20, %v3359_v23  ;;  %v3092_v3 = vsub.f32 %v2813_v32, %v9299_v35 }
 0x43a   : > { %v4775_v54 = vpop.eup %4774  ;;  %v3761_v48 = vadd.f32 %v3760_v13, %v3759_v21  ;;  %v3687_v33 = vmul.f32 %v9300_v5, %v3361_v59  ;;  %v3866_v2 = vsel %vm3722_vm1, %v3361_v59, 0.0  ;;  %v3182_v61 = vadd.f32 0.0009, %v3136_v50 }
 0x43b   : > { %v3711_v27 = vadd.f32 %v3710_v42, %v3686_v1  ;;  %v3867_v29 = vadd.f32 %v3866_v2, %v3865_v24  ;;  %v3137_v49 = vmul.f32 2.0, %v3091_v19  ;;  %v3138_v55 = vmul.f32 2.0, %v3092_v3 }
 0x43c   : > { %v3762_v4 = vsel %vm3722_vm1, %v3687_v33, 0.0  ;;  %v3363_v10 = vmul.f32 %v8290_v28, %v3182_v61  ;;  %v3093_v6 = vsub.f32 %v2815_v9, %v9301_v53  ;;  %v9304_v28 = vld [vmem:[#allocation26_spill] sm:$0xff]  ;;  %v5004_v9 = vmov 1966171168  }
 0x43d   : > { %v3763_v45 = vadd.f32 %v3762_v4, %v3761_v48  ;;  %v3183_v38 = vadd.f32 0.0009, %v3137_v49  ;;  %v3184_v7 = vadd.f32 0.0009, %v3138_v55  ;;  %v3781_v36 = vlaneseq }
 0x43e   : > { %v3688_v15 = vmul.f32 %v9302_v47, %v3363_v10  ;;  %v3818_v18 = vadd.f32 %v3817_v41, %v3363_v10  ;;  %v3139_v63 = vmul.f32 2.0, %v3093_v6 }
 0x43f   : > { %v3365_v39 = vmul.f32 %v8324_v40, %v3183_v38  ;;  %v3367_v46 = vmul.f32 %v4773_v57, %v3184_v7  ;;  %v3779_v57 = vunpack.c.l.s4 %v5004_v9  ;;  %v3782_v48 = vshrl.u32 %v3781_v36, 7 }
 0x440   : > { %v3712_v17 = vadd.f32 %v3711_v27, %v3688_v15  ;;  %v3185_v58 = vadd.f32 0.0009, %v3139_v63  ;;  %vm3795_vm4 = vcmp.lt.s32.totalorder %v3781_v36, 182 }
 0x441   : > { %v3689_v43 = vmul.f32 %v9303_v0, %v3365_v39  ;;  %v3868_v60 = vsel %vm3722_vm1, %v3365_v39, 0.0  ;;  %v3690_v16 = vmul.f32 %v9304_v28, %v3367_v46  ;;  %v3819_v56 = vsel %vm3713_vm2, %v3367_v46, 0.0 }
 0x442   : > { %v3869_v11 = vadd.f32 %v3868_v60, %v3867_v29  ;;  %v3820_v14 = vadd.f32 %v3819_v56, %v3818_v18  ;;  %v3369_v34 = vmul.f32 %v4775_v54, %v3185_v58  ;;  %v3780_v54 = vunpack.c.0.s8 %v3779_v57 }
 0x443   : > { %v3764_v25 = vsel %vm3722_vm1, %v3689_v43, 0.0  ;;  %v3714_v20 = vsel %vm3713_vm2, %v3690_v16, 0.0 }
 0x444   : > { %v3765_v26 = vadd.f32 %v3764_v25, %v3763_v45  ;;  %v3715_v52 = vadd.f32 %v3714_v20, %v3712_v17  ;;  %v3821_v40 = vrot.slane %v3820_v14, 4  ;;  %v3691_v51 = vmul.f32 %v9305_v44, %v3369_v34 }
 0x445   : > { %v3870_v42 = vsel %vm3766_vm3, %v3369_v34, 0.0  ;;  %v3783_v49 = vsub.s32 %v3780_v54, %v3782_v48 }
 0x446   : > { %v3716_v31 = vrot.slane %v3715_v52, 4  ;;  %v3822_v62 = vadd.f32 %v3821_v40, %v3820_v14  ;;  %v3767_v22 = vsel %vm3766_vm3, %v3691_v51, 0.0  ;;  %v3871_v32 = vadd.f32 %v3870_v42, %v3869_v11 }
 0x447   : > { %v3768_v21 = vadd.f32 %v3767_v22, %v3765_v26 }
 0x448   : > { %v3717_v12 = vadd.f32 %v3716_v31, %v3715_v52  ;;  %v3823_v37 = vrot.slane %v3822_v62, 2  ;;  %v3872_v30 = vrot.slane %v3871_v32, 4 }
 0x449   : > { %v3769_v23 = vrot.slane %v3768_v21, 4 }
 0x44a   : > { %v3718_v24 = vrot.slane %v3717_v12, 2  ;;  %v3824_v59 = vadd.f32 %v3823_v37, %v3822_v62  ;;  %v3873_v50 = vadd.f32 %v3872_v30, %v3871_v32 }
 0x44b   : > { %v3770_v19 = vadd.f32 %v3769_v23, %v3768_v21 }
 0x44c   : > { %v3719_v13 = vadd.f32 %v3718_v24, %v3717_v12  ;;  %v3825_v8 = vrot.slane %v3824_v59, 1  ;;  %v3874_v1 = vrot.slane %v3873_v50, 2 }
 0x44d   : > { %v3771_v41 = vrot.slane %v3770_v19, 2 }
 0x44e   : > { %v3720_v35 = vrot.slane %v3719_v13, 1  ;;  %v3875_v3 = vadd.f32 %v3874_v1, %v3873_v50  ;;  %v3826_v33 = vadd.f32 %v3825_v8, %v3824_v59 }
 0x44f   : > { %v3772_v5 = vadd.f32 %v3771_v41, %v3770_v19 }
 0x450   : > { %v3876_v2 = vrot.slane %v3875_v3, 1  ;;  %v3721_v27 = vadd.f32 %v3720_v35, %v3719_v13 }
 0x451   : > { %v3773_v61 = vrot.slane %v3772_v5, 1 }
 0x452   : > { %v3877_v29 = vadd.f32 %v3876_v2, %v3875_v3 }
 0x453   : > { %v3774_v55 = vadd.f32 %v3773_v61, %v3772_v5 }
 0x454   : > { %v3880_v4 = vcombine.low %v3826_v33, %v3877_v29 }
 0x455   : > { %v3777_v10 = vcombine.low %v3721_v27, %v3774_v55 }
 0x456   : > { %v3887_v53 = vrot.slane %v3880_v4, %v3783_v49 }
 0x457   : > { %v3784_v6 = vrot.slane %v3777_v10, %v3783_v49 }
 0x458   : > { %v3894_v45 = vrot.slane %v3887_v53, %v3783_v49 }
 0x459   : > { %v3791_v38 = vrot.slane %v3784_v6, %v3783_v49 }
 0x45a   : > { %3896 = vst.msk [vmem:[%s253_s26] sm:$0x3] %vm3795_vm4, %v3894_v45 }
 0x45b   : > { %3797 = vst.msk [vmem:[%s233_s15] sm:$0x3] %vm3795_vm4, %v3791_v38 }
 0x45c   : > { %4953 = shalt.err (!%p4950_p3)
}
 0x45d   : > { %s4954_s10 = scalar_lea.hbm %s8411_s8, 32  ;;  %s4958_s14 = scalar_lea.hbm %s8459_s4, 192 }
 0x45e   : > { %p4955_p4 = scmp.ne.s32.totalorder %s8411_s8, %s4954_s10  ;;  %p4959_p9 = scmp.lt.u32.totalorder %s8411_s8, %s8459_s4 }
 0x45f   : > { %p4960_p10 = scmp.lt.u32.totalorder %s4958_s14, %s4954_s10  ;;  %p4962_p12 = scmp.lt.u32.totalorder %s4954_s10, %s8411_s8 }
 0x460   : > { %p4956_p7 = pnand %p4955_p4, %p5074_p5 }
 0x461   : > { %p4961_p11 = por %p4960_p10, %p4959_p9 }
 0x462   : > { %p4957_p8 = pneg %p4956_p7 }
 0x463   : > { %p4963_p13 = por %p4962_p12, %p4961_p11 }
 0x465   : > { %p4964_p0 = pnand %p4963_p13, %p4957_p8 }
 0x467   : > { %4967 = shalt.err (!%p4964_p0)
}
 0x468   : > { %4552 = dma.vmem_to_hbm [thread:$0]  (%p5074_p5), %s8413_s16, 32, %s8411_s8, %s3898_s22  }
 0x469 PF: > { %p4558_p1 = scmp.ge.s32.totalorder %s5002_s21, 2  ;;  %s3931_s25 = sand.u32 1, %s4990_s18  }
 0x46a   : > { %s3932_s26 = scalar_lea.sflag [#allocation3], %s3931_s25 }
 0x46b   : > { %p4555_p2 = pnand %p4558_p1, %p5078_p6 }
 0x46d   : > { %4985 = dma.done.wait (!%p4555_p2), %s3932_s26, 32  }
 0x46e   : > { %4987 = vsyncadd (!%p4555_p2), %s3932_s26, 4294967264  ;;  %p16_p3 = scmp.ge.s32.totalorder %s5061_s24, 8   ;;  %s9306_s18 = smov %s4994_s19 }
 0x46f   : > { %s9307_s19 = smov %s4998_s20  ;;  %s9308_s20 = smov %s5072_s27 }
 0x470   : > { %s9309_s21 = smov %s5061_s24  ;;  %18 = sbr.rel (!%p16_p3) target bundleno = 3 (0x3), region = 86 }
 0x477   :  { %3944 = vsyncpa [#allocation3], 1 }
 0x478   :  { %3946 = vsyncpa [#allocation3 + $0x1], 1 }

// kernel: run.8
= control target key start
LH: loop header
LB: loop body
LE: loop exit
PB: predicated region body
PF: predicated region fallthrough
CT: control target
= control target key end

     0   :  { %11 = vsyncpa [#allocation3], 0  ;;  %s3842_s0 = inlined_call_operand.vmem [shape: f32[6,96,96], index: 0, kind: input, shape index: {}]   ;;  %s3843_s1 = inlined_call_operand.vmem [shape: f32[6,96,96], index: 1, kind: input, shape index: {}]   ;;  %s3844_s2 = inlined_call_operand.vmem [shape: f32[86,96], index: 2, kind: input, shape index: {}]   ;;  %s3845_s3 = inlined_call_operand.vmem [shape: f32[96,86], index: 3, kind: input, shape index: {}]   ;;  %s3846_s4 = inlined_call_operand.hbm [shape: f32[6,1,86], index: 4, kind: output, shape index: {0}]   ;;  %s3847_s5 = inlined_call_operand.vmem [shape: f32[6,1,86], index: 5, kind: output, shape index: {1}]  }
   0x1   :  { %13 = vsyncpa [#allocation3 + $0x1], 0  ;;  %s2907_s18 = smov 0   ;;  %s2909_s19 = smov 0  }
   0x2   :  { %s2911_s20 = smov 0   ;;  %s2913_s21 = smov 0  }
   0x3 LB: > { %s2928_s22 = sadd.s32 4294967295, %s2871_s21   ;;  %s1886_s23 = sadd.s32 4294967294, %s2871_s21   ;;  %s2871_s21 = sphi %s2913_s21, %s3853_s21   ;;  %s2867_s20 = sphi %s2911_s20, %s3852_s20   ;;  %s2863_s19 = sphi %s2909_s19, %s3851_s19   ;;  %s2859_s18 = sphi %s2907_s18, %s3850_s18  }
   0x4   : > { %s2932_s24 = sadd.s32 1, %s2871_s21   ;;  %s120_s25 = sadd.s32 1, %s2867_s20 }
   0x5   : > { %s117_s26 = ssub.s32 %s2871_s21, %s2932_s24  ;;  %p130_p0 = scmp.ne.s32.totalorder %s2867_s20, %s2863_s19 }
   0x6   : > { %p118_p1 = scmp.eq.s32.totalorder %s117_s26, 0  ;;  %p131_p2 = scmp.eq.s32.totalorder %s2928_s22, 5 }
   0x7   : > { %p136_p3 = scmp.ne.s32.totalorder %s2863_s19, %s2859_s18  ;;  %p137_p4 = scmp.eq.s32.totalorder %s1886_s23, 5 }
   0x8   : > { %s2943_s27 = scalar_select %p118_p1, %s2867_s20, %s120_s25  }
   0x9   : > { %p2945_p5 = por %p131_p2, %p130_p0  ;;  %p2949_p6 = por %p137_p4, %p136_p3 }
   0xa   : > { %p1889_p7 = scmp.ge.s32.totalorder %s2871_s21, 1  ;;  %p203_p8 = scmp.lt.s32.totalorder %s2871_s21, 7 }
   0xc   : > { %p204_p9 = pnand %p1889_p7, %p203_p8 }
   0xd   : > { %v286_v0 = vld [vmem:[%s3845_s3] sm:$0xff] (!%p204_p9)  ;;  %v287_v1 = vld [vmem:[%s3845_s3 + $0x8] sm:$0xff] (!%p204_p9)  ;;  %v288_v2 = vld [vmem:[%s3845_s3 + $0x10] sm:$0xff] (!%p204_p9)  ;;  %p238_p10 = scmp.lt.s32.totalorder (!%p204_p9), %s2928_s22, 5  ;;  %vm334_vm0 = vcmask (!%p204_p9), 785408   ;;  %vm2874_vm1 = vmmov (!%p204_p9), 0  }
   0xe   : > { %207 = sbr.rel (%p204_p9) target bundleno = 697 (0x2b9), region = 36  ;;  %v2596_v3 = vpack.c.bf16 (!%p204_p9), %v287_v1, %v286_v0  ;;  %v289_v4 = vld [vmem:[%s3845_s3 + $0x18] sm:$0xff] (!%p204_p9)  ;;  %v290_v6 = vld [vmem:[%s3845_s3 + $0x20] sm:$0xff] (!%p204_p9)  ;;  %v291_v7 = vld [vmem:[%s3845_s3 + $0x28] sm:$0xff] (!%p204_p9)  ;;  %vm1722_vm2 = vcmask (!%p204_p9), 703488   ;;  %vm1742_vm3 = vcmask (!%p204_p9), 701440  }
   0xf   : > { %v2600_v5 = vpack.c.bf16 (!%p204_p9), %v289_v4, %v288_v2  ;;  %v2604_v8 = vpack.c.bf16 (!%p204_p9), %v291_v7, %v290_v6  ;;  %v292_v9 = vld [vmem:[%s3845_s3 + $0x30] sm:$0xff] (!%p204_p9)  ;;  %v293_v10 = vld [vmem:[%s3845_s3 + $0x38] sm:$0xff] (!%p204_p9)  ;;  %v294_v13 = vld [vmem:[%s3845_s3 + $0x40] sm:$0xff] (!%p204_p9)  ;;  %s231_s13 = sand.u32 (!%p204_p9), 1, %s2863_s19   ;;  %vm1751_vm4 = vcmask (!%p204_p9), 696320  }
  0x10   : > { %2597 = vmatprep.subr.bf16.mxu0 (!%p204_p9), %v2596_v3  ;;  %v2608_v12 = vpack.c.bf16 (!%p204_p9), %v293_v10, %v292_v9  ;;  %v295_v14 = vld [vmem:[%s3845_s3 + $0x48] sm:$0xff] (!%p204_p9)  ;;  %v296_v22 = vld [vmem:[%s3845_s3 + $0x50] sm:$0xff] (!%p204_p9)  ;;  %v297_v23 = vld [vmem:[%s3845_s3 + $0x58] sm:$0xff] (!%p204_p9)  ;;  %s232_s25 = scalar_lea.vmem (!%p204_p9), [#allocation2], %s231_s13 }
  0x11   : > { %2599 = vmatpush3.bf16.msra.mxu0 (!%p204_p9), %v2596_v3  ;;  %v2612_v30 = vpack.c.bf16 (!%p204_p9), %v295_v14, %v294_v13  ;;  %v2616_v51 = vpack.c.bf16 (!%p204_p9), %v297_v23, %v296_v22  ;;  %v2873_v13 = vmov (!%p204_p9), 0.0|0.0   ;;  %s1797_s26 = sshll.u32 (!%p204_p9), %s232_s25, 4  ;;  %s3802_s26 = int_to_ptr.vmem [resolvable:$true] %s1797_s26 }
  0x12   : > { %2601 = vmatprep.subr.bf16.mxu0 (!%p204_p9), %v2600_v5  ;;  %2620 = vmatprep.subr.bf16.mxu1 (!%p204_p9), %v2873_v13  ;;  %s2809_s8 = scalar_lea.vmem (!%p204_p9), %s3802_s26, 16 }
  0x13   : > { %p2810_p11 = scmp.ne.s32.totalorder (!%p204_p9), %s3802_s26, %s2809_s8 }
  0x15   : > { %s2975_s17 = scalar_select %p238_p10, %s2928_s22, 5  ;;  %2603 = vmatpush3.bf16.msra.mxu0 %v2600_v5 }
  0x16   : > { %2605 = vmatprep.subr.bf16.mxu0 %v2604_v8  ;;  %p2811_p12 = pnand %p2810_p11, %p2945_p5 }
  0x17   : > { %s2722_s23 = smul.u32 96, %s2975_s17  ;;  %s250_s16 = scalar_lea.vmem %s3847_s5, %s2975_s17 }
  0x18   : > { %s1782_s17 = scalar_lea.sflag [#allocation3], %s231_s13  ;;  %p2812_p13 = pneg %p2811_p12 }
  0x19   : > { %s2987_s9 = scalar_lea.vmem %s3842_s0, %s2722_s23  ;;  %s2997_s12 = scalar_lea.vmem %s3843_s1, %s2722_s23  ;;  %2607 = vmatpush3.bf16.msra.mxu0 %v2604_v8 }
  0x1a   : > { %v2990_v11 = vld [vmem:[%s2987_s9] sm:$0xff]  ;;  %v3006_v15 = vld [vmem:[%s2987_s9 + $0x8] sm:$0xff]  ;;  %v3009_v16 = vld [vmem:[%s2987_s9 + $0x10] sm:$0xff]  ;;  %2609 = vmatprep.subr.bf16.mxu0 %v2608_v12  ;;  %s2007_s23 = sshll.u32 %s2928_s22, 4  ;;  %s2876_s22 = smov [#allocation2]  }
  0x1b   : > { %2221 = vmatprep.mubr.msk.f32.mxu0 %vm334_vm0, %v2990_v11  ;;  %v3012_v17 = vld [vmem:[%s2987_s9 + $0x18] sm:$0xff]  ;;  %v3015_v18 = vld [vmem:[%s2987_s9 + $0x20] sm:$0xff]  ;;  %v3018_v19 = vld [vmem:[%s2987_s9 + $0x28] sm:$0xff]  ;;  %v298_v54 = vmul.f32 %v2990_v11, %v2990_v11  ;;  %v299_v55 = vmul.f32 %v3006_v15, %v3006_v15  ;;  %v300_v56 = vmul.f32 %v3009_v16, %v3009_v16  ;;  %s3800_s7 = scalar_lea.hbm %s3846_s4, %s2007_s23 }
  0x1c   : > { %v3021_v20 = vld [vmem:[%s2997_s12] sm:$0xff]  ;;  %v3024_v21 = vld [vmem:[%s2997_s12 + $0x8] sm:$0xff]  ;;  %v3033_v24 = vld [vmem:[%s2987_s9 + $0x30] sm:$0xff]  ;;  %v301_v57 = vmul.f32 %v3012_v17, %v3012_v17  ;;  %v302_v58 = vmul.f32 %v3015_v18, %v3015_v18  ;;  %v303_v59 = vmul.f32 %v3018_v19, %v3018_v19 }
  0x1d   : > { %v3036_v25 = vld [vmem:[%s2987_s9 + $0x38] sm:$0xff]  ;;  %v3040_v26 = vmul.f32 %v3021_v20, %v2990_v11  ;;  %v3044_v27 = vmul.f32 %v3024_v21, %v3006_v15  ;;  %v3047_v28 = vld [vmem:[%s2997_s12 + $0x10] sm:$0xff]  ;;  %v3053_v31 = vld [vmem:[%s2987_s9 + $0x40] sm:$0xff]  ;;  %2611 = vmatpush3.bf16.msra.mxu0 %v2608_v12  ;;  %v304_v60 = vmul.f32 %v3033_v24, %v3033_v24  ;;  %v310_v2 = vmul.f32 %v3021_v20, %v3021_v20 }
  0x1e   : > { %v3050_v29 = vld [vmem:[%s2997_s12 + $0x18] sm:$0xff]  ;;  %v3057_v32 = vmul.f32 %v3047_v28, %v3009_v16  ;;  %v3064_v34 = vld [vmem:[%s2997_s12 + $0x20] sm:$0xff]  ;;  %v3067_v35 = vld [vmem:[%s2997_s12 + $0x28] sm:$0xff]  ;;  %2613 = vmatprep.subr.bf16.mxu0 %v2612_v30  ;;  %v305_v61 = vmul.f32 %v3036_v25, %v3036_v25  ;;  %v306_v62 = vmul.f32 %v3053_v31, %v3053_v31  ;;  %v311_v3 = vmul.f32 %v3024_v21, %v3024_v21 }
  0x1f   : > { %v3061_v33 = vmul.f32 %v3050_v29, %v3012_v17  ;;  %v260_v36 = vld [vmem:[%s2987_s9 + $0x48] sm:$0xff]  ;;  %v3072_v37 = vmul.f32 %v3064_v34, %v3015_v18  ;;  %v3076_v38 = vmul.f32 %v3067_v35, %v3018_v19  ;;  %v3079_v39 = vld [vmem:[%s2997_s12 + $0x30] sm:$0xff]  ;;  %v3082_v40 = vld [vmem:[%s2997_s12 + $0x38] sm:$0xff]  ;;  %v312_v4 = vmul.f32 %v3047_v28, %v3047_v28 }
  0x20   : > { %v261_v41 = vld [vmem:[%s2987_s9 + $0x50] sm:$0xff]  ;;  %v3087_v42 = vmul.f32 %v3079_v39, %v3033_v24  ;;  %v3091_v43 = vmul.f32 %v3082_v40, %v3036_v25  ;;  %v3094_v44 = vld [vmem:[%s2997_s12 + $0x40] sm:$0xff]  ;;  %v3097_v45 = vld [vmem:[%s2997_s12 + $0x48] sm:$0xff]  ;;  %v307_v63 = vmul.f32 %v260_v36, %v260_v36  ;;  %v313_v5 = vmul.f32 %v3050_v29, %v3050_v29 }
  0x21   : > { %v262_v46 = vld [vmem:[%s2987_s9 + $0x58] sm:$0xff]  ;;  %v3102_v47 = vmul.f32 %v3094_v44, %v3053_v31  ;;  %v3105_v48 = vmul.f32 %v3097_v45, %v260_v36  ;;  %v3108_v49 = vld [vmem:[%s2997_s12 + $0x50] sm:$0xff]  ;;  %2615 = vmatpush3.bf16.msra.mxu0 %v2612_v30  ;;  %v308_v0 = vmul.f32 %v261_v41, %v261_v41  ;;  %v314_v6 = vmul.f32 %v3064_v34, %v3064_v34  ;;  %s2813_s9 = sshll.u32 %s2876_s22, 4  ;;  %s2814_s9 = int_to_ptr.vmem [resolvable:$false] %s2813_s9 }
  0x22   : > { %v3111_v50 = vld [vmem:[%s2997_s12 + $0x58] sm:$0xff]  ;;  %v3114_v52 = vmul.f32 %v3108_v49, %v261_v41  ;;  %2617 = vmatprep.subr.bf16.mxu0 %v2616_v51  ;;  %v309_v1 = vmul.f32 %v262_v46, %v262_v46  ;;  %v315_v7 = vmul.f32 %v3067_v35, %v3067_v35  ;;  %v316_v8 = vmul.f32 %v3079_v39, %v3079_v39  ;;  %s2815_s10 = scalar_lea.vmem %s2814_s9, 32  ;;  %p2816_p0 = scmp.lt.s32.totalorder %s3802_s26, %s2814_s9 }
  0x23   : > { %v3117_v53 = vmul.f32 %v3111_v50, %v262_v46  ;;  %v317_v9 = vmul.f32 %v3082_v40, %v3082_v40  ;;  %v318_v10 = vmul.f32 %v3094_v44, %v3094_v44  ;;  %v319_v11 = vmul.f32 %v3097_v45, %v3097_v45  ;;  %p2817_p1 = scmp.lt.s32.totalorder %s2815_s10, %s2809_s8 }
  0x24   : > { %v320_v12 = vmul.f32 %v3108_v49, %v3108_v49  ;;  %v321_v14 = vmul.f32 %v3111_v50, %v3111_v50 }
  0x25   : > { %2619 = vmatpush3.bf16.msra.mxu0 %v2616_v51  ;;  %v3306_v51 = vld [vmem:[%s3844_s2 + $0x20] sm:$0xff]  ;;  %p2818_p2 = por %p2817_p1, %p2816_p0 }
  0x26   : > { %2674 = vmatprep.subr.bf16.mxu0 %v2873_v13 }
  0x27   : > { %p2819_p3 = pnand %p2818_p2, %p2812_p13 }
  0x28   : > { %2222 = vmatmul.mubr.msk.f32.vlgmr.msra.gmra.mrb[0].mxu0 %vm334_vm0, %v3006_v15  ;;  %v2875_v15 = vmov 0.0  }
  0x29   : > { %2224 = vmatprep.mubr.msk.f32.mxu0 %vm334_vm0, %v3009_v16  ;;  %2335 = vmatprep.mubr.msk.f32.mxu1 %vm2874_vm1, %v2875_v15 }
  0x2c   : > { %2225 = vmatmul.mubr.msk.f32.gmra.mrb[2].mxu0 %vm334_vm0, %v3012_v17 }
  0x2d   : > { %2227 = vmatprep.mubr.msk.f32.mxu0 %vm334_vm0, %v3015_v18 }
  0x30   : > { %2228 = vmatmul.mubr.msk.f32.gmra.mrb[4].mxu0 %vm334_vm0, %v3018_v19 }
  0x31   : > { %2230 = vmatprep.mubr.msk.f32.mxu0 %vm334_vm0, %v3033_v24 }
  0x34   : > { %2231 = vmatmul.mubr.msk.f32.gmra.mrb[6].mxu0 %vm334_vm0, %v3036_v25 }
  0x35   : > { %2233 = vmatprep.mubr.msk.f32.mxu0 %vm334_vm0, %v3053_v31 }
  0x38   : > { %2234 = vmatmul.mubr.msk.f32.gmra.mrb[8].mxu0 %vm334_vm0, %v260_v36 }
  0x39   : > { %2236 = vmatprep.mubr.msk.f32.mxu0 %vm334_vm0, %v261_v41 }
  0x3c   : > { %2237 = vmatmul.mubr.msk.f32.gmra.mrb[10].mxu0 %vm334_vm0, %v262_v46 }
  0x3d   : > { %2239 = vmatprep.mubr.msk.f32.mxu0 %vm334_vm0, %v3021_v20 }
  0x40   : > { %2240 = vmatmul.mubr.msk.f32.gmra.mrb[12].mxu0 %vm334_vm0, %v3024_v21 }
  0x41   : > { %2242 = vmatprep.mubr.msk.f32.mxu0 %vm334_vm0, %v3047_v28 }
  0x44   : > { %2243 = vmatmul.mubr.msk.f32.gmra.mrb[14].mxu0 %vm334_vm0, %v3050_v29 }
  0x45   : > { %2245 = vmatprep.mubr.msk.f32.mxu0 %vm334_vm0, %v3064_v34 }
  0x48   : > { %2246 = vmatmul.mubr.msk.f32.gmra.mrb[16].mxu0 %vm334_vm0, %v3067_v35  ;;  %v3266_v35 = vld [vmem:[%s3844_s2] sm:$0xff] }
  0x49   : > { %2248 = vmatprep.mubr.msk.f32.mxu0 %vm334_vm0, %v3079_v39  ;;  %v3276_v39 = vld [vmem:[%s3844_s2 + $0x8] sm:$0xff] }
  0x4c   : > { %2249 = vmatmul.mubr.msk.f32.gmra.mrb[18].mxu0 %vm334_vm0, %v3082_v40 }
  0x4d   : > { %2251 = vmatprep.mubr.msk.f32.mxu0 %vm334_vm0, %v3094_v44 }
  0x50   : > { %2252 = vmatmul.mubr.msk.f32.gmra.mrb[20].mxu0 %vm334_vm0, %v3097_v45 }
  0x51   : > { %2254 = vmatprep.mubr.msk.f32.mxu0 %vm334_vm0, %v3108_v49 }
  0x54   : > { %2255 = vmatmul.mubr.msk.f32.gmra.mrb[22].mxu0 %vm334_vm0, %v3111_v50 }
  0x55   : > { %2257 = vmatprep.mubr.msk.f32.mxu0 %vm334_vm0, %v298_v54 }
  0x58   : > { %2258 = vmatmul.mubr.msk.f32.gmra.mrb[24].mxu0 %vm334_vm0, %v299_v55  ;;  %v3316_v55 = vld [vmem:[%s3844_s2 + $0x28] sm:$0xff] }
  0x59   : > { %2260 = vmatprep.mubr.msk.f32.mxu0 %vm334_vm0, %v300_v56 }
  0x5c   : > { %2261 = vmatmul.mubr.msk.f32.gmra.mrb[26].mxu0 %vm334_vm0, %v301_v57 }
  0x5d   : > { %2263 = vmatprep.mubr.msk.f32.mxu0 %vm334_vm0, %v302_v58 }
  0x60   : > { %2264 = vmatmul.mubr.msk.f32.gmra.mrb[28].mxu0 %vm334_vm0, %v303_v59  ;;  %v3326_v59 = vld [vmem:[%s3844_s2 + $0x30] sm:$0xff] }
  0x61   : > { %2266 = vmatprep.mubr.msk.f32.mxu0 %vm334_vm0, %v304_v60 }
  0x64   : > { %2267 = vmatmul.mubr.msk.f32.gmra.mrb[30].mxu0 %vm334_vm0, %v305_v61 }
  0x65   : > { %2269 = vmatprep.mubr.msk.f32.mxu0 %vm334_vm0, %v306_v62 }
  0x68   : > { %2270 = vmatmul.mubr.msk.f32.gmra.mrb[32].mxu0 %vm334_vm0, %v307_v63  ;;  %v3336_v63 = vld [vmem:[%s3844_s2 + $0x38] sm:$0xff] }
  0x69   : > { %2272 = vmatprep.mubr.msk.f32.mxu0 %vm334_vm0, %v308_v0 }
  0x6c   : > { %2273 = vmatmul.mubr.msk.f32.gmra.mrb[34].mxu0 %vm334_vm0, %v309_v1 }
  0x6d   : > { %2275 = vmatprep.mubr.msk.f32.mxu0 %vm334_vm0, %v310_v2 }
  0x70   : > { %2276 = vmatmul.mubr.msk.f32.gmra.mrb[36].mxu0 %vm334_vm0, %v311_v3  ;;  %v3345_v3 = vld [vmem:[%s3844_s2 + $0x40] sm:$0xff] }
  0x71   : > { %2278 = vmatprep.mubr.msk.f32.mxu0 %vm334_vm0, %v312_v4 }
  0x74   : > { %2279 = vmatmul.mubr.msk.f32.gmra.mrb[38].mxu0 %vm334_vm0, %v313_v5 }
  0x75   : > { %2281 = vmatprep.mubr.msk.f32.mxu0 %vm334_vm0, %v314_v6 }
  0x78   : > { %2282 = vmatmul.mubr.msk.f32.gmra.mrb[40].mxu0 %vm334_vm0, %v315_v7  ;;  %v3354_v7 = vld [vmem:[%s3844_s2 + $0x48] sm:$0xff] }
  0x79   : > { %2284 = vmatprep.mubr.msk.f32.mxu0 %vm334_vm0, %v316_v8 }
  0x7c   : > { %2285 = vmatmul.mubr.msk.f32.gmra.mrb[42].mxu0 %vm334_vm0, %v317_v9 }
  0x7d   : > { %2287 = vmatprep.mubr.msk.f32.mxu0 %vm334_vm0, %v318_v10 }
  0x80   : > { %2288 = vmatmul.mubr.msk.f32.gmra.mrb[44].mxu0 %vm334_vm0, %v319_v11  ;;  %v3363_v11 = vld [vmem:[%s3844_s2 + $0x50] sm:$0x3f] }
  0x81   : > { %2290 = vmatprep.mubr.msk.f32.mxu0 %vm334_vm0, %v320_v12 }
  0x84   : > { %2291 = vmatmul.mubr.msk.f32.gmra.mrb[46].mxu0 %vm334_vm0, %v321_v14 }
  0x85   : > { %2293 = vmatprep.mubr.msk.f32.mxu0 %vm334_vm0, %v3040_v26 }
  0x88   : > { %2294 = vmatmul.mubr.msk.f32.gmra.mrb[48].mxu0 %vm334_vm0, %v3044_v27 }
  0x89   : > { %2296 = vmatprep.mubr.msk.f32.mxu0 %vm334_vm0, %v3057_v32 }
  0x8c   : > { %2297 = vmatmul.mubr.msk.f32.gmra.mrb[50].mxu0 %vm334_vm0, %v3061_v33 }
  0x8d   : > { %2299 = vmatprep.mubr.msk.f32.mxu0 %vm334_vm0, %v3072_v37 }
  0x90   : > { %2300 = vmatmul.mubr.msk.f32.gmra.mrb[52].mxu0 %vm334_vm0, %v3076_v38 }
  0x91   : > { %2302 = vmatprep.mubr.msk.f32.mxu0 %vm334_vm0, %v3087_v42 }
  0x94   : > { %2303 = vmatmul.mubr.msk.f32.gmra.mrb[54].mxu0 %vm334_vm0, %v3091_v43  ;;  %v3286_v43 = vld [vmem:[%s3844_s2 + $0x10] sm:$0xff] }
  0x95   : > { %2305 = vmatprep.mubr.msk.f32.mxu0 %vm334_vm0, %v3102_v47  ;;  %v3296_v47 = vld [vmem:[%s3844_s2 + $0x18] sm:$0xff] }
  0x98   : > { %2306 = vmatmul.mubr.msk.f32.gmra.mrb[56].mxu0 %vm334_vm0, %v3105_v48 }
  0x99   : > { %2308 = vmatprep.mubr.msk.f32.mxu0 %vm334_vm0, %v3114_v52 }
  0x9c   : > { %2309 = vmatmul.mubr.msk.f32.gmra.mrb[58].mxu0 %vm334_vm0, %v3117_v53 }
  0x9d   : > { %2506 = vmatprep.mubr.msk.f32.mxu0 %vm2874_vm1, %v2875_v15 }
  0xfb   : > { %v2223_v16 = vpop.f32.mrb[0].mxu0 }
  0xfc   : > { %v581_v17 = vpop.f32.mrb[1].mxu0 }
  0xfd   : > { %v2621_v18 = vpack.c.bf16 %v2223_v16, %v581_v17 }
  0xff   : > { %v2226_v19 = vpop.f32.mrb[2].mxu0  ;;  %2622 = vmatpush3.bf16.msra.mxu1 %v2621_v18 }
 0x100   : > { %v591_v20 = vpop.f32.mrb[3].mxu0  ;;  %2623 = vmatprep.subr.bf16.mxu1 %v2873_v13 }
 0x101   : > { %v2624_v21 = vpack.c.bf16 %v2226_v19, %v591_v20 }
 0x103   : > { %v2229_v22 = vpop.f32.mrb[4].mxu0  ;;  %2625 = vmatpush3.bf16.msra.mxu1 %v2624_v21 }
 0x104   : > { %v601_v23 = vpop.f32.mrb[5].mxu0  ;;  %2626 = vmatprep.subr.bf16.mxu1 %v2873_v13 }
 0x105   : > { %v2627_v24 = vpack.c.bf16 %v2229_v22, %v601_v23 }
 0x107   : > { %v2232_v25 = vpop.f32.mrb[6].mxu0  ;;  %2628 = vmatpush3.bf16.msra.mxu1 %v2627_v24 }
 0x108   : > { %v611_v26 = vpop.f32.mrb[7].mxu0  ;;  %2629 = vmatprep.subr.bf16.mxu1 %v2873_v13 }
 0x109   : > { %v2630_v27 = vpack.c.bf16 %v2232_v25, %v611_v26 }
 0x10b   : > { %v2235_v28 = vpop.f32.mrb[8].mxu0  ;;  %2631 = vmatpush3.bf16.msra.mxu1 %v2630_v27 }
 0x10c   : > { %v621_v29 = vpop.f32.mrb[9].mxu0  ;;  %2632 = vmatprep.subr.bf16.mxu1 %v2873_v13 }
 0x10d   : > { %v2633_v30 = vpack.c.bf16 %v2235_v28, %v621_v29 }
 0x10f   : > { %v2238_v31 = vpop.f32.mrb[10].mxu0  ;;  %2634 = vmatpush3.bf16.msra.mxu1 %v2633_v30 }
 0x110   : > { %v631_v32 = vpop.f32.mrb[11].mxu0  ;;  %2635 = vmatprep.subr.bf16.mxu1 %v2873_v13 }
 0x111   : > { %v2636_v33 = vpack.c.bf16 %v2238_v31, %v631_v32 }
 0x113   : > { %v2241_v34 = vpop.f32.mrb[12].mxu0  ;;  %2637 = vmatpush3.bf16.msra.mxu1 %v2636_v33 }
 0x114   : > { %v641_v36 = vpop.f32.mrb[13].mxu0  ;;  %2638 = vmatprep.subr.bf16.mxu1 %v2873_v13 }
 0x115   : > { %v2639_v37 = vpack.c.bf16 %v2241_v34, %v641_v36 }
 0x116   : > { %2336 = vmatmul.mubr.msk.f32.vlgmr.msra.gmra.mrb[0].mxu1 %vm334_vm0, %v3266_v35 }
 0x117   : > { %v2244_v38 = vpop.f32.mrb[14].mxu0  ;;  %2640 = vmatpush3.bf16.msra.mxu1 %v2639_v37  ;;  %2338 = vmatprep.mubr.msk.f32.mxu1 %vm2874_vm1, %v2875_v15 }
 0x118   : > { %v651_v40 = vpop.f32.mrb[15].mxu0  ;;  %2641 = vmatprep.subr.bf16.mxu1 %v2873_v13 }
 0x119   : > { %v2642_v41 = vpack.c.bf16 %v2244_v38, %v651_v40 }
 0x11a   : > { %2339 = vmatmul.mubr.msk.f32.gmra.mrb[2].mxu1 %vm334_vm0, %v3276_v39 }
 0x11b   : > { %v2247_v42 = vpop.f32.mrb[16].mxu0  ;;  %2643 = vmatpush3.bf16.msra.mxu1 %v2642_v41  ;;  %2341 = vmatprep.mubr.msk.f32.mxu1 %vm2874_vm1, %v2875_v15 }
 0x11c   : > { %v661_v44 = vpop.f32.mrb[17].mxu0  ;;  %2644 = vmatprep.subr.bf16.mxu1 %v2873_v13 }
 0x11d   : > { %v2645_v45 = vpack.c.bf16 %v2247_v42, %v661_v44 }
 0x11e   : > { %2342 = vmatmul.mubr.msk.f32.gmra.mrb[4].mxu1 %vm334_vm0, %v3286_v43 }
 0x11f   : > { %v2250_v46 = vpop.f32.mrb[18].mxu0  ;;  %2646 = vmatpush3.bf16.msra.mxu1 %v2645_v45  ;;  %2344 = vmatprep.mubr.msk.f32.mxu1 %vm2874_vm1, %v2875_v15 }
 0x120   : > { %v671_v48 = vpop.f32.mrb[19].mxu0  ;;  %2647 = vmatprep.subr.bf16.mxu1 %v2873_v13 }
 0x121   : > { %v2648_v49 = vpack.c.bf16 %v2250_v46, %v671_v48 }
 0x122   : > { %2345 = vmatmul.mubr.msk.f32.gmra.mrb[6].mxu1 %vm334_vm0, %v3296_v47 }
 0x123   : > { %v2253_v50 = vpop.f32.mrb[20].mxu0  ;;  %2649 = vmatpush3.bf16.msra.mxu1 %v2648_v49  ;;  %2347 = vmatprep.mubr.msk.f32.mxu1 %vm2874_vm1, %v2875_v15 }
 0x124   : > { %v681_v52 = vpop.f32.mrb[21].mxu0  ;;  %2650 = vmatprep.subr.bf16.mxu1 %v2873_v13 }
 0x125   : > { %v2651_v53 = vpack.c.bf16 %v2253_v50, %v681_v52 }
 0x126   : > { %2348 = vmatmul.mubr.msk.f32.gmra.mrb[8].mxu1 %vm334_vm0, %v3306_v51 }
 0x127   : > { %v2256_v54 = vpop.f32.mrb[22].mxu0  ;;  %2652 = vmatpush3.bf16.msra.mxu1 %v2651_v53  ;;  %2350 = vmatprep.mubr.msk.f32.mxu1 %vm2874_vm1, %v2875_v15 }
 0x128   : > { %v691_v56 = vpop.f32.mrb[23].mxu0  ;;  %2653 = vmatprep.subr.bf16.mxu1 %v2873_v13 }
 0x129   : > { %v2654_v57 = vpack.c.bf16 %v2256_v54, %v691_v56 }
 0x12a   : > { %2351 = vmatmul.mubr.msk.f32.gmra.mrb[10].mxu1 %vm334_vm0, %v3316_v55 }
 0x12b   : > { %v2259_v58 = vpop.f32.mrb[24].mxu0  ;;  %2655 = vmatpush3.bf16.msra.mxu1 %v2654_v57  ;;  %2353 = vmatprep.mubr.msk.f32.mxu1 %vm2874_vm1, %v2875_v15 }
 0x12c   : > { %v701_v60 = vpop.f32.mrb[25].mxu0  ;;  %2656 = vmatprep.subr.bf16.mxu1 %v2873_v13 }
 0x12d   : > { %v2657_v61 = vpack.c.bf16 %v2259_v58, %v701_v60 }
 0x12e   : > { %2354 = vmatmul.mubr.msk.f32.gmra.mrb[12].mxu1 %vm334_vm0, %v3326_v59 }
 0x12f   : > { %v2262_v62 = vpop.f32.mrb[26].mxu0  ;;  %2356 = vmatprep.mubr.msk.f32.mxu1 %vm2874_vm1, %v2875_v15 }
 0x130   : > { %v711_v0 = vpop.f32.mrb[27].mxu0 }
 0x131   : > { %v2660_v1 = vpack.c.bf16 %v2262_v62, %v711_v0 }
 0x132   : > { %2357 = vmatmul.mubr.msk.f32.gmra.mrb[14].mxu1 %vm334_vm0, %v3336_v63 }
 0x133   : > { %v2265_v2 = vpop.f32.mrb[28].mxu0  ;;  %2359 = vmatprep.mubr.msk.f32.mxu1 %vm2874_vm1, %v2875_v15 }
 0x134   : > { %v721_v4 = vpop.f32.mrb[29].mxu0 }
 0x135   : > { %v2663_v5 = vpack.c.bf16 %v2265_v2, %v721_v4 }
 0x136   : > { %2360 = vmatmul.mubr.msk.f32.gmra.mrb[16].mxu1 %vm334_vm0, %v3345_v3 }
 0x137   : > { %v2268_v6 = vpop.f32.mrb[30].mxu0  ;;  %2362 = vmatprep.mubr.msk.f32.mxu1 %vm2874_vm1, %v2875_v15 }
 0x138   : > { %v731_v8 = vpop.f32.mrb[31].mxu0 }
 0x139   : > { %v2666_v9 = vpack.c.bf16 %v2268_v6, %v731_v8 }
 0x13a   : > { %2363 = vmatmul.mubr.msk.f32.gmra.mrb[18].mxu1 %vm334_vm0, %v3354_v7 }
 0x13b   : > { %v2271_v10 = vpop.f32.mrb[32].mxu0  ;;  %2365 = vmatprep.mubr.msk.f32.mxu1 %vm2874_vm1, %v2875_v15 }
 0x13c   : > { %v741_v12 = vpop.f32.mrb[33].mxu0 }
 0x13d   : > { %v2669_v14 = vpack.c.bf16 %v2271_v10, %v741_v12 }
 0x13e   : > { %2366 = vmatmul.mubr.msk.f32.gmra.mrb[20].mxu1 %vm334_vm0, %v3363_v11 }
 0x13f   : > { %v2274_v16 = vpop.f32.mrb[34].mxu0  ;;  %2392 = vmatprep.mubr.msk.f32.mxu1 %vm2874_vm1, %v2875_v15 }
 0x140   : > { %v751_v17 = vpop.f32.mrb[35].mxu0 }
 0x141   : > { %v2672_v18 = vpack.c.bf16 %v2274_v16, %v751_v17 }
 0x142   : > { %2393 = vmatmul.mubr.msk.f32.vlgmr.msra.gmra.mrb[22].mxu1 %vm334_vm0, %v3266_v35 }
 0x143   : > { %2658 = vmatpush3.bf16.msra.mxu1 %v2657_v61  ;;  %v2277_v19 = vpop.f32.mrb[36].mxu0  ;;  %2395 = vmatprep.mubr.msk.f32.mxu1 %vm2874_vm1, %v2875_v15 }
 0x144   : > { %v761_v20 = vpop.f32.mrb[37].mxu0  ;;  %2659 = vmatprep.subr.bf16.mxu1 %v2873_v13 }
 0x145   : > { %v2675_v21 = vpack.c.bf16 %v2277_v19, %v761_v20 }
 0x146   : > { %2396 = vmatmul.mubr.msk.f32.gmra.mrb[24].mxu1 %vm334_vm0, %v3276_v39 }
 0x147   : > { %2661 = vmatpush3.bf16.msra.mxu1 %v2660_v1  ;;  %v2280_v22 = vpop.f32.mrb[38].mxu0  ;;  %2676 = vmatpush3.bf16.msra.mxu0 %v2675_v21 }
 0x148   : > { %v771_v23 = vpop.f32.mrb[39].mxu0  ;;  %2398 = vmatprep.mubr.msk.f32.mxu1 %vm2874_vm1, %v2875_v15  ;;  %2662 = vmatprep.subr.bf16.mxu1 %v2873_v13 }
 0x149   : > { %v2678_v24 = vpack.c.bf16 %v2280_v22, %v771_v23  ;;  %2677 = vmatprep.subr.bf16.mxu0 %v2873_v13 }
 0x14a   : > { %2399 = vmatmul.mubr.msk.f32.gmra.mrb[26].mxu1 %vm334_vm0, %v3286_v43 }
 0x14b   : > { %2664 = vmatpush3.bf16.msra.mxu1 %v2663_v5  ;;  %v2283_v25 = vpop.f32.mrb[40].mxu0  ;;  %2679 = vmatpush3.bf16.msra.mxu0 %v2678_v24 }
 0x14c   : > { %v781_v26 = vpop.f32.mrb[41].mxu0  ;;  %2401 = vmatprep.mubr.msk.f32.mxu1 %vm2874_vm1, %v2875_v15  ;;  %2665 = vmatprep.subr.bf16.mxu1 %v2873_v13 }
 0x14d   : > { %v2681_v27 = vpack.c.bf16 %v2283_v25, %v781_v26  ;;  %2680 = vmatprep.subr.bf16.mxu0 %v2873_v13 }
 0x14e   : > { %2402 = vmatmul.mubr.msk.f32.gmra.mrb[28].mxu1 %vm334_vm0, %v3296_v47 }
 0x14f   : > { %2667 = vmatpush3.bf16.msra.mxu1 %v2666_v9  ;;  %v2286_v28 = vpop.f32.mrb[42].mxu0  ;;  %2682 = vmatpush3.bf16.msra.mxu0 %v2681_v27 }
 0x150   : > { %v791_v29 = vpop.f32.mrb[43].mxu0  ;;  %2404 = vmatprep.mubr.msk.f32.mxu1 %vm2874_vm1, %v2875_v15  ;;  %2668 = vmatprep.subr.bf16.mxu1 %v2873_v13 }
 0x151   : > { %v2684_v30 = vpack.c.bf16 %v2286_v28, %v791_v29  ;;  %2683 = vmatprep.subr.bf16.mxu0 %v2873_v13 }
 0x152   : > { %2405 = vmatmul.mubr.msk.f32.gmra.mrb[30].mxu1 %vm334_vm0, %v3306_v51 }
 0x153   : > { %2670 = vmatpush3.bf16.msra.mxu1 %v2669_v14  ;;  %v2289_v31 = vpop.f32.mrb[44].mxu0  ;;  %2685 = vmatpush3.bf16.msra.mxu0 %v2684_v30 }
 0x154   : > { %v801_v32 = vpop.f32.mrb[45].mxu0  ;;  %2407 = vmatprep.mubr.msk.f32.mxu1 %vm2874_vm1, %v2875_v15  ;;  %2671 = vmatprep.subr.bf16.mxu1 %v2873_v13 }
 0x155   : > { %v2687_v33 = vpack.c.bf16 %v2289_v31, %v801_v32  ;;  %2686 = vmatprep.subr.bf16.mxu0 %v2873_v13 }
 0x156   : > { %2408 = vmatmul.mubr.msk.f32.gmra.mrb[32].mxu1 %vm334_vm0, %v3316_v55 }
 0x157   : > { %2673 = vmatpush3.bf16.msra.mxu1 %v2672_v18  ;;  %v2292_v34 = vpop.f32.mrb[46].mxu0  ;;  %2688 = vmatpush3.bf16.msra.mxu0 %v2687_v33 }
 0x158   : > { %v811_v36 = vpop.f32.mrb[47].mxu0  ;;  %2410 = vmatprep.mubr.msk.f32.mxu1 %vm2874_vm1, %v2875_v15  ;;  %2689 = vmatprep.subr.bf16.mxu0 %v2873_v13 }
 0x159   : > { %v2690_v37 = vpack.c.bf16 %v2292_v34, %v811_v36  ;;  %2710 = vmatprep.subr.bf16.mxu1 %v2873_v13 }
 0x15a   : > { %2411 = vmatmul.mubr.msk.f32.gmra.mrb[34].mxu1 %vm334_vm0, %v3326_v59 }
 0x15b   : > { %2691 = vmatpush3.bf16.msra.mxu0 %v2690_v37  ;;  %2413 = vmatprep.mubr.msk.f32.mxu1 %vm2874_vm1, %v2875_v15  ;;  %v2295_v38 = vpop.f32.mrb[48].mxu0 }
 0x15c   : > { %v821_v40 = vpop.f32.mrb[49].mxu0  ;;  %2692 = vmatprep.subr.bf16.mxu0 %v2873_v13 }
 0x15d   : > { %v2693_v41 = vpack.c.bf16 %v2295_v38, %v821_v40 }
 0x15e   : > { %2414 = vmatmul.mubr.msk.f32.gmra.mrb[36].mxu1 %vm334_vm0, %v3336_v63  ;;  %2507 = vmatmul.mubr.msk.f32.vlgmr.msra.gmra.mrb[60].mxu0 %vm334_vm0, %v3266_v35 }
 0x15f   : > { %2416 = vmatprep.mubr.msk.f32.mxu1 %vm2874_vm1, %v2875_v15  ;;  %2509 = vmatprep.mubr.msk.f32.mxu0 %vm2874_vm1, %v2875_v15  ;;  %v2298_v42 = vpop.f32.mrb[50].mxu0 }
 0x160   : > { %2694 = vmatpush3.bf16.msra.mxu0 %v2693_v41  ;;  %v831_v44 = vpop.f32.mrb[51].mxu0 }
 0x161   : > { %v2696_v45 = vpack.c.bf16 %v2298_v42, %v831_v44  ;;  %2695 = vmatprep.subr.bf16.mxu0 %v2873_v13 }
 0x162   : > { %2417 = vmatmul.mubr.msk.f32.gmra.mrb[38].mxu1 %vm334_vm0, %v3345_v3  ;;  %2510 = vmatmul.mubr.msk.f32.gmra.mrb[62].mxu0 %vm334_vm0, %v3276_v39 }
 0x163   : > { %2419 = vmatprep.mubr.msk.f32.mxu1 %vm2874_vm1, %v2875_v15  ;;  %2512 = vmatprep.mubr.msk.f32.mxu0 %vm2874_vm1, %v2875_v15  ;;  %v2301_v46 = vpop.f32.mrb[52].mxu0 }
 0x164   : > { %2697 = vmatpush3.bf16.msra.mxu0 %v2696_v45  ;;  %v841_v48 = vpop.f32.mrb[53].mxu0 }
 0x165   : > { %v2699_v49 = vpack.c.bf16 %v2301_v46, %v841_v48  ;;  %2698 = vmatprep.subr.bf16.mxu0 %v2873_v13 }
 0x166   : > { %2420 = vmatmul.mubr.msk.f32.gmra.mrb[40].mxu1 %vm334_vm0, %v3354_v7  ;;  %2513 = vmatmul.mubr.msk.f32.gmra.mrb[64].mxu0 %vm334_vm0, %v3286_v43 }
 0x167   : > { %2422 = vmatprep.mubr.msk.f32.mxu1 %vm2874_vm1, %v2875_v15  ;;  %2515 = vmatprep.mubr.msk.f32.mxu0 %vm2874_vm1, %v2875_v15  ;;  %v2304_v50 = vpop.f32.mrb[54].mxu0 }
 0x168   : > { %2700 = vmatpush3.bf16.msra.mxu0 %v2699_v49  ;;  %v851_v52 = vpop.f32.mrb[55].mxu0 }
 0x169   : > { %v2702_v53 = vpack.c.bf16 %v2304_v50, %v851_v52  ;;  %2701 = vmatprep.subr.bf16.mxu0 %v2873_v13 }
 0x16a   : > { %2423 = vmatmul.mubr.msk.f32.gmra.mrb[42].mxu1 %vm334_vm0, %v3363_v11  ;;  %2516 = vmatmul.mubr.msk.f32.gmra.mrb[66].mxu0 %vm334_vm0, %v3296_v47 }
 0x16b   : > { %2449 = vmatprep.mubr.msk.f32.mxu1 %vm2874_vm1, %v2875_v15  ;;  %2518 = vmatprep.mubr.msk.f32.mxu0 %vm2874_vm1, %v2875_v15  ;;  %v2307_v54 = vpop.f32.mrb[56].mxu0 }
 0x16c   : > { %2703 = vmatpush3.bf16.msra.mxu0 %v2702_v53  ;;  %v861_v56 = vpop.f32.mrb[57].mxu0 }
 0x16d   : > { %v2705_v57 = vpack.c.bf16 %v2307_v54, %v861_v56  ;;  %2704 = vmatprep.subr.bf16.mxu0 %v2873_v13 }
 0x16e   : > { %2450 = vmatmul.mubr.msk.f32.vlgmr.msra.gmra.mrb[44].mxu1 %vm334_vm0, %v3266_v35  ;;  %2519 = vmatmul.mubr.msk.f32.gmra.mrb[68].mxu0 %vm334_vm0, %v3306_v51 }
 0x16f   : > { %2452 = vmatprep.mubr.msk.f32.mxu1 %vm2874_vm1, %v2875_v15  ;;  %2521 = vmatprep.mubr.msk.f32.mxu0 %vm2874_vm1, %v2875_v15  ;;  %v2310_v58 = vpop.f32.mrb[58].mxu0 }
 0x170   : > { %2716 = vmatpush3.bf16.msra.mxu1 %v2693_v41  ;;  %2706 = vmatpush3.bf16.msra.mxu0 %v2705_v57  ;;  %v871_v60 = vpop.f32.mrb[59].mxu0 }
 0x171   : > { %v2708_v61 = vpack.c.bf16 %v2310_v58, %v871_v60  ;;  %2711 = vmatprep.subr.bf16.mxu1 %v2873_v13  ;;  %2707 = vmatprep.subr.bf16.mxu0 %v2873_v13 }
 0x172   : > { %2453 = vmatmul.mubr.msk.f32.gmra.mrb[46].mxu1 %vm334_vm0, %v3276_v39  ;;  %2522 = vmatmul.mubr.msk.f32.gmra.mrb[70].mxu0 %vm334_vm0, %v3316_v55 }
 0x173   : > { %2455 = vmatprep.mubr.msk.f32.mxu1 %vm2874_vm1, %v2875_v15  ;;  %2524 = vmatprep.mubr.msk.f32.mxu0 %vm2874_vm1, %v2875_v15 }
 0x174   : > { %2717 = vmatpush3.bf16.msra.mxu1 %v2696_v45  ;;  %2709 = vmatpush3.bf16.msra.mxu0 %v2708_v61 }
 0x175   : > { %2712 = vmatprep.subr.bf16.mxu1 %v2873_v13 }
 0x176   : > { %2456 = vmatmul.mubr.msk.f32.gmra.mrb[48].mxu1 %vm334_vm0, %v3286_v43  ;;  %2525 = vmatmul.mubr.msk.f32.gmra.mrb[72].mxu0 %vm334_vm0, %v3326_v59 }
 0x177   : > { %2458 = vmatprep.mubr.msk.f32.mxu1 %vm2874_vm1, %v2875_v15  ;;  %2527 = vmatprep.mubr.msk.f32.mxu0 %vm2874_vm1, %v2875_v15 }
 0x178   : > { %2718 = vmatpush3.bf16.msra.mxu1 %v2699_v49 }
 0x179   : > { %2713 = vmatprep.subr.bf16.mxu1 %v2873_v13 }
 0x17a   : > { %2459 = vmatmul.mubr.msk.f32.gmra.mrb[50].mxu1 %vm334_vm0, %v3296_v47  ;;  %2528 = vmatmul.mubr.msk.f32.gmra.mrb[74].mxu0 %vm334_vm0, %v3336_v63 }
 0x17b   : > { %2461 = vmatprep.mubr.msk.f32.mxu1 %vm2874_vm1, %v2875_v15  ;;  %2530 = vmatprep.mubr.msk.f32.mxu0 %vm2874_vm1, %v2875_v15 }
 0x17c   : > { %2719 = vmatpush3.bf16.msra.mxu1 %v2702_v53 }
 0x17d   : > { %2714 = vmatprep.subr.bf16.mxu1 %v2873_v13 }
 0x17e   : > { %2462 = vmatmul.mubr.msk.f32.gmra.mrb[52].mxu1 %vm334_vm0, %v3306_v51  ;;  %2531 = vmatmul.mubr.msk.f32.gmra.mrb[76].mxu0 %vm334_vm0, %v3345_v3 }
 0x17f   : > { %2464 = vmatprep.mubr.msk.f32.mxu1 %vm2874_vm1, %v2875_v15  ;;  %2533 = vmatprep.mubr.msk.f32.mxu0 %vm2874_vm1, %v2875_v15 }
 0x180   : > { %2720 = vmatpush3.bf16.msra.mxu1 %v2705_v57 }
 0x181   : > { %2715 = vmatprep.subr.bf16.mxu1 %v2873_v13 }
 0x182   : > { %2465 = vmatmul.mubr.msk.f32.gmra.mrb[54].mxu1 %vm334_vm0, %v3316_v55  ;;  %2534 = vmatmul.mubr.msk.f32.gmra.mrb[78].mxu0 %vm334_vm0, %v3354_v7 }
 0x183   : > { %2467 = vmatprep.mubr.msk.f32.mxu1 %vm2874_vm1, %v2875_v15  ;;  %2536 = vmatprep.mubr.msk.f32.mxu0 %vm2874_vm1, %v2875_v15 }
 0x184   : > { %2721 = vmatpush3.bf16.msra.mxu1 %v2708_v61 }
 0x186   : > { %2468 = vmatmul.mubr.msk.f32.gmra.mrb[56].mxu1 %vm334_vm0, %v3326_v59  ;;  %2537 = vmatmul.mubr.msk.f32.gmra.mrb[80].mxu0 %vm334_vm0, %v3363_v11 }
 0x187   : > { %2470 = vmatprep.mubr.msk.f32.mxu1 %vm2874_vm1, %v2875_v15  ;;  %2563 = vmatprep.mubr.msk.f32.mxu0 %vm2874_vm1, %v2875_v15 }
 0x18a   : > { %2471 = vmatmul.mubr.msk.f32.gmra.mrb[58].mxu1 %vm334_vm0, %v3336_v63  ;;  %2564 = vmatmul.mubr.msk.f32.vlgmr.msra.gmra.mrb[82].mxu0 %vm334_vm0, %v3266_v35 }
 0x18b   : > { %2473 = vmatprep.mubr.msk.f32.mxu1 %vm2874_vm1, %v2875_v15 }
 0x18e   : > { %2474 = vmatmul.mubr.msk.f32.gmra.mrb[60].mxu1 %vm334_vm0, %v3345_v3 }
 0x18f   : > { %2476 = vmatprep.mubr.msk.f32.mxu1 %vm2874_vm1, %v2875_v15 }
 0x192   : > { %2477 = vmatmul.mubr.msk.f32.gmra.mrb[62].mxu1 %vm334_vm0, %v3354_v7 }
 0x193   : > { %2479 = vmatprep.mubr.msk.f32.mxu1 %vm2874_vm1, %v2875_v15 }
 0x196   : > { %2480 = vmatmul.mubr.msk.f32.gmra.mrb[64].mxu1 %vm334_vm0, %v3363_v11 }
 0x197   : > { %2566 = vmatprep.mubr.msk.f32.mxu1 %vm2874_vm1, %v2875_v15 }
 0x19a   : > { %2567 = vmatmul.mubr.msk.f32.vlgmr.msra.gmra.mrb[66].mxu1 %vm334_vm0, %v3276_v39 }
 0x19b   : > { %2569 = vmatprep.mubr.msk.f32.mxu1 %vm2874_vm1, %v2875_v15 }
 0x19e   : > { %2570 = vmatmul.mubr.msk.f32.gmra.mrb[68].mxu1 %vm334_vm0, %v3286_v43 }
 0x19f   : > { %2572 = vmatprep.mubr.msk.f32.mxu1 %vm2874_vm1, %v2875_v15 }
 0x1a2   : > { %2573 = vmatmul.mubr.msk.f32.gmra.mrb[70].mxu1 %vm334_vm0, %v3296_v47 }
 0x1a3   : > { %2575 = vmatprep.mubr.msk.f32.mxu1 %vm2874_vm1, %v2875_v15 }
 0x1a6   : > { %2576 = vmatmul.mubr.msk.f32.gmra.mrb[72].mxu1 %vm334_vm0, %v3306_v51 }
 0x1a7   : > { %2578 = vmatprep.mubr.msk.f32.mxu1 %vm2874_vm1, %v2875_v15 }
 0x1aa   : > { %2579 = vmatmul.mubr.msk.f32.gmra.mrb[74].mxu1 %vm334_vm0, %v3316_v55 }
 0x1ab   : > { %2581 = vmatprep.mubr.msk.f32.mxu1 %vm2874_vm1, %v2875_v15 }
 0x1ae   : > { %2582 = vmatmul.mubr.msk.f32.gmra.mrb[76].mxu1 %vm334_vm0, %v3326_v59 }
 0x1af   : > { %2584 = vmatprep.mubr.msk.f32.mxu1 %vm2874_vm1, %v2875_v15 }
 0x1b2   : > { %2585 = vmatmul.mubr.msk.f32.gmra.mrb[78].mxu1 %vm334_vm0, %v3336_v63 }
 0x1b3   : > { %2587 = vmatprep.mubr.msk.f32.mxu1 %vm2874_vm1, %v2875_v15 }
 0x1b6   : > { %2588 = vmatmul.mubr.msk.f32.gmra.mrb[80].mxu1 %vm334_vm0, %v3345_v3 }
 0x1b7   : > { %2590 = vmatprep.mubr.msk.f32.mxu1 %vm2874_vm1, %v2875_v15 }
 0x1ba   : > { %2591 = vmatmul.mubr.msk.f32.gmra.mrb[82].mxu1 %vm334_vm0, %v3354_v7 }
 0x1bb   : > { %2593 = vmatprep.mubr.msk.f32.mxu1 %vm2874_vm1, %v2875_v15 }
 0x1be   : > { %2594 = vmatmul.mubr.msk.f32.gmra.mrb[84].mxu1 %vm334_vm0, %v3363_v11 }
 0x1e9   : > { %v979_v13 = vpop.f32.mrb[0].mxu1 }
 0x1ea   : > { %v2337_v35 = vpop.f32.mrb[1].mxu1  ;;  %v3573_v12 = vmul.f32 %v979_v13, %v979_v13 }
 0x1ed   : > { %v984_v39 = vpop.f32.mrb[2].mxu1 }
 0x1ee   : > { %v2340_v43 = vpop.f32.mrb[3].mxu1  ;;  %v3581_v20 = vmul.f32 %v984_v39, %v984_v39 }
 0x1f1   : > { %v989_v47 = vpop.f32.mrb[4].mxu1 }
 0x1f2   : > { %v2343_v51 = vpop.f32.mrb[5].mxu1  ;;  %v3589_v27 = vmul.f32 %v989_v47, %v989_v47 }
 0x1f5   : > { %v994_v55 = vpop.f32.mrb[6].mxu1 }
 0x1f6   : > { %v2346_v59 = vpop.f32.mrb[7].mxu1  ;;  %v3598_v36 = vmul.f32 %v994_v55, %v994_v55 }
 0x1f9   : > { %v999_v62 = vpop.f32.mrb[8].mxu1 }
 0x1fa   : > { %v2349_v63 = vpop.f32.mrb[9].mxu1  ;;  %v3607_v49 = vmul.f32 %v999_v62, %v999_v62 }
 0x1fd   : > { %v1004_v0 = vpop.f32.mrb[10].mxu1 }
 0x1fe   : > { %v2352_v1 = vpop.f32.mrb[11].mxu1  ;;  %v3618_v35 = vmul.f32 %v1004_v0, %v1004_v0 }
 0x201   : > { %v3563_v2 = vpop.f32.mrb[12].mxu1 }
 0x202   : > { %v2355_v3 = vpop.f32.mrb[13].mxu1 }
 0x205   : > { %v3565_v4 = vpop.f32.mrb[14].mxu1 }
 0x206   : > { %v2358_v15 = vpop.f32.mrb[15].mxu1 }
 0x207   : > { %v3631_v15 = vmul.f32 %v3563_v2, %v3563_v2 }
 0x209   : > { %v3567_v5 = vpop.f32.mrb[16].mxu1 }
 0x20a   : > { %v2361_v6 = vpop.f32.mrb[17].mxu1 }
 0x20d   : > { %v3569_v7 = vpop.f32.mrb[18].mxu1 }
 0x20e   : > { %v2364_v8 = vpop.f32.mrb[19].mxu1 }
 0x211   : > { %v3571_v9 = vpop.f32.mrb[20].mxu1 }
 0x212   : > { %v2367_v10 = vpop.f32.mrb[21].mxu1 }
 0x215   : > { %v1099_v11 = vpop.f32.mrb[22].mxu1 }
 0x216   : > { %v3575_v14 = vmul.f32 %v1099_v11, %v1099_v11  ;;  %v3577_v16 = vmul.f32 %v1099_v11, %v979_v13  ;;  %v2394_v17 = vpop.f32.mrb[23].mxu1 }
 0x218   : > { %v1667_v18 = vadd.f32 %v3575_v14, %v3573_v12  ;;  %v1645_v33 = vmul.f32 2.0, %v3577_v16 }
 0x219   : > { %v1104_v19 = vpop.f32.mrb[24].mxu1 }
 0x21a   : > { %v1678_v21 = vadd.f32 0.0001, %v1667_v18  ;;  %v3583_v22 = vmul.f32 %v1104_v19, %v1104_v19  ;;  %v3585_v23 = vmul.f32 %v1104_v19, %v984_v39  ;;  %v2397_v24 = vpop.f32.mrb[25].mxu1  ;;  %v1656_v44 = vadd.f32 0.0001, %v1645_v33 }
 0x21c   : > { %2765 = vrcp.f32 %v1678_v21  ;;  %v1668_v25 = vadd.f32 %v3583_v22, %v3581_v20  ;;  %v1646_v45 = vmul.f32 2.0, %v3585_v23 }
 0x21d   : > { %v1109_v26 = vpop.f32.mrb[26].mxu1 }
 0x21e   : > { %v1679_v28 = vadd.f32 0.0001, %v1668_v25  ;;  %v3591_v29 = vmul.f32 %v1109_v26, %v1109_v26  ;;  %v3593_v30 = vmul.f32 %v1109_v26, %v989_v47  ;;  %v2400_v31 = vpop.f32.mrb[27].mxu1  ;;  %v1657_v58 = vadd.f32 0.0001, %v1646_v45 }
 0x21f   : > { %v3647_v26 = vmul.f32 %v3565_v4, %v3565_v4 }
 0x220   : > { %2767 = vrcp.f32 %v1679_v28  ;;  %v1669_v32 = vadd.f32 %v3591_v29, %v3589_v27  ;;  %v1647_v60 = vmul.f32 2.0, %v3593_v30 }
 0x221   : > { %v1114_v34 = vpop.f32.mrb[28].mxu1 }
 0x222   : > { %v1680_v37 = vadd.f32 0.0001, %v1669_v32  ;;  %v3600_v38 = vmul.f32 %v1114_v34, %v1114_v34  ;;  %v3602_v40 = vmul.f32 %v1114_v34, %v994_v55  ;;  %v2403_v41 = vpop.f32.mrb[29].mxu1 }
 0x224   : > { %2769 = vrcp.f32 %v1680_v37  ;;  %v1670_v42 = vadd.f32 %v3600_v38, %v3598_v36  ;;  %v1648_v63 = vmul.f32 2.0, %v3602_v40 }
 0x225   : > { %v1119_v46 = vpop.f32.mrb[30].mxu1 }
 0x226   : > { %v2766_v48 = vpop.eup %2765  ;;  %v1681_v50 = vadd.f32 0.0001, %v1670_v42  ;;  %v3609_v52 = vmul.f32 %v1119_v46, %v1119_v46  ;;  %v3611_v53 = vmul.f32 %v1119_v46, %v999_v62  ;;  %v2406_v54 = vpop.f32.mrb[31].mxu1  ;;  %v1658_v62 = vadd.f32 0.0001, %v1647_v60 }
 0x227   : > { %v3613_v56 = vmul.f32 %v2766_v48, %v1656_v44  ;;  %v1659_v18 = vadd.f32 0.0001, %v1648_v63 }
 0x228   : > { %2771 = vrcp.f32 %v1681_v50  ;;  %v1671_v57 = vadd.f32 %v3609_v52, %v3607_v49  ;;  %v1649_v19 = vmul.f32 2.0, %v3611_v53 }
 0x229   : > { %v1124_v61 = vpop.f32.mrb[32].mxu1 }
 0x22a   : > { %v2768_v13 = vpop.eup %2767  ;;  %v1682_v39 = vadd.f32 0.0001, %v1671_v57  ;;  %v3620_v43 = vmul.f32 %v1124_v61, %v1124_v61  ;;  %v3622_v47 = vmul.f32 %v1124_v61, %v1004_v0  ;;  %v2409_v51 = vpop.f32.mrb[33].mxu1  ;;  %v1660_v42 = vadd.f32 0.0001, %v1649_v19 }
 0x22b   : > { %v3624_v55 = vmul.f32 %v2768_v13, %v1657_v58 }
 0x22c   : > { %2773 = vrcp.f32 %v1682_v39  ;;  %v1672_v59 = vadd.f32 %v3620_v43, %v3618_v35  ;;  %v1650_v44 = vmul.f32 2.0, %v3622_v47 }
 0x22d   : > { %v1129_v1 = vpop.f32.mrb[34].mxu1 }
 0x22e   : > { %v2770_v3 = vpop.eup %2769  ;;  %v1683_v6 = vadd.f32 0.0001, %v1672_v59  ;;  %v3633_v8 = vmul.f32 %v1129_v1, %v1129_v1  ;;  %v3636_v0 = vmul.f32 %v1129_v1, %v3563_v2  ;;  %v2412_v10 = vpop.f32.mrb[35].mxu1  ;;  %v1661_v39 = vadd.f32 0.0001, %v1650_v44 }
 0x22f   : > { %v3638_v11 = vmul.f32 %v2770_v3, %v1658_v62 }
 0x230   : > { %2775 = vrcp.f32 %v1683_v6  ;;  %v1673_v17 = vadd.f32 %v3633_v8, %v3631_v15  ;;  %v1651_v51 = vmul.f32 2.0, %v3636_v0 }
 0x231   : > { %v1134_v21 = vpop.f32.mrb[36].mxu1  ;;  %v3643_v24 = vpop.f32.mrb[60].mxu0 }
 0x232   : > { %v2772_v25 = vpop.eup %2771  ;;  %v1684_v2 = vadd.f32 0.0001, %v1673_v17  ;;  %v3649_v28 = vmul.f32 %v1134_v21, %v1134_v21  ;;  %v3652_v31 = vmul.f32 %v1134_v21, %v3565_v4  ;;  %v2415_v32 = vpop.f32.mrb[37].mxu1  ;;  %v1557_v37 = vsub.f32 %v3643_v24, %v3575_v14 }
 0x233   : > { %v2508_v33 = vpop.f32.mrb[61].mxu0  ;;  %v3654_v34 = vmul.f32 %v2772_v25, %v1659_v18  ;;  %v3665_v4 = vmul.f32 %v3567_v5, %v3567_v5  ;;  %v1662_v21 = vadd.f32 0.0001, %v1651_v51 }
 0x234   : > { %2777 = vrcp.f32 %v1684_v2  ;;  %v1674_v41 = vadd.f32 %v3649_v28, %v3647_v26  ;;  %v1652_v24 = vmul.f32 2.0, %v3652_v31 }
 0x235   : > { %v1139_v45 = vpop.f32.mrb[38].mxu1  ;;  %v3661_v46 = vpop.f32.mrb[62].mxu0 }
 0x236   : > { %v2774_v48 = vpop.eup %2773  ;;  %v1685_v50 = vadd.f32 0.0001, %v1674_v41  ;;  %v3667_v54 = vmul.f32 %v1139_v45, %v1139_v45  ;;  %v3670_v14 = vmul.f32 %v1139_v45, %v3567_v5  ;;  %v2418_v57 = vpop.f32.mrb[39].mxu1  ;;  %v1558_v61 = vsub.f32 %v3661_v46, %v3583_v22 }
 0x237   : > { %v2511_v58 = vpop.f32.mrb[63].mxu0  ;;  %v3672_v60 = vmul.f32 %v2774_v48, %v1660_v42  ;;  %v3681_v5 = vmul.f32 %v3569_v7, %v3569_v7 }
 0x238   : > { %2779 = vrcp.f32 %v1685_v50  ;;  %v1675_v13 = vadd.f32 %v3667_v54, %v3665_v4  ;;  %v1663_v50 = vadd.f32 0.0001, %v1652_v24  ;;  %v1653_v57 = vmul.f32 2.0, %v3670_v14 }
 0x239   : > { %v1144_v59 = vpop.f32.mrb[40].mxu1  ;;  %v1349_v62 = vpop.f32.mrb[64].mxu0 }
 0x23a   : > { %v2776_v63 = vpop.eup %2775  ;;  %v1686_v1 = vadd.f32 0.0001, %v1675_v13  ;;  %v3683_v3 = vmul.f32 %v1144_v59, %v1144_v59  ;;  %v3686_v6 = vmul.f32 %v1144_v59, %v3569_v7  ;;  %v2421_v22 = vpop.f32.mrb[41].mxu1  ;;  %v1559_v18 = vsub.f32 %v1349_v62, %v3591_v29 }
 0x23b   : > { %v2514_v10 = vpop.f32.mrb[65].mxu0  ;;  %v3688_v17 = vmul.f32 %v2776_v63, %v1661_v39  ;;  %v3696_v7 = vmul.f32 %v3571_v9, %v3571_v9  ;;  %v1664_v22 = vadd.f32 0.0001, %v1653_v57 }
 0x23c   : > { %2781 = vrcp.f32 %v1686_v1  ;;  %v1676_v19 = vadd.f32 %v3683_v3, %v3681_v5  ;;  %v1654_v10 = vmul.f32 2.0, %v3686_v6 }
 0x23d   : > { %v1149_v25 = vpop.f32.mrb[42].mxu1  ;;  %v1354_v2 = vpop.f32.mrb[66].mxu0 }
 0x23e   : > { %v2778_v32 = vpop.eup %2777  ;;  %v1687_v33 = vadd.f32 0.0001, %v1676_v19  ;;  %v3698_v41 = vmul.f32 %v1149_v25, %v1149_v25  ;;  %v3701_v42 = vmul.f32 %v1149_v25, %v3571_v9  ;;  %v2424_v29 = vpop.f32.mrb[43].mxu1  ;;  %v1560_v46 = vsub.f32 %v1354_v2, %v3600_v38 }
 0x23f   : > { %v2517_v44 = vpop.f32.mrb[67].mxu0  ;;  %v3703_v45 = vmul.f32 %v2778_v32, %v1662_v21  ;;  %v1665_v29 = vadd.f32 0.0001, %v1654_v10 }
 0x240   : > { %2783 = vrcp.f32 %v1687_v33  ;;  %v1677_v48 = vadd.f32 %v3698_v41, %v3696_v7  ;;  %v1655_v44 = vmul.f32 2.0, %v3701_v42 }
 0x241   : > { %v1219_v58 = vpop.f32.mrb[44].mxu1  ;;  %v1359_v13 = vpop.f32.mrb[68].mxu0 }
 0x242   : > { %v2780_v39 = vpop.eup %2779  ;;  %v1688_v51 = vadd.f32 0.0001, %v1677_v48  ;;  %v1546_v9 = vsub.f32 %v1219_v58, %v3573_v12  ;;  %v2451_v59 = vpop.f32.mrb[45].mxu1  ;;  %v1561_v62 = vsub.f32 %v1359_v13, %v3609_v52 }
 0x243   : > { %v2520_v63 = vpop.f32.mrb[69].mxu0  ;;  %v3711_v1 = vmul.f32 %v2780_v39, %v1663_v50 }
 0x244   : > { %2785 = vrcp.f32 %v1688_v51  ;;  %v1601_v38 = vadd.f32 %v1557_v37, %v1546_v9 }
 0x245   : > { %v1224_v19 = vpop.f32.mrb[46].mxu1  ;;  %v1364_v21 = vpop.f32.mrb[70].mxu0 }
 0x246   : > { %v2782_v24 = vpop.eup %2781  ;;  %v1547_v25 = vsub.f32 %v1224_v19, %v3581_v20  ;;  %v2454_v2 = vpop.f32.mrb[47].mxu1  ;;  %v1562_v32 = vsub.f32 %v1364_v21, %v3620_v43  ;;  %v1666_v43 = vadd.f32 0.0001, %v1655_v44  ;;  %v1612_v44 = vadd.f32 0.0009, %v1601_v38 }
 0x247   : > { %v2523_v12 = vpop.f32.mrb[71].mxu0  ;;  %v3716_v33 = vmul.f32 %v2782_v24, %v1664_v22 }
 0x248   : > { %v1602_v52 = vadd.f32 %v1558_v61, %v1547_v25  ;;  %2787 = vrcp.f32 %v1612_v44 }
 0x249   : > { %v1229_v48 = vpop.f32.mrb[48].mxu1  ;;  %v1369_v37 = vpop.f32.mrb[72].mxu0 }
 0x24a   : > { %v2784_v50 = vpop.eup %2783  ;;  %v1548_v57 = vsub.f32 %v1229_v48, %v3589_v27  ;;  %v2457_v58 = vpop.f32.mrb[49].mxu1  ;;  %v1563_v13 = vsub.f32 %v1369_v37, %v3633_v8 }
 0x24b   : > { %v2526_v39 = vpop.f32.mrb[73].mxu0  ;;  %v3721_v20 = vmul.f32 %v2784_v50, %v1665_v29 }
 0x24c   : > { %v1603_v51 = vadd.f32 %v1559_v18, %v1548_v57 }
 0x24d   : > { %v1234_v9 = vpop.f32.mrb[50].mxu1  ;;  %v1374_v59 = vpop.f32.mrb[74].mxu0 }
 0x24e   : > { %v2786_v63 = vpop.eup %2785  ;;  %v1549_v61 = vsub.f32 %v1234_v9, %v3598_v36  ;;  %v2460_v22 = vpop.f32.mrb[51].mxu1  ;;  %v1564_v10 = vsub.f32 %v1374_v59, %v3649_v28 }
 0x24f   : > { %v2529_v19 = vpop.f32.mrb[75].mxu0  ;;  %v3725_v21 = vmul.f32 %v2786_v63, %v1666_v43 }
 0x250   : > { %v1604_v27 = vadd.f32 %v1560_v46, %v1549_v61 }
 0x251   : > { %v1239_v24 = vpop.f32.mrb[52].mxu1  ;;  %v1379_v25 = vpop.f32.mrb[76].mxu0 }
 0x252   : > { %v1550_v8 = vsub.f32 %v1239_v24, %v3607_v49  ;;  %v2463_v2 = vpop.f32.mrb[53].mxu1  ;;  %v1565_v18 = vsub.f32 %v1379_v25, %v3667_v54  ;;  %v2532_v12 = vpop.f32.mrb[77].mxu0 }
 0x254   : > { %v1605_v29 = vadd.f32 %v1561_v62, %v1550_v8 }
 0x255   : > { %v1244_v48 = vpop.f32.mrb[54].mxu1  ;;  %v1384_v37 = vpop.f32.mrb[78].mxu0 }
 0x256   : > { %v1551_v36 = vsub.f32 %v1244_v48, %v3618_v35  ;;  %v2466_v50 = vpop.f32.mrb[55].mxu1  ;;  %v1566_v28 = vsub.f32 %v1384_v37, %v3683_v3  ;;  %v2535_v57 = vpop.f32.mrb[79].mxu0 }
 0x258   : > { %v1606_v58 = vadd.f32 %v1562_v32, %v1551_v36 }
 0x259   : > { %v1249_v46 = vpop.f32.mrb[56].mxu1  ;;  %v1389_v39 = vpop.f32.mrb[80].mxu0 }
 0x25a   : > { %v1552_v49 = vsub.f32 %v1249_v46, %v3631_v15  ;;  %v1567_v43 = vsub.f32 %v1389_v39, %v3698_v41  ;;  %v2469_v54 = vpop.f32.mrb[57].mxu1  ;;  %v2538_v9 = vpop.f32.mrb[81].mxu0 }
 0x25b   : > { %v2788_v41 = vpop.eup %2787 }
 0x25c   : > { %v1607_v62 = vadd.f32 %v1563_v13, %v1552_v49  ;;  %v1613_v13 = vadd.f32 0.0009, %v1602_v52 }
 0x25d   : > { %v1254_v38 = vpop.f32.mrb[58].mxu1  ;;  %v1459_v59 = vpop.f32.mrb[82].mxu0 }
 0x25e   : > { %v1553_v63 = vsub.f32 %v1254_v38, %v3647_v26  ;;  %v1568_v35 = vsub.f32 %v1459_v59, %v3577_v16  ;;  %v2472_v61 = vpop.f32.mrb[59].mxu1  ;;  %v2565_v3 = vpop.f32.mrb[83].mxu0  ;;  %2789 = vrcp.f32 %v1613_v13 }
 0x260   : > { %v3735_v22 = vadd.f32 %v1564_v10, %v1553_v63  ;;  %v1579_v32 = vmul.f32 2.0, %v1568_v35  ;;  %v1614_v10 = vadd.f32 0.0009, %v1603_v51 }
 0x261   : > { %v1259_v19 = vpop.f32.mrb[60].mxu1 }
 0x262   : > { %v1590_v24 = vadd.f32 0.0009, %v1579_v32  ;;  %v1554_v15 = vsub.f32 %v1259_v19, %v3665_v4  ;;  %v2475_v25 = vpop.f32.mrb[61].mxu1  ;;  %2791 = vrcp.f32 %v1614_v10 }
 0x264   : > { %v1624_v8 = vmul.f32 %v2788_v41, %v1590_v24  ;;  %v3738_v2 = vadd.f32 %v1565_v18, %v1554_v15  ;;  %v1615_v18 = vadd.f32 0.0009, %v1604_v27 }
 0x265   : > { %v1264_v12 = vpop.f32.mrb[62].mxu1 }
 0x266   : > { %v1711_v26 = vmul.f32 %v3613_v56, %v1624_v8  ;;  %v1555_v16 = vsub.f32 %v1264_v12, %v3681_v5  ;;  %v2478_v44 = vpop.f32.mrb[63].mxu1  ;;  %2793 = vrcp.f32 %v1615_v18  ;;  %v1616_v5 = vadd.f32 0.0009, %v1605_v29 }
 0x267   : > { %v1753_v27 = vsel %vm1722_vm2, %v1624_v8, 0.0 }
 0x268   : > { %v3742_v48 = vadd.f32 %v1566_v28, %v1555_v16  ;;  %v2790_v54 = vpop.eup %2789  ;;  %2795 = vrcp.f32 %v1616_v5 }
 0x269   : > { %v1269_v37 = vpop.f32.mrb[64].mxu1 }
 0x26a   : > { %v1556_v36 = vsub.f32 %v1269_v37, %v3696_v7  ;;  %v2481_v4 = vpop.f32.mrb[65].mxu1  ;;  %v1619_v37 = vadd.f32 0.0009, %v3735_v22 }
 0x26c   : > { %v3745_v50 = vadd.f32 %v1567_v43, %v1556_v36  ;;  %v1617_v43 = vadd.f32 0.0009, %v1606_v58  ;;  %v2792_v61 = vpop.eup %2791  ;;  %v1618_v58 = vadd.f32 0.0009, %v1607_v62 }
 0x26d   : > { %v1464_v57 = vpop.f32.mrb[66].mxu1 }
 0x26e   : > { %v1569_v52 = vsub.f32 %v1464_v57, %v3585_v23  ;;  %v2568_v46 = vpop.f32.mrb[67].mxu1  ;;  %2797 = vrcp.f32 %v1617_v43 }
 0x26f   : > { %2799 = vrcp.f32 %v1618_v58  ;;  %v1622_v58 = vadd.f32 0.0009, %v3745_v50 }
 0x270   : > { %v1580_v56 = vmul.f32 2.0, %v1569_v52  ;;  %v2794_v12 = vpop.eup %2793  ;;  %2801 = vrcp.f32 %v1619_v37 }
 0x271   : > { %v1469_v39 = vpop.f32.mrb[68].mxu1 }
 0x272   : > { %v1591_v28 = vadd.f32 0.0009, %v1580_v56  ;;  %v1570_v51 = vsub.f32 %v1469_v39, %v3593_v30  ;;  %v2571_v49 = vpop.f32.mrb[69].mxu1  ;;  %v1723_v30 = vsel %vm1722_vm2, %v1711_v26, 0.0  ;;  %v2796_v52 = vpop.eup %2795 }
 0x274   : > { %v1626_v7 = vmul.f32 %v2790_v54, %v1591_v28  ;;  %v1581_v9 = vmul.f32 2.0, %v1570_v51  ;;  %v1620_v28 = vadd.f32 0.0009, %v3738_v2 }
 0x275   : > { %v1474_v38 = vpop.f32.mrb[70].mxu1 }
 0x276   : > { %v1712_v23 = vmul.f32 %v3624_v55, %v1626_v7  ;;  %v1754_v59 = vsel %vm1722_vm2, %v1626_v7, 0.0  ;;  %v1592_v63 = vadd.f32 0.0009, %v1581_v9  ;;  %v1571_v29 = vsub.f32 %v1474_v38, %v3602_v40  ;;  %v2574_v35 = vpop.f32.mrb[71].mxu1 }
 0x277   : > { %v1755_v3 = vadd.f32 %v1754_v59, %v1753_v27  ;;  %2803 = vrcp.f32 %v1620_v28  ;;  %v1621_v59 = vadd.f32 0.0009, %v3742_v48 }
 0x278   : > { %v1724_v32 = vsel %vm1722_vm2, %v1712_v23, 0.0  ;;  %v1628_v19 = vmul.f32 %v2792_v61, %v1592_v63  ;;  %v1582_v24 = vmul.f32 2.0, %v1571_v29  ;;  %v2798_v9 = vpop.eup %2797 }
 0x279   : > { %v1725_v15 = vadd.f32 %v1724_v32, %v1723_v30  ;;  %v1479_v25 = vpop.f32.mrb[72].mxu1  ;;  %2805 = vrcp.f32 %v1621_v59 }
 0x27a   : > { %v1713_v55 = vmul.f32 %v3638_v11, %v1628_v19  ;;  %v1756_v41 = vsel %vm1722_vm2, %v1628_v19, 0.0  ;;  %v1593_v8 = vadd.f32 0.0009, %v1582_v24  ;;  %v1572_v40 = vsub.f32 %v1479_v25, %v3611_v53  ;;  %v2577_v13 = vpop.f32.mrb[73].mxu1 }
 0x27b   : > { %v1757_v16 = vadd.f32 %v1756_v41, %v1755_v3  ;;  %v2800_v3 = vpop.eup %2799  ;;  %2807 = vrcp.f32 %v1622_v58 }
 0x27c   : > { %v1726_v26 = vsel %vm1722_vm2, %v1713_v55, 0.0  ;;  %v1630_v44 = vmul.f32 %v2794_v12, %v1593_v8  ;;  %v1583_v10 = vmul.f32 2.0, %v1572_v40  ;;  %v2802_v8 = vpop.eup %2801 }
 0x27d   : > { %v1727_v62 = vadd.f32 %v1726_v26, %v1725_v15  ;;  %v1484_v36 = vpop.f32.mrb[74].mxu1 }
 0x27e   : > { %v1714_v4 = vmul.f32 %v3654_v34, %v1630_v44  ;;  %v1758_v11 = vsel %vm1722_vm2, %v1630_v44, 0.0  ;;  %v1594_v18 = vadd.f32 0.0009, %v1583_v10  ;;  %v1573_v57 = vsub.f32 %v1484_v36, %v3622_v47  ;;  %v2580_v53 = vpop.f32.mrb[75].mxu1 }
 0x27f   : > { %v1759_v46 = vadd.f32 %v1758_v11, %v1757_v16 }
 0x280   : > { %v1728_v56 = vsel %vm1722_vm2, %v1714_v4, 0.0  ;;  %v1632_v5 = vmul.f32 %v2796_v52, %v1594_v18  ;;  %v1584_v39 = vmul.f32 2.0, %v1573_v57 }
 0x281   : > { %v1729_v22 = vadd.f32 %v1728_v56, %v1727_v62  ;;  %v1489_v51 = vpop.f32.mrb[76].mxu1  ;;  %v2804_v36 = vpop.eup %2803 }
 0x282   : > { %v1715_v49 = vmul.f32 %v3672_v60, %v1632_v5  ;;  %v1760_v34 = vsel %vm1722_vm2, %v1632_v5, 0.0  ;;  %v1595_v54 = vadd.f32 0.0009, %v1584_v39  ;;  %v1574_v7 = vsub.f32 %v1489_v51, %v3636_v0  ;;  %v2583_v47 = vpop.f32.mrb[77].mxu1 }
 0x283   : > { %v1761_v43 = vadd.f32 %v1760_v34, %v1759_v46  ;;  %v2806_v39 = vpop.eup %2805 }
 0x284   : > { %v1730_v27 = vsel %vm1722_vm2, %v1715_v49, 0.0  ;;  %v1634_v38 = vmul.f32 %v2798_v9, %v1595_v54  ;;  %v1585_v23 = vmul.f32 2.0, %v1574_v7 }
 0x285   : > { %v1731_v2 = vadd.f32 %v1730_v27, %v1729_v22  ;;  %v1494_v63 = vpop.f32.mrb[78].mxu1 }
 0x286   : > { %v1716_v29 = vmul.f32 %v3688_v17, %v1634_v38  ;;  %v1762_v60 = vsel %vm1722_vm2, %v1634_v38, 0.0  ;;  %v1596_v35 = vadd.f32 0.0009, %v1585_v23  ;;  %v1575_v61 = vsub.f32 %v1494_v63, %v3652_v31  ;;  %v2586_v0 = vpop.f32.mrb[79].mxu1 }
 0x287   : > { %v1763_v30 = vadd.f32 %v1762_v60, %v1761_v43 }
 0x288   : > { %v1732_v32 = vsel %vm1722_vm2, %v1716_v29, 0.0  ;;  %v1636_v19 = vmul.f32 %v2800_v3, %v1596_v35  ;;  %v1586_v24 = vmul.f32 2.0, %v1575_v61 }
 0x289   : > { %v1733_v48 = vadd.f32 %v1732_v32, %v1731_v2  ;;  %v1499_v15 = vpop.f32.mrb[80].mxu1 }
 0x28a   : > { %v1717_v25 = vmul.f32 %v3703_v45, %v1636_v19  ;;  %v1764_v17 = vsel %vm1722_vm2, %v1636_v19, 0.0  ;;  %v1597_v55 = vadd.f32 0.0009, %v1586_v24  ;;  %v1576_v41 = vsub.f32 %v1499_v15, %v3670_v14  ;;  %v2589_v31 = vpop.f32.mrb[81].mxu1 }
 0x28b   : > { %v1765_v40 = vadd.f32 %v1764_v17, %v1763_v30 }
 0x28c   : > { %v1734_v13 = vsel %vm1722_vm2, %v1717_v25, 0.0  ;;  %v1638_v12 = vmul.f32 %v2802_v8, %v1597_v55  ;;  %v1587_v16 = vmul.f32 2.0, %v1576_v41 }
 0x28d   : > { %v1735_v26 = vadd.f32 %v1734_v13, %v1733_v48  ;;  %v1504_v44 = vpop.f32.mrb[82].mxu1 }
 0x28e   : > { %v1718_v50 = vmul.f32 %v3711_v1, %v1638_v12  ;;  %v1766_v10 = vsel %vm1722_vm2, %v1638_v12, 0.0  ;;  %v1598_v45 = vadd.f32 0.0009, %v1587_v16  ;;  %v1577_v37 = vsub.f32 %v1504_v44, %v3686_v6  ;;  %v2592_v62 = vpop.f32.mrb[83].mxu1 }
 0x28f   : > { %v1767_v14 = vadd.f32 %v1766_v10, %v1765_v40 }
 0x290   : > { %v1736_v4 = vsel %vm1722_vm2, %v1718_v50, 0.0  ;;  %v1640_v11 = vmul.f32 %v2804_v36, %v1598_v45  ;;  %v1588_v18 = vmul.f32 2.0, %v1577_v37 }
 0x291   : > { %v1737_v57 = vadd.f32 %v1736_v4, %v1735_v26  ;;  %v1509_v53 = vpop.f32.mrb[84].mxu1 }
 0x292   : > { %v1719_v52 = vmul.f32 %v3716_v33, %v1640_v11  ;;  %v1768_v46 = vsel %vm1722_vm2, %v1640_v11, 0.0  ;;  %v1599_v56 = vadd.f32 0.0009, %v1588_v18  ;;  %v1578_v1 = vsub.f32 %v1509_v53, %v3701_v42  ;;  %v2595_v5 = vpop.f32.mrb[85].mxu1  ;;  %v2808_v33 = vpop.eup %2807 }
 0x293   : > { %v1769_v28 = vadd.f32 %v1768_v46, %v1767_v14 }
 0x294   : > { %v1738_v6 = vsel %vm1722_vm2, %v1719_v52, 0.0  ;;  %v1642_v22 = vmul.f32 %v2806_v39, %v1599_v56  ;;  %v1589_v51 = vmul.f32 2.0, %v1578_v1 }
 0x295   : > { %v1739_v49 = vadd.f32 %v1738_v6, %v1737_v57 }
 0x296   : > { %v1720_v34 = vmul.f32 %v3721_v20, %v1642_v22  ;;  %v1770_v54 = vsel %vm1722_vm2, %v1642_v22, 0.0  ;;  %v1600_v7 = vadd.f32 0.0009, %v1589_v51 }
 0x297   : > { %v1771_v47 = vadd.f32 %v1770_v54, %v1769_v28 }
 0x298   : > { %v1740_v9 = vsel %vm1722_vm2, %v1720_v34, 0.0  ;;  %v1644_v42 = vmul.f32 %v2808_v33, %v1600_v7 }
 0x299   : > { %v1741_v43 = vadd.f32 %v1740_v9, %v1739_v49 }
 0x29a   : > { %v1721_v27 = vmul.f32 %v3725_v21, %v1644_v42  ;;  %v1772_v38 = vsel %vm1742_vm3, %v1644_v42, 0.0 }
 0x29b   : > { %v1773_v23 = vadd.f32 %v1772_v38, %v1771_v47 }
 0x29c   : > { %v1743_v59 = vsel %vm1742_vm3, %v1721_v27, 0.0 }
 0x29d   : > { %v1744_v2 = vadd.f32 %v1743_v59, %v1741_v43  ;;  %v1774_v20 = vrot.slane %v1773_v23, 4 }
 0x29f   : > { %v1745_v63 = vrot.slane %v1744_v2, 4  ;;  %v1775_v29 = vadd.f32 %v1774_v20, %v1773_v23 }
 0x2a1   : > { %v1746_v60 = vadd.f32 %v1745_v63, %v1744_v2  ;;  %v1776_v35 = vrot.slane %v1775_v29, 2 }
 0x2a3   : > { %v1777_v61 = vadd.f32 %v1776_v35, %v1775_v29  ;;  %v1747_v0 = vrot.slane %v1746_v60, 2 }
 0x2a5   : > { %v1778_v3 = vrot.slane %v1777_v61, 1  ;;  %v1748_v21 = vadd.f32 %v1747_v0, %v1746_v60 }
 0x2a7   : > { %v1749_v30 = vrot.slane %v1748_v21, 1  ;;  %v1779_v32 = vadd.f32 %v1778_v3, %v1777_v61 }
 0x2a9   : > { %v1750_v19 = vadd.f32 %v1749_v30, %v1748_v21  ;;  %1780 = vst.msk [vmem:[%s250_s16] sm:$0x1] %vm1751_vm4, %v1779_v32 }
 0x2ab   : > { %1752 = vst.msk [vmem:[%s232_s25] sm:$0x1] %vm1751_vm4, %v1750_v19 }
 0x2ac   : > { %2822 = shalt.err (!%p2819_p3)
}
 0x2ad   : > { %s2823_s11 = scalar_lea.hbm %s3800_s7, 16  ;;  %s2827_s14 = scalar_lea.hbm %s3846_s4, 96 }
 0x2ae   : > { %p2824_p4 = scmp.ne.s32.totalorder %s3800_s7, %s2823_s11  ;;  %p2828_p9 = scmp.lt.u32.totalorder %s3800_s7, %s3846_s4 }
 0x2af   : > { %p2829_p10 = scmp.lt.u32.totalorder %s2827_s14, %s2823_s11  ;;  %p2831_p12 = scmp.lt.u32.totalorder %s2823_s11, %s3800_s7 }
 0x2b0   : > { %p2825_p7 = pnand %p2824_p4, %p2945_p5 }
 0x2b1   : > { %p2830_p11 = por %p2829_p10, %p2828_p9 }
 0x2b2   : > { %p2826_p8 = pneg %p2825_p7 }
 0x2b3   : > { %p2832_p13 = por %p2831_p12, %p2830_p11 }
 0x2b5   : > { %p2833_p0 = pnand %p2832_p13, %p2826_p8 }
 0x2b7   : > { %2836 = shalt.err (!%p2833_p0)
}
 0x2b8   : > { %2723 = dma.vmem_to_hbm [thread:$0]  (%p2945_p5), %s3802_s26, 16, %s3800_s7, %s1782_s17  }
 0x2b9 PF: > { %p2729_p1 = scmp.ge.s32.totalorder %s2871_s21, 2  ;;  %s1812_s23 = sand.u32 1, %s2859_s18  }
 0x2ba   : > { %s1813_s25 = scalar_lea.sflag [#allocation3], %s1812_s23 }
 0x2bb   : > { %p2726_p2 = pnand %p2729_p1, %p2949_p6 }
 0x2bd   : > { %2854 = dma.done.wait (!%p2726_p2), %s1813_s25, 16  }
 0x2be   : > { %2856 = vsyncadd (!%p2726_p2), %s1813_s25, 4294967280  ;;  %p16_p3 = scmp.ge.s32.totalorder %s2932_s24, 8   ;;  %s3850_s18 = smov %s2863_s19 }
 0x2bf   : > { %s3851_s19 = smov %s2867_s20  ;;  %s3852_s20 = smov %s2943_s27 }
 0x2c0   : > { %s3853_s21 = smov %s2932_s24  ;;  %18 = sbr.rel (!%p16_p3) target bundleno = 3 (0x3), region = 86 }
 0x2c7   :  { %1823 = vsyncpa [#allocation3], 1 }
 0x2c8   :  { %1825 = vsyncpa [#allocation3 + $0x1], 1 }

</bundles_post_ra>
